<compile_context>
chip_gen: v7x
topology: tpu7x:2x2x1
jax: 0.10.0
libtpu: 0.0.40
codegen_flags: <defaults>
</compile_context>

<pallas_src>
import jax
import jax.numpy as jnp
from jax.experimental import pallas as pl
from jax.experimental.pallas import tpu as pltpu


def _leaky_relu(x, slope=0.2):
    return jnp.where(x >= 0, x, slope * x)


# ----------------------------------------------------------------------------
# Fused decoder kernel: hidden MLP recomputed per tile + tiled output proj.
# ----------------------------------------------------------------------------
def decoder_kernel(x_ref, w1_ref, b1_ref, w2_ref, b2_ref, w3_ref, b3_ref,
                   o_ref):
    # Hidden layers: trivially small (B x latent, latent x hidden, hidden x
    # hidden); recomputing them per output tile is free relative to the W3
    # tile DMA, and avoids a separate kernel + HBM round trip for h.
    h = jnp.dot(x_ref[...], w1_ref[...], preferred_element_type=jnp.float32)
    h = _leaky_relu(h + b1_ref[...])
    h = jnp.dot(h, w2_ref[...], preferred_element_type=jnp.float32)
    h = _leaky_relu(h + b2_ref[...])

    # Output projection for this lane tile of W3.
    y = jnp.dot(h, w3_ref[...], preferred_element_type=jnp.float32)
    y = y + b3_ref[...]
    o_ref[...] = jax.nn.sigmoid(y).astype(o_ref.dtype)


def run_decoder(x, w1, b1, w2, b2, w3, b3, *, tn=32768):
    B, L = x.shape
    H = w1.shape[1]
    N = w3.shape[1]
    n_tiles = pl.cdiv(N, tn)  # partial last block: reads padded, writes masked

    return pl.pallas_call(
        decoder_kernel,
        out_shape=jax.ShapeDtypeStruct((B, N), jnp.float32),
        grid_spec=pltpu.PrefetchScalarGridSpec(
            num_scalar_prefetch=0,
            grid=(n_tiles,),
            in_specs=[
                pl.BlockSpec((B, L), lambda j: (0, 0)),   # x
                pl.BlockSpec((L, H), lambda j: (0, 0)),   # w1
                pl.BlockSpec((1, H), lambda j: (0, 0)),   # b1
                pl.BlockSpec((H, H), lambda j: (0, 0)),   # w2
                pl.BlockSpec((1, H), lambda j: (0, 0)),   # b2
                pl.BlockSpec((H, tn), lambda j: (0, j)),  # w3 (streamed)
                pl.BlockSpec((1, tn), lambda j: (0, j)),  # b3 (streamed)
            ],
            out_specs=pl.BlockSpec((B, tn), lambda j: (0, j)),
        ),
        compiler_params=pltpu.CompilerParams(
            dimension_semantics=("parallel",)),
    )(x, w1, b1, w2, b2, w3, b3)


# ----------------------------------------------------------------------------
# Decoder wrapper + pure-JAX reference
# ----------------------------------------------------------------------------
def decoder_forward(x, params):
    w1, b1, w2, b2, w3, b3 = params
    y = run_decoder(x, w1, b1, w2, b2, w3, b3)
    B = x.shape[0]
    # Matches torch: x_hat.view(B, 3, 428, 240)  (done in plain JAX)
    return y.reshape(B, 3, 428, 240)


def decoder_reference(x, params):
    w1, b1, w2, b2, w3, b3 = params
    h = _leaky_relu(x @ w1 + b1)
    h = _leaky_relu(h @ w2 + b2)
    y = jax.nn.sigmoid(h @ w3 + b3)
    return y.reshape(x.shape[0], 3, 428, 240)


def init_params(key, latent_dim, hidden_dim, output_dim):
    ks = jax.random.split(key, 6)
    scale1 = 1.0 / jnp.sqrt(latent_dim)
    scale2 = 1.0 / jnp.sqrt(hidden_dim)
    # Weights stored as (in, out); equivalent to torch's (out, in) transposed.
    w1 = jax.random.uniform(ks[0], (latent_dim, hidden_dim), jnp.float32,
                            -scale1, scale1)
    b1 = jax.random.uniform(ks[1], (1, hidden_dim), jnp.float32, -scale1, scale1)
    w2 = jax.random.uniform(ks[2], (hidden_dim, hidden_dim), jnp.float32,
                            -scale2, scale2)
    b2 = jax.random.uniform(ks[3], (1, hidden_dim), jnp.float32, -scale2, scale2)
    w3 = jax.random.uniform(ks[4], (hidden_dim, output_dim), jnp.float32,
                            -scale2, scale2)
    b3 = jax.random.uniform(ks[5], (1, output_dim), jnp.float32, -scale2, scale2)
    return (w1, b1, w2, b2, w3, b3)


if __name__ == "__main__":
    # Small latent/hidden dims; output_dim is fixed by the hard-coded
    # view(B, 3, 428, 240) in the PyTorch forward.
    B, LATENT, HIDDEN = 2, 16, 32
    OUTPUT = 3 * 428 * 240  # 308160

    key = jax.random.PRNGKey(0)
    k_x, k_p = jax.random.split(key)
    x = jax.random.normal(k_x, (B, LATENT), jnp.float32)
    params = init_params(k_p, LATENT, HIDDEN, OUTPUT)

    out = jax.jit(decoder_forward)(x, params)
    out = jax.block_until_ready(out)

    ref = decoder_reference(x, params)
    assert out.shape == (B, 3, 428, 240), out.shape
    assert jnp.allclose(out, ref, atol=1e-5, rtol=1e-5), "mismatch vs reference"

    print("KERNEL_OK")
</pallas_src>

<mosaic_0001>
module attributes {stable_mosaic.version = 11 : i64} {
  func.func @decoder_kernel(%arg0: i32, %arg1: memref<2x16xf32, #tpu.memory_space<vmem>>, %arg2: memref<16x32xf32, #tpu.memory_space<vmem>>, %arg3: memref<1x32xf32, #tpu.memory_space<vmem>>, %arg4: memref<32x32xf32, #tpu.memory_space<vmem>>, %arg5: memref<1x32xf32, #tpu.memory_space<vmem>>, %arg6: memref<32x32768xf32, #tpu.memory_space<vmem>>, %arg7: memref<1x32768xf32, #tpu.memory_space<vmem>>, %arg8: memref<2x32768xf32, #tpu.memory_space<vmem>>) attributes {dimension_semantics = [#tpu.dimension_semantics<parallel>], iteration_bounds = array<i64: 10>, scalar_prefetch = 0 : i64, scratch_operands = 0 : i64, tpu.core_type = #tpu.core_type<tc>, window_params = [{pipeline_mode = #tpu.pipeline_mode<synchronous>, transform_indices = @transform_0, window_bounds = array<i64: 2, 16>}, {pipeline_mode = #tpu.pipeline_mode<synchronous>, transform_indices = @transform_1, window_bounds = array<i64: 16, 32>}, {pipeline_mode = #tpu.pipeline_mode<synchronous>, transform_indices = @transform_2, window_bounds = array<i64: 1, 32>}, {pipeline_mode = #tpu.pipeline_mode<synchronous>, transform_indices = @transform_3, window_bounds = array<i64: 32, 32>}, {pipeline_mode = #tpu.pipeline_mode<synchronous>, transform_indices = @transform_4, window_bounds = array<i64: 1, 32>}, {transform_indices = @transform_5, window_bounds = array<i64: 32, 32768>}, {transform_indices = @transform_6, window_bounds = array<i64: 1, 32768>}, {transform_indices = @transform_7, window_bounds = array<i64: 2, 32768>}]} {
    %c0 = arith.constant 0 : index
    %c0_0 = arith.constant 0 : index
    %0 = vector.load %arg1[%c0, %c0_0] : memref<2x16xf32, #tpu.memory_space<vmem>>, vector<2x16xf32>
    %c0_1 = arith.constant 0 : index
    %c0_2 = arith.constant 0 : index
    %1 = vector.load %arg2[%c0_1, %c0_2] : memref<16x32xf32, #tpu.memory_space<vmem>>, vector<16x32xf32>
    %cst = arith.constant dense<0.000000e+00> : vector<2x32xf32>
    %2 = tpu.matmul %0, %1, %cst {dimension_numbers = #tpu.dot_dimension_numbers<[1], [0], [0], [1], [0, 0, 1, 1], [], []>} : vector<2x16xf32>, vector<16x32xf32>, vector<2x32xf32> -> vector<2x32xf32>
    %c0_3 = arith.constant 0 : index
    %c0_4 = arith.constant 0 : index
    %3 = vector.load %arg3[%c0_3, %c0_4] : memref<1x32xf32, #tpu.memory_space<vmem>>, vector<1x32xf32>
    %4 = vector.broadcast %3 : vector<1x32xf32> to vector<2x32xf32>
    %5 = arith.addf %2, %4 : vector<2x32xf32>
    %cst_5 = arith.constant 0.000000e+00 : f32
    %6 = vector.broadcast %cst_5 : f32 to vector<2x32xf32>
    %7 = arith.cmpf oge, %5, %6 : vector<2x32xf32>
    %cst_6 = arith.constant 2.000000e-01 : f32
    %8 = vector.broadcast %cst_6 : f32 to vector<2x32xf32>
    %9 = arith.mulf %8, %5 : vector<2x32xf32>
    %10 = arith.select %7, %5, %9 : vector<2x32xi1>, vector<2x32xf32>
    %c0_7 = arith.constant 0 : index
    %c0_8 = arith.constant 0 : index
    %11 = vector.load %arg4[%c0_7, %c0_8] : memref<32x32xf32, #tpu.memory_space<vmem>>, vector<32x32xf32>
    %cst_9 = arith.constant dense<0.000000e+00> : vector<2x32xf32>
    %12 = tpu.matmul %10, %11, %cst_9 {dimension_numbers = #tpu.dot_dimension_numbers<[1], [0], [0], [1], [0, 0, 1, 1], [], []>} : vector<2x32xf32>, vector<32x32xf32>, vector<2x32xf32> -> vector<2x32xf32>
    %c0_10 = arith.constant 0 : index
    %c0_11 = arith.constant 0 : index
    %13 = vector.load %arg5[%c0_10, %c0_11] : memref<1x32xf32, #tpu.memory_space<vmem>>, vector<1x32xf32>
    %14 = vector.broadcast %13 : vector<1x32xf32> to vector<2x32xf32>
    %15 = arith.addf %12, %14 : vector<2x32xf32>
    %cst_12 = arith.constant 0.000000e+00 : f32
    %16 = vector.broadcast %cst_12 : f32 to vector<2x32xf32>
    %17 = arith.cmpf oge, %15, %16 : vector<2x32xf32>
    %cst_13 = arith.constant 2.000000e-01 : f32
    %18 = vector.broadcast %cst_13 : f32 to vector<2x32xf32>
    %19 = arith.mulf %18, %15 : vector<2x32xf32>
    %20 = arith.select %17, %15, %19 : vector<2x32xi1>, vector<2x32xf32>
    %c0_14 = arith.constant 0 : index
    %c0_15 = arith.constant 0 : index
    %21 = vector.load %arg6[%c0_14, %c0_15] : memref<32x32768xf32, #tpu.memory_space<vmem>>, vector<32x32768xf32>
    %cst_16 = arith.constant dense<0.000000e+00> : vector<2x32768xf32>
    %22 = tpu.matmul %20, %21, %cst_16 {dimension_numbers = #tpu.dot_dimension_numbers<[1], [0], [0], [1], [0, 0, 1, 1], [], []>} : vector<2x32xf32>, vector<32x32768xf32>, vector<2x32768xf32> -> vector<2x32768xf32>
    %c0_17 = arith.constant 0 : index
    %c0_18 = arith.constant 0 : index
    %23 = vector.load %arg7[%c0_17, %c0_18] : memref<1x32768xf32, #tpu.memory_space<vmem>>, vector<1x32768xf32>
    %24 = vector.broadcast %23 : vector<1x32768xf32> to vector<2x32768xf32>
    %25 = arith.addf %22, %24 : vector<2x32768xf32>
    %26 = arith.negf %25 : vector<2x32768xf32>
    %27 = math.exp %26 : vector<2x32768xf32>
    %cst_19 = arith.constant 1.000000e+00 : f32
    %28 = vector.broadcast %cst_19 : f32 to vector<2x32768xf32>
    %29 = arith.addf %28, %27 : vector<2x32768xf32>
    %30 = arith.divf %28, %29 : vector<2x32768xf32>
    %c0_20 = arith.constant 0 : index
    %c0_21 = arith.constant 0 : index
    %31 = vector.load %arg8[%c0_20, %c0_21] : memref<2x32768xf32, #tpu.memory_space<vmem>>, vector<2x32768xf32>
    tpu.vector_store %arg8[%c0_20, %c0_21], %30 {strides = array<i32>} : memref<2x32768xf32, #tpu.memory_space<vmem>>, vector<2x32768xf32>,
    return
  }
  func.func @transform_0(%arg0: i32) -> (i32, i32) {
    %c0_i32 = arith.constant 0 : i32
    %c0_i32_0 = arith.constant 0 : i32
    %c0_i32_1 = arith.constant 0 : i32
    return %c0_i32, %c0_i32_0 : i32, i32
  }
  func.func @transform_1(%arg0: i32) -> (i32, i32) {
    %c0_i32 = arith.constant 0 : i32
    %c0_i32_0 = arith.constant 0 : i32
    %c0_i32_1 = arith.constant 0 : i32
    return %c0_i32, %c0_i32_0 : i32, i32
  }
  func.func @transform_2(%arg0: i32) -> (i32, i32) {
    %c0_i32 = arith.constant 0 : i32
    %c0_i32_0 = arith.constant 0 : i32
    %c0_i32_1 = arith.constant 0 : i32
    return %c0_i32, %c0_i32_0 : i32, i32
  }
  func.func @transform_3(%arg0: i32) -> (i32, i32) {
    %c0_i32 = arith.constant 0 : i32
    %c0_i32_0 = arith.constant 0 : i32
    %c0_i32_1 = arith.constant 0 : i32
    return %c0_i32, %c0_i32_0 : i32, i32
  }
  func.func @transform_4(%arg0: i32) -> (i32, i32) {
    %c0_i32 = arith.constant 0 : i32
    %c0_i32_0 = arith.constant 0 : i32
    %c0_i32_1 = arith.constant 0 : i32
    return %c0_i32, %c0_i32_0 : i32, i32
  }
  func.func @transform_5(%arg0: i32) -> (i32, i32) {
    %c0_i32 = arith.constant 0 : i32
    %c0_i32_0 = arith.constant 0 : i32
    return %c0_i32, %arg0 : i32, i32
  }
  func.func @transform_6(%arg0: i32) -> (i32, i32) {
    %c0_i32 = arith.constant 0 : i32
    %c0_i32_0 = arith.constant 0 : i32
    return %c0_i32, %arg0 : i32, i32
  }
  func.func @transform_7(%arg0: i32) -> (i32, i32) {
    %c0_i32 = arith.constant 0 : i32
    %c0_i32_0 = arith.constant 0 : i32
    return %c0_i32, %arg0 : i32, i32
  }
}

</mosaic_0001>

<bundles_post_ra>
// kernel: decoder_forward.1
= control target key start
LH: loop header
LB: loop body
LE: loop exit
PB: predicated region body
PF: predicated region fallthrough
CT: control target
= control target key end

     0   :  { %s25527_s0 = inlined_call_operand.hbm [shape: f32[2,16], index: 0, kind: input, shape index: {}]   ;;  %s25528_s1 = inlined_call_operand.hbm [shape: f32[16,32], index: 1, kind: input, shape index: {}]   ;;  %s25529_s2 = inlined_call_operand.hbm [shape: f32[1,32], index: 2, kind: input, shape index: {}]   ;;  %s25530_s3 = inlined_call_operand.hbm [shape: f32[32,32], index: 3, kind: input, shape index: {}]   ;;  %s25531_s4 = inlined_call_operand.hbm [shape: f32[1,32], index: 4, kind: input, shape index: {}]   ;;  %s25532_s5 = inlined_call_operand.hbm [shape: f32[32,308160], index: 5, kind: input, shape index: {}]   ;;  %s25533_s6 = inlined_call_operand.hbm [shape: f32[1,308160], index: 6, kind: input, shape index: {}]   ;;  %s25534_s7 = inlined_call_operand.vmem [shape: f32[2,308160], index: 7, kind: output, shape index: {}]  }
   0x1   :  { %26063 = sst [smem:[#allocation219_spill]] %s25534_s7 }
   0x2   :  { %12 = vsyncpa [#allocation3], 0 }
   0x3   :  { %13 = vsyncpa [#allocation5], 0 }
   0x4   :  { %14 = vsyncpa [#allocation8], 0 }
   0x5   :  { %15 = vsyncpa [#allocation11], 0 }
   0x6   :  { %17 = vsyncpa [#allocation11 + $0x1], 0  ;;  %s18885_s24 = smov 0   ;;  %s18887_s25 = smov 0  }
   0x7   :  { %s18889_s26 = smov 0   ;;  %s18891_s27 = smov 0  }
   0x8 LB: > { %s18904_s28 = sadd.s32 4294967295, %s18762_s27   ;;  %s18907_s29 = sadd.s32 1, %s18762_s27   ;;  %s18762_s27 = sphi %s18891_s27, %s27607_s27   ;;  %s18758_s26 = sphi %s18889_s26, %s27611_s26   ;;  %s18754_s25 = sphi %s18887_s25, %s27610_s25   ;;  %s18750_s24 = sphi %s18885_s24, %s27609_s24  }
   0x9   : > { %26064 = sst [smem:[#allocation18_spill]] %s18907_s29  ;;  %s132_s30 = ssub.s32 %s18762_s27, %s18907_s29 }
   0xa   : > { %s135_s8 = sadd.s32 1, %s18758_s26  ;;  %p133_p0 = scmp.eq.s32.totalorder %s132_s30, 0 }
   0xb   : > { %p142_p1 = scmp.ne.s32.totalorder %s18758_s26, %s18754_s25  ;;  %p143_p2 = scmp.eq.s32.totalorder %s18762_s27, 0 }
   0xc   : > { %p148_p3 = scmp.ne.s32.totalorder %s18754_s25, %s18750_s24  ;;  %p25535_p5 = scmp.eq.s32.totalorder %s18904_s28, 0 }
   0xd   : > { %s18917_s9 = scalar_select %p133_p0, %s18758_s26, %s135_s8  }
   0xe   : > { %p18919_p4 = por %p143_p2, %p142_p1  ;;  %p198_p6 = scmp.eq.s32.totalorder %s18904_s28, 9 }
   0xf   : > { %26065 = sst [smem:[#allocation19_spill]] %s18917_s9  ;;  %p15695_p7 = scmp.ge.s32.totalorder %s18762_s27, 1 }
  0x10   : > { %s26066_s10 = scalar_select %p18919_p4, 1, 0 }
  0x11   : > { %p18928_p8 = por %p25535_p5, %p148_p3  ;;  %p211_p9 = scmp.lt.s32.totalorder %s18762_s27, 11 }
  0x12   : > { %p18933_p10 = por %p198_p6, %p142_p1  ;;  %s18828_s14 = smov [#allocation4]  }
  0x13   : > { %s26067_s11 = scalar_select %p18928_p8, 1, 0 }
  0x14   : > { %s26068_s12 = scalar_select %p18933_p10, 1, 0 }
  0x15   : > { %p18937_p11 = pnand %p15695_p7, %p211_p9  ;;  %s234_s15 = sshll.u32 %s18828_s14, 4  ;;  %s18943_s15 = int_to_ptr.vmem [resolvable:$true] %s234_s15 }
  0x16   : > { %s18829_s17 = smov [#allocation7]   ;;  %s18830_s19 = smov [#allocation2]  }
  0x17   : > { %s26069_s13 = scalar_select %p18937_p11, 1, 0 }
  0x18   : > { %p17231_p12 = pneg %p18937_p11  ;;  %s258_s18 = sshll.u32 %s18829_s17, 4  ;;  %s18951_s18 = int_to_ptr.vmem [resolvable:$true] %s258_s18 }
  0x19   : > { %s18953_s20 = sshll.u32 %s18830_s19, 4  ;;  %s18456_s23 = scalar_lea.hbm %s25528_s1, 256  ;;  %s225_s20 = int_to_ptr.vmem [resolvable:$true] %s18953_s20 }
  0x1a   : > { %p18947_p13 = pnand %p17231_p12, %p25535_p5  ;;  %p18457_p0 = scmp.ne.s32.totalorder %s25528_s1, %s18456_s23 }
  0x1b   : > { %p18463_p6 = scmp.lt.u32.totalorder %s18456_s23, %s25528_s1 }
  0x1c   : > { %p18963_p1 = pneg %p18947_p13 }
  0x1e   : > { %p18459_p2 = pnand %p18963_p1, %p18457_p0 }
  0x20   : > { %p18460_p3 = pneg %p18459_p2 }
  0x22   : > { %p18465_p7 = pnand %p18463_p6, %p18460_p3 }
  0x24   : > { %18468 = shalt.err (!%p18465_p7)
}
  0x25   : > { %s18469_s19 = scalar_lea.vmem %s18943_s15, 256  ;;  %p18477_p10 = scmp.lt.s32.totalorder %s18943_s15, %s18943_s15 }
  0x26   : > { %p18470_p9 = scmp.ne.s32.totalorder %s18943_s15, %s18469_s19  ;;  %p18478_p8 = scmp.lt.s32.totalorder %s18469_s19, %s18469_s19 }
  0x28   : > { %p18472_p12 = pnand %p18470_p9, %p18963_p1  ;;  %p18479_p0 = por %p18478_p8, %p18477_p10 }
  0x2a   : > { %p18473_p5 = pneg %p18472_p12 }
  0x2c   : > { %p18480_p2 = pnand %p18479_p0, %p18473_p5 }
  0x2e   : > { %18483 = shalt.err (!%p18480_p2)
}
  0x2f   : > { %s18831_s21 = smov 128   ;;  %s18832_s22 = smov 8  }
  0x30   : > { %17237 = dma.hbm_to_vmem [thread:$0]  (!%p18947_p13), %s25528_s1, 256, %s18943_s15, [#allocation5], %s18831_s21, %s18831_s21, %s18832_s22  }
  0x31   : > { %s18484_s17 = scalar_lea.hbm %s25530_s3, 512 }
  0x32   : > { %p18485_p8 = scmp.ne.s32.totalorder %s25530_s3, %s18484_s17  ;;  %p18491_p3 = scmp.lt.u32.totalorder %s18484_s17, %s25530_s3 }
  0x34   : > { %p18487_p5 = pnand %p18485_p8, %p18963_p1 }
  0x36   : > { %p18488_p10 = pneg %p18487_p5 }
  0x38   : > { %p18493_p6 = pnand %p18491_p3, %p18488_p10 }
  0x3a   : > { %18496 = shalt.err (!%p18493_p6)
}
  0x3b   : > { %s18497_s15 = scalar_lea.vmem %s18951_s18, 512  ;;  %p18505_p0 = scmp.lt.s32.totalorder %s18951_s18, %s18951_s18 }
  0x3c   : > { %p18498_p7 = scmp.ne.s32.totalorder %s18951_s18, %s18497_s15  ;;  %p18506_p2 = scmp.lt.s32.totalorder %s18497_s15, %s18497_s15 }
  0x3e   : > { %p18500_p9 = pnand %p18498_p7, %p18963_p1  ;;  %p18507_p8 = por %p18506_p2, %p18505_p0 }
  0x40   : > { %p18501_p12 = pneg %p18500_p9 }
  0x42   : > { %p18508_p5 = pnand %p18507_p8, %p18501_p12 }
  0x44   : > { %18511 = shalt.err (!%p18508_p5)
}
  0x45   : > { %17243 = dma.hbm_to_vmem [thread:$0]  (!%p18947_p13), %s25530_s3, 512, %s18951_s18, [#allocation8], %s18831_s21, %s18831_s21, %s18832_s22  }
  0x46   : > { %s18512_s24 = scalar_lea.hbm %s25527_s0, 32 }
  0x47   : > { %p18513_p10 = scmp.ne.s32.totalorder %s25527_s0, %s18512_s24  ;;  %p18519_p7 = scmp.lt.u32.totalorder %s18512_s24, %s25527_s0 }
  0x49   : > { %p18515_p3 = pnand %p18513_p10, %p18963_p1 }
  0x4b   : > { %p18516_p6 = pneg %p18515_p3 }
  0x4d   : > { %p18521_p9 = pnand %p18519_p7, %p18516_p6 }
  0x4f   : > { %18524 = shalt.err (!%p18521_p9)
}
  0x50   : > { %s18525_s15 = scalar_lea.vmem %s225_s20, 32  ;;  %p18533_p8 = scmp.lt.s32.totalorder %s225_s20, %s225_s20 }
  0x51   : > { %p18526_p12 = scmp.ne.s32.totalorder %s225_s20, %s18525_s15  ;;  %p18534_p5 = scmp.lt.s32.totalorder %s18525_s15, %s18525_s15 }
  0x53   : > { %p18528_p0 = pnand %p18526_p12, %p18963_p1  ;;  %p18535_p11 = por %p18534_p5, %p18533_p8 }
  0x55   : > { %p18529_p2 = pneg %p18528_p0 }
  0x57   : > { %p18536_p4 = pnand %p18535_p11, %p18529_p2 }
  0x59   : > { %18539 = shalt.err (!%p18536_p4)
}
  0x5a   : > { %17234 = dma.hbm_to_vmem [thread:$0]  (!%p18947_p13), %s25527_s0, 32, %s225_s20, [#allocation3]  }
  0x5b   : > { %s18833_s22 = smov [#allocation6]   ;;  %s18834_s29 = smov [#allocation9]  }
  0x5c   : > { %s248_s7 = sshll.u32 %s18833_s22, 4  ;;  %s272_s9 = sshll.u32 %s18834_s29, 4  ;;  %s249_s7 = int_to_ptr.vmem [resolvable:$true] %s248_s7  ;;  %s273_s9 = int_to_ptr.vmem [resolvable:$true] %s272_s9 }
  0x5d   : > { %s18540_s30 = scalar_lea.hbm %s25529_s2, 16 }
  0x5e   : > { %p18541_p4 = scmp.ne.s32.totalorder %s25529_s2, %s18540_s30  ;;  %p18547_p3 = scmp.lt.u32.totalorder %s18540_s30, %s25529_s2 }
  0x60   : > { %p18543_p11 = pnand %p18541_p4, %p18963_p1 }
  0x62   : > { %p18544_p10 = pneg %p18543_p11 }
  0x64   : > { %p18549_p6 = pnand %p18547_p3, %p18544_p10 }
  0x66   : > { %18552 = shalt.err (!%p18549_p6)
}
  0x67   : > { %s18553_s20 = scalar_lea.vmem %s249_s7, 16  ;;  %s18560_s18 = scalar_lea.vmem %s249_s7, 32 }
  0x68   : > { %p18554_p7 = scmp.ne.s32.totalorder %s249_s7, %s18553_s20  ;;  %p18561_p0 = scmp.lt.s32.totalorder %s249_s7, %s249_s7 }
  0x69   : > { %p18562_p2 = scmp.lt.s32.totalorder %s18560_s18, %s18553_s20 }
  0x6a   : > { %p18556_p9 = pnand %p18554_p7, %p18963_p1 }
  0x6b   : > { %p18563_p8 = por %p18562_p2, %p18561_p0 }
  0x6c   : > { %p18557_p12 = pneg %p18556_p9 }
  0x6e   : > { %p18564_p5 = pnand %p18563_p8, %p18557_p12 }
  0x70   : > { %18567 = shalt.err (!%p18564_p5)
}
  0x71   : > { %17240 = dma.hbm_to_vmem [thread:$0]  (!%p18947_p13), %s25529_s2, 16, %s249_s7, [#allocation5]  }
  0x72   : > { %s18568_s24 = scalar_lea.hbm %s25531_s4, 16 }
  0x73   : > { %p18569_p4 = scmp.ne.s32.totalorder %s25531_s4, %s18568_s24  ;;  %p18575_p3 = scmp.lt.u32.totalorder %s18568_s24, %s25531_s4 }
  0x75   : > { %p18571_p11 = pnand %p18569_p4, %p18963_p1 }
  0x77   : > { %p18572_p10 = pneg %p18571_p11 }
  0x79   : > { %p18577_p6 = pnand %p18575_p3, %p18572_p10 }
  0x7b   : > { %18580 = shalt.err (!%p18577_p6)
}
  0x7c   : > { %s18581_s15 = scalar_lea.vmem %s273_s9, 16  ;;  %s18588_s7 = scalar_lea.vmem %s273_s9, 32 }
  0x7d   : > { %p18582_p7 = scmp.ne.s32.totalorder %s273_s9, %s18581_s15  ;;  %p18589_p0 = scmp.lt.s32.totalorder %s273_s9, %s273_s9 }
  0x7e   : > { %p18590_p2 = scmp.lt.s32.totalorder %s18588_s7, %s18581_s15 }
  0x7f   : > { %p18584_p9 = pnand %p18582_p7, %p18963_p1 }
  0x80   : > { %p18591_p8 = por %p18590_p2, %p18589_p0 }
  0x81   : > { %p18585_p12 = pneg %p18584_p9 }
  0x83   : > { %p18592_p5 = pnand %p18591_p8, %p18585_p12 }
  0x85   : > { %18595 = shalt.err (!%p18592_p5)
}
  0x86   : > { %17246 = dma.hbm_to_vmem [thread:$0]  (!%p18947_p13), %s25531_s4, 16, %s273_s9, [#allocation8]  }
  0x87   : > { %p15701_p4 = scmp.ge.s32.totalorder %s18762_s27, 10 }
  0x88   : > { %p26072_p11 = scmp.ne.s32.totalorder (!%p15701_p4), %s26066_s10, 0 }
  0x89   : > { %279 = sbr.rel (%p15701_p4) target bundleno = 215 (0xd7), region = 36 }
  0x90   : > { %282 = sbr.rel (!%p26072_p11) target bundleno = 179 (0xb3), region = 40  ;;  %s283_s8 = sand.u32 (%p26072_p11), 1, %s18762_s27  }
  0x91   : > { %s285_s21 = sand.u32 (%p26072_p11), 1, %s18758_s26   ;;  %s15703_s29 = sshll.u32 (%p26072_p11), %s18762_s27, 8 }
  0x92   : > { %s15702_s22 = sshll.u32 (%p26072_p11), %s285_s21, 13  ;;  %s289_s23 = ssub.s32 (%p26072_p11), 2408, %s15703_s29 }
  0x93   : > { %p290_p1 = scmp.lt.s32.totalorder (%p26072_p11), %s289_s23, 256  ;;  %s19074_s24 = scalar_lea.sflag (%p26072_p11), [#allocation11], %s283_s8 }
  0x94   : > { %s287_s30 = scalar_lea.vmem (%p26072_p11), [#allocation10], %s15702_s22 }
  0x97   : > { %s27613_s23 = smov (!%p290_p1, %s289_s23), 256 }
  0x98   : > { %s19071_s16 = sshll.u32 %s27613_s23, 9 }
  0x99   : > { %s294_s9 = ssub.s32 131072, %s19071_s16 }
  0x9a   : > { %295 = vsyncadd %s19074_s24, %s294_s9  ;;  %p15705_p13 = scmp.ne.s32.totalorder %s19071_s16, 0  ;;  %s16141_s14 = sshll.u32 %s18762_s27, 15 }
  0x9b   : > { %s19082_s15 = scalar_lea.hbm %s25532_s5, %s16141_s14  ;;  %s15707_s7 = sshll.u32 %s27613_s23, 3 }
  0x9c   : > { %s301_s20 = sshll.u32 %s287_s30, 4  ;;  %s18596_s18 = scalar_lea.hbm %s19082_s15, %s19071_s16  ;;  %s19085_s20 = int_to_ptr.vmem [resolvable:$true] %s301_s20 }
  0x9d   : > { %p18597_p10 = scmp.ne.s32.totalorder %s19082_s15, %s18596_s18  ;;  %s18600_s22 = scalar_lea.hbm %s25532_s5, 1232896 }
  0x9e   : > { %p18601_p7 = scmp.lt.u32.totalorder %s19082_s15, %s25532_s5  ;;  %p18602_p9 = scmp.lt.u32.totalorder %s18600_s22, %s18596_s18 }
  0x9f   : > { %p18598_p3 = pnand %p18597_p10, %p15705_p13  ;;  %p18604_p0 = scmp.lt.u32.totalorder %s18596_s18, %s19082_s15 }
  0xa0   : > { %p18603_p12 = por %p18602_p9, %p18601_p7 }
  0xa1   : > { %p18599_p6 = pneg %p18598_p3 }
  0xa2   : > { %p18605_p2 = por %p18604_p0, %p18603_p12 }
  0xa4   : > { %p18606_p8 = pnand %p18605_p2, %p18599_p6 }
  0xa6   : > { %18609 = shalt.err (!%p18606_p8)
}
  0xa7   : > { %s18610_s30 = scalar_lea.vmem %s19085_s20, %s19071_s16  ;;  %s18835_s14 = smov [#allocation10]  }
  0xa8   : > { %p18611_p5 = scmp.ne.s32.totalorder %s19085_s20, %s18610_s30  ;;  %s18614_s17 = sshll.u32 %s18835_s14, 4  ;;  %s18615_s17 = int_to_ptr.vmem [resolvable:$false] %s18614_s17 }
  0xa9   : > { %s18616_s19 = scalar_lea.vmem %s18615_s17, 262144  ;;  %p18617_p1 = scmp.lt.s32.totalorder %s19085_s20, %s18615_s17 }
  0xaa   : > { %p18612_p4 = pnand %p18611_p5, %p15705_p13  ;;  %p18618_p10 = scmp.lt.s32.totalorder %s18616_s19, %s18610_s30 }
  0xac   : > { %p18613_p11 = pneg %p18612_p4  ;;  %p18619_p3 = por %p18618_p10, %p18617_p1 }
  0xae   : > { %p18620_p7 = pnand %p18619_p3, %p18613_p11 }
  0xb0   : > { %18623 = shalt.err (!%p18620_p7)
}
  0xb1   : > { %s18836_s18 = smov 308224   ;;  %s18837_s8 = smov 32768  }
  0xb2   : > { %307 = dma.hbm_to_vmem [thread:$0]  (%p15705_p13), %s19082_s15, %s19071_s16, %s19085_s20, %s19074_s24, %s18836_s18, %s18837_s8, %s15707_s7  }
  0xb3 PF: > { %p26073_p6 = scmp.ne.s32.totalorder %s26066_s10, 0 }
  0xb4   : > { %s311_s21 = sand.u32 (%p26073_p6), 1, %s18762_s27   ;;  %s313_s22 = sand.u32 (%p26073_p6), 1, %s18758_s26  }
  0xb5   : > { %310 = sbr.rel (!%p26073_p6) target bundleno = 215 (0xd7), region = 44  ;;  %s15710_s29 = sshll.u32 (%p26073_p6), %s313_s22, 8 }
  0xb6   : > { %s15711_s9 = sshll.u32 (%p26073_p6), %s18762_s27, 8  ;;  %s19122_s23 = scalar_lea.sflag (%p26073_p6), [#allocation11], %s311_s21 }
  0xb7   : > { %s317_s30 = ssub.s32 (%p26073_p6), 2408, %s15711_s9  ;;  %s315_s16 = scalar_lea.vmem (%p26073_p6), [#allocation12], %s15710_s29 }
  0xb8   : > { %p318_p9 = scmp.lt.s32.totalorder (%p26073_p6), %s317_s30, 256 }
  0xbc   : > { %s27615_s30 = smov (!%p318_p9, %s317_s30), 256 }
  0xbd   : > { %s19119_s14 = sshll.u32 %s27615_s30, 4 }
  0xbe   : > { %s322_s17 = ssub.s32 4096, %s19119_s14 }
  0xbf   : > { %323 = vsyncadd %s19122_s23, %s322_s17  ;;  %p15713_p13 = scmp.ne.s32.totalorder %s19119_s14, 0  ;;  %s16144_s10 = sshll.u32 %s18762_s27, 12 }
  0xc0   : > { %s19130_s7 = scalar_lea.hbm %s25533_s6, %s16144_s10  ;;  %s328_s20 = sshll.u32 %s315_s16, 4  ;;  %s329_s20 = int_to_ptr.vmem [resolvable:$true] %s328_s20 }
  0xc1   : > { %s18624_s19 = scalar_lea.hbm %s19130_s7, %s19119_s14  ;;  %s18628_s27 = scalar_lea.hbm %s25533_s6, 38528 }
  0xc2   : > { %p18625_p12 = scmp.ne.s32.totalorder %s19130_s7, %s18624_s19  ;;  %p18629_p8 = scmp.lt.u32.totalorder %s19130_s7, %s25533_s6 }
  0xc3   : > { %p18630_p5 = scmp.lt.u32.totalorder %s18628_s27, %s18624_s19  ;;  %p18632_p11 = scmp.lt.u32.totalorder %s18624_s19, %s19130_s7 }
  0xc4   : > { %p18626_p0 = pnand %p18625_p12, %p15713_p13 }
  0xc5   : > { %p18631_p4 = por %p18630_p5, %p18629_p8 }
  0xc6   : > { %p18627_p2 = pneg %p18626_p0 }
  0xc7   : > { %p18633_p1 = por %p18632_p11, %p18631_p4 }
  0xc9   : > { %p18634_p10 = pnand %p18633_p1, %p18627_p2 }
  0xcb   : > { %18637 = shalt.err (!%p18634_p10)
}
  0xcc   : > { %s18638_s29 = scalar_lea.vmem %s329_s20, %s19119_s14  ;;  %s18838_s9 = smov [#allocation12]  }
  0xcd   : > { %p18639_p3 = scmp.ne.s32.totalorder %s329_s20, %s18638_s29  ;;  %s18642_s30 = sshll.u32 %s18838_s9, 4  ;;  %s18643_s30 = int_to_ptr.vmem [resolvable:$false] %s18642_s30 }
  0xce   : > { %s18644_s17 = scalar_lea.vmem %s18643_s30, 8192  ;;  %p18645_p9 = scmp.lt.s32.totalorder %s329_s20, %s18643_s30 }
  0xcf   : > { %p18640_p7 = pnand %p18639_p3, %p15713_p13  ;;  %p18646_p12 = scmp.lt.s32.totalorder %s18644_s17, %s18638_s29 }
  0xd1   : > { %p18641_p6 = pneg %p18640_p7  ;;  %p18647_p0 = por %p18646_p12, %p18645_p9 }
  0xd3   : > { %p18648_p5 = pnand %p18647_p0, %p18641_p6 }
  0xd5   : > { %18651 = shalt.err (!%p18648_p5)
}
  0xd6   : > { %331 = dma.hbm_to_vmem [thread:$0]  (%p15713_p13), %s19130_s7, %s19119_s14, %s329_s20, %s19122_s23  }
  0xd7 PF: > { %p26074_p2 = scmp.ne.s32.totalorder %s26069_s13, 0 }
  0xd9   : > { %337 = sbr.rel (%p26074_p2) target bundleno = 1769 (0x6e9), region = 48 }
  0xe0   : > { %p26075_p8 = scmp.eq.s32.totalorder %s18904_s28, 0 }
  0xe2   : > { %18733 = dma.done.wait (%p26075_p8), [#allocation3], 32   ;;  %p26076_p4 = pmov %p26075_p8 }
  0xe4   : > { %18735 = vsyncadd (%p26076_p4), [#allocation3], 4294967264  ;;  %p26077_p11 = pmov %p26076_p4 }
  0xe5   : > { %p26078_p1 = pmov %p26076_p4 }
  0xe6   : > { %18737 = dma.done.wait (%p26077_p11), [#allocation5], 272  }
  0xe7   : > { %18739 = vsyncadd (%p26078_p1), [#allocation5], 4294967024  ;;  %p26079_p10 = pmov %p26078_p1 }
  0xe8   : > { %p26080_p13 = pmov %p26078_p1 }
  0xe9   : > { %18741 = dma.done.wait (%p26079_p10), [#allocation8], 528  }
  0xea   : > { %18743 = vsyncadd (%p26080_p13), [#allocation8], 4294966768  ;;  %s359_s13 = sand.u32 1, %s18904_s28   ;;  %s19169_s14 = sand.u32 1, %s18754_s25  }
  0xeb   : > { %s15721_s23 = sshll.u32 %s19169_s14, 13  ;;  %s360_s16 = scalar_lea.sflag [#allocation11], %s359_s13 }
  0xec   : > { %s19172_s10 = scalar_lea.vmem [#allocation10], %s15721_s23  ;;  %p26081_p3 = scmp.ne.s32.totalorder %s26067_s11, 0 }
  0xee   : > { %18745 = dma.done.wait (%p26081_p3), %s360_s16, 135168  }
  0xef   : > { %18747 = vsyncadd (%p26081_p3), %s360_s16, 4294832128  ;;  %v18839_v0 = vmov 0.0|0.0   ;;  %vm18840_vm0 = vmmov 0   ;;  %v25540_v1 = vmov 0.0   ;;  %v423_v2 = vld [vmem:[#allocation4] sm:$0xff]  ;;  %v424_v3 = vld [vmem:[#allocation4 + $0x8] sm:$0xff] }
  0xf0   : > { %16176 = vmatprep.subr.bf16.mxu0 %v18839_v0  ;;  %16162 = vmatprep.mubr.msk.f32.mxu0 %vm18840_vm0, %v25540_v1  ;;  %v16177_v4 = vpack.c.bf16 %v424_v3, %v423_v2  ;;  %v509_v5 = vld [vmem:[#allocation7] sm:$0xff]  ;;  %v510_v6 = vld [vmem:[#allocation7 + $0x8] sm:$0xff]  ;;  %vm432_vm1 = vcmask 130048   ;;  %v511_v9 = vld [vmem:[#allocation7 + $0x10] sm:$0xff]  ;;  %vm520_vm3 = vcmask 261120   ;;  %s15722_s11 = sshll.u32 %s19169_s14, 8 }
  0xf1   : > { %16179 = vmatprep.subr.bf16.mxu1 %v18839_v0  ;;  %16173 = vmatprep.mubr.msk.f32.mxu1 %vm18840_vm0, %v25540_v1  ;;  %v16180_v7 = vpack.c.bf16 %v510_v6, %v509_v5  ;;  %v422_v8 = vld [vmem:[#allocation2] sm:$0x3]  ;;  %v512_v10 = vld [vmem:[#allocation7 + $0x18] sm:$0xff]  ;;  %v597_v17 = vld [vmem:[%s19172_s10] sm:$0xff]  ;;  %s20146_s24 = scalar_lea.vmem [#allocation12], %s15722_s11  ;;  %s15723_s15 = sshll.u32 %s19169_s14, 9 }
  0xf2   : > { %16178 = vmatpush3.bf16.msra.mxu0 %v16177_v4  ;;  %v16183_v11 = vpack.c.bf16 %v512_v10, %v511_v9  ;;  %v598_v12 = vld [vmem:[%s19172_s10 + $0x8] sm:$0xff]  ;;  %v600_v14 = vld [vmem:[%s19172_s10 + $0x18] sm:$0xff]  ;;  %v853_v18 = vld [vmem:[%s19172_s10 + $0x800] sm:$0xff]  ;;  %s21895_s7 = scalar_lea.vmem [#allocation13], %s15723_s15   ;;  %p27595_p7 = scmp.ne.s32.totalorder %s26068_s12, 0 }
  0xf3   : > { %16181 = vmatpush3.bf16.msra.mxu1 %v16180_v7  ;;  %v854_v13 = vld [vmem:[%s19172_s10 + $0x808] sm:$0xff]  ;;  %v856_v16 = vld [vmem:[%s19172_s10 + $0x818] sm:$0xff]  ;;  %v16187_v20 = vpack.c.bf16 %v853_v18, %v597_v17  ;;  %v599_v23 = vld [vmem:[%s19172_s10 + $0x10] sm:$0xff]  ;;  %s16113_s20 = sshll.u32 (%p27595_p7), %s18904_s28, 8  ;;  %s16145_s19 = sshll.u32 (%p27595_p7), %s18904_s28, 9 }
  0xf4   : > { %16182 = vmatprep.subr.bf16.mxu1 %v18839_v0  ;;  %v16185_v15 = vpack.c.bf16 %v854_v13, %v598_v12  ;;  %v16193_v19 = vpack.c.bf16 %v856_v16, %v600_v14  ;;  %v15724_v21 = vld [vmem:[#allocation6] ss:$0 sm:$0xff]  ;;  %v855_v24 = vld [vmem:[%s19172_s10 + $0x810] sm:$0xff]  ;;  %v1110_v30 = vld [vmem:[%s19172_s10 + $0x1008] sm:$0xff]  ;;  %s15072_s18 = ssub.s32 (%p27595_p7), 2408, %s16113_s20  ;;  %s27596_s21 = sld [smem:[#allocation219_spill]] (%p27595_p7) }
  0xf5   : > { %16163 = vmatmul.mubr.msk.f32.vlgmr.msra.gmra.mrb[0].mxu0 %vm432_vm1, %v422_v8  ;;  %v16195_v28 = vpack.c.bf16 %v855_v24, %v599_v23  ;;  %v1366_v31 = vld [vmem:[%s19172_s10 + $0x1808] sm:$0xff]  ;;  %v1112_v32 = vld [vmem:[%s19172_s10 + $0x1018] sm:$0xff]  ;;  %v1109_v35 = vld [vmem:[%s19172_s10 + $0x1000] sm:$0xff]  ;;  %p15073_p6 = scmp.lt.s32.totalorder (%p27595_p7), %s15072_s18, 256 }
  0xf6   : > { %3032 = vmatprep.mubr.f32.mxu0 %v25540_v1  ;;  %16186 = vmatprep.subr.bf16.mxu0 %v16185_v15  ;;  %v16189_v33 = vpack.c.bf16 %v1366_v31, %v1110_v30  ;;  %v1368_v34 = vld [vmem:[%s19172_s10 + $0x1818] sm:$0xff]  ;;  %v1365_v36 = vld [vmem:[%s19172_s10 + $0x1800] sm:$0xff]  ;;  %v1111_v39 = vld [vmem:[%s19172_s10 + $0x1010] sm:$0xff] }
  0xf7   : > { %16184 = vmatpush3.bf16.msra.mxu1 %v16183_v11  ;;  %16188 = vmatpush1.bf16.msra.mxu0 %v16187_v20  ;;  %v16197_v37 = vpack.c.bf16 %v1368_v34, %v1112_v32  ;;  %v16191_v38 = vpack.c.bf16 %v1365_v36, %v1109_v35  ;;  %v1367_v40 = vld [vmem:[%s19172_s10 + $0x1810] sm:$0xff]  ;;  %v602_v42 = vld [vmem:[%s19172_s10 + $0x28] sm:$0xff]  ;;  %v604_v44 = vld [vmem:[%s19172_s10 + $0x38] sm:$0xff] }
  0xf8   : > { %16194 = vmatprep.subr.bf16.mxu1 %v16193_v19  ;;  %16190 = vmatprep.subr.bf16.mxu0 %v16189_v33  ;;  %v16199_v41 = vpack.c.bf16 %v1367_v40, %v1111_v39  ;;  %v858_v43 = vld [vmem:[%s19172_s10 + $0x828] sm:$0xff]  ;;  %v860_v46 = vld [vmem:[%s19172_s10 + $0x838] sm:$0xff]  ;;  %v601_v49 = vld [vmem:[%s19172_s10 + $0x20] sm:$0xff] }
  0xf9   : > { %v16201_v45 = vpack.c.bf16 %v858_v43, %v602_v42  ;;  %v16209_v47 = vpack.c.bf16 %v860_v46, %v604_v44  ;;  %v15726_v48 = vld [vmem:[#allocation9] ss:$0 sm:$0xff]  ;;  %v857_v50 = vld [vmem:[%s19172_s10 + $0x820] sm:$0xff]  ;;  %v603_v52 = vld [vmem:[%s19172_s10 + $0x30] sm:$0xff] }
  0xfa   : > { %v859_v53 = vld [vmem:[%s19172_s10 + $0x830] sm:$0xff]  ;;  %v1114_v54 = vld [vmem:[%s19172_s10 + $0x1028] sm:$0xff]  ;;  %v1116_v58 = vld [vmem:[%s19172_s10 + $0x1038] sm:$0xff]  ;;  %v16203_v61 = vpack.c.bf16 %v857_v50, %v601_v49  ;;  %s25109_s22 = scalar_lea.vmem (%p27595_p7), %s27596_s21, %s16145_s19  }
  0xfb   : > { %16192 = vmatpush1.bf16.msra.mxu0 %v16191_v38  ;;  %v1370_v57 = vld [vmem:[%s19172_s10 + $0x1828] sm:$0xff]  ;;  %v1372_v59 = vld [vmem:[%s19172_s10 + $0x1838] sm:$0xff]  ;;  %v16211_v62 = vpack.c.bf16 %v859_v53, %v603_v52  ;;  %v1113_v63 = vld [vmem:[%s19172_s10 + $0x1020] sm:$0xff] }
  0xfc   : > { %16202 = vmatprep.subr.bf16.mxu0 %v16201_v45  ;;  %v1369_v0 = vld [vmem:[%s19172_s10 + $0x1820] sm:$0xff]  ;;  %v16205_v2 = vpack.c.bf16 %v1370_v57, %v1114_v54  ;;  %v16213_v3 = vpack.c.bf16 %v1372_v59, %v1116_v58  ;;  %v1115_v4 = vld [vmem:[%s19172_s10 + $0x1030] sm:$0xff]  ;;  %v606_v6 = vld [vmem:[%s19172_s10 + $0x48] sm:$0xff] }
  0xfd   : > { %v1371_v5 = vld [vmem:[%s19172_s10 + $0x1830] sm:$0xff]  ;;  %v862_v8 = vld [vmem:[%s19172_s10 + $0x848] sm:$0xff]  ;;  %v608_v9 = vld [vmem:[%s19172_s10 + $0x58] sm:$0xff]  ;;  %v16207_v11 = vpack.c.bf16 %v1369_v0, %v1113_v63 }
  0xfe   : > { %v864_v10 = vld [vmem:[%s19172_s10 + $0x858] sm:$0xff]  ;;  %v16215_v12 = vpack.c.bf16 %v1371_v5, %v1115_v4  ;;  %v605_v13 = vld [vmem:[%s19172_s10 + $0x40] sm:$0xff]  ;;  %v16217_v15 = vpack.c.bf16 %v862_v8, %v606_v6  ;;  %v607_v17 = vld [vmem:[%s19172_s10 + $0x50] sm:$0xff] }
  0xff   : > { %v861_v14 = vld [vmem:[%s19172_s10 + $0x840] sm:$0xff]  ;;  %v16225_v16 = vpack.c.bf16 %v864_v10, %v608_v9  ;;  %v863_v18 = vld [vmem:[%s19172_s10 + $0x850] sm:$0xff]  ;;  %v1118_v19 = vld [vmem:[%s19172_s10 + $0x1048] sm:$0xff] }
 0x100   : > { %v1374_v20 = vld [vmem:[%s19172_s10 + $0x1848] sm:$0xff]  ;;  %v16219_v23 = vpack.c.bf16 %v861_v14, %v605_v13  ;;  %v16227_v24 = vpack.c.bf16 %v863_v18, %v607_v17  ;;  %v1375_v30 = vld [vmem:[%s19172_s10 + $0x1850] sm:$0xff]  ;;  %v612_v33 = vld [vmem:[%s19172_s10 + $0x78] sm:$0xff] }
 0x101   : > { %v610_v31 = vld [vmem:[%s19172_s10 + $0x68] sm:$0xff]  ;;  %v868_v34 = vld [vmem:[%s19172_s10 + $0x878] sm:$0xff]  ;;  %v865_v38 = vld [vmem:[%s19172_s10 + $0x860] sm:$0xff] }
 0x102   : > { %v866_v32 = vld [vmem:[%s19172_s10 + $0x868] sm:$0xff]  ;;  %v16241_v40 = vpack.c.bf16 %v868_v34, %v612_v33  ;;  %v867_v42 = vld [vmem:[%s19172_s10 + $0x870] sm:$0xff]  ;;  %v1124_v45 = vld [vmem:[%s19172_s10 + $0x1078] sm:$0xff] }
 0x103   : > { %v16233_v39 = vpack.c.bf16 %v866_v32, %v610_v31  ;;  %v1122_v43 = vld [vmem:[%s19172_s10 + $0x1068] sm:$0xff]  ;;  %v1380_v46 = vld [vmem:[%s19172_s10 + $0x1878] sm:$0xff]  ;;  %v1121_v49 = vld [vmem:[%s19172_s10 + $0x1060] sm:$0xff] }
 0x104   : > { %v1378_v44 = vld [vmem:[%s19172_s10 + $0x1868] sm:$0xff]  ;;  %v1377_v50 = vld [vmem:[%s19172_s10 + $0x1860] sm:$0xff]  ;;  %v16245_v52 = vpack.c.bf16 %v1380_v46, %v1124_v45  ;;  %v1123_v53 = vld [vmem:[%s19172_s10 + $0x1070] sm:$0xff] }
 0x105   : > { %v1379_v54 = vld [vmem:[%s19172_s10 + $0x1870] sm:$0xff]  ;;  %v616_v57 = vld [vmem:[%s19172_s10 + $0x98] sm:$0xff]  ;;  %v16239_v59 = vpack.c.bf16 %v1377_v50, %v1121_v49  ;;  %v1126_v4 = vld [vmem:[%s19172_s10 + $0x1088] sm:$0xff] }
 0x106   : > { %v872_v58 = vld [vmem:[%s19172_s10 + $0x898] sm:$0xff]  ;;  %v1382_v5 = vld [vmem:[%s19172_s10 + $0x1888] sm:$0xff] }
 0x107   : > { %v16257_v0 = vpack.c.bf16 %v872_v58, %v616_v57  ;;  %v1128_v6 = vld [vmem:[%s19172_s10 + $0x1098] sm:$0xff]  ;;  %v16253_v13 = vpack.c.bf16 %v1382_v5, %v1126_v4  ;;  %v618_v17 = vld [vmem:[%s19172_s10 + $0xa8] sm:$0xff] }
 0x108   : > { %v1384_v8 = vld [vmem:[%s19172_s10 + $0x1898] sm:$0xff]  ;;  %v874_v18 = vld [vmem:[%s19172_s10 + $0x8a8] sm:$0xff] }
 0x109   : > { %v16261_v14 = vpack.c.bf16 %v1384_v8, %v1128_v6  ;;  %v1132_v31 = vld [vmem:[%s19172_s10 + $0x10b8] sm:$0xff] }
 0x10a   : > { %v1388_v32 = vld [vmem:[%s19172_s10 + $0x18b8] sm:$0xff] }
 0x10b   : > { %v628_v4 = vld [vmem:[%s19172_s10 + $0xf8] sm:$0xff] }
 0x10c   : > { %v884_v5 = vld [vmem:[%s19172_s10 + $0x8f8] sm:$0xff] }
 0x1c8   : > { %v502_v22 = vpop.f32.mrb[0].mxu0 }
 0x1c9   : > { %v503_v25 = vadd.f32 %v15724_v21, %v502_v22  ;;  %v16164_v26 = vpop.f32.mrb[1].mxu0  ;;  %v1120_v21 = vld [vmem:[%s19172_s10 + $0x1058] sm:$0xff] }
 0x1ca   : > { %v1376_v22 = vld [vmem:[%s19172_s10 + $0x1858] sm:$0xff]  ;;  %v1373_v26 = vld [vmem:[%s19172_s10 + $0x1840] sm:$0xff] }
 0x1cb   : > { %vm506_vm2 = vcmp.ge.f32.partialorder %v503_v25, 0.0  ;;  %v507_v27 = vmul.f32 0.2, %v503_v25 }
 0x1cd   : > { %v508_v29 = vsel %vm506_vm2, %v503_v25, %v507_v27  ;;  %v1117_v25 = vld [vmem:[%s19172_s10 + $0x1040] sm:$0xff]  ;;  %v16221_v27 = vpack.c.bf16 %v1374_v20, %v1118_v19  ;;  %v620_v19 = vld [vmem:[%s19172_s10 + $0xb8] sm:$0xff] }
 0x1ce   : > { %16174 = vmatmul.mubr.msk.f32.vlgmr.msra.gmra.mrb[0].mxu1 %vm520_vm3, %v508_v29  ;;  %v1119_v29 = vld [vmem:[%s19172_s10 + $0x1050] sm:$0xff]  ;;  %v16223_v35 = vpack.c.bf16 %v1373_v26, %v1117_v25  ;;  %v876_v20 = vld [vmem:[%s19172_s10 + $0x8b8] sm:$0xff]  ;;  %v16265_v25 = vpack.c.bf16 %v874_v18, %v618_v17 }
 0x1cf   : > { %16196 = vmatpush1.bf16.msra.mxu1 %v16195_v28  ;;  %3103 = vmatprep.mubr.f32.mxu1 %v25540_v1  ;;  %v16229_v28 = vpack.c.bf16 %v1376_v22, %v1120_v21  ;;  %v16231_v36 = vpack.c.bf16 %v1375_v30, %v1119_v29  ;;  %v16273_v26 = vpack.c.bf16 %v876_v20, %v620_v19  ;;  %v1130_v29 = vld [vmem:[%s19172_s10 + $0x10a8] sm:$0xff]  ;;  %v1140_v17 = vld [vmem:[%s19172_s10 + $0x10f8] sm:$0xff] }
 0x1d0   : > { %16198 = vmatprep.subr.bf16.mxu1 %v16197_v37  ;;  %v609_v37 = vld [vmem:[%s19172_s10 + $0x60] sm:$0xff]  ;;  %v1386_v30 = vld [vmem:[%s19172_s10 + $0x18a8] sm:$0xff]  ;;  %v1396_v18 = vld [vmem:[%s19172_s10 + $0x18f8] sm:$0xff] }
 0x1d3   : > { %16200 = vmatpush1.bf16.msra.mxu1 %v16199_v41  ;;  %v611_v41 = vld [vmem:[%s19172_s10 + $0x70] sm:$0xff] }
 0x1d4   : > { %16210 = vmatprep.subr.bf16.mxu1 %v16209_v47  ;;  %v16235_v47 = vpack.c.bf16 %v865_v38, %v609_v37  ;;  %v16269_v37 = vpack.c.bf16 %v1386_v30, %v1130_v29  ;;  %v16277_v38 = vpack.c.bf16 %v1388_v32, %v1132_v31  ;;  %v632_v29 = vld [vmem:[%s19172_s10 + $0x118] sm:$0xff] }
 0x1d5   : > { %v888_v30 = vld [vmem:[%s19172_s10 + $0x918] sm:$0xff] }
 0x2a1   : > { %v590_v51 = vpop.f32.mrb[0].mxu1 }
 0x2a2   : > { %v591_v55 = vadd.f32 %v15726_v48, %v590_v51  ;;  %v16175_v56 = vpop.f32.mrb[1].mxu1  ;;  %v16243_v48 = vpack.c.bf16 %v867_v42, %v611_v41  ;;  %v16237_v51 = vpack.c.bf16 %v1378_v44, %v1122_v43  ;;  %v622_v41 = vld [vmem:[%s19172_s10 + $0xc8] sm:$0xff]  ;;  %v624_v43 = vld [vmem:[%s19172_s10 + $0xd8] sm:$0xff] }
 0x2a3   : > { %v870_v56 = vld [vmem:[%s19172_s10 + $0x888] sm:$0xff]  ;;  %v880_v44 = vld [vmem:[%s19172_s10 + $0x8d8] sm:$0xff] }
 0x2a4   : > { %vm594_vm4 = vcmp.ge.f32.partialorder %v591_v55, 0.0  ;;  %v595_v60 = vmul.f32 0.2, %v591_v55  ;;  %v878_v42 = vld [vmem:[%s19172_s10 + $0x8c8] sm:$0xff]  ;;  %v16289_v50 = vpack.c.bf16 %v880_v44, %v624_v43 }
 0x2a5   : > { %v16281_v49 = vpack.c.bf16 %v878_v42, %v622_v41  ;;  %v1144_v41 = vld [vmem:[%s19172_s10 + $0x1118] sm:$0xff] }
 0x2a6   : > { %v19216_v7 = vsel %vm594_vm4, %v591_v55, %v595_v60  ;;  %v614_v55 = vld [vmem:[%s19172_s10 + $0x88] sm:$0xff]  ;;  %v16247_v60 = vpack.c.bf16 %v1379_v54, %v1123_v53  ;;  %v1400_v42 = vld [vmem:[%s19172_s10 + $0x1918] sm:$0xff] }
 0x2a7   : > { %15728 = vmatmul.mubr.msk.f32.vlgmr.msra.gmra.mrb[2].mxu0 %vm520_vm3, %v19216_v7  ;;  %15729 = vmatmul.mubr.msk.f32.vlgmr.msra.gmra.mrb[2].mxu1 %vm520_vm3, %v19216_v7  ;;  %v16249_v63 = vpack.c.bf16 %v870_v56, %v614_v55  ;;  %v1134_v53 = vld [vmem:[%s19172_s10 + $0x10c8] sm:$0xff]  ;;  %v1136_v55 = vld [vmem:[%s19172_s10 + $0x10d8] sm:$0xff] }
 0x2a8   : > { %16204 = vmatpush1.bf16.msra.mxu0 %v16203_v61  ;;  %16212 = vmatpush1.bf16.msra.mxu1 %v16211_v62  ;;  %v613_v61 = vld [vmem:[%s19172_s10 + $0x80] sm:$0xff]  ;;  %v1390_v54 = vld [vmem:[%s19172_s10 + $0x18c8] sm:$0xff]  ;;  %v1392_v56 = vld [vmem:[%s19172_s10 + $0x18d8] sm:$0xff] }
 0x2a9   : > { %16206 = vmatprep.subr.bf16.mxu0 %v16205_v2  ;;  %16214 = vmatprep.subr.bf16.mxu1 %v16213_v3  ;;  %v869_v62 = vld [vmem:[%s19172_s10 + $0x880] sm:$0xff]  ;;  %v615_v2 = vld [vmem:[%s19172_s10 + $0x90] sm:$0xff] }
 0x2aa   : > { %3174 = vmatprep.mubr.f32.mxu0 %v25540_v1  ;;  %3245 = vmatprep.mubr.f32.mxu1 %v25540_v1  ;;  %v871_v3 = vld [vmem:[%s19172_s10 + $0x890] sm:$0xff]  ;;  %v16251_v9 = vpack.c.bf16 %v869_v62, %v613_v61  ;;  %v16285_v61 = vpack.c.bf16 %v1390_v54, %v1134_v53  ;;  %v16293_v62 = vpack.c.bf16 %v1392_v56, %v1136_v55  ;;  %v636_v53 = vld [vmem:[%s19172_s10 + $0x138] sm:$0xff] }
 0x2ab   : > { %v16259_v10 = vpack.c.bf16 %v871_v3, %v615_v2  ;;  %v626_v2 = vld [vmem:[%s19172_s10 + $0xe8] sm:$0xff]  ;;  %v892_v54 = vld [vmem:[%s19172_s10 + $0x938] sm:$0xff] }
 0x2ac   : > { %16208 = vmatpush1.bf16.msra.mxu0 %v16207_v11  ;;  %16216 = vmatpush1.bf16.msra.mxu1 %v16215_v12  ;;  %v1125_v11 = vld [vmem:[%s19172_s10 + $0x1080] sm:$0xff]  ;;  %v882_v3 = vld [vmem:[%s19172_s10 + $0x8e8] sm:$0xff] }
 0x2ad   : > { %16218 = vmatprep.subr.bf16.mxu0 %v16217_v15  ;;  %16226 = vmatprep.subr.bf16.mxu1 %v16225_v16  ;;  %v1381_v12 = vld [vmem:[%s19172_s10 + $0x1880] sm:$0xff]  ;;  %v1127_v15 = vld [vmem:[%s19172_s10 + $0x1090] sm:$0xff] }
 0x2ae   : > { %v1383_v16 = vld [vmem:[%s19172_s10 + $0x1890] sm:$0xff]  ;;  %v16255_v21 = vpack.c.bf16 %v1381_v12, %v1125_v11  ;;  %v16297_v11 = vpack.c.bf16 %v882_v3, %v626_v2  ;;  %v16305_v12 = vpack.c.bf16 %v884_v5, %v628_v4  ;;  %v1148_v2 = vld [vmem:[%s19172_s10 + $0x1138] sm:$0xff] }
 0x2af   : > { %15730 = vmatmul.mubr.msk.f32.vlgmr.msra.gmra.mrb[4].mxu0 %vm520_vm3, %v19216_v7  ;;  %15731 = vmatmul.mubr.msk.f32.vlgmr.msra.gmra.mrb[4].mxu1 %vm520_vm3, %v19216_v7  ;;  %v16263_v22 = vpack.c.bf16 %v1383_v16, %v1127_v15  ;;  %v1138_v15 = vld [vmem:[%s19172_s10 + $0x10e8] sm:$0xff]  ;;  %v1404_v3 = vld [vmem:[%s19172_s10 + $0x1938] sm:$0xff] }
 0x2b0   : > { %16220 = vmatpush1.bf16.msra.mxu0 %v16219_v23  ;;  %16228 = vmatpush1.bf16.msra.mxu1 %v16227_v24  ;;  %v617_v23 = vld [vmem:[%s19172_s10 + $0xa0] sm:$0xff]  ;;  %v1394_v16 = vld [vmem:[%s19172_s10 + $0x18e8] sm:$0xff] }
 0x2b1   : > { %16222 = vmatprep.subr.bf16.mxu0 %v16221_v27  ;;  %16230 = vmatprep.subr.bf16.mxu1 %v16229_v28  ;;  %v873_v24 = vld [vmem:[%s19172_s10 + $0x8a0] sm:$0xff]  ;;  %v619_v27 = vld [vmem:[%s19172_s10 + $0xb0] sm:$0xff] }
 0x2b2   : > { %3316 = vmatprep.mubr.f32.mxu0 %v25540_v1  ;;  %3387 = vmatprep.mubr.f32.mxu1 %v25540_v1  ;;  %v875_v28 = vld [vmem:[%s19172_s10 + $0x8b0] sm:$0xff]  ;;  %v16267_v33 = vpack.c.bf16 %v873_v24, %v617_v23  ;;  %v16301_v23 = vpack.c.bf16 %v1394_v16, %v1138_v15  ;;  %v16309_v24 = vpack.c.bf16 %v1396_v18, %v1140_v17  ;;  %v640_v15 = vld [vmem:[%s19172_s10 + $0x158] sm:$0xff] }
 0x2b3   : > { %v16275_v34 = vpack.c.bf16 %v875_v28, %v619_v27  ;;  %v630_v27 = vld [vmem:[%s19172_s10 + $0x108] sm:$0xff]  ;;  %v896_v16 = vld [vmem:[%s19172_s10 + $0x958] sm:$0xff] }
 0x2b4   : > { %16224 = vmatpush1.bf16.msra.mxu0 %v16223_v35  ;;  %16232 = vmatpush1.bf16.msra.mxu1 %v16231_v36  ;;  %v1129_v35 = vld [vmem:[%s19172_s10 + $0x10a0] sm:$0xff]  ;;  %v886_v28 = vld [vmem:[%s19172_s10 + $0x908] sm:$0xff] }
 0x2b5   : > { %16234 = vmatprep.subr.bf16.mxu0 %v16233_v39  ;;  %16242 = vmatprep.subr.bf16.mxu1 %v16241_v40  ;;  %v1385_v36 = vld [vmem:[%s19172_s10 + $0x18a0] sm:$0xff]  ;;  %v1131_v39 = vld [vmem:[%s19172_s10 + $0x10b0] sm:$0xff] }
 0x2b6   : > { %v1387_v40 = vld [vmem:[%s19172_s10 + $0x18b0] sm:$0xff]  ;;  %v16271_v45 = vpack.c.bf16 %v1385_v36, %v1129_v35  ;;  %v16313_v35 = vpack.c.bf16 %v886_v28, %v630_v27  ;;  %v16321_v36 = vpack.c.bf16 %v888_v30, %v632_v29  ;;  %v1152_v27 = vld [vmem:[%s19172_s10 + $0x1158] sm:$0xff] }
 0x2b7   : > { %15732 = vmatmul.mubr.msk.f32.vlgmr.msra.gmra.mrb[6].mxu0 %vm520_vm3, %v19216_v7  ;;  %15733 = vmatmul.mubr.msk.f32.vlgmr.msra.gmra.mrb[6].mxu1 %vm520_vm3, %v19216_v7  ;;  %v16279_v46 = vpack.c.bf16 %v1387_v40, %v1131_v39  ;;  %v1142_v39 = vld [vmem:[%s19172_s10 + $0x1108] sm:$0xff]  ;;  %v1408_v28 = vld [vmem:[%s19172_s10 + $0x1958] sm:$0xff] }
 0x2b8   : > { %16236 = vmatpush1.bf16.msra.mxu0 %v16235_v47  ;;  %16244 = vmatpush1.bf16.msra.mxu1 %v16243_v48  ;;  %v621_v47 = vld [vmem:[%s19172_s10 + $0xc0] sm:$0xff]  ;;  %v1398_v40 = vld [vmem:[%s19172_s10 + $0x1908] sm:$0xff] }
 0x2b9   : > { %16238 = vmatprep.subr.bf16.mxu0 %v16237_v51  ;;  %16246 = vmatprep.subr.bf16.mxu1 %v16245_v52  ;;  %v877_v48 = vld [vmem:[%s19172_s10 + $0x8c0] sm:$0xff]  ;;  %v623_v51 = vld [vmem:[%s19172_s10 + $0xd0] sm:$0xff] }
 0x2ba   : > { %3458 = vmatprep.mubr.f32.mxu0 %v25540_v1  ;;  %3529 = vmatprep.mubr.f32.mxu1 %v25540_v1  ;;  %v879_v52 = vld [vmem:[%s19172_s10 + $0x8d0] sm:$0xff]  ;;  %v16283_v57 = vpack.c.bf16 %v877_v48, %v621_v47  ;;  %v16317_v47 = vpack.c.bf16 %v1398_v40, %v1142_v39  ;;  %v16325_v48 = vpack.c.bf16 %v1400_v42, %v1144_v41  ;;  %v644_v39 = vld [vmem:[%s19172_s10 + $0x178] sm:$0xff] }
 0x2bb   : > { %v16291_v58 = vpack.c.bf16 %v879_v52, %v623_v51  ;;  %v634_v51 = vld [vmem:[%s19172_s10 + $0x128] sm:$0xff]  ;;  %v900_v40 = vld [vmem:[%s19172_s10 + $0x978] sm:$0xff] }
 0x2bc   : > { %16240 = vmatpush1.bf16.msra.mxu0 %v16239_v59  ;;  %16248 = vmatpush1.bf16.msra.mxu1 %v16247_v60  ;;  %v1133_v59 = vld [vmem:[%s19172_s10 + $0x10c0] sm:$0xff]  ;;  %v890_v52 = vld [vmem:[%s19172_s10 + $0x928] sm:$0xff] }
 0x2bd   : > { %16250 = vmatprep.subr.bf16.mxu0 %v16249_v63  ;;  %16258 = vmatprep.subr.bf16.mxu1 %v16257_v0  ;;  %v1389_v60 = vld [vmem:[%s19172_s10 + $0x18c0] sm:$0xff]  ;;  %v1135_v63 = vld [vmem:[%s19172_s10 + $0x10d0] sm:$0xff] }
 0x2be   : > { %v1391_v0 = vld [vmem:[%s19172_s10 + $0x18d0] sm:$0xff]  ;;  %v16287_v6 = vpack.c.bf16 %v1389_v60, %v1133_v59  ;;  %v16329_v59 = vpack.c.bf16 %v890_v52, %v634_v51  ;;  %v16337_v60 = vpack.c.bf16 %v892_v54, %v636_v53  ;;  %v1156_v51 = vld [vmem:[%s19172_s10 + $0x1178] sm:$0xff] }
 0x2bf   : > { %15734 = vmatmul.mubr.msk.f32.vlgmr.msra.gmra.mrb[8].mxu0 %vm520_vm3, %v19216_v7  ;;  %15735 = vmatmul.mubr.msk.f32.vlgmr.msra.gmra.mrb[8].mxu1 %vm520_vm3, %v19216_v7  ;;  %v16295_v8 = vpack.c.bf16 %v1391_v0, %v1135_v63  ;;  %v1146_v63 = vld [vmem:[%s19172_s10 + $0x1128] sm:$0xff]  ;;  %v1412_v52 = vld [vmem:[%s19172_s10 + $0x1978] sm:$0xff] }
 0x2c0   : > { %16252 = vmatpush1.bf16.msra.mxu0 %v16251_v9  ;;  %16260 = vmatpush1.bf16.msra.mxu1 %v16259_v10  ;;  %v625_v9 = vld [vmem:[%s19172_s10 + $0xe0] sm:$0xff]  ;;  %v1402_v0 = vld [vmem:[%s19172_s10 + $0x1928] sm:$0xff] }
 0x2c1   : > { %16254 = vmatprep.subr.bf16.mxu0 %v16253_v13  ;;  %16262 = vmatprep.subr.bf16.mxu1 %v16261_v14  ;;  %v881_v10 = vld [vmem:[%s19172_s10 + $0x8e0] sm:$0xff]  ;;  %v627_v13 = vld [vmem:[%s19172_s10 + $0xf0] sm:$0xff] }
 0x2c2   : > { %3600 = vmatprep.mubr.f32.mxu0 %v25540_v1  ;;  %3671 = vmatprep.mubr.f32.mxu1 %v25540_v1  ;;  %v883_v14 = vld [vmem:[%s19172_s10 + $0x8f0] sm:$0xff]  ;;  %v16299_v19 = vpack.c.bf16 %v881_v10, %v625_v9  ;;  %v16333_v9 = vpack.c.bf16 %v1402_v0, %v1146_v63  ;;  %v16341_v10 = vpack.c.bf16 %v1404_v3, %v1148_v2  ;;  %v648_v63 = vld [vmem:[%s19172_s10 + $0x198] sm:$0xff] }
 0x2c3   : > { %v16307_v20 = vpack.c.bf16 %v883_v14, %v627_v13  ;;  %v638_v13 = vld [vmem:[%s19172_s10 + $0x148] sm:$0xff]  ;;  %v904_v0 = vld [vmem:[%s19172_s10 + $0x998] sm:$0xff] }
 0x2c4   : > { %16256 = vmatpush1.bf16.msra.mxu0 %v16255_v21  ;;  %16264 = vmatpush1.bf16.msra.mxu1 %v16263_v22  ;;  %v1137_v21 = vld [vmem:[%s19172_s10 + $0x10e0] sm:$0xff]  ;;  %v894_v14 = vld [vmem:[%s19172_s10 + $0x948] sm:$0xff] }
 0x2c5   : > { %16266 = vmatprep.subr.bf16.mxu0 %v16265_v25  ;;  %16274 = vmatprep.subr.bf16.mxu1 %v16273_v26  ;;  %v1393_v22 = vld [vmem:[%s19172_s10 + $0x18e0] sm:$0xff]  ;;  %v1139_v25 = vld [vmem:[%s19172_s10 + $0x10f0] sm:$0xff] }
 0x2c6   : > { %v1395_v26 = vld [vmem:[%s19172_s10 + $0x18f0] sm:$0xff]  ;;  %v16303_v31 = vpack.c.bf16 %v1393_v22, %v1137_v21  ;;  %v16345_v21 = vpack.c.bf16 %v894_v14, %v638_v13  ;;  %v16353_v22 = vpack.c.bf16 %v896_v16, %v640_v15  ;;  %v1160_v13 = vld [vmem:[%s19172_s10 + $0x1198] sm:$0xff] }
 0x2c7   : > { %15736 = vmatmul.mubr.msk.f32.vlgmr.msra.gmra.mrb[10].mxu0 %vm520_vm3, %v19216_v7  ;;  %15737 = vmatmul.mubr.msk.f32.vlgmr.msra.gmra.mrb[10].mxu1 %vm520_vm3, %v19216_v7  ;;  %v16311_v32 = vpack.c.bf16 %v1395_v26, %v1139_v25  ;;  %v1150_v25 = vld [vmem:[%s19172_s10 + $0x1148] sm:$0xff]  ;;  %v1416_v14 = vld [vmem:[%s19172_s10 + $0x1998] sm:$0xff] }
 0x2c8   : > { %16268 = vmatpush1.bf16.msra.mxu0 %v16267_v33  ;;  %16276 = vmatpush1.bf16.msra.mxu1 %v16275_v34  ;;  %v629_v33 = vld [vmem:[%s19172_s10 + $0x100] sm:$0xff]  ;;  %v1406_v26 = vld [vmem:[%s19172_s10 + $0x1948] sm:$0xff] }
 0x2c9   : > { %16270 = vmatprep.subr.bf16.mxu0 %v16269_v37  ;;  %16278 = vmatprep.subr.bf16.mxu1 %v16277_v38  ;;  %v885_v34 = vld [vmem:[%s19172_s10 + $0x900] sm:$0xff]  ;;  %v631_v37 = vld [vmem:[%s19172_s10 + $0x110] sm:$0xff] }
 0x2ca   : > { %3742 = vmatprep.mubr.f32.mxu0 %v25540_v1  ;;  %3813 = vmatprep.mubr.f32.mxu1 %v25540_v1  ;;  %v887_v38 = vld [vmem:[%s19172_s10 + $0x910] sm:$0xff]  ;;  %v16315_v43 = vpack.c.bf16 %v885_v34, %v629_v33  ;;  %v16349_v33 = vpack.c.bf16 %v1406_v26, %v1150_v25  ;;  %v16357_v34 = vpack.c.bf16 %v1408_v28, %v1152_v27  ;;  %v652_v25 = vld [vmem:[%s19172_s10 + $0x1b8] sm:$0xff] }
 0x2cb   : > { %v16323_v44 = vpack.c.bf16 %v887_v38, %v631_v37  ;;  %v642_v37 = vld [vmem:[%s19172_s10 + $0x168] sm:$0xff]  ;;  %v908_v26 = vld [vmem:[%s19172_s10 + $0x9b8] sm:$0xff] }
 0x2cc   : > { %16272 = vmatpush1.bf16.msra.mxu0 %v16271_v45  ;;  %16280 = vmatpush1.bf16.msra.mxu1 %v16279_v46  ;;  %v1141_v45 = vld [vmem:[%s19172_s10 + $0x1100] sm:$0xff]  ;;  %v898_v38 = vld [vmem:[%s19172_s10 + $0x968] sm:$0xff] }
 0x2cd   : > { %16282 = vmatprep.subr.bf16.mxu0 %v16281_v49  ;;  %16290 = vmatprep.subr.bf16.mxu1 %v16289_v50  ;;  %v1397_v46 = vld [vmem:[%s19172_s10 + $0x1900] sm:$0xff]  ;;  %v1143_v49 = vld [vmem:[%s19172_s10 + $0x1110] sm:$0xff] }
 0x2ce   : > { %v1399_v50 = vld [vmem:[%s19172_s10 + $0x1910] sm:$0xff]  ;;  %v16319_v55 = vpack.c.bf16 %v1397_v46, %v1141_v45  ;;  %v16361_v45 = vpack.c.bf16 %v898_v38, %v642_v37  ;;  %v16369_v46 = vpack.c.bf16 %v900_v40, %v644_v39  ;;  %v1164_v37 = vld [vmem:[%s19172_s10 + $0x11b8] sm:$0xff] }
 0x2cf   : > { %15738 = vmatmul.mubr.msk.f32.vlgmr.msra.gmra.mrb[12].mxu0 %vm520_vm3, %v19216_v7  ;;  %15739 = vmatmul.mubr.msk.f32.vlgmr.msra.gmra.mrb[12].mxu1 %vm520_vm3, %v19216_v7  ;;  %v16327_v56 = vpack.c.bf16 %v1399_v50, %v1143_v49  ;;  %v1154_v49 = vld [vmem:[%s19172_s10 + $0x1168] sm:$0xff]  ;;  %v1420_v38 = vld [vmem:[%s19172_s10 + $0x19b8] sm:$0xff] }
 0x2d0   : > { %16284 = vmatpush1.bf16.msra.mxu0 %v16283_v57  ;;  %16292 = vmatpush1.bf16.msra.mxu1 %v16291_v58  ;;  %v633_v57 = vld [vmem:[%s19172_s10 + $0x120] sm:$0xff]  ;;  %v1410_v50 = vld [vmem:[%s19172_s10 + $0x1968] sm:$0xff] }
 0x2d1   : > { %16286 = vmatprep.subr.bf16.mxu0 %v16285_v61  ;;  %16294 = vmatprep.subr.bf16.mxu1 %v16293_v62  ;;  %v889_v58 = vld [vmem:[%s19172_s10 + $0x920] sm:$0xff]  ;;  %v635_v61 = vld [vmem:[%s19172_s10 + $0x130] sm:$0xff] }
 0x2d2   : > { %3884 = vmatprep.mubr.f32.mxu0 %v25540_v1  ;;  %3955 = vmatprep.mubr.f32.mxu1 %v25540_v1  ;;  %v891_v62 = vld [vmem:[%s19172_s10 + $0x930] sm:$0xff]  ;;  %v16331_v4 = vpack.c.bf16 %v889_v58, %v633_v57  ;;  %v16365_v57 = vpack.c.bf16 %v1410_v50, %v1154_v49  ;;  %v16373_v58 = vpack.c.bf16 %v1412_v52, %v1156_v51  ;;  %v656_v49 = vld [vmem:[%s19172_s10 + $0x1d8] sm:$0xff] }
 0x2d3   : > { %v16339_v5 = vpack.c.bf16 %v891_v62, %v635_v61  ;;  %v646_v61 = vld [vmem:[%s19172_s10 + $0x188] sm:$0xff]  ;;  %v912_v50 = vld [vmem:[%s19172_s10 + $0x9d8] sm:$0xff] }
 0x2d4   : > { %16288 = vmatpush1.bf16.msra.mxu0 %v16287_v6  ;;  %16296 = vmatpush1.bf16.msra.mxu1 %v16295_v8  ;;  %v1145_v6 = vld [vmem:[%s19172_s10 + $0x1120] sm:$0xff]  ;;  %v902_v62 = vld [vmem:[%s19172_s10 + $0x988] sm:$0xff] }
 0x2d5   : > { %16298 = vmatprep.subr.bf16.mxu0 %v16297_v11  ;;  %16306 = vmatprep.subr.bf16.mxu1 %v16305_v12  ;;  %v1401_v8 = vld [vmem:[%s19172_s10 + $0x1920] sm:$0xff]  ;;  %v1147_v11 = vld [vmem:[%s19172_s10 + $0x1130] sm:$0xff] }
 0x2d6   : > { %v1403_v12 = vld [vmem:[%s19172_s10 + $0x1930] sm:$0xff]  ;;  %v16335_v17 = vpack.c.bf16 %v1401_v8, %v1145_v6  ;;  %v16377_v6 = vpack.c.bf16 %v902_v62, %v646_v61  ;;  %v16385_v8 = vpack.c.bf16 %v904_v0, %v648_v63  ;;  %v1168_v61 = vld [vmem:[%s19172_s10 + $0x11d8] sm:$0xff] }
 0x2d7   : > { %15740 = vmatmul.mubr.msk.f32.vlgmr.msra.gmra.mrb[14].mxu0 %vm520_vm3, %v19216_v7  ;;  %15741 = vmatmul.mubr.msk.f32.vlgmr.msra.gmra.mrb[14].mxu1 %vm520_vm3, %v19216_v7  ;;  %v16343_v18 = vpack.c.bf16 %v1403_v12, %v1147_v11  ;;  %v1158_v11 = vld [vmem:[%s19172_s10 + $0x1188] sm:$0xff]  ;;  %v1424_v62 = vld [vmem:[%s19172_s10 + $0x19d8] sm:$0xff] }
 0x2d8   : > { %16300 = vmatpush1.bf16.msra.mxu0 %v16299_v19  ;;  %16308 = vmatpush1.bf16.msra.mxu1 %v16307_v20  ;;  %v637_v19 = vld [vmem:[%s19172_s10 + $0x140] sm:$0xff]  ;;  %v1414_v12 = vld [vmem:[%s19172_s10 + $0x1988] sm:$0xff] }
 0x2d9   : > { %16302 = vmatprep.subr.bf16.mxu0 %v16301_v23  ;;  %16310 = vmatprep.subr.bf16.mxu1 %v16309_v24  ;;  %v893_v20 = vld [vmem:[%s19172_s10 + $0x940] sm:$0xff]  ;;  %v639_v23 = vld [vmem:[%s19172_s10 + $0x150] sm:$0xff] }
 0x2da   : > { %4026 = vmatprep.mubr.f32.mxu0 %v25540_v1  ;;  %4097 = vmatprep.mubr.f32.mxu1 %v25540_v1  ;;  %v895_v24 = vld [vmem:[%s19172_s10 + $0x950] sm:$0xff]  ;;  %v16347_v29 = vpack.c.bf16 %v893_v20, %v637_v19  ;;  %v16381_v19 = vpack.c.bf16 %v1414_v12, %v1158_v11  ;;  %v16389_v20 = vpack.c.bf16 %v1416_v14, %v1160_v13  ;;  %v660_v11 = vld [vmem:[%s19172_s10 + $0x1f8] sm:$0xff] }
 0x2db   : > { %v16355_v30 = vpack.c.bf16 %v895_v24, %v639_v23  ;;  %v650_v23 = vld [vmem:[%s19172_s10 + $0x1a8] sm:$0xff]  ;;  %v916_v12 = vld [vmem:[%s19172_s10 + $0x9f8] sm:$0xff] }
 0x2dc   : > { %16304 = vmatpush1.bf16.msra.mxu0 %v16303_v31  ;;  %16312 = vmatpush1.bf16.msra.mxu1 %v16311_v32  ;;  %v1149_v31 = vld [vmem:[%s19172_s10 + $0x1140] sm:$0xff]  ;;  %v906_v24 = vld [vmem:[%s19172_s10 + $0x9a8] sm:$0xff] }
 0x2dd   : > { %16314 = vmatprep.subr.bf16.mxu0 %v16313_v35  ;;  %16322 = vmatprep.subr.bf16.mxu1 %v16321_v36  ;;  %v1405_v32 = vld [vmem:[%s19172_s10 + $0x1940] sm:$0xff]  ;;  %v1151_v35 = vld [vmem:[%s19172_s10 + $0x1150] sm:$0xff] }
 0x2de   : > { %v1407_v36 = vld [vmem:[%s19172_s10 + $0x1950] sm:$0xff]  ;;  %v16351_v41 = vpack.c.bf16 %v1405_v32, %v1149_v31  ;;  %v16393_v31 = vpack.c.bf16 %v906_v24, %v650_v23  ;;  %v16401_v32 = vpack.c.bf16 %v908_v26, %v652_v25  ;;  %v1172_v23 = vld [vmem:[%s19172_s10 + $0x11f8] sm:$0xff] }
 0x2df   : > { %15742 = vmatmul.mubr.msk.f32.vlgmr.msra.gmra.mrb[16].mxu0 %vm520_vm3, %v19216_v7  ;;  %15743 = vmatmul.mubr.msk.f32.vlgmr.msra.gmra.mrb[16].mxu1 %vm520_vm3, %v19216_v7  ;;  %v16359_v42 = vpack.c.bf16 %v1407_v36, %v1151_v35  ;;  %v1162_v35 = vld [vmem:[%s19172_s10 + $0x11a8] sm:$0xff]  ;;  %v1428_v24 = vld [vmem:[%s19172_s10 + $0x19f8] sm:$0xff] }
 0x2e0   : > { %16316 = vmatpush1.bf16.msra.mxu0 %v16315_v43  ;;  %16324 = vmatpush1.bf16.msra.mxu1 %v16323_v44  ;;  %v641_v43 = vld [vmem:[%s19172_s10 + $0x160] sm:$0xff]  ;;  %v1418_v36 = vld [vmem:[%s19172_s10 + $0x19a8] sm:$0xff] }
 0x2e1   : > { %16318 = vmatprep.subr.bf16.mxu0 %v16317_v47  ;;  %16326 = vmatprep.subr.bf16.mxu1 %v16325_v48  ;;  %v897_v44 = vld [vmem:[%s19172_s10 + $0x960] sm:$0xff]  ;;  %v643_v47 = vld [vmem:[%s19172_s10 + $0x170] sm:$0xff] }
 0x2e2   : > { %4168 = vmatprep.mubr.f32.mxu0 %v25540_v1  ;;  %4239 = vmatprep.mubr.f32.mxu1 %v25540_v1  ;;  %v899_v48 = vld [vmem:[%s19172_s10 + $0x970] sm:$0xff]  ;;  %v16363_v53 = vpack.c.bf16 %v897_v44, %v641_v43  ;;  %v16397_v43 = vpack.c.bf16 %v1418_v36, %v1162_v35  ;;  %v16405_v44 = vpack.c.bf16 %v1420_v38, %v1164_v37  ;;  %v664_v35 = vld [vmem:[%s19172_s10 + $0x218] sm:$0xff] }
 0x2e3   : > { %v16371_v54 = vpack.c.bf16 %v899_v48, %v643_v47  ;;  %v654_v47 = vld [vmem:[%s19172_s10 + $0x1c8] sm:$0xff]  ;;  %v920_v36 = vld [vmem:[%s19172_s10 + $0xa18] sm:$0xff] }
 0x2e4   : > { %16320 = vmatpush1.bf16.msra.mxu0 %v16319_v55  ;;  %16328 = vmatpush1.bf16.msra.mxu1 %v16327_v56  ;;  %v1153_v55 = vld [vmem:[%s19172_s10 + $0x1160] sm:$0xff]  ;;  %v910_v48 = vld [vmem:[%s19172_s10 + $0x9c8] sm:$0xff] }
 0x2e5   : > { %16330 = vmatprep.subr.bf16.mxu0 %v16329_v59  ;;  %16338 = vmatprep.subr.bf16.mxu1 %v16337_v60  ;;  %v1409_v56 = vld [vmem:[%s19172_s10 + $0x1960] sm:$0xff]  ;;  %v1155_v59 = vld [vmem:[%s19172_s10 + $0x1170] sm:$0xff] }
 0x2e6   : > { %v1411_v60 = vld [vmem:[%s19172_s10 + $0x1970] sm:$0xff]  ;;  %v16367_v2 = vpack.c.bf16 %v1409_v56, %v1153_v55  ;;  %v16409_v55 = vpack.c.bf16 %v910_v48, %v654_v47  ;;  %v16417_v56 = vpack.c.bf16 %v912_v50, %v656_v49  ;;  %v1176_v47 = vld [vmem:[%s19172_s10 + $0x1218] sm:$0xff] }
 0x2e7   : > { %15744 = vmatmul.mubr.msk.f32.vlgmr.msra.gmra.mrb[18].mxu0 %vm520_vm3, %v19216_v7  ;;  %15745 = vmatmul.mubr.msk.f32.vlgmr.msra.gmra.mrb[18].mxu1 %vm520_vm3, %v19216_v7  ;;  %v16375_v3 = vpack.c.bf16 %v1411_v60, %v1155_v59  ;;  %v1166_v59 = vld [vmem:[%s19172_s10 + $0x11c8] sm:$0xff]  ;;  %v1432_v48 = vld [vmem:[%s19172_s10 + $0x1a18] sm:$0xff] }
 0x2e8   : > { %16332 = vmatpush1.bf16.msra.mxu0 %v16331_v4  ;;  %16340 = vmatpush1.bf16.msra.mxu1 %v16339_v5  ;;  %v645_v4 = vld [vmem:[%s19172_s10 + $0x180] sm:$0xff]  ;;  %v1422_v60 = vld [vmem:[%s19172_s10 + $0x19c8] sm:$0xff] }
 0x2e9   : > { %16334 = vmatprep.subr.bf16.mxu0 %v16333_v9  ;;  %16342 = vmatprep.subr.bf16.mxu1 %v16341_v10  ;;  %v901_v5 = vld [vmem:[%s19172_s10 + $0x980] sm:$0xff]  ;;  %v647_v9 = vld [vmem:[%s19172_s10 + $0x190] sm:$0xff] }
 0x2ea   : > { %4310 = vmatprep.mubr.f32.mxu0 %v25540_v1  ;;  %4381 = vmatprep.mubr.f32.mxu1 %v25540_v1  ;;  %v903_v10 = vld [vmem:[%s19172_s10 + $0x990] sm:$0xff]  ;;  %v16379_v15 = vpack.c.bf16 %v901_v5, %v645_v4  ;;  %v16413_v4 = vpack.c.bf16 %v1422_v60, %v1166_v59  ;;  %v16421_v5 = vpack.c.bf16 %v1424_v62, %v1168_v61  ;;  %v668_v59 = vld [vmem:[%s19172_s10 + $0x238] sm:$0xff] }
 0x2eb   : > { %v16387_v16 = vpack.c.bf16 %v903_v10, %v647_v9  ;;  %v658_v9 = vld [vmem:[%s19172_s10 + $0x1e8] sm:$0xff]  ;;  %v924_v60 = vld [vmem:[%s19172_s10 + $0xa38] sm:$0xff] }
 0x2ec   : > { %16336 = vmatpush1.bf16.msra.mxu0 %v16335_v17  ;;  %16344 = vmatpush1.bf16.msra.mxu1 %v16343_v18  ;;  %v1157_v17 = vld [vmem:[%s19172_s10 + $0x1180] sm:$0xff]  ;;  %v914_v10 = vld [vmem:[%s19172_s10 + $0x9e8] sm:$0xff] }
 0x2ed   : > { %16346 = vmatprep.subr.bf16.mxu0 %v16345_v21  ;;  %16354 = vmatprep.subr.bf16.mxu1 %v16353_v22  ;;  %v1413_v18 = vld [vmem:[%s19172_s10 + $0x1980] sm:$0xff]  ;;  %v1159_v21 = vld [vmem:[%s19172_s10 + $0x1190] sm:$0xff] }
 0x2ee   : > { %v1415_v22 = vld [vmem:[%s19172_s10 + $0x1990] sm:$0xff]  ;;  %v16383_v27 = vpack.c.bf16 %v1413_v18, %v1157_v17  ;;  %v16425_v17 = vpack.c.bf16 %v914_v10, %v658_v9  ;;  %v16433_v18 = vpack.c.bf16 %v916_v12, %v660_v11  ;;  %v1180_v9 = vld [vmem:[%s19172_s10 + $0x1238] sm:$0xff] }
 0x2ef   : > { %15746 = vmatmul.mubr.msk.f32.vlgmr.msra.gmra.mrb[20].mxu0 %vm520_vm3, %v19216_v7  ;;  %15747 = vmatmul.mubr.msk.f32.vlgmr.msra.gmra.mrb[20].mxu1 %vm520_vm3, %v19216_v7  ;;  %v16391_v28 = vpack.c.bf16 %v1415_v22, %v1159_v21  ;;  %v1170_v21 = vld [vmem:[%s19172_s10 + $0x11e8] sm:$0xff]  ;;  %v1436_v10 = vld [vmem:[%s19172_s10 + $0x1a38] sm:$0xff] }
 0x2f0   : > { %16348 = vmatpush1.bf16.msra.mxu0 %v16347_v29  ;;  %16356 = vmatpush1.bf16.msra.mxu1 %v16355_v30  ;;  %v649_v29 = vld [vmem:[%s19172_s10 + $0x1a0] sm:$0xff]  ;;  %v1426_v22 = vld [vmem:[%s19172_s10 + $0x19e8] sm:$0xff] }
 0x2f1   : > { %16350 = vmatprep.subr.bf16.mxu0 %v16349_v33  ;;  %16358 = vmatprep.subr.bf16.mxu1 %v16357_v34  ;;  %v905_v30 = vld [vmem:[%s19172_s10 + $0x9a0] sm:$0xff]  ;;  %v651_v33 = vld [vmem:[%s19172_s10 + $0x1b0] sm:$0xff] }
 0x2f2   : > { %4452 = vmatprep.mubr.f32.mxu0 %v25540_v1  ;;  %4523 = vmatprep.mubr.f32.mxu1 %v25540_v1  ;;  %v907_v34 = vld [vmem:[%s19172_s10 + $0x9b0] sm:$0xff]  ;;  %v16395_v39 = vpack.c.bf16 %v905_v30, %v649_v29  ;;  %v16429_v29 = vpack.c.bf16 %v1426_v22, %v1170_v21  ;;  %v16437_v30 = vpack.c.bf16 %v1428_v24, %v1172_v23  ;;  %v672_v21 = vld [vmem:[%s19172_s10 + $0x258] sm:$0xff] }
 0x2f3   : > { %v16403_v40 = vpack.c.bf16 %v907_v34, %v651_v33  ;;  %v662_v33 = vld [vmem:[%s19172_s10 + $0x208] sm:$0xff]  ;;  %v928_v22 = vld [vmem:[%s19172_s10 + $0xa58] sm:$0xff] }
 0x2f4   : > { %16352 = vmatpush1.bf16.msra.mxu0 %v16351_v41  ;;  %16360 = vmatpush1.bf16.msra.mxu1 %v16359_v42  ;;  %v1161_v41 = vld [vmem:[%s19172_s10 + $0x11a0] sm:$0xff]  ;;  %v918_v34 = vld [vmem:[%s19172_s10 + $0xa08] sm:$0xff] }
 0x2f5   : > { %16362 = vmatprep.subr.bf16.mxu0 %v16361_v45  ;;  %16370 = vmatprep.subr.bf16.mxu1 %v16369_v46  ;;  %v1417_v42 = vld [vmem:[%s19172_s10 + $0x19a0] sm:$0xff]  ;;  %v1163_v45 = vld [vmem:[%s19172_s10 + $0x11b0] sm:$0xff] }
 0x2f6   : > { %v1419_v46 = vld [vmem:[%s19172_s10 + $0x19b0] sm:$0xff]  ;;  %v16399_v51 = vpack.c.bf16 %v1417_v42, %v1161_v41  ;;  %v16441_v41 = vpack.c.bf16 %v918_v34, %v662_v33  ;;  %v16449_v42 = vpack.c.bf16 %v920_v36, %v664_v35  ;;  %v1184_v33 = vld [vmem:[%s19172_s10 + $0x1258] sm:$0xff] }
 0x2f7   : > { %15748 = vmatmul.mubr.msk.f32.vlgmr.msra.gmra.mrb[22].mxu0 %vm520_vm3, %v19216_v7  ;;  %15749 = vmatmul.mubr.msk.f32.vlgmr.msra.gmra.mrb[22].mxu1 %vm520_vm3, %v19216_v7  ;;  %v16407_v52 = vpack.c.bf16 %v1419_v46, %v1163_v45  ;;  %v1174_v45 = vld [vmem:[%s19172_s10 + $0x1208] sm:$0xff]  ;;  %v1440_v34 = vld [vmem:[%s19172_s10 + $0x1a58] sm:$0xff] }
 0x2f8   : > { %16364 = vmatpush1.bf16.msra.mxu0 %v16363_v53  ;;  %16372 = vmatpush1.bf16.msra.mxu1 %v16371_v54  ;;  %v653_v53 = vld [vmem:[%s19172_s10 + $0x1c0] sm:$0xff]  ;;  %v1430_v46 = vld [vmem:[%s19172_s10 + $0x1a08] sm:$0xff] }
 0x2f9   : > { %16366 = vmatprep.subr.bf16.mxu0 %v16365_v57  ;;  %16374 = vmatprep.subr.bf16.mxu1 %v16373_v58  ;;  %v909_v54 = vld [vmem:[%s19172_s10 + $0x9c0] sm:$0xff]  ;;  %v655_v57 = vld [vmem:[%s19172_s10 + $0x1d0] sm:$0xff] }
 0x2fa   : > { %4594 = vmatprep.mubr.f32.mxu0 %v25540_v1  ;;  %4665 = vmatprep.mubr.f32.mxu1 %v25540_v1  ;;  %v911_v58 = vld [vmem:[%s19172_s10 + $0x9d0] sm:$0xff]  ;;  %v16411_v63 = vpack.c.bf16 %v909_v54, %v653_v53  ;;  %v16445_v53 = vpack.c.bf16 %v1430_v46, %v1174_v45  ;;  %v16453_v54 = vpack.c.bf16 %v1432_v48, %v1176_v47  ;;  %v676_v45 = vld [vmem:[%s19172_s10 + $0x278] sm:$0xff] }
 0x2fb   : > { %v16419_v0 = vpack.c.bf16 %v911_v58, %v655_v57  ;;  %v666_v57 = vld [vmem:[%s19172_s10 + $0x228] sm:$0xff]  ;;  %v932_v46 = vld [vmem:[%s19172_s10 + $0xa78] sm:$0xff] }
 0x2fc   : > { %16368 = vmatpush1.bf16.msra.mxu0 %v16367_v2  ;;  %16376 = vmatpush1.bf16.msra.mxu1 %v16375_v3  ;;  %v1165_v2 = vld [vmem:[%s19172_s10 + $0x11c0] sm:$0xff]  ;;  %v922_v58 = vld [vmem:[%s19172_s10 + $0xa28] sm:$0xff] }
 0x2fd   : > { %16378 = vmatprep.subr.bf16.mxu0 %v16377_v6  ;;  %16386 = vmatprep.subr.bf16.mxu1 %v16385_v8  ;;  %v1421_v3 = vld [vmem:[%s19172_s10 + $0x19c0] sm:$0xff]  ;;  %v1167_v6 = vld [vmem:[%s19172_s10 + $0x11d0] sm:$0xff] }
 0x2fe   : > { %v1423_v8 = vld [vmem:[%s19172_s10 + $0x19d0] sm:$0xff]  ;;  %v16415_v13 = vpack.c.bf16 %v1421_v3, %v1165_v2  ;;  %v16457_v2 = vpack.c.bf16 %v922_v58, %v666_v57  ;;  %v16465_v3 = vpack.c.bf16 %v924_v60, %v668_v59  ;;  %v1188_v57 = vld [vmem:[%s19172_s10 + $0x1278] sm:$0xff]  ;;  %v19610_v59 = vld [vmem:[%s19172_s10 + $0x1260] sm:$0xff] }
 0x2ff   : > { %15750 = vmatmul.mubr.msk.f32.vlgmr.msra.gmra.mrb[24].mxu0 %vm520_vm3, %v19216_v7  ;;  %15751 = vmatmul.mubr.msk.f32.vlgmr.msra.gmra.mrb[24].mxu1 %vm520_vm3, %v19216_v7  ;;  %v16423_v14 = vpack.c.bf16 %v1423_v8, %v1167_v6  ;;  %v1178_v6 = vld [vmem:[%s19172_s10 + $0x1228] sm:$0xff]  ;;  %v1444_v58 = vld [vmem:[%s19172_s10 + $0x1a78] sm:$0xff]  ;;  %v19613_v60 = vld [vmem:[%s19172_s10 + $0x1a60] sm:$0xff] }
 0x300   : > { %16380 = vmatpush1.bf16.msra.mxu0 %v16379_v15  ;;  %16388 = vmatpush1.bf16.msra.mxu1 %v16387_v16  ;;  %v657_v15 = vld [vmem:[%s19172_s10 + $0x1e0] sm:$0xff]  ;;  %v1434_v8 = vld [vmem:[%s19172_s10 + $0x1a28] sm:$0xff] }
 0x301   : > { %16382 = vmatprep.subr.bf16.mxu0 %v16381_v19  ;;  %16390 = vmatprep.subr.bf16.mxu1 %v16389_v20  ;;  %v913_v16 = vld [vmem:[%s19172_s10 + $0x9e0] sm:$0xff]  ;;  %v659_v19 = vld [vmem:[%s19172_s10 + $0x1f0] sm:$0xff] }
 0x302   : > { %4736 = vmatprep.mubr.f32.mxu0 %v25540_v1  ;;  %4807 = vmatprep.mubr.f32.mxu1 %v25540_v1  ;;  %v915_v20 = vld [vmem:[%s19172_s10 + $0x9f0] sm:$0xff]  ;;  %v16427_v25 = vpack.c.bf16 %v913_v16, %v657_v15  ;;  %v16461_v15 = vpack.c.bf16 %v1434_v8, %v1178_v6  ;;  %v16469_v16 = vpack.c.bf16 %v1436_v10, %v1180_v9  ;;  %v19634_v6 = vld [vmem:[%s19172_s10 + $0x280] sm:$0xff] }
 0x303   : > { %v16435_v26 = vpack.c.bf16 %v915_v20, %v659_v19  ;;  %v670_v19 = vld [vmem:[%s19172_s10 + $0x248] sm:$0xff]  ;;  %v19637_v8 = vld [vmem:[%s19172_s10 + $0xa80] sm:$0xff]  ;;  %v16501_v10 = vpack.c.bf16 %v1444_v58, %v1188_v57 }
 0x304   : > { %16384 = vmatpush1.bf16.msra.mxu0 %v16383_v27  ;;  %16392 = vmatpush1.bf16.msra.mxu1 %v16391_v28  ;;  %v1169_v27 = vld [vmem:[%s19172_s10 + $0x11e0] sm:$0xff]  ;;  %v926_v20 = vld [vmem:[%s19172_s10 + $0xa48] sm:$0xff] }
 0x305   : > { %16394 = vmatprep.subr.bf16.mxu0 %v16393_v31  ;;  %16402 = vmatprep.subr.bf16.mxu1 %v16401_v32  ;;  %v1425_v28 = vld [vmem:[%s19172_s10 + $0x19e0] sm:$0xff]  ;;  %v1171_v31 = vld [vmem:[%s19172_s10 + $0x11f0] sm:$0xff] }
 0x306   : > { %v1427_v32 = vld [vmem:[%s19172_s10 + $0x19f0] sm:$0xff]  ;;  %v16431_v37 = vpack.c.bf16 %v1425_v28, %v1169_v27  ;;  %v16473_v27 = vpack.c.bf16 %v926_v20, %v670_v19  ;;  %v16481_v28 = vpack.c.bf16 %v928_v22, %v672_v21  ;;  %v19670_v21 = vld [vmem:[%s19172_s10 + $0x2a8] sm:$0xff]  ;;  %v19776_v57 = vld [vmem:[%s19172_s10 + $0x12c0] sm:$0xff] }
 0x307   : > { %15752 = vmatmul.mubr.msk.f32.vlgmr.msra.gmra.mrb[26].mxu0 %vm520_vm3, %v19216_v7  ;;  %15753 = vmatmul.mubr.msk.f32.vlgmr.msra.gmra.mrb[26].mxu1 %vm520_vm3, %v19216_v7  ;;  %v16439_v38 = vpack.c.bf16 %v1427_v32, %v1171_v31  ;;  %v1182_v31 = vld [vmem:[%s19172_s10 + $0x1248] sm:$0xff]  ;;  %v19664_v19 = vld [vmem:[%s19172_s10 + $0x1290] sm:$0xff]  ;;  %26097 = vst [vmem:[#allocation35_spill] sm:$0xff] %v19776_v57  ;;  %v19779_v58 = vld [vmem:[%s19172_s10 + $0x1ac0] sm:$0xff] }
 0x308   : > { %16396 = vmatpush1.bf16.msra.mxu0 %v16395_v39  ;;  %16404 = vmatpush1.bf16.msra.mxu1 %v16403_v40  ;;  %v661_v39 = vld [vmem:[%s19172_s10 + $0x200] sm:$0xff]  ;;  %v1438_v32 = vld [vmem:[%s19172_s10 + $0x1a48] sm:$0xff]  ;;  %v19667_v20 = vld [vmem:[%s19172_s10 + $0x1a90] sm:$0xff]  ;;  %26098 = vst [vmem:[#allocation36_spill] sm:$0xff] %v19779_v58 }
 0x309   : > { %16398 = vmatprep.subr.bf16.mxu0 %v16397_v43  ;;  %16406 = vmatprep.subr.bf16.mxu1 %v16405_v44  ;;  %v917_v40 = vld [vmem:[%s19172_s10 + $0xa00] sm:$0xff]  ;;  %v663_v43 = vld [vmem:[%s19172_s10 + $0x210] sm:$0xff]  ;;  %v19673_v22 = vld [vmem:[%s19172_s10 + $0xaa8] sm:$0xff] }
 0x30a   : > { %4878 = vmatprep.mubr.f32.mxu0 %v25540_v1  ;;  %4949 = vmatprep.mubr.f32.mxu1 %v25540_v1  ;;  %v919_v44 = vld [vmem:[%s19172_s10 + $0xa10] sm:$0xff]  ;;  %v16443_v49 = vpack.c.bf16 %v917_v40, %v661_v39  ;;  %v16477_v39 = vpack.c.bf16 %v1438_v32, %v1182_v31  ;;  %v16485_v40 = vpack.c.bf16 %v1440_v34, %v1184_v33  ;;  %v19708_v33 = vld [vmem:[%s19172_s10 + $0x12b8] sm:$0xff]  ;;  %v20005_v57 = vld [vmem:[%s19172_s10 + $0xb48] sm:$0xff] }
 0x30b   : > { %v16451_v50 = vpack.c.bf16 %v919_v44, %v663_v43  ;;  %v674_v43 = vld [vmem:[%s19172_s10 + $0x268] sm:$0xff]  ;;  %v16495_v31 = vpack.c.bf16 %v19613_v60, %v19610_v59  ;;  %26082 = vst [vmem:[#allocation20_spill] sm:$0xff] %v19708_v33  ;;  %v19711_v34 = vld [vmem:[%s19172_s10 + $0x1ab8] sm:$0xff]  ;;  %v19817_v60 = vld [vmem:[%s19172_s10 + $0xae0] sm:$0xff] }
 0x30c   : > { %16400 = vmatpush1.bf16.msra.mxu0 %v16399_v51  ;;  %16408 = vmatpush1.bf16.msra.mxu1 %v16407_v52  ;;  %v1173_v51 = vld [vmem:[%s19172_s10 + $0x1200] sm:$0xff]  ;;  %v930_v44 = vld [vmem:[%s19172_s10 + $0xa68] sm:$0xff]  ;;  %26104 = vst [vmem:[#allocation42_spill] sm:$0xff] %v19817_v60  ;;  %v19999_v60 = vld [vmem:[%s19172_s10 + $0x1b30] sm:$0xff] }
 0x30d   : > { %16410 = vmatprep.subr.bf16.mxu0 %v16409_v55  ;;  %16418 = vmatprep.subr.bf16.mxu1 %v16417_v56  ;;  %v1429_v52 = vld [vmem:[%s19172_s10 + $0x1a00] sm:$0xff]  ;;  %v1175_v55 = vld [vmem:[%s19172_s10 + $0x1210] sm:$0xff]  ;;  %v19826_v59 = vld [vmem:[%s19172_s10 + $0x12e8] sm:$0xff]  ;;  %26134 = vst [vmem:[#allocation67_spill] sm:$0xff] %v19999_v60 }
 0x30e   : > { %v1431_v56 = vld [vmem:[%s19172_s10 + $0x1a10] sm:$0xff]  ;;  %v16447_v61 = vpack.c.bf16 %v1429_v52, %v1173_v51  ;;  %v16489_v51 = vpack.c.bf16 %v930_v44, %v674_v43  ;;  %v16497_v52 = vpack.c.bf16 %v932_v46, %v676_v45  ;;  %v19735_v43 = vld [vmem:[%s19172_s10 + $0xac8] sm:$0xff]  ;;  %v19738_v44 = vld [vmem:[%s19172_s10 + $0x2d8] sm:$0xff]  ;;  %26107 = vst [vmem:[#allocation45_spill] sm:$0xff] %v19826_v59 }
 0x30f   : > { %15754 = vmatmul.mubr.msk.f32.vlgmr.msra.gmra.mrb[28].mxu0 %vm520_vm3, %v19216_v7  ;;  %15755 = vmatmul.mubr.msk.f32.vlgmr.msra.gmra.mrb[28].mxu1 %vm520_vm3, %v19216_v7  ;;  %v16455_v62 = vpack.c.bf16 %v1431_v56, %v1175_v55  ;;  %v1186_v55 = vld [vmem:[%s19172_s10 + $0x1268] sm:$0xff]  ;;  %26088 = vst [vmem:[#allocation26_spill] sm:$0xff] %v19735_v43  ;;  %26089 = vst [vmem:[#allocation27_spill] sm:$0xff] %v19738_v44  ;;  %v19741_v45 = vld [vmem:[%s19172_s10 + $0xad8] sm:$0xff] }
 0x310   : > { %16412 = vmatpush1.bf16.msra.mxu0 %v16411_v63  ;;  %16420 = vmatpush1.bf16.msra.mxu1 %v16419_v0  ;;  %v665_v63 = vld [vmem:[%s19172_s10 + $0x220] sm:$0xff]  ;;  %v1442_v56 = vld [vmem:[%s19172_s10 + $0x1a68] sm:$0xff]  ;;  %26090 = vst [vmem:[#allocation28_spill] sm:$0xff] %v19741_v45  ;;  %v19907_v43 = vld [vmem:[%s19172_s10 + $0x1b18] sm:$0xff] }
 0x311   : > { %16414 = vmatprep.subr.bf16.mxu0 %v16413_v4  ;;  %16422 = vmatprep.subr.bf16.mxu1 %v16421_v5  ;;  %v921_v0 = vld [vmem:[%s19172_s10 + $0xa20] sm:$0xff]  ;;  %v667_v4 = vld [vmem:[%s19172_s10 + $0x230] sm:$0xff]  ;;  %v16493_v9 = vpack.c.bf16 %v1442_v56, %v1186_v55  ;;  %v19770_v55 = vld [vmem:[%s19172_s10 + $0x12d8] sm:$0xff]  ;;  %26136 = vst [vmem:[#allocation69_spill] sm:$0xff] %v20005_v57 }
 0x312   : > { %5020 = vmatprep.mubr.f32.mxu0 %v25540_v1  ;;  %5091 = vmatprep.mubr.f32.mxu1 %v25540_v1  ;;  %v923_v5 = vld [vmem:[%s19172_s10 + $0xa30] sm:$0xff]  ;;  %v16459_v11 = vpack.c.bf16 %v921_v0, %v665_v63  ;;  %v19744_v46 = vld [vmem:[%s19172_s10 + $0x2c0] sm:$0xff]  ;;  %26095 = vst [vmem:[#allocation33_spill] sm:$0xff] %v19770_v55  ;;  %v19773_v56 = vld [vmem:[%s19172_s10 + $0x1ad8] sm:$0xff] }
 0x313   : > { %v16467_v12 = vpack.c.bf16 %v923_v5, %v667_v4  ;;  %v19628_v4 = vld [vmem:[%s19172_s10 + $0x298] sm:$0xff]  ;;  %26091 = vst [vmem:[#allocation29_spill] sm:$0xff] %v19744_v46  ;;  %26096 = vst [vmem:[#allocation34_spill] sm:$0xff] %v19773_v56  ;;  %v19879_v44 = vld [vmem:[%s19172_s10 + $0xb00] sm:$0xff] }
 0x314   : > { %16416 = vmatpush1.bf16.msra.mxu0 %v16415_v13  ;;  %16424 = vmatpush1.bf16.msra.mxu1 %v16423_v14  ;;  %v1177_v13 = vld [vmem:[%s19172_s10 + $0x1220] sm:$0xff]  ;;  %v19631_v5 = vld [vmem:[%s19172_s10 + $0xa98] sm:$0xff]  ;;  %v19885_v46 = vld [vmem:[%s19172_s10 + $0xb10] sm:$0xff] }
 0x315   : > { %16426 = vmatprep.subr.bf16.mxu0 %v16425_v17  ;;  %16434 = vmatprep.subr.bf16.mxu1 %v16433_v18  ;;  %v1433_v14 = vld [vmem:[%s19172_s10 + $0x1a20] sm:$0xff]  ;;  %v1179_v17 = vld [vmem:[%s19172_s10 + $0x1230] sm:$0xff]  ;;  %26117 = vst [vmem:[#allocation55_spill] sm:$0xff] %v19885_v46  ;;  %v19901_v45 = vld [vmem:[%s19172_s10 + $0x1b08] sm:$0xff] }
 0x316   : > { %v1435_v18 = vld [vmem:[%s19172_s10 + $0x1a30] sm:$0xff]  ;;  %v16463_v23 = vpack.c.bf16 %v1433_v14, %v1177_v13  ;;  %v19646_v13 = vld [vmem:[%s19172_s10 + $0x1288] sm:$0xff]  ;;  %v19910_v33 = vld [vmem:[%s19172_s10 + $0x1300] sm:$0xff] }
 0x317   : > { %15756 = vmatmul.mubr.msk.f32.vlgmr.msra.gmra.mrb[30].mxu0 %vm520_vm3, %v19216_v7  ;;  %15757 = vmatmul.mubr.msk.f32.vlgmr.msra.gmra.mrb[30].mxu1 %vm520_vm3, %v19216_v7  ;;  %v16471_v24 = vpack.c.bf16 %v1435_v18, %v1179_v17  ;;  %v19649_v14 = vld [vmem:[%s19172_s10 + $0x1a88] sm:$0xff]  ;;  %v19658_v17 = vld [vmem:[%s19172_s10 + $0x1280] sm:$0xff]  ;;  %v19928_v56 = vld [vmem:[%s19172_s10 + $0x1310] sm:$0xff] }
 0x318   : > { %16428 = vmatpush1.bf16.msra.mxu0 %v16427_v25  ;;  %16436 = vmatpush1.bf16.msra.mxu1 %v16435_v26  ;;  %v669_v25 = vld [vmem:[%s19172_s10 + $0x240] sm:$0xff]  ;;  %26120 = vst [vmem:[#allocation56_spill] sm:$0xff] %v19928_v56  ;;  %v26125_v55 = vpack.c.bf16 %v19649_v14, %v19646_v13  ;;  %v19964_v14 = vld [vmem:[%s19172_s10 + $0x330] sm:$0xff] }
 0x319   : > { %16430 = vmatprep.subr.bf16.mxu0 %v16429_v29  ;;  %16438 = vmatprep.subr.bf16.mxu1 %v16437_v30  ;;  %v925_v26 = vld [vmem:[%s19172_s10 + $0xa40] sm:$0xff]  ;;  %v671_v29 = vld [vmem:[%s19172_s10 + $0x250] sm:$0xff]  ;;  %26127 = vst [vmem:[#allocation61_spill] sm:$0xff] %v19964_v14 }
 0x31a   : > { %5162 = vmatprep.mubr.f32.mxu0 %v25540_v1  ;;  %5233 = vmatprep.mubr.f32.mxu1 %v25540_v1  ;;  %v927_v30 = vld [vmem:[%s19172_s10 + $0xa50] sm:$0xff]  ;;  %v16475_v35 = vpack.c.bf16 %v925_v26, %v669_v25  ;;  %v19661_v18 = vld [vmem:[%s19172_s10 + $0x1a80] sm:$0xff] }
 0x31b   : > { %v16483_v36 = vpack.c.bf16 %v927_v30, %v671_v29  ;;  %v19686_v25 = vld [vmem:[%s19172_s10 + $0x2a0] sm:$0xff]  ;;  %v19698_v29 = vld [vmem:[%s19172_s10 + $0x12a8] sm:$0xff]  ;;  %v20029_v59 = vld [vmem:[%s19172_s10 + $0x350] sm:$0xff] }
 0x31c   : > { %16432 = vmatpush1.bf16.msra.mxu0 %v16431_v37  ;;  %16440 = vmatpush1.bf16.msra.mxu1 %v16439_v38  ;;  %v1181_v37 = vld [vmem:[%s19172_s10 + $0x1240] sm:$0xff]  ;;  %v19701_v30 = vld [vmem:[%s19172_s10 + $0x1aa8] sm:$0xff]  ;;  %26141 = vst [vmem:[#allocation74_spill] sm:$0xff] %v20029_v59 }
 0x31d   : > { %16442 = vmatprep.subr.bf16.mxu0 %v16441_v41  ;;  %16450 = vmatprep.subr.bf16.mxu1 %v16449_v42  ;;  %v1437_v38 = vld [vmem:[%s19172_s10 + $0x1a40] sm:$0xff]  ;;  %v1183_v41 = vld [vmem:[%s19172_s10 + $0x1250] sm:$0xff] }
 0x31e   : > { %v1439_v42 = vld [vmem:[%s19172_s10 + $0x1a50] sm:$0xff]  ;;  %v16479_v47 = vpack.c.bf16 %v1437_v38, %v1181_v37  ;;  %v19689_v26 = vld [vmem:[%s19172_s10 + $0xaa0] sm:$0xff] }
 0x31f   : > { %15758 = vmatmul.mubr.msk.f32.vlgmr.msra.gmra.mrb[32].mxu0 %vm520_vm3, %v19216_v7  ;;  %15759 = vmatmul.mubr.msk.f32.vlgmr.msra.gmra.mrb[32].mxu1 %vm520_vm3, %v19216_v7  ;;  %v16487_v48 = vpack.c.bf16 %v1439_v42, %v1183_v41  ;;  %v19720_v37 = vld [vmem:[%s19172_s10 + $0x12b0] sm:$0xff]  ;;  %v19732_v42 = vld [vmem:[%s19172_s10 + $0x2c8] sm:$0xff]  ;;  %v19961_v13 = vld [vmem:[%s19172_s10 + $0xb20] sm:$0xff] }
 0x320   : > { %16444 = vmatpush1.bf16.msra.mxu0 %v16443_v49  ;;  %16452 = vmatpush1.bf16.msra.mxu1 %v16451_v50  ;;  %v673_v49 = vld [vmem:[%s19172_s10 + $0x260] sm:$0xff]  ;;  %26085 = vst [vmem:[#allocation23_spill] sm:$0xff] %v19720_v37  ;;  %v19723_v38 = vld [vmem:[%s19172_s10 + $0x1ab0] sm:$0xff]  ;;  %26087 = vst [vmem:[#allocation25_spill] sm:$0xff] %v19732_v42 }
 0x321   : > { %16446 = vmatprep.subr.bf16.mxu0 %v16445_v53  ;;  %16454 = vmatprep.subr.bf16.mxu1 %v16453_v54  ;;  %v929_v50 = vld [vmem:[%s19172_s10 + $0xa60] sm:$0xff]  ;;  %v675_v53 = vld [vmem:[%s19172_s10 + $0x270] sm:$0xff]  ;;  %26086 = vst [vmem:[#allocation24_spill] sm:$0xff] %v19723_v38  ;;  %v19864_v38 = vld [vmem:[%s19172_s10 + $0x308] sm:$0xff] }
 0x322   : > { %5304 = vmatprep.mubr.f32.mxu0 %v25540_v1  ;;  %5375 = vmatprep.mubr.f32.mxu1 %v25540_v1  ;;  %v931_v54 = vld [vmem:[%s19172_s10 + $0xa70] sm:$0xff]  ;;  %v16491_v63 = vpack.c.bf16 %v929_v50, %v673_v49  ;;  %26115 = vst [vmem:[#allocation53_spill] sm:$0xff] %v19864_v38  ;;  %v19904_v42 = vld [vmem:[%s19172_s10 + $0x1318] sm:$0xff]  ;;  %v19913_v37 = vld [vmem:[%s19172_s10 + $0x1b00] sm:$0xff] }
 0x323   : > { %v16499_v0 = vpack.c.bf16 %v931_v54, %v675_v53  ;;  %v19753_v49 = vld [vmem:[%s19172_s10 + $0xad0] sm:$0xff]  ;;  %v19764_v53 = vld [vmem:[%s19172_s10 + $0x12c8] sm:$0xff]  ;;  %v20108_v56 = vld [vmem:[%s19172_s10 + $0xb60] sm:$0xff] }
 0x324   : > { %16448 = vmatpush1.bf16.msra.mxu0 %v16447_v61  ;;  %16456 = vmatpush1.bf16.msra.mxu1 %v16455_v62  ;;  %v19616_v61 = vld [vmem:[%s19172_s10 + $0x1270] sm:$0xff]  ;;  %26094 = vst [vmem:[#allocation32_spill] sm:$0xff] %v19753_v49  ;;  %v19767_v54 = vld [vmem:[%s19172_s10 + $0x1ac8] sm:$0xff]  ;;  %26160 = vst [vmem:[#allocation89_spill] sm:$0xff] %v20108_v56 }
 0x325   : > { %16458 = vmatprep.subr.bf16.mxu0 %v16457_v2  ;;  %16466 = vmatprep.subr.bf16.mxu1 %v16465_v3  ;;  %v19619_v62 = vld [vmem:[%s19172_s10 + $0x1a70] sm:$0xff]  ;;  %v19622_v2 = vld [vmem:[%s19172_s10 + $0x288] sm:$0xff]  ;;  %v20308_v57 = vld [vmem:[%s19172_s10 + $0x3a0] sm:$0xff]  ;;  %v26222_v56 = vpack.c.bf16 %v19767_v54, %v19764_v53 }
 0x326   : > { %v19625_v3 = vld [vmem:[%s19172_s10 + $0xa88] sm:$0xff]  ;;  %v16503_v32 = vpack.c.bf16 %v19619_v62, %v19616_v61  ;;  %v19814_v61 = vld [vmem:[%s19172_s10 + $0x2e0] sm:$0xff]  ;;  %v19850_v62 = vld [vmem:[%s19172_s10 + $0x12f0] sm:$0xff]  ;;  %26208 = vst [vmem:[#allocation111_spill] sm:$0xff] %v20308_v57 }
 0x327   : > { %15760 = vmatmul.mubr.msk.f32.vlgmr.msra.gmra.mrb[34].mxu0 %vm520_vm3, %v19216_v7  ;;  %15761 = vmatmul.mubr.msk.f32.vlgmr.msra.gmra.mrb[34].mxu1 %vm520_vm3, %v19216_v7  ;;  %26103 = vst [vmem:[#allocation41_spill] sm:$0xff] %v19814_v61  ;;  %26113 = vst [vmem:[#allocation51_spill] sm:$0xff] %v19850_v62  ;;  %v19853_v50 = vld [vmem:[%s19172_s10 + $0x1af0] sm:$0xff]  ;;  %v20381_v54 = vld [vmem:[%s19172_s10 + $0x3c8] sm:$0xff] }
 0x328   : > { %16460 = vmatpush1.bf16.msra.mxu0 %v16459_v11  ;;  %16468 = vmatpush1.bf16.msra.mxu1 %v16467_v12  ;;  %v19640_v11 = vld [vmem:[%s19172_s10 + $0x290] sm:$0xff]  ;;  %26114 = vst [vmem:[#allocation52_spill] sm:$0xff] %v19853_v50  ;;  %v26144_v50 = vpack.c.bf16 %v19667_v20, %v19664_v19  ;;  %v20053_v19 = vld [vmem:[%s19172_s10 + $0x1358] sm:$0xff]  ;;  %v26187_v46 = vld [vmem:[#allocation24_spill] sm:$0xff] }
 0x329   : > { %16462 = vmatprep.subr.bf16.mxu0 %v16461_v15  ;;  %16470 = vmatprep.subr.bf16.mxu1 %v16469_v16  ;;  %v19643_v12 = vld [vmem:[%s19172_s10 + $0xa90] sm:$0xff]  ;;  %v19652_v15 = vld [vmem:[%s19172_s10 + $0x1298] sm:$0xff]  ;;  %26147 = vst [vmem:[#allocation78_spill] sm:$0xff] %v20053_v19  ;;  %v26195_v19 = vld [vmem:[#allocation25_spill] sm:$0xff] }
 0x32a   : > { %5446 = vmatprep.mubr.f32.mxu0 %v25540_v1  ;;  %5517 = vmatprep.mubr.f32.mxu1 %v25540_v1  ;;  %v19655_v16 = vld [vmem:[%s19172_s10 + $0x1a98] sm:$0xff]  ;;  %v19882_v41 = vld [vmem:[%s19172_s10 + $0x310] sm:$0xff]  ;;  %v26119_v49 = vpack.c.bf16 %v19643_v12, %v19640_v11  ;;  %v19937_v11 = vld [vmem:[%s19172_s10 + $0xb28] sm:$0xff]  ;;  %26228 = vst [vmem:[#allocation115_spill] sm:$0xff] %v20381_v54 }
 0x32b   : > { %26116 = vst [vmem:[#allocation54_spill] sm:$0xff] %v19882_v41  ;;  %26122 = vst [vmem:[#allocation58_spill] sm:$0xff] %v19937_v11  ;;  %v19940_v12 = vld [vmem:[%s19172_s10 + $0x338] sm:$0xff]  ;;  %v26126_v58 = vpack.c.bf16 %v19655_v16, %v19652_v15  ;;  %v19967_v15 = vld [vmem:[%s19172_s10 + $0xb30] sm:$0xff] }
 0x32c   : > { %16464 = vmatpush1.bf16.msra.mxu0 %v16463_v23  ;;  %16472 = vmatpush1.bf16.msra.mxu1 %v16471_v24  ;;  %v19676_v23 = vld [vmem:[%s19172_s10 + $0x2b8] sm:$0xff]  ;;  %26123 = vst [vmem:[#allocation59_spill] sm:$0xff] %v19940_v12  ;;  %v19970_v16 = vld [vmem:[%s19172_s10 + $0x1328] sm:$0xff]  ;;  %v19996_v61 = vld [vmem:[%s19172_s10 + $0x1330] sm:$0xff] }
 0x32d   : > { %16474 = vmatprep.subr.bf16.mxu0 %v16473_v27  ;;  %16482 = vmatprep.subr.bf16.mxu1 %v16481_v28  ;;  %v19679_v24 = vld [vmem:[%s19172_s10 + $0xab8] sm:$0xff]  ;;  %v19692_v27 = vld [vmem:[%s19172_s10 + $0x2b0] sm:$0xff]  ;;  %26128 = vst [vmem:[#allocation62_spill] sm:$0xff] %v19970_v16  ;;  %26133 = vst [vmem:[#allocation66_spill] sm:$0xff] %v19996_v61 }
 0x32e   : > { %v19695_v28 = vld [vmem:[%s19172_s10 + $0xab0] sm:$0xff]  ;;  %v20056_v20 = vld [vmem:[%s19172_s10 + $0x1b58] sm:$0xff]  ;;  %v26150_v41 = vpack.c.bf16 %v19679_v24, %v19676_v23  ;;  %v20085_v24 = vld [vmem:[%s19172_s10 + $0x368] sm:$0xff] }
 0x32f   : > { %15762 = vmatmul.mubr.msk.f32.vlgmr.msra.gmra.mrb[36].mxu0 %vm520_vm3, %v19216_v7  ;;  %15763 = vmatmul.mubr.msk.f32.vlgmr.msra.gmra.mrb[36].mxu1 %vm520_vm3, %v19216_v7  ;;  %v20032_v38 = vld [vmem:[%s19172_s10 + $0xb50] sm:$0xff]  ;;  %26148 = vst [vmem:[#allocation79_spill] sm:$0xff] %v20056_v20  ;;  %26155 = vst [vmem:[#allocation84_spill] sm:$0xff] %v20085_v24  ;;  %v20105_v11 = vld [vmem:[%s19172_s10 + $0x360] sm:$0xff]  ;;  %v26166_v14 = vpack.c.bf16 %v19695_v28, %v19692_v27 }
 0x330   : > { %16476 = vmatpush1.bf16.msra.mxu0 %v16475_v35  ;;  %16484 = vmatpush1.bf16.msra.mxu1 %v16483_v36  ;;  %v19714_v35 = vld [vmem:[%s19172_s10 + $0x12a0] sm:$0xff]  ;;  %26142 = vst [vmem:[#allocation75_spill] sm:$0xff] %v20032_v38  ;;  %v20082_v23 = vld [vmem:[%s19172_s10 + $0x1b50] sm:$0xff]  ;;  %26159 = vst [vmem:[#allocation88_spill] sm:$0xff] %v20105_v11 }
 0x331   : > { %16478 = vmatprep.subr.bf16.mxu0 %v16477_v39  ;;  %16486 = vmatprep.subr.bf16.mxu1 %v16485_v40  ;;  %26083 = vst [vmem:[#allocation21_spill] sm:$0xff] %v19714_v35  ;;  %v19717_v36 = vld [vmem:[%s19172_s10 + $0x1aa0] sm:$0xff]  ;;  %v16505_v39 = vpack.c.bf16 %v19625_v3, %v19622_v2  ;;  %v16513_v40 = vpack.c.bf16 %v19631_v5, %v19628_v4  ;;  %v19796_v2 = vld [vmem:[%s19172_s10 + $0x2e8] sm:$0xff]  ;;  %v19802_v4 = vld [vmem:[%s19172_s10 + $0x2f8] sm:$0xff] }
 0x332   : > { %5588 = vmatprep.mubr.f32.mxu0 %v25540_v1  ;;  %5659 = vmatprep.mubr.f32.mxu1 %v25540_v1  ;;  %26084 = vst [vmem:[#allocation22_spill] sm:$0xff] %v19717_v36  ;;  %26099 = vst [vmem:[#allocation37_spill] sm:$0xff] %v19796_v2  ;;  %v19799_v3 = vld [vmem:[%s19172_s10 + $0xae8] sm:$0xff]  ;;  %v19805_v5 = vld [vmem:[%s19172_s10 + $0xaf8] sm:$0xff] }
 0x333   : > { %26100 = vst [vmem:[#allocation38_spill] sm:$0xff] %v19799_v3  ;;  %26101 = vst [vmem:[#allocation39_spill] sm:$0xff] %v19802_v4  ;;  %v19867_v35 = vld [vmem:[%s19172_s10 + $0xb08] sm:$0xff]  ;;  %v19870_v36 = vld [vmem:[%s19172_s10 + $0x318] sm:$0xff]  ;;  %v26132_v4 = vmov 0.0  }
 0x334   : > { %16480 = vmatpush1.bf16.msra.mxu0 %v16479_v47  ;;  %16488 = vmatpush1.bf16.msra.mxu1 %v16487_v48  ;;  %v19747_v47 = vld [vmem:[%s19172_s10 + $0xac0] sm:$0xff]  ;;  %v19750_v48 = vld [vmem:[%s19172_s10 + $0x2d0] sm:$0xff]  ;;  %26102 = vst [vmem:[#allocation40_spill] sm:$0xff] %v19805_v5  ;;  %v19979_v5 = vld [vmem:[%s19172_s10 + $0x1b38] sm:$0xff] }
 0x335   : > { %16490 = vmatprep.subr.bf16.mxu0 %v16489_v51  ;;  %16498 = vmatprep.subr.bf16.mxu1 %v16497_v52  ;;  %26092 = vst [vmem:[#allocation30_spill] sm:$0xff] %v19747_v47  ;;  %26093 = vst [vmem:[#allocation31_spill] sm:$0xff] %v19750_v48  ;;  %v19838_v52 = vld [vmem:[%s19172_s10 + $0x12f8] sm:$0xff]  ;;  %v19898_v47 = vld [vmem:[%s19172_s10 + $0x1308] sm:$0xff]  ;;  %v26118_v48 = vpack.c.bf16 %v19637_v8, %v19634_v6 }
 0x336   : > { %26109 = vst [vmem:[#allocation47_spill] sm:$0xff] %v19838_v52  ;;  %v19841_v51 = vld [vmem:[%s19172_s10 + $0x1af8] sm:$0xff]  ;;  %v19931_v6 = vld [vmem:[%s19172_s10 + $0x1b10] sm:$0xff]  ;;  %v19934_v8 = vld [vmem:[%s19172_s10 + $0x328] sm:$0xff] }
 0x337   : > { %15764 = vmatmul.mubr.msk.f32.vlgmr.msra.gmra.mrb[38].mxu0 %vm520_vm3, %v19216_v7  ;;  %15765 = vmatmul.mubr.msk.f32.vlgmr.msra.gmra.mrb[38].mxu1 %vm520_vm3, %v19216_v7  ;;  %26110 = vst [vmem:[#allocation48_spill] sm:$0xff] %v19841_v51  ;;  %26121 = vst [vmem:[#allocation57_spill] sm:$0xff] %v19934_v8  ;;  %v19958_v2 = vld [vmem:[%s19172_s10 + $0x320] sm:$0xff]  ;;  %v20002_v3 = vld [vmem:[%s19172_s10 + $0x348] sm:$0xff] }
 0x338   : > { %16492 = vmatpush1.bf16.msra.mxu0 %v16491_v63  ;;  %16500 = vmatpush1.bf16.msra.mxu1 %v16499_v0  ;;  %v19790_v63 = vld [vmem:[%s19172_s10 + $0x12d0] sm:$0xff]  ;;  %26131 = vst [vmem:[#allocation65_spill] sm:$0xff] %v19979_v5  ;;  %26135 = vst [vmem:[#allocation68_spill] sm:$0xff] %v20002_v3  ;;  %v20023_v52 = vld [vmem:[%s19172_s10 + $0x340] sm:$0xff] }
 0x339   : > { %16494 = vmatprep.subr.bf16.mxu0 %v16493_v9  ;;  %16502 = vmatprep.subr.bf16.mxu1 %v16501_v10  ;;  %v19793_v0 = vld [vmem:[%s19172_s10 + $0x1ad0] sm:$0xff]  ;;  %v19829_v9 = vld [vmem:[%s19172_s10 + $0x1ae8] sm:$0xff]  ;;  %v19873_v10 = vld [vmem:[%s19172_s10 + $0xb18] sm:$0xff]  ;;  %26139 = vst [vmem:[#allocation72_spill] sm:$0xff] %v20023_v52 }
 0x33a   : > { %5730 = vmatprep.mubr.f32.mxu0 %v25540_v1  ;;  %5801 = vmatprep.mubr.f32.mxu1 %v25540_v1  ;;  %26108 = vst [vmem:[#allocation46_spill] sm:$0xff] %v19829_v9  ;;  %v19876_v1 = vld [vmem:[%s19172_s10 + $0x300] sm:$0xff]  ;;  %v26143_v9 = vpack.c.bf16 %v19661_v18, %v19658_v17  ;;  %v20047_v17 = vld [vmem:[%s19172_s10 + $0x1348] sm:$0xff]  ;;  %26154 = vst [vmem:[#allocation83_spill] sm:$0xff] %v20082_v23 }
 0x33b   : > { %v20026_v51 = vld [vmem:[%s19172_s10 + $0xb40] sm:$0xff]  ;;  %26145 = vst [vmem:[#allocation76_spill] sm:$0xff] %v20047_v17  ;;  %v20050_v18 = vld [vmem:[%s19172_s10 + $0x1b48] sm:$0xff]  ;;  %v20102_v8 = vld [vmem:[%s19172_s10 + $0xb78] sm:$0xff] }
 0x33c   : > { %16496 = vmatpush1.bf16.msra.mxu0 %v16495_v31  ;;  %16504 = vmatpush1.bf16.msra.mxu1 %v16503_v32  ;;  %v19820_v31 = vld [vmem:[%s19172_s10 + $0x2f0] sm:$0xff]  ;;  %26140 = vst [vmem:[#allocation73_spill] sm:$0xff] %v20026_v51  ;;  %26146 = vst [vmem:[#allocation77_spill] sm:$0xff] %v20050_v18  ;;  %v20127_v5 = vld [vmem:[%s19172_s10 + $0x1368] sm:$0xff] }
 0x33d   : > { %26105 = vst [vmem:[#allocation43_spill] sm:$0xff] %v19820_v31  ;;  %v19823_v32 = vld [vmem:[%s19172_s10 + $0xaf0] sm:$0xff]  ;;  %16506 = vmatprep.subr.bf16.mxu0 %v16505_v39  ;;  %16514 = vmatprep.subr.bf16.mxu1 %v16513_v40  ;;  %v19844_v39 = vld [vmem:[%s19172_s10 + $0x12e0] sm:$0xff]  ;;  %26158 = vst [vmem:[#allocation87_spill] sm:$0xff] %v20102_v8 }
 0x33e   : > { %26106 = vst [vmem:[#allocation44_spill] sm:$0xff] %v19823_v32  ;;  %26111 = vst [vmem:[#allocation49_spill] sm:$0xff] %v19844_v39  ;;  %v19847_v40 = vld [vmem:[%s19172_s10 + $0x1ae0] sm:$0xff]  ;;  %v20017_v39 = vld [vmem:[%s19172_s10 + $0x358] sm:$0xff] }
 0x33f   : > { %26112 = vst [vmem:[#allocation50_spill] sm:$0xff] %v19847_v40  ;;  %15766 = vmatmul.mubr.msk.f32.vlgmr.msra.gmra.mrb[40].mxu0 %vm520_vm3, %v19216_v7  ;;  %15767 = vmatmul.mubr.msk.f32.vlgmr.msra.gmra.mrb[40].mxu1 %vm520_vm3, %v19216_v7  ;;  %v19990_v31 = vld [vmem:[%s19172_s10 + $0x1320] sm:$0xff]  ;;  %26137 = vst [vmem:[#allocation70_spill] sm:$0xff] %v20017_v39  ;;  %v20020_v40 = vld [vmem:[%s19172_s10 + $0xb58] sm:$0xff] }
 0x340   : > { %16508 = vmatpush1.bf16.msra.mxu0 %v26118_v48  ;;  %16516 = vmatpush1.bf16.msra.mxu1 %v26119_v49  ;;  %v19943_v48 = vld [vmem:[%s19172_s10 + $0xb38] sm:$0xff]  ;;  %v1685_v49 = vlaneseq  ;;  %v19993_v32 = vld [vmem:[%s19172_s10 + $0x1b20] sm:$0xff]  ;;  %26138 = vst [vmem:[#allocation71_spill] sm:$0xff] %v20020_v40  ;;  %v20111_v62 = vld [vmem:[%s19172_s10 + $0x370] sm:$0xff] }
 0x341   : > { %26124 = vst [vmem:[#allocation60_spill] sm:$0xff] %v19943_v48  ;;  %16510 = vmatprep.subr.bf16.mxu0 %v26125_v55  ;;  %16518 = vmatprep.subr.bf16.mxu1 %v26126_v58  ;;  %v19973_v55 = vld [vmem:[%s19172_s10 + $0x1b28] sm:$0xff]  ;;  %v19976_v58 = vld [vmem:[%s19172_s10 + $0x1338] sm:$0xff]  ;;  %26161 = vst [vmem:[#allocation90_spill] sm:$0xff] %v20111_v62 }
 0x342   : > { %26129 = vst [vmem:[#allocation63_spill] sm:$0xff] %v19973_v55  ;;  %26130 = vst [vmem:[#allocation64_spill] sm:$0xff] %v19976_v58  ;;  %5872 = vmatprep.mubr.f32.mxu0 %v26132_v4  ;;  %5943 = vmatprep.mubr.f32.mxu1 %v26132_v4  ;;  %v20099_v48 = vld [vmem:[%s19172_s10 + $0x378] sm:$0xff]  ;;  %v20124_v58 = vld [vmem:[%s19172_s10 + $0xb70] sm:$0xff]  ;;  %v26165_v55 = vpack.c.bf16 %v19689_v26, %v19686_v25 }
 0x343   : > { %26157 = vst [vmem:[#allocation86_spill] sm:$0xff] %v20099_v48  ;;  %26162 = vst [vmem:[#allocation91_spill] sm:$0xff] %v20124_v58  ;;  %v20130_v16 = vld [vmem:[%s19172_s10 + $0x1b68] sm:$0xff]  ;;  %v20149_v25 = vld [vmem:[%s20146_s24] sm:$0xff] }
 0x344   : > { %16512 = vmatpush1.bf16.msra.mxu0 %v26143_v9  ;;  %16520 = vmatpush1.bf16.msra.mxu1 %v26144_v50  ;;  %v20058_v50 = vshrl.u32 %v1685_v49, 7  ;;  %v26149_v9 = vpack.c.bf16 %v19673_v22, %v19670_v21  ;;  %v20073_v21 = vld [vmem:[%s19172_s10 + $0x1340] sm:$0xff]  ;;  %26163 = vst [vmem:[#allocation92_spill] sm:$0xff] %v20127_v5  ;;  %26164 = vst [vmem:[#allocation93_spill] sm:$0xff] %v20130_v16  ;;  %v20155_v27 = vld [vmem:[%s19172_s10 + $0x1378] sm:$0xff] }
 0x345   : > { %16530 = vmatprep.subr.bf16.mxu1 %v26150_v41  ;;  %26151 = vst [vmem:[#allocation80_spill] sm:$0xff] %v20073_v21  ;;  %v20076_v22 = vld [vmem:[%s19172_s10 + $0x1b40] sm:$0xff]  ;;  %v20088_v41 = vld [vmem:[%s19172_s10 + $0xb68] sm:$0xff]  ;;  %26167 = vst [vmem:[#allocation94_spill] sm:$0xff] %v20155_v27 }
 0x346   : > { %16522 = vmatprep.subr.bf16.mxu0 %v26149_v9  ;;  %26152 = vst [vmem:[#allocation81_spill] sm:$0xff] %v20076_v22  ;;  %v20079_v9 = vld [vmem:[%s19172_s10 + $0x1350] sm:$0xff]  ;;  %26156 = vst [vmem:[#allocation85_spill] sm:$0xff] %v20088_v41  ;;  %v20152_v26 = vsub.s32 0, %v20058_v50  ;;  %v20158_v28 = vld [vmem:[%s19172_s10 + $0x1b78] sm:$0xff]  ;;  %v20171_v59 = vsub.s32 2, %v20058_v50 }
 0x347   : > { %26153 = vst [vmem:[#allocation82_spill] sm:$0xff] %v20079_v9  ;;  %15768 = vmatmul.mubr.msk.f32.vlgmr.msra.gmra.mrb[42].mxu0 %vm520_vm3, %v19216_v7  ;;  %15769 = vmatmul.mubr.msk.f32.vlgmr.msra.gmra.mrb[42].mxu1 %vm520_vm3, %v19216_v7  ;;  %26168 = vst [vmem:[#allocation95_spill] sm:$0xff] %v20158_v28  ;;  %v20174_v38 = vsub.s32 1, %v20058_v50  ;;  %v20203_v20 = vsub.s32 3, %v20058_v50  ;;  %v20206_v17 = vld [vmem:[%s19172_s10 + $0x398] sm:$0xff]  ;;  %v20212_v52 = vld [vmem:[%s19172_s10 + $0x380] sm:$0xff] }
 0x348   : > { %16524 = vmatpush1.bf16.msra.mxu0 %v26165_v55  ;;  %16532 = vmatpush1.bf16.msra.mxu1 %v26166_v14  ;;  %v26169_v14 = vpack.c.bf16 %v19701_v30, %v19698_v29  ;;  %v26170_v55 = vld [vmem:[#allocation20_spill] sm:$0xff]  ;;  %26178 = vst [vmem:[#allocation101_spill] sm:$0xff] %v20206_v17  ;;  %v20209_v18 = vld [vmem:[%s19172_s10 + $0xb98] sm:$0xff]  ;;  %26180 = vst [vmem:[#allocation103_spill] sm:$0xff] %v20212_v52  ;;  %v20240_v24 = vsub.s32 4, %v20058_v50  ;;  %v20243_v49 = vsub.s32 6, %v20058_v50 }
 0x349   : > { %v26171_v12 = vpack.c.bf16 %v19711_v34, %v26170_v55  ;;  %v20177_v29 = vld [vmem:[%s19172_s10 + $0x1360] sm:$0xff]  ;;  %v20183_v34 = vld [vmem:[%s19172_s10 + $0x1370] sm:$0xff]  ;;  %v20192_v55 = vld [vmem:[%s19172_s10 + $0xb88] sm:$0xff]  ;;  %6014 = vmatprep.mubr.f32.mxu0 %v26132_v4  ;;  %6085 = vmatprep.mubr.f32.mxu1 %v26132_v4  ;;  %26179 = vst [vmem:[#allocation102_spill] sm:$0xff] %v20209_v18  ;;  %v26241_v17 = vpack.c.bf16 %v19793_v0, %v19790_v63 }
 0x34a   : > { %16526 = vmatprep.subr.bf16.mxu0 %v26169_v14  ;;  %26172 = vst [vmem:[#allocation20_spill] sm:$0xff] %v20177_v29  ;;  %v20180_v30 = vld [vmem:[%s19172_s10 + $0x1b60] sm:$0xff]  ;;  %26174 = vst [vmem:[#allocation97_spill] sm:$0xff] %v20183_v34  ;;  %v20189_v14 = vld [vmem:[%s19172_s10 + $0x388] sm:$0xff] }
 0x34b   : > { %16534 = vmatprep.subr.bf16.mxu1 %v26171_v12  ;;  %26173 = vst [vmem:[#allocation96_spill] sm:$0xff] %v20180_v30  ;;  %v20186_v12 = vld [vmem:[%s19172_s10 + $0x1b70] sm:$0xff]  ;;  %26176 = vst [vmem:[#allocation99_spill] sm:$0xff] %v20189_v14  ;;  %v20223_v41 = vld [vmem:[%s19172_s10 + $0xb80] sm:$0xff] }
 0x34c   : > { %26175 = vst [vmem:[#allocation98_spill] sm:$0xff] %v20186_v12  ;;  %26177 = vst [vmem:[#allocation100_spill] sm:$0xff] %v20192_v55  ;;  %v20226_v9 = vld [vmem:[%s19172_s10 + $0x390] sm:$0xff]  ;;  %v26185_v22 = vld [vmem:[#allocation21_spill] sm:$0xff] }
 0x34d   : > { %26181 = vst [vmem:[#allocation104_spill] sm:$0xff] %v20223_v41  ;;  %26182 = vst [vmem:[#allocation105_spill] sm:$0xff] %v20226_v9  ;;  %v20229_v23 = vld [vmem:[%s19172_s10 + $0xb90] sm:$0xff]  ;;  %v26188_v48 = vld [vmem:[#allocation23_spill] sm:$0xff] }
 0x34e   : > { %26183 = vst [vmem:[#allocation106_spill] sm:$0xff] %v20229_v23  ;;  %v26184_v21 = vld [vmem:[#allocation22_spill] sm:$0xff]  ;;  %v26189_v8 = vpack.c.bf16 %v26187_v46, %v26188_v48  ;;  %v20249_v46 = vld [vmem:[%s19172_s10 + $0x1388] sm:$0xff]  ;;  %v20255_v48 = vld [vmem:[%s19172_s10 + $0x1398] sm:$0xff] }
 0x34f   : > { %v26186_v51 = vpack.c.bf16 %v26184_v21, %v26185_v22  ;;  %26190 = vst [vmem:[#allocation22_spill] sm:$0xff] %v20249_v46  ;;  %26192 = vst [vmem:[#allocation24_spill] sm:$0xff] %v20255_v48  ;;  %v20258_v21 = vld [vmem:[%s19172_s10 + $0x1b98] sm:$0xff]  ;;  %v26194_v22 = vld [vmem:[#allocation26_spill] sm:$0xff] }
 0x350   : > { %16536 = vmatpush1.bf16.msra.mxu1 %v26189_v8  ;;  %v20252_v8 = vld [vmem:[%s19172_s10 + $0x1b88] sm:$0xff]  ;;  %26193 = vst [vmem:[#allocation23_spill] sm:$0xff] %v20258_v21  ;;  %v26196_v5 = vpack.c.bf16 %v26194_v22, %v26195_v19  ;;  %v26197_v16 = vld [vmem:[#allocation28_spill] sm:$0xff]  ;;  %v26198_v62 = vld [vmem:[#allocation27_spill] sm:$0xff]  ;;  %v20273_v19 = vsub.s32 7, %v20058_v50 }
 0x351   : > { %16528 = vmatpush1.bf16.msra.mxu0 %v26186_v51  ;;  %v20246_v51 = vsub.s32 5, %v20058_v50  ;;  %26191 = vst [vmem:[#allocation21_spill] sm:$0xff] %v20252_v8  ;;  %v26199_v58 = vpack.c.bf16 %v26197_v16, %v26198_v62  ;;  %v20279_v62 = vld [vmem:[%s19172_s10 + $0x1b80] sm:$0xff]  ;;  %v20282_v16 = vld [vmem:[%s19172_s10 + $0x1390] sm:$0xff]  ;;  %v20288_v22 = vld [vmem:[%s19172_s10 + $0x3a8] sm:$0xff] }
 0x352   : > { %16538 = vmatprep.subr.bf16.mxu0 %v26196_v5  ;;  %v20276_v5 = vld [vmem:[%s19172_s10 + $0x1380] sm:$0xff]  ;;  %26201 = vst [vmem:[#allocation25_spill] sm:$0xff] %v20279_v62  ;;  %26202 = vst [vmem:[#allocation28_spill] sm:$0xff] %v20282_v16  ;;  %v20291_v11 = vld [vmem:[%s19172_s10 + $0xba8] sm:$0xff] }
 0x353   : > { %16546 = vmatprep.subr.bf16.mxu1 %v26199_v58  ;;  %26200 = vst [vmem:[#allocation26_spill] sm:$0xff] %v20276_v5  ;;  %v20285_v58 = vld [vmem:[%s19172_s10 + $0x1b90] sm:$0xff]  ;;  %26204 = vst [vmem:[#allocation107_spill] sm:$0xff] %v20288_v22  ;;  %v20302_v40 = vld [vmem:[%s19172_s10 + $0x3b8] sm:$0xff]  ;;  %15771 = vmatmul.mubr.msk.f32.vlgmr.msra.gmra.mrb[44].mxu1 %vm520_vm3, %v19216_v7 }
 0x354   : > { %26203 = vst [vmem:[#allocation27_spill] sm:$0xff] %v20285_v58  ;;  %26205 = vst [vmem:[#allocation108_spill] sm:$0xff] %v20291_v11  ;;  %v20305_v3 = vld [vmem:[%s19172_s10 + $0xbb8] sm:$0xff]  ;;  %v20311_v61 = vld [vmem:[%s19172_s10 + $0xba0] sm:$0xff]  ;;  %15770 = vmatmul.mubr.msk.f32.vlgmr.msra.gmra.mrb[44].mxu0 %vm520_vm3, %v19216_v7  ;;  %6227 = vmatprep.mubr.f32.mxu1 %v26132_v4 }
 0x355   : > { %26206 = vst [vmem:[#allocation109_spill] sm:$0xff] %v20302_v40  ;;  %26207 = vst [vmem:[#allocation110_spill] sm:$0xff] %v20305_v3  ;;  %v20324_v39 = vld [vmem:[%s19172_s10 + $0x3b0] sm:$0xff]  ;;  %v20330_v55 = vld [vmem:[%s20146_s24 + $0x8] sm:$0xff]  ;;  %6156 = vmatprep.mubr.f32.mxu0 %v26132_v4 }
 0x356   : > { %26209 = vst [vmem:[#allocation112_spill] sm:$0xff] %v20311_v61  ;;  %26210 = vst [vmem:[#allocation113_spill] sm:$0xff] %v20324_v39  ;;  %v20327_v14 = vld [vmem:[%s19172_s10 + $0xbb0] sm:$0xff]  ;;  %v26213_v12 = vld [vmem:[#allocation29_spill] sm:$0xff] }
 0x357   : > { %26211 = vst [vmem:[#allocation114_spill] sm:$0xff] %v20327_v14  ;;  %v26212_v34 = vld [vmem:[#allocation30_spill] sm:$0xff]  ;;  %v26215_v30 = vld [vmem:[#allocation32_spill] sm:$0xff]  ;;  %v26216_v60 = vld [vmem:[#allocation31_spill] sm:$0xff] }
 0x358   : > { %v26214_v29 = vpack.c.bf16 %v26212_v34, %v26213_v12  ;;  %v26217_v28 = vpack.c.bf16 %v26215_v30, %v26216_v60  ;;  %v20345_v34 = vld [vmem:[%s19172_s10 + $0x13a8] sm:$0xff]  ;;  %v20351_v60 = vld [vmem:[%s19172_s10 + $0x13b8] sm:$0xff]  ;;  %v20357_v30 = vld [vmem:[%s19172_s10 + $0x13a0] sm:$0xff] }
 0x359   : > { %26218 = vst [vmem:[#allocation30_spill] sm:$0xff] %v20351_v60  ;;  %26220 = vst [vmem:[#allocation32_spill] sm:$0xff] %v20357_v30  ;;  %v20360_v12 = vld [vmem:[%s19172_s10 + $0x1ba0] sm:$0xff]  ;;  %v26223_v27 = vld [vmem:[#allocation34_spill] sm:$0xff] }
 0x35a   : > { %16540 = vmatpush1.bf16.msra.mxu0 %v26214_v29  ;;  %16548 = vmatpush1.bf16.msra.mxu1 %v26217_v28  ;;  %v20348_v29 = vld [vmem:[%s19172_s10 + $0x1ba8] sm:$0xff]  ;;  %v20354_v28 = vld [vmem:[%s19172_s10 + $0x1bb8] sm:$0xff]  ;;  %26221 = vst [vmem:[#allocation31_spill] sm:$0xff] %v20360_v12  ;;  %v20375_v18 = vld [vmem:[%s19172_s10 + $0x13b0] sm:$0xff] }
 0x35b   : > { %26219 = vst [vmem:[#allocation29_spill] sm:$0xff] %v20354_v28  ;;  %16542 = vmatprep.subr.bf16.mxu0 %v26222_v56  ;;  %v26224_v9 = vld [vmem:[#allocation33_spill] sm:$0xff]  ;;  %26226 = vst [vmem:[#allocation34_spill] sm:$0xff] %v20375_v18  ;;  %v20378_v53 = vld [vmem:[%s19172_s10 + $0x1bb0] sm:$0xff] }
 0x35c   : > { %v26225_v23 = vpack.c.bf16 %v26223_v27, %v26224_v9  ;;  %26227 = vst [vmem:[#allocation33_spill] sm:$0xff] %v20378_v53  ;;  %v20384_v56 = vld [vmem:[%s19172_s10 + $0xbc8] sm:$0xff]  ;;  %v20387_v9 = vld [vmem:[%s19172_s10 + $0x3d8] sm:$0xff]  ;;  %v18842_v27 = vmov 1983009808   ;;  %v20403_v21 = vld [vmem:[%s19172_s10 + $0x3c0] sm:$0xff] }
 0x35d   : > { %26229 = vst [vmem:[#allocation116_spill] sm:$0xff] %v20384_v56  ;;  %26230 = vst [vmem:[#allocation117_spill] sm:$0xff] %v20387_v9  ;;  %v20394_v52 = vunpack.c.l.s4 %v18842_v27  ;;  %v20406_v46 = vld [vmem:[%s19172_s10 + $0xbc0] sm:$0xff]  ;;  %v20409_v8 = vld [vmem:[%s19172_s10 + $0x3d0] sm:$0xff] }
 0x35e   : > { %16550 = vmatprep.subr.bf16.mxu1 %v26225_v23  ;;  %v20390_v23 = vld [vmem:[%s19172_s10 + $0xbd8] sm:$0xff]  ;;  %26232 = vst [vmem:[#allocation119_spill] sm:$0xff] %v20403_v21  ;;  %26233 = vst [vmem:[#allocation120_spill] sm:$0xff] %v20406_v46  ;;  %v20420_v22 = vld [vmem:[%s19172_s10 + $0xbd0] sm:$0xff] }
 0x35f   : > { %26231 = vst [vmem:[#allocation118_spill] sm:$0xff] %v20390_v23  ;;  %26234 = vst [vmem:[#allocation121_spill] sm:$0xff] %v20409_v8  ;;  %v20423_v11 = vld [vmem:[%s19172_s10 + $0x13c8] sm:$0xff]  ;;  %v26238_v58 = vld [vmem:[#allocation36_spill] sm:$0xff]  ;;  %16552 = vmatpush1.bf16.msra.mxu1 %v26241_v17 }
 0x360   : > { %26235 = vst [vmem:[#allocation122_spill] sm:$0xff] %v20420_v22  ;;  %26236 = vst [vmem:[#allocation123_spill] sm:$0xff] %v20423_v11  ;;  %v20426_v16 = vld [vmem:[%s19172_s10 + $0x1bc8] sm:$0xff]  ;;  %v26239_v5 = vld [vmem:[#allocation35_spill] sm:$0xff] }
 0x361   : > { %26237 = vst [vmem:[#allocation124_spill] sm:$0xff] %v20426_v16  ;;  %v26240_v62 = vpack.c.bf16 %v26238_v58, %v26239_v5  ;;  %v20441_v39 = vld [vmem:[%s19172_s10 + $0x13d8] sm:$0xff]  ;;  %v20450_v63 = vld [vmem:[%s19172_s10 + $0x1bc0] sm:$0xff]  ;;  %v26245_v0 = vld [vmem:[#allocation38_spill] sm:$0xff] }
 0x362   : > { %26242 = vst [vmem:[#allocation36_spill] sm:$0xff] %v20441_v39  ;;  %v20444_v5 = vld [vmem:[%s19172_s10 + $0x1bd8] sm:$0xff]  ;;  %26244 = vst [vmem:[#allocation125_spill] sm:$0xff] %v20450_v63  ;;  %v26246_v17 = vld [vmem:[#allocation37_spill] sm:$0xff]  ;;  %15773 = vmatmul.mubr.msk.f32.vlgmr.msra.gmra.mrb[46].mxu1 %vm520_vm3, %v19216_v7 }
 0x363   : > { %16544 = vmatpush1.bf16.msra.mxu0 %v26240_v62  ;;  %v20447_v62 = vld [vmem:[%s19172_s10 + $0x13c0] sm:$0xff]  ;;  %v26247_v58 = vpack.c.bf16 %v26245_v0, %v26246_v17  ;;  %v26249_v41 = vld [vmem:[#allocation39_spill] sm:$0xff]  ;;  %v20465_v40 = vld [vmem:[%s19172_s10 + $0x13d0] sm:$0xff]  ;;  %6369 = vmatprep.mubr.f32.mxu1 %v26132_v4 }
 0x364   : > { %26243 = vst [vmem:[#allocation35_spill] sm:$0xff] %v20447_v62  ;;  %v26248_v48 = vld [vmem:[#allocation40_spill] sm:$0xff]  ;;  %26251 = vst [vmem:[#allocation38_spill] sm:$0xff] %v20465_v40  ;;  %v20468_v3 = vld [vmem:[%s19172_s10 + $0x1bd0] sm:$0xff] }
 0x365   : > { %16554 = vmatprep.subr.bf16.mxu0 %v26247_v58  ;;  %v26250_v14 = vpack.c.bf16 %v26248_v48, %v26249_v41  ;;  %26252 = vst [vmem:[#allocation37_spill] sm:$0xff] %v20468_v3  ;;  %v20471_v0 = vld [vmem:[%s19172_s10 + $0x3e8] sm:$0xff]  ;;  %v20484_v61 = vld [vmem:[%s19172_s10 + $0x3f8] sm:$0xff]  ;;  %v20490_v27 = vld [vmem:[%s19172_s10 + $0x3e0] sm:$0xff] }
 0x366   : > { %26253 = vst [vmem:[#allocation40_spill] sm:$0xff] %v20471_v0  ;;  %v20474_v41 = vld [vmem:[%s19172_s10 + $0xbe8] sm:$0xff]  ;;  %26255 = vst [vmem:[#allocation126_spill] sm:$0xff] %v20484_v61  ;;  %v20487_v57 = vld [vmem:[%s19172_s10 + $0xbf8] sm:$0xff]  ;;  %15772 = vmatmul.mubr.msk.f32.vlgmr.msra.gmra.mrb[46].mxu0 %vm520_vm3, %v19216_v7 }
 0x367   : > { %16562 = vmatprep.subr.bf16.mxu1 %v26250_v14  ;;  %26254 = vst [vmem:[#allocation39_spill] sm:$0xff] %v20474_v41  ;;  %v13852_v14 = vunpack.c.0.s8 %v20394_v52  ;;  %26256 = vst [vmem:[#allocation127_spill] sm:$0xff] %v20487_v57  ;;  %v20493_v30 = vld [vmem:[%s19172_s10 + $0xbe0] sm:$0xff]  ;;  %v20506_v48 = vld [vmem:[%s19172_s10 + $0x3f0] sm:$0xff]  ;;  %6298 = vmatprep.mubr.f32.mxu0 %v26132_v4 }
 0x368   : > { %26257 = vst [vmem:[#allocation128_spill] sm:$0xff] %v20490_v27  ;;  %26258 = vst [vmem:[#allocation129_spill] sm:$0xff] %v20493_v30  ;;  %v20509_v9 = vld [vmem:[%s19172_s10 + $0xbf0] sm:$0xff]  ;;  %v26262_v56 = vld [vmem:[#allocation41_spill] sm:$0xff]  ;;  %v26320_v30 = vpack.c.bf16 %v19907_v43, %v19904_v42 }
 0x369   : > { %26259 = vst [vmem:[#allocation130_spill] sm:$0xff] %v20506_v48  ;;  %26260 = vst [vmem:[#allocation131_spill] sm:$0xff] %v20509_v9  ;;  %v20512_v23 = vld [vmem:[%s20146_s24 + $0x10] sm:$0xff]  ;;  %v26264_v53 = vld [vmem:[#allocation44_spill] sm:$0xff]  ;;  %v26299_v48 = vpack.c.bf16 %v19873_v10, %v19870_v36  ;;  %v26319_v9 = vpack.c.bf16 %v19901_v45, %v19898_v47 }
 0x36a   : > { %v26261_v54 = vld [vmem:[#allocation42_spill] sm:$0xff]  ;;  %v26265_v12 = vld [vmem:[#allocation43_spill] sm:$0xff]  ;;  %v26271_v17 = vld [vmem:[#allocation45_spill] sm:$0xff] }
 0x36b   : > { %v26263_v18 = vpack.c.bf16 %v26261_v54, %v26262_v56  ;;  %v26266_v52 = vpack.c.bf16 %v26264_v53, %v26265_v12  ;;  %v20527_v54 = vld [vmem:[%s19172_s10 + $0x13e8] sm:$0xff]  ;;  %v20533_v12 = vld [vmem:[%s19172_s10 + $0x13f8] sm:$0xff]  ;;  %v20539_v56 = vld [vmem:[%s19172_s10 + $0x13e0] sm:$0xff] }
 0x36c   : > { %26267 = vst [vmem:[#allocation42_spill] sm:$0xff] %v20533_v12  ;;  %v20536_v53 = vld [vmem:[%s19172_s10 + $0x1bf8] sm:$0xff]  ;;  %26268 = vst [vmem:[#allocation41_spill] sm:$0xff] %v20539_v56  ;;  %v26270_v58 = vld [vmem:[#allocation46_spill] sm:$0xff] }
 0x36d   : > { %16556 = vmatpush1.bf16.msra.mxu0 %v26263_v18  ;;  %16564 = vmatpush1.bf16.msra.mxu1 %v26266_v52  ;;  %v20530_v18 = vld [vmem:[%s19172_s10 + $0x1be8] sm:$0xff]  ;;  %v20542_v52 = vld [vmem:[%s19172_s10 + $0x1be0] sm:$0xff]  ;;  %v26272_v22 = vpack.c.bf16 %v26270_v58, %v26271_v17  ;;  %v26274_v8 = vld [vmem:[#allocation47_spill] sm:$0xff]  ;;  %v20577_v58 = vsub.s32 %v13852_v14, %v20058_v50 }
 0x36e   : > { %26269 = vst [vmem:[#allocation44_spill] sm:$0xff] %v20542_v52  ;;  %v26273_v21 = vld [vmem:[#allocation48_spill] sm:$0xff]  ;;  %v20557_v28 = vld [vmem:[%s19172_s10 + $0x13f0] sm:$0xff]  ;;  %v20604_v0 = vld [vmem:[%s19172_s10 + $0x1408] sm:$0xff] }
 0x36f   : > { %16558 = vmatprep.subr.bf16.mxu0 %v26272_v22  ;;  %v26275_v11 = vpack.c.bf16 %v26273_v21, %v26274_v8  ;;  %v20560_v17 = vld [vmem:[%s19172_s10 + $0x1bf0] sm:$0xff]  ;;  %v20563_v22 = vld [vmem:[%s19172_s10 + $0x408] sm:$0xff]  ;;  %v20572_v21 = vld [vmem:[%s19172_s10 + $0xc18] sm:$0xff]  ;;  %26280 = vst [vmem:[#allocation47_spill] sm:$0xff] %v20577_v58 }
 0x370   : > { %26276 = vst [vmem:[#allocation43_spill] sm:$0xff] %v20563_v22  ;;  %v20566_v8 = vld [vmem:[%s19172_s10 + $0xc08] sm:$0xff]  ;;  %26279 = vst [vmem:[#allocation48_spill] sm:$0xff] %v20572_v21  ;;  %v20584_v46 = vld [vmem:[%s19172_s10 + $0x400] sm:$0xff]  ;;  %v26312_v21 = vpack.c.bf16 %v19879_v44, %v19876_v1 }
 0x371   : > { %16566 = vmatprep.subr.bf16.mxu1 %v26275_v11  ;;  %26277 = vst [vmem:[#allocation46_spill] sm:$0xff] %v20566_v8  ;;  %v20569_v11 = vld [vmem:[%s19172_s10 + $0x418] sm:$0xff]  ;;  %26281 = vst [vmem:[#allocation132_spill] sm:$0xff] %v20584_v46  ;;  %v20587_v62 = vld [vmem:[%s19172_s10 + $0xc00] sm:$0xff] }
 0x372   : > { %26278 = vst [vmem:[#allocation45_spill] sm:$0xff] %v20569_v11  ;;  %26282 = vst [vmem:[#allocation133_spill] sm:$0xff] %v20587_v62  ;;  %v20590_v63 = vld [vmem:[%s19172_s10 + $0x410] sm:$0xff]  ;;  %v20607_v41 = vld [vmem:[%s19172_s10 + $0x1c08] sm:$0xff] }
 0x373   : > { %26283 = vst [vmem:[#allocation134_spill] sm:$0xff] %v20590_v63  ;;  %v20601_v58 = vld [vmem:[%s19172_s10 + $0xc10] sm:$0xff]  ;;  %26285 = vst [vmem:[#allocation136_spill] sm:$0xff] %v20604_v0  ;;  %v26288_v3 = vld [vmem:[#allocation49_spill] sm:$0xff] }
 0x374   : > { %26284 = vst [vmem:[#allocation135_spill] sm:$0xff] %v20601_v58  ;;  %26286 = vst [vmem:[#allocation137_spill] sm:$0xff] %v20607_v41  ;;  %v26287_v40 = vld [vmem:[#allocation50_spill] sm:$0xff]  ;;  %v26290_v61 = vld [vmem:[#allocation52_spill] sm:$0xff] }
 0x375   : > { %v26289_v50 = vpack.c.bf16 %v26287_v40, %v26288_v3  ;;  %v26291_v57 = vld [vmem:[#allocation51_spill] sm:$0xff]  ;;  %v26297_v60 = vld [vmem:[#allocation53_spill] sm:$0xff]  ;;  %v20664_v10 = vld [vmem:[%s19172_s10 + $0x420] sm:$0xff] }
 0x376   : > { %v26292_v14 = vpack.c.bf16 %v26290_v61, %v26291_v57  ;;  %v20622_v3 = vld [vmem:[%s19172_s10 + $0x1418] sm:$0xff]  ;;  %v20628_v57 = vld [vmem:[%s19172_s10 + $0x1400] sm:$0xff]  ;;  %v26298_v16 = vpack.c.bf16 %v19867_v35, %v26297_v60  ;;  %v20652_v39 = vld [vmem:[%s19172_s10 + $0x428] sm:$0xff]  ;;  %26304 = vst [vmem:[#allocation141_spill] sm:$0xff] %v20664_v10 }
 0x377   : > { %16560 = vmatpush1.bf16.msra.mxu0 %v26289_v50  ;;  %v20625_v40 = vld [vmem:[%s19172_s10 + $0x1c18] sm:$0xff]  ;;  %26293 = vst [vmem:[#allocation50_spill] sm:$0xff] %v20628_v57  ;;  %v20631_v61 = vld [vmem:[%s19172_s10 + $0x1c00] sm:$0xff]  ;;  %v20634_v50 = vld [vmem:[%s19172_s10 + $0x1410] sm:$0xff] }
 0x378   : > { %16568 = vmatpush1.bf16.msra.mxu1 %v26292_v14  ;;  %26294 = vst [vmem:[#allocation49_spill] sm:$0xff] %v20631_v61  ;;  %26295 = vst [vmem:[#allocation52_spill] sm:$0xff] %v20634_v50  ;;  %v20637_v14 = vld [vmem:[%s19172_s10 + $0x1c10] sm:$0xff]  ;;  %16570 = vmatprep.subr.bf16.mxu0 %v26298_v16  ;;  %v20655_v35 = vld [vmem:[%s19172_s10 + $0xc28] sm:$0xff] }
 0x379   : > { %26296 = vst [vmem:[#allocation51_spill] sm:$0xff] %v20637_v14  ;;  %16578 = vmatprep.subr.bf16.mxu1 %v26299_v48  ;;  %26300 = vst [vmem:[#allocation53_spill] sm:$0xff] %v20652_v39  ;;  %v20658_v16 = vld [vmem:[%s19172_s10 + $0x438] sm:$0xff]  ;;  %v20667_v60 = vld [vmem:[%s19172_s10 + $0xc20] sm:$0xff]  ;;  %v26333_v14 = vpack.c.bf16 %v19913_v37, %v19910_v33 }
 0x37a   : > { %26301 = vst [vmem:[#allocation138_spill] sm:$0xff] %v20655_v35  ;;  %26302 = vst [vmem:[#allocation139_spill] sm:$0xff] %v20658_v16  ;;  %v20661_v36 = vld [vmem:[%s19172_s10 + $0xc38] sm:$0xff]  ;;  %v20678_v56 = vld [vmem:[%s19172_s10 + $0x430] sm:$0xff]  ;;  %15774 = vmatmul.mubr.msk.f32.vlgmr.msra.gmra.mrb[48].mxu0 %vm520_vm3, %v19216_v7 }
 0x37b   : > { %26303 = vst [vmem:[#allocation140_spill] sm:$0xff] %v20661_v36  ;;  %26305 = vst [vmem:[#allocation142_spill] sm:$0xff] %v20667_v60  ;;  %v20681_v52 = vld [vmem:[%s19172_s10 + $0xc30] sm:$0xff]  ;;  %v20684_v12 = vld [vmem:[%s20146_s24 + $0x18] sm:$0xff]  ;;  %15775 = vmatmul.mubr.msk.f32.vlgmr.msra.gmra.mrb[48].mxu1 %vm520_vm3, %v19216_v7  ;;  %16572 = vmatpush1.bf16.msra.mxu0 %v26312_v21 }
 0x37c   : > { %26306 = vst [vmem:[#allocation143_spill] sm:$0xff] %v20678_v56  ;;  %26307 = vst [vmem:[#allocation144_spill] sm:$0xff] %v20681_v52  ;;  %v20697_v48 = vld [vmem:[%s19172_s10 + $0x1428] sm:$0xff]  ;;  %v20703_v62 = vld [vmem:[%s19172_s10 + $0x1438] sm:$0xff]  ;;  %16574 = vmatprep.subr.bf16.mxu0 %v26319_v9  ;;  %6440 = vmatprep.mubr.f32.mxu0 %v26132_v4 }
 0x37d   : > { %26308 = vst [vmem:[#allocation145_spill] sm:$0xff] %v20697_v48  ;;  %v20700_v46 = vld [vmem:[%s19172_s10 + $0x1c28] sm:$0xff]  ;;  %26310 = vst [vmem:[#allocation147_spill] sm:$0xff] %v20703_v62  ;;  %v20706_v11 = vld [vmem:[%s19172_s10 + $0x1c38] sm:$0xff]  ;;  %6511 = vmatprep.mubr.f32.mxu1 %v26132_v4 }
 0x37e   : > { %26309 = vst [vmem:[#allocation146_spill] sm:$0xff] %v20700_v46  ;;  %26311 = vst [vmem:[#allocation148_spill] sm:$0xff] %v20706_v11  ;;  %v26313_v27 = vld [vmem:[#allocation55_spill] sm:$0xff]  ;;  %v26314_v63 = vld [vmem:[#allocation54_spill] sm:$0xff] }
 0x37f   : > { %v26315_v58 = vpack.c.bf16 %v26313_v27, %v26314_v63  ;;  %v20721_v1 = vld [vmem:[%s19172_s10 + $0x1420] sm:$0xff]  ;;  %v20727_v27 = vld [vmem:[%s19172_s10 + $0x1430] sm:$0xff]  ;;  %v20733_v21 = vld [vmem:[%s19172_s10 + $0x448] sm:$0xff]  ;;  %16576 = vmatpush1.bf16.msra.mxu0 %v26333_v14 }
 0x380   : > { %v20724_v44 = vld [vmem:[%s19172_s10 + $0x1c20] sm:$0xff]  ;;  %26316 = vst [vmem:[#allocation55_spill] sm:$0xff] %v20727_v27  ;;  %v20730_v63 = vld [vmem:[%s19172_s10 + $0x1c30] sm:$0xff]  ;;  %26317 = vst [vmem:[#allocation54_spill] sm:$0xff] %v20733_v21 }
 0x381   : > { %16580 = vmatpush1.bf16.msra.mxu1 %v26315_v58  ;;  %v20736_v58 = vld [vmem:[%s19172_s10 + $0xc48] sm:$0xff]  ;;  %v20751_v8 = vld [vmem:[%s19172_s10 + $0x458] sm:$0xff]  ;;  %v20757_v47 = vld [vmem:[%s19172_s10 + $0x440] sm:$0xff] }
 0x382   : > { %26318 = vst [vmem:[#allocation149_spill] sm:$0xff] %v20736_v58  ;;  %16582 = vmatprep.subr.bf16.mxu1 %v26320_v30  ;;  %26321 = vst [vmem:[#allocation150_spill] sm:$0xff] %v20751_v8  ;;  %v20754_v45 = vld [vmem:[%s19172_s10 + $0xc58] sm:$0xff]  ;;  %v20760_v42 = vld [vmem:[%s19172_s10 + $0xc40] sm:$0xff]  ;;  %15776 = vmatmul.mubr.msk.f32.vlgmr.msra.gmra.mrb[50].mxu0 %vm520_vm3, %v19216_v7 }
 0x383   : > { %26322 = vst [vmem:[#allocation151_spill] sm:$0xff] %v20754_v45  ;;  %26323 = vst [vmem:[#allocation152_spill] sm:$0xff] %v20757_v47  ;;  %v20763_v43 = vld [vmem:[%s19172_s10 + $0x450] sm:$0xff]  ;;  %v20777_v22 = vld [vmem:[%s19172_s10 + $0x1448] sm:$0xff]  ;;  %6582 = vmatprep.mubr.f32.mxu0 %v26132_v4 }
 0x384   : > { %26324 = vst [vmem:[#allocation153_spill] sm:$0xff] %v20760_v42  ;;  %26325 = vst [vmem:[#allocation154_spill] sm:$0xff] %v20763_v43  ;;  %v20774_v0 = vld [vmem:[%s19172_s10 + $0xc50] sm:$0xff]  ;;  %v20780_v50 = vld [vmem:[%s19172_s10 + $0x1c48] sm:$0xff] }
 0x385   : > { %26326 = vst [vmem:[#allocation155_spill] sm:$0xff] %v20774_v0  ;;  %26327 = vst [vmem:[#allocation156_spill] sm:$0xff] %v20777_v22  ;;  %v20791_v10 = vld [vmem:[%s19172_s10 + $0x1458] sm:$0xff]  ;;  %v20797_v16 = vld [vmem:[%s19172_s10 + $0x1440] sm:$0xff] }
 0x386   : > { %26328 = vst [vmem:[#allocation157_spill] sm:$0xff] %v20780_v50  ;;  %26329 = vst [vmem:[#allocation158_spill] sm:$0xff] %v20791_v10  ;;  %v20794_v60 = vld [vmem:[%s19172_s10 + $0x1c58] sm:$0xff]  ;;  %v20800_v36 = vld [vmem:[%s19172_s10 + $0x1c40] sm:$0xff] }
 0x387   : > { %26330 = vst [vmem:[#allocation159_spill] sm:$0xff] %v20794_v60  ;;  %26331 = vst [vmem:[#allocation160_spill] sm:$0xff] %v20797_v16  ;;  %v26334_v30 = vld [vmem:[#allocation56_spill] sm:$0xff]  ;;  %v20815_v39 = vld [vmem:[%s19172_s10 + $0x1450] sm:$0xff] }
 0x388   : > { %26332 = vst [vmem:[#allocation161_spill] sm:$0xff] %v20800_v36  ;;  %v26335_v56 = vpack.c.bf16 %v19931_v6, %v26334_v30  ;;  %26336 = vst [vmem:[#allocation56_spill] sm:$0xff] %v20815_v39  ;;  %v20818_v33 = vld [vmem:[%s19172_s10 + $0x1c50] sm:$0xff]  ;;  %v20821_v37 = vld [vmem:[%s19172_s10 + $0x468] sm:$0xff] }
 0x389   : > { %26337 = vst [vmem:[#allocation162_spill] sm:$0xff] %v20821_v37  ;;  %v20824_v6 = vld [vmem:[%s19172_s10 + $0xc68] sm:$0xff]  ;;  %v20830_v14 = vld [vmem:[%s19172_s10 + $0xc78] sm:$0xff]  ;;  %v26341_v30 = vld [vmem:[#allocation58_spill] sm:$0xff] }
 0x38a   : > { %16584 = vmatpush1.bf16.msra.mxu1 %v26335_v56  ;;  %26338 = vst [vmem:[#allocation163_spill] sm:$0xff] %v20824_v6  ;;  %v20827_v56 = vld [vmem:[%s19172_s10 + $0x478] sm:$0xff]  ;;  %26340 = vst [vmem:[#allocation165_spill] sm:$0xff] %v20830_v14  ;;  %v26342_v9 = vld [vmem:[#allocation57_spill] sm:$0xff] }
 0x38b   : > { %26339 = vst [vmem:[#allocation164_spill] sm:$0xff] %v20827_v56  ;;  %v26343_v41 = vpack.c.bf16 %v26341_v30, %v26342_v9  ;;  %v26344_v52 = vld [vmem:[#allocation60_spill] sm:$0xff]  ;;  %v26345_v62 = vld [vmem:[#allocation59_spill] sm:$0xff]  ;;  %v20868_v46 = vld [vmem:[%s19172_s10 + $0x1468] sm:$0xff]  ;;  %v26360_v30 = vpack.c.bf16 %v19961_v13, %v19958_v2 }
 0x38c   : > { %v26346_v11 = vpack.c.bf16 %v26344_v52, %v26345_v62  ;;  %v20845_v57 = vld [vmem:[%s19172_s10 + $0x460] sm:$0xff]  ;;  %v20854_v62 = vld [vmem:[%s19172_s10 + $0xc70] sm:$0xff]  ;;  %26352 = vst [vmem:[#allocation167_spill] sm:$0xff] %v20868_v46  ;;  %v20871_v48 = vld [vmem:[%s19172_s10 + $0x1c68] sm:$0xff] }
 0x38d   : > { %16586 = vmatprep.subr.bf16.mxu0 %v26343_v41  ;;  %26347 = vst [vmem:[#allocation58_spill] sm:$0xff] %v20845_v57  ;;  %v20848_v61 = vld [vmem:[%s19172_s10 + $0xc60] sm:$0xff]  ;;  %v20851_v41 = vld [vmem:[%s19172_s10 + $0x470] sm:$0xff]  ;;  %26350 = vst [vmem:[#allocation59_spill] sm:$0xff] %v20854_v62  ;;  %15777 = vmatmul.mubr.msk.f32.vlgmr.msra.gmra.mrb[50].mxu1 %vm520_vm3, %v19216_v7 }
 0x38e   : > { %16594 = vmatprep.subr.bf16.mxu1 %v26346_v11  ;;  %26348 = vst [vmem:[#allocation57_spill] sm:$0xff] %v20848_v61  ;;  %26349 = vst [vmem:[#allocation60_spill] sm:$0xff] %v20851_v41  ;;  %v20865_v35 = vld [vmem:[%s20146_s24 + $0x20] sm:$0xff]  ;;  %v20884_v52 = vld [vmem:[%s19172_s10 + $0x1478] sm:$0xff]  ;;  %16588 = vmatpush1.bf16.msra.mxu0 %v26360_v30 }
 0x38f   : > { %26351 = vst [vmem:[#allocation166_spill] sm:$0xff] %v20865_v35  ;;  %26353 = vst [vmem:[#allocation168_spill] sm:$0xff] %v20871_v48  ;;  %v20887_v43 = vld [vmem:[%s19172_s10 + $0x1c78] sm:$0xff]  ;;  %v20890_v0 = vld [vmem:[%s19172_s10 + $0x1460] sm:$0xff]  ;;  %6653 = vmatprep.mubr.f32.mxu1 %v26132_v4 }
 0x390   : > { %26354 = vst [vmem:[#allocation169_spill] sm:$0xff] %v20884_v52  ;;  %26355 = vst [vmem:[#allocation170_spill] sm:$0xff] %v20887_v43  ;;  %v20893_v47 = vld [vmem:[%s19172_s10 + $0x1c60] sm:$0xff]  ;;  %v20896_v42 = vld [vmem:[%s19172_s10 + $0x1470] sm:$0xff] }
 0x391   : > { %26356 = vst [vmem:[#allocation171_spill] sm:$0xff] %v20890_v0  ;;  %26357 = vst [vmem:[#allocation172_spill] sm:$0xff] %v20893_v47  ;;  %v20899_v9 = vld [vmem:[%s19172_s10 + $0x1c70] sm:$0xff]  ;;  %v26361_v11 = vld [vmem:[#allocation61_spill] sm:$0xff] }
 0x392   : > { %26358 = vst [vmem:[#allocation173_spill] sm:$0xff] %v20896_v42  ;;  %26359 = vst [vmem:[#allocation174_spill] sm:$0xff] %v20899_v9  ;;  %v26362_v22 = vpack.c.bf16 %v19967_v15, %v26361_v11  ;;  %v20914_v21 = vld [vmem:[%s19172_s10 + $0x488] sm:$0xff]  ;;  %v20920_v13 = vld [vmem:[%s19172_s10 + $0x498] sm:$0xff] }
 0x393   : > { %26363 = vst [vmem:[#allocation61_spill] sm:$0xff] %v20914_v21  ;;  %v20917_v2 = vld [vmem:[%s19172_s10 + $0xc88] sm:$0xff]  ;;  %26365 = vst [vmem:[#allocation176_spill] sm:$0xff] %v20920_v13  ;;  %v20923_v15 = vld [vmem:[%s19172_s10 + $0xc98] sm:$0xff] }
 0x394   : > { %16596 = vmatpush1.bf16.msra.mxu1 %v26362_v22  ;;  %26364 = vst [vmem:[#allocation175_spill] sm:$0xff] %v20917_v2  ;;  %26366 = vst [vmem:[#allocation177_spill] sm:$0xff] %v20923_v15  ;;  %v20926_v22 = vld [vmem:[%s19172_s10 + $0x480] sm:$0xff]  ;;  %v26369_v30 = vld [vmem:[#allocation63_spill] sm:$0xff] }
 0x395   : > { %26367 = vst [vmem:[#allocation178_spill] sm:$0xff] %v20926_v22  ;;  %v20929_v11 = vld [vmem:[%s19172_s10 + $0xc80] sm:$0xff]  ;;  %v26370_v50 = vld [vmem:[#allocation62_spill] sm:$0xff]  ;;  %v26372_v45 = vld [vmem:[#allocation65_spill] sm:$0xff] }
 0x396   : > { %26368 = vst [vmem:[#allocation179_spill] sm:$0xff] %v20929_v11  ;;  %v26371_v8 = vpack.c.bf16 %v26369_v30, %v26370_v50  ;;  %v26373_v16 = vld [vmem:[#allocation64_spill] sm:$0xff]  ;;  %v20944_v27 = vld [vmem:[%s19172_s10 + $0x490] sm:$0xff]  ;;  %v20961_v30 = vld [vmem:[%s19172_s10 + $0x1c88] sm:$0xff] }
 0x397   : > { %v26374_v36 = vpack.c.bf16 %v26372_v45, %v26373_v16  ;;  %26375 = vst [vmem:[#allocation63_spill] sm:$0xff] %v20944_v27  ;;  %v20947_v50 = vld [vmem:[%s19172_s10 + $0xc90] sm:$0xff]  ;;  %26378 = vst [vmem:[#allocation64_spill] sm:$0xff] %v20961_v30  ;;  %v20964_v58 = vld [vmem:[%s19172_s10 + $0x1498] sm:$0xff] }
 0x398   : > { %16590 = vmatprep.subr.bf16.mxu0 %v26371_v8  ;;  %26376 = vst [vmem:[#allocation62_spill] sm:$0xff] %v20947_v50  ;;  %v20950_v8 = vld [vmem:[%s19172_s10 + $0x1488] sm:$0xff]  ;;  %26379 = vst [vmem:[#allocation180_spill] sm:$0xff] %v20964_v58  ;;  %v20967_v60 = vld [vmem:[%s19172_s10 + $0x1c98] sm:$0xff] }
 0x399   : > { %16598 = vmatprep.subr.bf16.mxu1 %v26374_v36  ;;  %26377 = vst [vmem:[#allocation65_spill] sm:$0xff] %v20950_v8  ;;  %26380 = vst [vmem:[#allocation181_spill] sm:$0xff] %v20967_v60  ;;  %v20978_v41 = vld [vmem:[%s19172_s10 + $0x1480] sm:$0xff]  ;;  %v20984_v57 = vld [vmem:[%s19172_s10 + $0x1490] sm:$0xff]  ;;  %v26385_v36 = vpack.c.bf16 %v19993_v32, %v19990_v31 }
 0x39a   : > { %v20981_v62 = vld [vmem:[%s19172_s10 + $0x1c80] sm:$0xff]  ;;  %26381 = vst [vmem:[#allocation182_spill] sm:$0xff] %v20984_v57  ;;  %v20987_v10 = vld [vmem:[%s19172_s10 + $0x1c90] sm:$0xff]  ;;  %v20990_v61 = vld [vmem:[%s19172_s10 + $0x4a8] sm:$0xff] }
 0x39b   : > { %26382 = vst [vmem:[#allocation183_spill] sm:$0xff] %v20987_v10  ;;  %26383 = vst [vmem:[#allocation184_spill] sm:$0xff] %v20990_v61  ;;  %v20993_v16 = vld [vmem:[%s19172_s10 + $0xca8] sm:$0xff]  ;;  %16592 = vmatpush1.bf16.msra.mxu0 %v26385_v36  ;;  %v26386_v56 = vld [vmem:[#allocation67_spill] sm:$0xff] }
 0x39c   : > { %26384 = vst [vmem:[#allocation185_spill] sm:$0xff] %v20993_v16  ;;  %v26387_v45 = vld [vmem:[#allocation66_spill] sm:$0xff]  ;;  %v21008_v6 = vld [vmem:[%s19172_s10 + $0x4b8] sm:$0xff]  ;;  %v21014_v32 = vld [vmem:[%s19172_s10 + $0x4a0] sm:$0xff] }
 0x39d   : > { %v26388_v46 = vpack.c.bf16 %v26386_v56, %v26387_v45  ;;  %26389 = vst [vmem:[#allocation67_spill] sm:$0xff] %v21008_v6  ;;  %v21011_v31 = vld [vmem:[%s19172_s10 + $0xcb8] sm:$0xff]  ;;  %26391 = vst [vmem:[#allocation186_spill] sm:$0xff] %v21014_v32  ;;  %v21017_v56 = vld [vmem:[%s19172_s10 + $0xca0] sm:$0xff] }
 0x39e   : > { %26390 = vst [vmem:[#allocation66_spill] sm:$0xff] %v21011_v31  ;;  %26392 = vst [vmem:[#allocation187_spill] sm:$0xff] %v21017_v56  ;;  %v21023_v36 = vld [vmem:[%s19172_s10 + $0xcb0] sm:$0xff]  ;;  %v26395_v45 = vld [vmem:[#allocation69_spill] sm:$0xff]  ;;  %15778 = vmatmul.mubr.msk.f32.vlgmr.msra.gmra.mrb[52].mxu0 %vm520_vm3, %v19216_v7 }
 0x39f   : > { %16600 = vmatpush1.bf16.msra.mxu1 %v26388_v46  ;;  %v21020_v46 = vld [vmem:[%s19172_s10 + $0x4b0] sm:$0xff]  ;;  %26394 = vst [vmem:[#allocation189_spill] sm:$0xff] %v21023_v36  ;;  %v26396_v14 = vld [vmem:[#allocation68_spill] sm:$0xff]  ;;  %v26398_v37 = vld [vmem:[#allocation71_spill] sm:$0xff]  ;;  %6724 = vmatprep.mubr.f32.mxu0 %v26132_v4 }
 0x3a0   : > { %26393 = vst [vmem:[#allocation188_spill] sm:$0xff] %v21020_v46  ;;  %v26397_v48 = vpack.c.bf16 %v26395_v45, %v26396_v14  ;;  %v26399_v42 = vld [vmem:[#allocation70_spill] sm:$0xff]  ;;  %v21038_v43 = vld [vmem:[%s20146_s24 + $0x28] sm:$0xff]  ;;  %v21055_v45 = vld [vmem:[%s19172_s10 + $0x14b8] sm:$0xff] }
 0x3a1   : > { %v26400_v9 = vpack.c.bf16 %v26398_v37, %v26399_v42  ;;  %v21041_v39 = vld [vmem:[%s19172_s10 + $0x14a8] sm:$0xff]  ;;  %26403 = vst [vmem:[#allocation71_spill] sm:$0xff] %v21055_v45  ;;  %v21058_v52 = vld [vmem:[%s19172_s10 + $0x1cb8] sm:$0xff]  ;;  %v21061_v47 = vld [vmem:[%s19172_s10 + $0x14a0] sm:$0xff] }
 0x3a2   : > { %16602 = vmatprep.subr.bf16.mxu0 %v26397_v48  ;;  %26401 = vst [vmem:[#allocation69_spill] sm:$0xff] %v21041_v39  ;;  %v21044_v48 = vld [vmem:[%s19172_s10 + $0x1ca8] sm:$0xff]  ;;  %26404 = vst [vmem:[#allocation70_spill] sm:$0xff] %v21058_v52  ;;  %v21064_v0 = vld [vmem:[%s19172_s10 + $0x1ca0] sm:$0xff]  ;;  %15779 = vmatmul.mubr.msk.f32.vlgmr.msra.gmra.mrb[52].mxu1 %vm520_vm3, %v19216_v7 }
 0x3a3   : > { %16610 = vmatprep.subr.bf16.mxu1 %v26400_v9  ;;  %26402 = vst [vmem:[#allocation68_spill] sm:$0xff] %v21044_v48  ;;  %26405 = vst [vmem:[#allocation190_spill] sm:$0xff] %v21061_v47  ;;  %v21077_v42 = vld [vmem:[%s19172_s10 + $0x14b0] sm:$0xff]  ;;  %v21083_v30 = vld [vmem:[%s19172_s10 + $0x4c8] sm:$0xff]  ;;  %6795 = vmatprep.mubr.f32.mxu1 %v26132_v4 }
 0x3a4   : > { %26406 = vst [vmem:[#allocation191_spill] sm:$0xff] %v21064_v0  ;;  %26407 = vst [vmem:[#allocation192_spill] sm:$0xff] %v21077_v42  ;;  %v21080_v8 = vld [vmem:[%s19172_s10 + $0x1cb0] sm:$0xff]  ;;  %v21086_v27 = vld [vmem:[%s19172_s10 + $0xcc8] sm:$0xff] }
 0x3a5   : > { %26408 = vst [vmem:[#allocation193_spill] sm:$0xff] %v21080_v8  ;;  %26409 = vst [vmem:[#allocation194_spill] sm:$0xff] %v21083_v30  ;;  %v21089_v50 = vld [vmem:[%s19172_s10 + $0x4d8] sm:$0xff]  ;;  %v26413_v22 = vld [vmem:[#allocation73_spill] sm:$0xff] }
 0x3a6   : > { %26410 = vst [vmem:[#allocation195_spill] sm:$0xff] %v21086_v27  ;;  %26411 = vst [vmem:[#allocation196_spill] sm:$0xff] %v21089_v50  ;;  %v21092_v14 = vld [vmem:[%s19172_s10 + $0xcd8] sm:$0xff]  ;;  %v26414_v11 = vld [vmem:[#allocation72_spill] sm:$0xff] }
 0x3a7   : > { %26412 = vst [vmem:[#allocation197_spill] sm:$0xff] %v21092_v14  ;;  %v26415_v37 = vpack.c.bf16 %v26413_v22, %v26414_v11  ;;  %v26416_v9 = vld [vmem:[#allocation75_spill] sm:$0xff]  ;;  %v26417_v58 = vld [vmem:[#allocation74_spill] sm:$0xff]  ;;  %v21107_v2 = vld [vmem:[%s19172_s10 + $0x4c0] sm:$0xff] }
 0x3a8   : > { %v26418_v60 = vpack.c.bf16 %v26416_v9, %v26417_v58  ;;  %26419 = vst [vmem:[#allocation73_spill] sm:$0xff] %v21107_v2  ;;  %v21110_v35 = vld [vmem:[%s19172_s10 + $0xcc0] sm:$0xff]  ;;  %v21113_v22 = vld [vmem:[%s19172_s10 + $0x4d0] sm:$0xff]  ;;  %v26422_v11 = vld [vmem:[#allocation77_spill] sm:$0xff] }
 0x3a9   : > { %16604 = vmatpush1.bf16.msra.mxu0 %v26415_v37  ;;  %26420 = vst [vmem:[#allocation72_spill] sm:$0xff] %v21110_v35  ;;  %26421 = vst [vmem:[#allocation75_spill] sm:$0xff] %v21113_v22  ;;  %v26423_v58 = vld [vmem:[#allocation76_spill] sm:$0xff]  ;;  %v26425_v37 = vld [vmem:[#allocation79_spill] sm:$0xff] }
 0x3aa   : > { %16612 = vmatpush1.bf16.msra.mxu1 %v26418_v60  ;;  %v26424_v60 = vpack.c.bf16 %v26422_v11, %v26423_v58  ;;  %v26426_v9 = vld [vmem:[#allocation78_spill] sm:$0xff]  ;;  %v21131_v11 = vld [vmem:[%s19172_s10 + $0x14c8] sm:$0xff]  ;;  %v21148_v61 = vld [vmem:[%s19172_s10 + $0x1cd8] sm:$0xff] }
 0x3ab   : > { %v26427_v13 = vpack.c.bf16 %v26425_v37, %v26426_v9  ;;  %v21128_v16 = vld [vmem:[%s19172_s10 + $0xcd0] sm:$0xff]  ;;  %26429 = vst [vmem:[#allocation77_spill] sm:$0xff] %v21131_v11  ;;  %v21134_v58 = vld [vmem:[%s19172_s10 + $0x1cc8] sm:$0xff]  ;;  %v21145_v9 = vld [vmem:[%s19172_s10 + $0x14d8] sm:$0xff] }
 0x3ac   : > { %16606 = vmatprep.subr.bf16.mxu0 %v26424_v60  ;;  %26428 = vst [vmem:[#allocation74_spill] sm:$0xff] %v21128_v16  ;;  %26430 = vst [vmem:[#allocation76_spill] sm:$0xff] %v21134_v58  ;;  %v21151_v15 = vld [vmem:[%s19172_s10 + $0x14c0] sm:$0xff]  ;;  %v21157_v46 = vld [vmem:[%s19172_s10 + $0x14d0] sm:$0xff] }
 0x3ad   : > { %16614 = vmatprep.subr.bf16.mxu1 %v26427_v13  ;;  %26431 = vst [vmem:[#allocation79_spill] sm:$0xff] %v21145_v9  ;;  %26432 = vst [vmem:[#allocation78_spill] sm:$0xff] %v21148_v61  ;;  %v21154_v21 = vld [vmem:[%s19172_s10 + $0x1cc0] sm:$0xff]  ;;  %v21160_v13 = vld [vmem:[%s19172_s10 + $0x1cd0] sm:$0xff] }
 0x3ae   : > { %26433 = vst [vmem:[#allocation198_spill] sm:$0xff] %v21151_v15  ;;  %26434 = vst [vmem:[#allocation199_spill] sm:$0xff] %v21154_v21  ;;  %v21171_v36 = vld [vmem:[%s19172_s10 + $0x4e8] sm:$0xff]  ;;  %v21177_v56 = vld [vmem:[%s19172_s10 + $0x4f8] sm:$0xff] }
 0x3af   : > { %26435 = vst [vmem:[#allocation200_spill] sm:$0xff] %v21157_v46  ;;  %26436 = vst [vmem:[#allocation201_spill] sm:$0xff] %v21160_v13  ;;  %v21174_v32 = vld [vmem:[%s19172_s10 + $0xce8] sm:$0xff]  ;;  %v21180_v6 = vld [vmem:[%s19172_s10 + $0xcf8] sm:$0xff] }
 0x3b0   : > { %26437 = vst [vmem:[#allocation202_spill] sm:$0xff] %v21171_v36  ;;  %26438 = vst [vmem:[#allocation203_spill] sm:$0xff] %v21174_v32  ;;  %v21183_v60 = vld [vmem:[%s19172_s10 + $0x4e0] sm:$0xff]  ;;  %v26442_v31 = vld [vmem:[#allocation81_spill] sm:$0xff] }
 0x3b1   : > { %26439 = vst [vmem:[#allocation204_spill] sm:$0xff] %v21177_v56  ;;  %26440 = vst [vmem:[#allocation205_spill] sm:$0xff] %v21180_v6  ;;  %v26443_v37 = vld [vmem:[#allocation80_spill] sm:$0xff]  ;;  %v26445_v39 = vld [vmem:[#allocation83_spill] sm:$0xff] }
 0x3b2   : > { %26441 = vst [vmem:[#allocation206_spill] sm:$0xff] %v21183_v60  ;;  %v26444_v57 = vpack.c.bf16 %v26442_v31, %v26443_v37  ;;  %v26446_v45 = vld [vmem:[#allocation82_spill] sm:$0xff]  ;;  %v21198_v10 = vld [vmem:[%s19172_s10 + $0xce0] sm:$0xff]  ;;  %v26454_v37 = vld [vmem:[#allocation87_spill] sm:$0xff] }
 0x3b3   : > { %v26447_v48 = vpack.c.bf16 %v26445_v39, %v26446_v45  ;;  %26448 = vst [vmem:[#allocation81_spill] sm:$0xff] %v21198_v10  ;;  %v21201_v31 = vld [vmem:[%s19172_s10 + $0x4f0] sm:$0xff]  ;;  %v26451_v39 = vld [vmem:[#allocation85_spill] sm:$0xff]  ;;  %v21239_v50 = vld [vmem:[%s19172_s10 + $0x1cf8] sm:$0xff] }
 0x3b4   : > { %16608 = vmatpush1.bf16.msra.mxu0 %v26444_v57  ;;  %26449 = vst [vmem:[#allocation80_spill] sm:$0xff] %v21201_v31  ;;  %v21204_v57 = vld [vmem:[%s19172_s10 + $0xcf0] sm:$0xff]  ;;  %v21222_v30 = vld [vmem:[%s19172_s10 + $0x14e8] sm:$0xff]  ;;  %26460 = vst [vmem:[#allocation87_spill] sm:$0xff] %v21239_v50 }
 0x3b5   : > { %16616 = vmatpush1.bf16.msra.mxu1 %v26447_v48  ;;  %26450 = vst [vmem:[#allocation83_spill] sm:$0xff] %v21204_v57  ;;  %v26452_v48 = vld [vmem:[#allocation84_spill] sm:$0xff]  ;;  %v26455_v47 = vld [vmem:[#allocation86_spill] sm:$0xff]  ;;  %26457 = vst [vmem:[#allocation82_spill] sm:$0xff] %v21222_v30  ;;  %v26484_v57 = vrot.slane %v20149_v25, %v20152_v26 }
 0x3b6   : > { %v26453_v45 = vpack.c.bf16 %v26451_v39, %v26452_v48  ;;  %v26456_v42 = vpack.c.bf16 %v26454_v37, %v26455_v47  ;;  %v21219_v14 = vld [vmem:[%s20146_s24 + $0x30] sm:$0xff]  ;;  %v21225_v39 = vld [vmem:[%s19172_s10 + $0x1ce8] sm:$0xff]  ;;  %v21236_v37 = vld [vmem:[%s19172_s10 + $0x14f8] sm:$0xff] }
 0x3b7   : > { %26458 = vst [vmem:[#allocation85_spill] sm:$0xff] %v21225_v39  ;;  %26459 = vst [vmem:[#allocation84_spill] sm:$0xff] %v21236_v37  ;;  %v21242_v0 = vld [vmem:[%s19172_s10 + $0x14e0] sm:$0xff]  ;;  %15780 = vmatmul.mubr.msk.f32.vlgmr.msra.gmra.mrb[54].mxu0 %vm520_vm3, %v19216_v7  ;;  %v21258_v52 = vld [vmem:[%s19172_s10 + $0x14f0] sm:$0xff] }
 0x3b8   : > { %16618 = vmatprep.subr.bf16.mxu0 %v26453_v45  ;;  %16626 = vmatprep.subr.bf16.mxu1 %v26456_v42  ;;  %26461 = vst [vmem:[#allocation86_spill] sm:$0xff] %v21242_v0  ;;  %v21255_v45 = vld [vmem:[%s19172_s10 + $0x1ce0] sm:$0xff]  ;;  %26463 = vst [vmem:[#allocation208_spill] sm:$0xff] %v21258_v52  ;;  %v21261_v11 = vld [vmem:[%s19172_s10 + $0x1cf0] sm:$0xff] }
 0x3b9   : > { %15781 = vmatmul.mubr.msk.f32.vlgmr.msra.gmra.mrb[54].mxu1 %vm520_vm3, %v19216_v7  ;;  %26462 = vst [vmem:[#allocation207_spill] sm:$0xff] %v21255_v45  ;;  %26464 = vst [vmem:[#allocation209_spill] sm:$0xff] %v21261_v11  ;;  %v26465_v58 = vld [vmem:[#allocation89_spill] sm:$0xff]  ;;  %v26466_v22 = vld [vmem:[#allocation88_spill] sm:$0xff]  ;;  %6866 = vmatprep.mubr.f32.mxu0 %v26132_v4 }
 0x3ba   : > { %v26467_v16 = vpack.c.bf16 %v26465_v58, %v26466_v22  ;;  %v26468_v48 = vld [vmem:[#allocation91_spill] sm:$0xff]  ;;  %v26469_v9 = vld [vmem:[#allocation90_spill] sm:$0xff]  ;;  %v21276_v13 = vld [vmem:[%s19172_s10 + $0x508] sm:$0xff]  ;;  %6937 = vmatprep.mubr.f32.mxu1 %v26132_v4 }
 0x3bb   : > { %v26470_v61 = vpack.c.bf16 %v26468_v48, %v26469_v9  ;;  %v21279_v15 = vld [vmem:[%s19172_s10 + $0xd08] sm:$0xff]  ;;  %v21282_v22 = vld [vmem:[%s19172_s10 + $0x518] sm:$0xff]  ;;  %v26473_v58 = vld [vmem:[#allocation92_spill] sm:$0xff] }
 0x3bc   : > { %16620 = vmatpush1.bf16.msra.mxu0 %v26467_v16  ;;  %26471 = vst [vmem:[#allocation89_spill] sm:$0xff] %v21282_v22  ;;  %v26472_v16 = vld [vmem:[#allocation93_spill] sm:$0xff]  ;;  %v26476_v9 = vld [vmem:[#allocation94_spill] sm:$0xff]  ;;  %v21297_v60 = vld [vmem:[%s19172_s10 + $0xd18] sm:$0xff] }
 0x3bd   : > { %16628 = vmatpush1.bf16.msra.mxu1 %v26470_v61  ;;  %v26474_v21 = vpack.c.bf16 %v26472_v16, %v26473_v58  ;;  %v26475_v61 = vld [vmem:[#allocation95_spill] sm:$0xff]  ;;  %26478 = vst [vmem:[#allocation88_spill] sm:$0xff] %v21297_v60  ;;  %v21300_v16 = vld [vmem:[%s19172_s10 + $0x500] sm:$0xff]  ;;  %v3034_v58 = vpop.f32.mrb[2].mxu0  ;;  %v21314_v42 = vld [vmem:[%s19172_s10 + $0x510] sm:$0xff] }
 0x3be   : > { %v26477_v48 = vpack.c.bf16 %v26475_v61, %v26476_v9  ;;  %26479 = vst [vmem:[#allocation91_spill] sm:$0xff] %v21300_v16  ;;  %v3105_v61 = vpop.f32.mrb[2].mxu1  ;;  %26481 = vst [vmem:[#allocation93_spill] sm:$0xff] %v21314_v42  ;;  %v21317_v46 = vld [vmem:[%s19172_s10 + $0xd10] sm:$0xff]  ;;  %v21320_v31 = vld [vmem:[%s19172_s10 + $0x1508] sm:$0xff]  ;;  %v3035_v10 = vadd.f32 %v3034_v58, %v26484_v57  ;;  %v26485_v9 = vrot.slane %v20149_v25, %v20171_v59  ;;  %v3036_v56 = vpop.f32.mrb[3].mxu0 }
 0x3bf   : > { %16622 = vmatprep.subr.bf16.mxu0 %v26474_v21  ;;  %v21303_v21 = vld [vmem:[%s19172_s10 + $0xd00] sm:$0xff]  ;;  %26482 = vst [vmem:[#allocation92_spill] sm:$0xff] %v21317_v46  ;;  %26483 = vst [vmem:[#allocation95_spill] sm:$0xff] %v21320_v31  ;;  %v3107_v47 = vpop.f32.mrb[3].mxu1  ;;  %v21333_v6 = vld [vmem:[%s19172_s10 + $0x1d08] sm:$0xff]  ;;  %v26489_v58 = vrot.slane %v20149_v25, %v20174_v38 }
 0x3c0   : > { %16630 = vmatprep.subr.bf16.mxu1 %v26477_v48  ;;  %26480 = vst [vmem:[#allocation90_spill] sm:$0xff] %v21303_v21  ;;  %v3106_v48 = vadd.f32 %v3105_v61, %v26485_v9  ;;  %26486 = vst [vmem:[#allocation94_spill] sm:$0xff] %v21333_v6  ;;  %v21336_v36 = vld [vmem:[%s19172_s10 + $0x1518] sm:$0xff]  ;;  %v26490_v9 = vrot.slane %v20149_v25, %v20203_v20  ;;  %v26491_v2 = vld [vmem:[#allocation96_spill] sm:$0xff] }
 0x3c1   : > { %26487 = vst [vmem:[#allocation210_spill] sm:$0xff] %v21336_v36  ;;  %v21339_v57 = vld [vmem:[%s19172_s10 + $0x1d18] sm:$0xff]  ;;  %v3037_v61 = vadd.f32 %v3036_v56, %v26489_v58  ;;  %v26492_v30 = vld [vmem:[#allocation20_spill] sm:$0xff]  ;;  %v26494_v39 = vld [vmem:[#allocation98_spill] sm:$0xff] }
 0x3c2   : > { %26488 = vst [vmem:[#allocation211_spill] sm:$0xff] %v21339_v57  ;;  %v3108_v32 = vadd.f32 %v3107_v47, %v26490_v9  ;;  %v26493_v37 = vpack.c.bf16 %v26491_v2, %v26492_v30  ;;  %v26495_v0 = vld [vmem:[#allocation97_spill] sm:$0xff]  ;;  %v21356_v35 = vld [vmem:[%s19172_s10 + $0x1500] sm:$0xff]  ;;  %v21362_v58 = vld [vmem:[%s19172_s10 + $0x1510] sm:$0xff]  ;;  %v15856_v30 = vmul.f32 -1.442695, %v3035_v10 }
 0x3c3   : > { %v26496_v45 = vpack.c.bf16 %v26494_v39, %v26495_v0  ;;  %26497 = vst [vmem:[#allocation96_spill] sm:$0xff] %v21356_v35  ;;  %v21359_v56 = vld [vmem:[%s19172_s10 + $0x1d00] sm:$0xff]  ;;  %26499 = vst [vmem:[#allocation98_spill] sm:$0xff] %v21362_v58  ;;  %v21365_v47 = vld [vmem:[%s19172_s10 + $0x1d10] sm:$0xff] }
 0x3c4   : > { %16624 = vmatpush1.bf16.msra.mxu0 %v26493_v37  ;;  %26498 = vst [vmem:[#allocation20_spill] sm:$0xff] %v21359_v56  ;;  %26500 = vst [vmem:[#allocation97_spill] sm:$0xff] %v21365_v47  ;;  %v21368_v2 = vld [vmem:[%s19172_s10 + $0x528] sm:$0xff]  ;;  %v15858_v37 = vmul.f32 -1.442695, %v3106_v48  ;;  %v26502_v9 = vld [vmem:[#allocation100_spill] sm:$0xff]  ;;  %17432 = vpow2.f32 %v15856_v30 }
 0x3c5   : > { %16632 = vmatpush1.bf16.msra.mxu1 %v26496_v45  ;;  %26501 = vst [vmem:[#allocation212_spill] sm:$0xff] %v21368_v2  ;;  %v26503_v0 = vld [vmem:[#allocation99_spill] sm:$0xff]  ;;  %v26505_v45 = vld [vmem:[#allocation102_spill] sm:$0xff]  ;;  %v26506_v50 = vld [vmem:[#allocation101_spill] sm:$0xff]  ;;  %v15857_v48 = vmul.f32 -1.442695, %v3037_v61  ;;  %v26531_v2 = vrot.slane %v20149_v25, %v20240_v24 }
 0x3c6   : > { %v26504_v39 = vpack.c.bf16 %v26502_v9, %v26503_v0  ;;  %v26507_v52 = vpack.c.bf16 %v26505_v45, %v26506_v50  ;;  %v21381_v8 = vld [vmem:[%s19172_s10 + $0xd28] sm:$0xff]  ;;  %v21384_v10 = vld [vmem:[%s19172_s10 + $0x538] sm:$0xff]  ;;  %v15859_v9 = vmul.f32 -1.442695, %v3108_v32  ;;  %v21410_v30 = vld [vmem:[%s19172_s10 + $0x530] sm:$0xff]  ;;  %17434 = vpow2.f32 %v15858_v37 }
 0x3c7   : > { %26508 = vst [vmem:[#allocation100_spill] sm:$0xff] %v21381_v8  ;;  %26509 = vst [vmem:[#allocation99_spill] sm:$0xff] %v21384_v10  ;;  %v21391_v50 = vld [vmem:[%s19172_s10 + $0xd38] sm:$0xff]  ;;  %15782 = vmatmul.mubr.msk.f32.vlgmr.msra.gmra.mrb[56].mxu0 %vm520_vm3, %v19216_v7  ;;  %v21413_v0 = vld [vmem:[%s19172_s10 + $0xd30] sm:$0xff]  ;;  %17436 = vpow2.f32 %v15857_v48 }
 0x3c8   : > { %16634 = vmatprep.subr.bf16.mxu0 %v26504_v39  ;;  %16642 = vmatprep.subr.bf16.mxu1 %v26507_v52  ;;  %26510 = vst [vmem:[#allocation102_spill] sm:$0xff] %v21391_v50  ;;  %v21394_v39 = vld [vmem:[%s19172_s10 + $0x520] sm:$0xff]  ;;  %26513 = vst [vmem:[#allocation214_spill] sm:$0xff] %v21410_v30  ;;  %v26516_v11 = vld [vmem:[#allocation103_spill] sm:$0xff]  ;;  %17438 = vpow2.f32 %v15859_v9 }
 0x3c9   : > { %26511 = vst [vmem:[#allocation101_spill] sm:$0xff] %v21394_v39  ;;  %15783 = vmatmul.mubr.msk.f32.vlgmr.msra.gmra.mrb[56].mxu1 %vm520_vm3, %v19216_v7  ;;  %v21407_v52 = vld [vmem:[%s19172_s10 + $0xd20] sm:$0xff]  ;;  %26514 = vst [vmem:[#allocation215_spill] sm:$0xff] %v21413_v0  ;;  %v26518_v32 = vld [vmem:[#allocation106_spill] sm:$0xff]  ;;  %7008 = vmatprep.mubr.f32.mxu0 %v26132_v4 }
 0x3ca   : > { %26512 = vst [vmem:[#allocation213_spill] sm:$0xff] %v21407_v52  ;;  %v26515_v27 = vld [vmem:[#allocation104_spill] sm:$0xff]  ;;  %v26519_v46 = vld [vmem:[#allocation105_spill] sm:$0xff]  ;;  %v21428_v37 = vld [vmem:[%s20146_s24 + $0x38] sm:$0xff]  ;;  %7079 = vmatprep.mubr.f32.mxu1 %v26132_v4 }
 0x3cb   : > { %v26517_v42 = vpack.c.bf16 %v26515_v27, %v26516_v11  ;;  %v26520_v16 = vpack.c.bf16 %v26518_v32, %v26519_v46  ;;  %v21431_v6 = vld [vmem:[%s19172_s10 + $0x1528] sm:$0xff]  ;;  %v26522_v46 = vld [vmem:[#allocation22_spill] sm:$0xff]  ;;  %v26525_v32 = vld [vmem:[#allocation24_spill] sm:$0xff] }
 0x3cc   : > { %v21434_v27 = vld [vmem:[%s19172_s10 + $0x1d28] sm:$0xff]  ;;  %v21449_v36 = vld [vmem:[%s19172_s10 + $0x1538] sm:$0xff]  ;;  %v21466_v31 = vld [vmem:[%s19172_s10 + $0x1d20] sm:$0xff] }
 0x3cd   : > { %16636 = vmatpush1.bf16.msra.mxu0 %v26517_v42  ;;  %16644 = vmatpush1.bf16.msra.mxu1 %v26520_v16  ;;  %v26521_v11 = vld [vmem:[#allocation21_spill] sm:$0xff]  ;;  %v26524_v16 = vld [vmem:[#allocation23_spill] sm:$0xff]  ;;  %26528 = vst [vmem:[#allocation103_spill] sm:$0xff] %v21466_v31  ;;  %v21469_v9 = vld [vmem:[%s19172_s10 + $0x1530] sm:$0xff] }
 0x3ce   : > { %v26523_v42 = vpack.c.bf16 %v26521_v11, %v26522_v46  ;;  %v26526_v61 = vpack.c.bf16 %v26524_v16, %v26525_v32  ;;  %v21452_v11 = vld [vmem:[%s19172_s10 + $0x1d38] sm:$0xff]  ;;  %v21455_v46 = vld [vmem:[%s19172_s10 + $0x1520] sm:$0xff]  ;;  %26529 = vst [vmem:[#allocation106_spill] sm:$0xff] %v21469_v9  ;;  %v21472_v45 = vld [vmem:[%s19172_s10 + $0x1d30] sm:$0xff]  ;;  %v26532_v16 = vrot.slane %v20149_v25, %v20243_v49 }
 0x3cf   : > { %26527 = vst [vmem:[#allocation104_spill] sm:$0xff] %v21455_v46  ;;  %26530 = vst [vmem:[#allocation105_spill] sm:$0xff] %v21472_v45  ;;  %v21485_v0 = vld [vmem:[%s19172_s10 + $0x548] sm:$0xff]  ;;  %v21491_v50 = vld [vmem:[%s19172_s10 + $0x558] sm:$0xff] }
 0x3d0   : > { %16638 = vmatprep.subr.bf16.mxu0 %v26523_v42  ;;  %16646 = vmatprep.subr.bf16.mxu1 %v26526_v61  ;;  %v3176_v42 = vpop.f32.mrb[4].mxu0  ;;  %v3247_v61 = vpop.f32.mrb[4].mxu1  ;;  %26533 = vst [vmem:[#allocation21_spill] sm:$0xff] %v21485_v0  ;;  %v21488_v10 = vld [vmem:[%s19172_s10 + $0xd48] sm:$0xff]  ;;  %26535 = vst [vmem:[#allocation23_spill] sm:$0xff] %v21491_v50  ;;  %v26539_v58 = vld [vmem:[#allocation26_spill] sm:$0xff] }
 0x3d1   : > { %v3177_v8 = vadd.f32 %v3176_v42, %v26531_v2  ;;  %v3248_v32 = vadd.f32 %v3247_v61, %v26532_v16  ;;  %v3178_v39 = vpop.f32.mrb[5].mxu0  ;;  %v3249_v52 = vpop.f32.mrb[5].mxu1  ;;  %26534 = vst [vmem:[#allocation22_spill] sm:$0xff] %v21488_v10  ;;  %v26536_v2 = vrot.slane %v20149_v25, %v20246_v51  ;;  %v26537_v61 = vrot.slane %v20149_v25, %v20273_v19  ;;  %v26538_v48 = vld [vmem:[#allocation25_spill] sm:$0xff]  ;;  %v26541_v30 = vld [vmem:[#allocation27_spill] sm:$0xff]  ;;  %v26542_v35 = vld [vmem:[#allocation28_spill] sm:$0xff] }
 0x3d2   : > { %v26540_v47 = vpack.c.bf16 %v26538_v48, %v26539_v58  ;;  %v26543_v56 = vpack.c.bf16 %v26541_v30, %v26542_v35  ;;  %v21508_v21 = vld [vmem:[%s19172_s10 + $0xd58] sm:$0xff]  ;;  %v26550_v48 = vld [vmem:[#allocation110_spill] sm:$0xff]  ;;  %v26551_v35 = vld [vmem:[#allocation109_spill] sm:$0xff] }
 0x3d3   : > { %v3179_v42 = vadd.f32 %v3178_v39, %v26536_v2  ;;  %v3250_v16 = vadd.f32 %v3249_v52, %v26537_v61  ;;  %26544 = vst [vmem:[#allocation24_spill] sm:$0xff] %v21508_v21  ;;  %v21511_v39 = vld [vmem:[%s19172_s10 + $0x540] sm:$0xff]  ;;  %v15860_v25 = vmul.f32 -1.442695, %v3177_v8  ;;  %v15862_v52 = vmul.f32 -1.442695, %v3248_v32  ;;  %v17433_v21 = vpop.eup %17432 }
 0x3d4   : > { %16640 = vmatpush1.bf16.msra.mxu0 %v26540_v47  ;;  %16648 = vmatpush1.bf16.msra.mxu1 %v26543_v56  ;;  %26545 = vst [vmem:[#allocation25_spill] sm:$0xff] %v21511_v39  ;;  %v21514_v2 = vld [vmem:[%s19172_s10 + $0xd40] sm:$0xff]  ;;  %v26548_v58 = vld [vmem:[#allocation107_spill] sm:$0xff]  ;;  %v26552_v56 = vpack.c.bf16 %v26550_v48, %v26551_v35  ;;  %v21527_v22 = vld [vmem:[%s19172_s10 + $0x550] sm:$0xff]  ;;  %v26574_v35 = vrot.slane %v20330_v55, %v20152_v26 }
 0x3d5   : > { %26546 = vst [vmem:[#allocation26_spill] sm:$0xff] %v21514_v2  ;;  %v26547_v61 = vld [vmem:[#allocation108_spill] sm:$0xff]  ;;  %26553 = vst [vmem:[#allocation27_spill] sm:$0xff] %v21527_v22  ;;  %v21530_v8 = vld [vmem:[%s19172_s10 + $0xd50] sm:$0xff]  ;;  %v15861_v32 = vmul.f32 -1.442695, %v3179_v42  ;;  %17440 = vpow2.f32 %v15860_v25 }
 0x3d6   : > { %v26549_v47 = vpack.c.bf16 %v26547_v61, %v26548_v58  ;;  %16658 = vmatprep.subr.bf16.mxu1 %v26552_v56  ;;  %26554 = vst [vmem:[#allocation28_spill] sm:$0xff] %v21530_v8  ;;  %v15863_v60 = vmul.f32 -1.442695, %v3250_v16  ;;  %v21540_v48 = vld [vmem:[%s19172_s10 + $0x1d48] sm:$0xff]  ;;  %v21553_v56 = vld [vmem:[%s19172_s10 + $0x1558] sm:$0xff]  ;;  %17442 = vpow2.f32 %v15862_v52  ;;  %v26559_v25 = vld [vmem:[#allocation112_spill] sm:$0xff] }
 0x3d7   : > { %26556 = vst [vmem:[#allocation107_spill] sm:$0xff] %v21540_v48  ;;  %15784 = vmatmul.mubr.msk.f32.vlgmr.msra.gmra.mrb[58].mxu0 %vm520_vm3, %v19216_v7  ;;  %15785 = vmatmul.mubr.msk.f32.vlgmr.msra.gmra.mrb[58].mxu1 %vm520_vm3, %v19216_v7  ;;  %26557 = vst [vmem:[#allocation110_spill] sm:$0xff] %v21553_v56  ;;  %v21556_v30 = vld [vmem:[%s19172_s10 + $0x1d58] sm:$0xff]  ;;  %v26562_v57 = vld [vmem:[#allocation114_spill] sm:$0xff]  ;;  %17444 = vpow2.f32 %v15861_v32 }
 0x3d8   : > { %16650 = vmatprep.subr.bf16.mxu0 %v26549_v47  ;;  %v21537_v47 = vld [vmem:[%s19172_s10 + $0x1548] sm:$0xff]  ;;  %26558 = vst [vmem:[#allocation109_spill] sm:$0xff] %v21556_v30  ;;  %v26560_v58 = vld [vmem:[#allocation111_spill] sm:$0xff]  ;;  %v21571_v50 = vld [vmem:[%s19172_s10 + $0x1540] sm:$0xff]  ;;  %17446 = vpow2.f32 %v15863_v60  ;;  %7150 = vmatprep.mubr.f32.mxu0 %v26132_v4 }
 0x3d9   : > { %26555 = vst [vmem:[#allocation108_spill] sm:$0xff] %v21537_v47  ;;  %v26561_v61 = vpack.c.bf16 %v26559_v25, %v26560_v58  ;;  %v26563_v46 = vld [vmem:[#allocation113_spill] sm:$0xff]  ;;  %26565 = vst [vmem:[#allocation112_spill] sm:$0xff] %v21571_v50  ;;  %v21574_v52 = vld [vmem:[%s19172_s10 + $0x1d40] sm:$0xff]  ;;  %7221 = vmatprep.mubr.f32.mxu1 %v26132_v4  ;;  %v26575_v47 = vrot.slane %v20330_v55, %v20171_v59 }
 0x3da   : > { %v26564_v31 = vpack.c.bf16 %v26562_v57, %v26563_v46  ;;  %26566 = vst [vmem:[#allocation111_spill] sm:$0xff] %v21574_v52  ;;  %v26569_v57 = vld [vmem:[#allocation30_spill] sm:$0xff]  ;;  %v21601_v58 = vld [vmem:[%s19172_s10 + $0x568] sm:$0xff]  ;;  %v21615_v48 = vld [vmem:[%s19172_s10 + $0x578] sm:$0xff] }
 0x3db   : > { %16652 = vmatpush1.bf16.msra.mxu0 %v26561_v61  ;;  %v26567_v61 = vpack.c.bf16 %v20348_v29, %v20345_v34  ;;  %v21589_v42 = vld [vmem:[%s19172_s10 + $0x1550] sm:$0xff]  ;;  %v17435_v34 = vpop.eup %17434  ;;  %v12824_v29 = vadd.f32 1.0, %v17433_v21  ;;  %26572 = vst [vmem:[#allocation113_spill] sm:$0xff] %v21601_v58  ;;  %v21604_v60 = vld [vmem:[%s19172_s10 + $0xd68] sm:$0xff]  ;;  %26576 = vst [vmem:[#allocation30_spill] sm:$0xff] %v21615_v48 }
 0x3dc   : > { %16660 = vmatpush1.bf16.msra.mxu1 %v26564_v31  ;;  %v26568_v31 = vld [vmem:[#allocation29_spill] sm:$0xff]  ;;  %26571 = vst [vmem:[#allocation114_spill] sm:$0xff] %v21589_v42  ;;  %v21598_v25 = vld [vmem:[%s19172_s10 + $0x1d50] sm:$0xff]  ;;  %v17437_v21 = vpop.eup %17436  ;;  %v12826_v32 = vadd.f32 1.0, %v17435_v34  ;;  %v21618_v22 = vld [vmem:[%s19172_s10 + $0xd78] sm:$0xff] }
 0x3dd   : > { %16654 = vmatprep.subr.bf16.mxu0 %v26567_v61  ;;  %v26570_v46 = vpack.c.bf16 %v26568_v31, %v26569_v57  ;;  %v3318_v61 = vpop.f32.mrb[6].mxu0  ;;  %v3389_v31 = vpop.f32.mrb[6].mxu1  ;;  %26573 = vst [vmem:[#allocation29_spill] sm:$0xff] %v21604_v60  ;;  %26577 = vst [vmem:[#allocation216_spill] sm:$0xff] %v21618_v22  ;;  %v21621_v34 = vld [vmem:[%s19172_s10 + $0x560] sm:$0xff]  ;;  %17448 = vrcp.f32 %v12824_v29  ;;  %v26581_v2 = vld [vmem:[#allocation31_spill] sm:$0xff] }
 0x3de   : > { %v3319_v16 = vadd.f32 %v3318_v61, %v26574_v35  ;;  %v3390_v57 = vadd.f32 %v3389_v31, %v26575_v47  ;;  %v3391_v56 = vpop.f32.mrb[7].mxu1  ;;  %26578 = vst [vmem:[#allocation217_spill] sm:$0xff] %v21621_v34  ;;  %v17439_v8 = vpop.eup %17438  ;;  %v12825_v35 = vadd.f32 1.0, %v17437_v21  ;;  %v26579_v61 = vrot.slane %v20330_v55, %v20174_v38  ;;  %v26582_v30 = vld [vmem:[#allocation32_spill] sm:$0xff]  ;;  %v26584_v52 = vld [vmem:[#allocation33_spill] sm:$0xff]  ;;  %v26585_v0 = vld [vmem:[#allocation34_spill] sm:$0xff] }
 0x3df   : > { %16662 = vmatprep.subr.bf16.mxu1 %v26570_v46  ;;  %v3320_v46 = vpop.f32.mrb[7].mxu0  ;;  %v26580_v31 = vrot.slane %v20330_v55, %v20203_v20  ;;  %v26583_v50 = vpack.c.bf16 %v26581_v2, %v26582_v30  ;;  %v26586_v10 = vpack.c.bf16 %v26584_v52, %v26585_v0  ;;  %v21636_v29 = vld [vmem:[%s19172_s10 + $0xd60] sm:$0xff]  ;;  %v21639_v21 = vld [vmem:[%s19172_s10 + $0x570] sm:$0xff]  ;;  %17450 = vrcp.f32 %v12826_v32  ;;  %v26591_v2 = vld [vmem:[#allocation115_spill] sm:$0xff] }
 0x3e0   : > { %v3321_v47 = vadd.f32 %v3320_v46, %v26579_v61  ;;  %26587 = vst [vmem:[#allocation31_spill] sm:$0xff] %v21636_v29  ;;  %26588 = vst [vmem:[#allocation32_spill] sm:$0xff] %v21639_v21  ;;  %v21642_v46 = vld [vmem:[%s19172_s10 + $0xd70] sm:$0xff]  ;;  %v12827_v61 = vadd.f32 1.0, %v17439_v8  ;;  %v26590_v9 = vld [vmem:[#allocation116_spill] sm:$0xff]  ;;  %17452 = vrcp.f32 %v12825_v35  ;;  %v17441_v29 = vpop.eup %17440 }
 0x3e1   : > { %v3392_v39 = vadd.f32 %v3391_v56, %v26580_v31  ;;  %16656 = vmatpush1.bf16.msra.mxu0 %v26583_v50  ;;  %16664 = vmatpush1.bf16.msra.mxu1 %v26586_v10  ;;  %26589 = vst [vmem:[#allocation33_spill] sm:$0xff] %v21642_v46  ;;  %v15864_v56 = vmul.f32 -1.442695, %v3319_v16  ;;  %v15866_v31 = vmul.f32 -1.442695, %v3390_v57  ;;  %v26592_v50 = vpack.c.bf16 %v26590_v9, %v26591_v2  ;;  %v26593_v30 = vld [vmem:[#allocation118_spill] sm:$0xff] }
 0x3e2   : > { %v26594_v0 = vld [vmem:[#allocation117_spill] sm:$0xff]  ;;  %v21651_v10 = vld [vmem:[%s20146_s24 + $0x40] sm:$0xff]  ;;  %v15865_v45 = vmul.f32 -1.442695, %v3321_v47  ;;  %v21664_v57 = vld [vmem:[%s19172_s10 + $0x1578] sm:$0xff]  ;;  %17454 = vrcp.f32 %v12827_v61  ;;  %v12828_v34 = vadd.f32 1.0, %v17441_v29 }
 0x3e3   : > { %16666 = vmatprep.subr.bf16.mxu0 %v26592_v50  ;;  %v26595_v52 = vpack.c.bf16 %v26593_v30, %v26594_v0  ;;  %v21658_v32 = vld [vmem:[%s19172_s10 + $0x1568] sm:$0xff]  ;;  %26598 = vst [vmem:[#allocation115_spill] sm:$0xff] %v21664_v57  ;;  %v15867_v2 = vmul.f32 -1.442695, %v3392_v39  ;;  %v21675_v50 = vld [vmem:[%s19172_s10 + $0x1d78] sm:$0xff]  ;;  %v21678_v30 = vld [vmem:[%s19172_s10 + $0x1560] sm:$0xff]  ;;  %17456 = vpow2.f32 %v15864_v56 }
 0x3e4   : > { %26596 = vst [vmem:[#allocation34_spill] sm:$0xff] %v21658_v32  ;;  %v21661_v9 = vld [vmem:[%s19172_s10 + $0x1d68] sm:$0xff]  ;;  %15786 = vmatmul.mubr.msk.f32.vlgmr.msra.gmra.mrb[60].mxu0 %vm520_vm3, %v19216_v7  ;;  %15787 = vmatmul.mubr.msk.f32.vlgmr.msra.gmra.mrb[60].mxu1 %vm520_vm3, %v19216_v7  ;;  %26599 = vst [vmem:[#allocation118_spill] sm:$0xff] %v21675_v50  ;;  %v21681_v0 = vld [vmem:[%s19172_s10 + $0x1d60] sm:$0xff]  ;;  %17458 = vpow2.f32 %v15866_v31  ;;  %v17443_v31 = vpop.eup %17442  ;;  %v26620_v50 = vrot.slane %v20330_v55, %v20273_v19 }
 0x3e5   : > { %16674 = vmatprep.subr.bf16.mxu1 %v26595_v52  ;;  %26597 = vst [vmem:[#allocation116_spill] sm:$0xff] %v21661_v9  ;;  %26600 = vst [vmem:[#allocation117_spill] sm:$0xff] %v21678_v30  ;;  %v26602_v39 = vld [vmem:[#allocation120_spill] sm:$0xff]  ;;  %v26603_v61 = vld [vmem:[#allocation119_spill] sm:$0xff]  ;;  %17460 = vpow2.f32 %v15865_v45  ;;  %7292 = vmatprep.mubr.f32.mxu0 %v26132_v4  ;;  %v17445_v29 = vpop.eup %17444 }
 0x3e6   : > { %26601 = vst [vmem:[#allocation218_spill] sm:$0xff] %v21681_v0  ;;  %v26604_v52 = vpack.c.bf16 %v26602_v39, %v26603_v61  ;;  %v26605_v16 = vld [vmem:[#allocation122_spill] sm:$0xff]  ;;  %v26606_v8 = vld [vmem:[#allocation121_spill] sm:$0xff]  ;;  %v26608_v56 = vld [vmem:[#allocation124_spill] sm:$0xff]  ;;  %7363 = vmatprep.mubr.f32.mxu1 %v26132_v4  ;;  %v12830_v61 = vadd.f32 1.0, %v17443_v31  ;;  %17462 = vpow2.f32 %v15867_v2  ;;  %v17447_v31 = vpop.eup %17446  ;;  %v12829_v2 = vadd.f32 1.0, %v17445_v29 }
 0x3e7   : > { %v26607_v58 = vpack.c.bf16 %v26605_v16, %v26606_v8  ;;  %v26609_v48 = vld [vmem:[#allocation123_spill] sm:$0xff]  ;;  %v26611_v8 = vld [vmem:[#allocation36_spill] sm:$0xff]  ;;  %v21720_v45 = vld [vmem:[%s19172_s10 + $0x588] sm:$0xff]  ;;  %v26614_v16 = vrot.slane %v20330_v55, %v20240_v24  ;;  %17464 = vrcp.f32 %v12828_v34 }
 0x3e8   : > { %16668 = vmatpush1.bf16.msra.mxu0 %v26604_v52  ;;  %v26610_v39 = vpack.c.bf16 %v26608_v56, %v26609_v48  ;;  %v3460_v48 = vpop.f32.mrb[8].mxu0  ;;  %v3531_v56 = vpop.f32.mrb[8].mxu1  ;;  %26613 = vst [vmem:[#allocation120_spill] sm:$0xff] %v21720_v45  ;;  %v21729_v30 = vld [vmem:[%s19172_s10 + $0xd88] sm:$0xff]  ;;  %v21732_v0 = vld [vmem:[%s19172_s10 + $0x598] sm:$0xff]  ;;  %v26625_v46 = vld [vmem:[#allocation38_spill] sm:$0xff]  ;;  %17466 = vrcp.f32 %v12830_v61 }
 0x3e9   : > { %16676 = vmatpush1.bf16.msra.mxu1 %v26607_v58  ;;  %v26612_v58 = vpack.c.bf16 %v20444_v5, %v26611_v8  ;;  %v21714_v8 = vld [vmem:[%s19172_s10 + $0x1570] sm:$0xff]  ;;  %v3461_v47 = vadd.f32 %v3460_v48, %v26614_v16  ;;  %v26615_v5 = vrot.slane %v20330_v55, %v20243_v49  ;;  %v3462_v52 = vpop.f32.mrb[9].mxu0  ;;  %v3533_v35 = vpop.f32.mrb[9].mxu1  ;;  %26616 = vst [vmem:[#allocation119_spill] sm:$0xff] %v21729_v30  ;;  %26617 = vst [vmem:[#allocation122_spill] sm:$0xff] %v21732_v0  ;;  %v21735_v57 = vld [vmem:[%s19172_s10 + $0xd98] sm:$0xff] }
 0x3ea   : > { %16670 = vmatprep.subr.bf16.mxu0 %v26610_v39  ;;  %26618 = vst [vmem:[#allocation121_spill] sm:$0xff] %v21735_v57  ;;  %v26619_v16 = vrot.slane %v20330_v55, %v20246_v51  ;;  %v26622_v32 = vld [vmem:[#allocation35_spill] sm:$0xff]  ;;  %v26624_v21 = vld [vmem:[#allocation37_spill] sm:$0xff]  ;;  %v21750_v60 = vld [vmem:[%s19172_s10 + $0x580] sm:$0xff]  ;;  %17468 = vrcp.f32 %v12829_v2 }
 0x3eb   : > { %16678 = vmatprep.subr.bf16.mxu1 %v26612_v58  ;;  %v21717_v58 = vld [vmem:[%s19172_s10 + $0x1d70] sm:$0xff]  ;;  %v3532_v39 = vadd.f32 %v3531_v56, %v26615_v5  ;;  %v3534_v56 = vadd.f32 %v3533_v35, %v26620_v50  ;;  %v26621_v5 = vld [vmem:[#allocation125_spill] sm:$0xff]  ;;  %v26626_v22 = vpack.c.bf16 %v26624_v21, %v26625_v46  ;;  %26627 = vst [vmem:[#allocation124_spill] sm:$0xff] %v21750_v60  ;;  %v21753_v34 = vld [vmem:[%s19172_s10 + $0xd80] sm:$0xff]  ;;  %v17449_v21 = vpop.eup %17448 }
 0x3ec   : > { %v3463_v48 = vadd.f32 %v3462_v52, %v26619_v16  ;;  %v26623_v9 = vpack.c.bf16 %v26621_v5, %v26622_v32  ;;  %26628 = vst [vmem:[#allocation123_spill] sm:$0xff] %v21753_v34  ;;  %v21756_v29 = vld [vmem:[%s19172_s10 + $0x590] sm:$0xff]  ;;  %v12831_v52 = vadd.f32 1.0, %v17447_v31  ;;  %v15868_v16 = vmul.f32 -1.442695, %v3461_v47  ;;  %v26630_v35 = vld [vmem:[#allocation39_spill] sm:$0xff] }
 0x3ed   : > { %16680 = vmatpush1.bf16.msra.mxu1 %v26626_v22  ;;  %26629 = vst [vmem:[#allocation36_spill] sm:$0xff] %v21756_v29  ;;  %v15870_v55 = vmul.f32 -1.442695, %v3532_v39  ;;  %v26631_v50 = vld [vmem:[#allocation40_spill] sm:$0xff]  ;;  %v26633_v32 = vld [vmem:[#allocation127_spill] sm:$0xff]  ;;  %v21765_v22 = vld [vmem:[%s19172_s10 + $0xd90] sm:$0xff] }
 0x3ee   : > { %16672 = vmatpush1.bf16.msra.mxu0 %v26623_v9  ;;  %v26632_v42 = vpack.c.bf16 %v26630_v35, %v26631_v50  ;;  %v26634_v9 = vld [vmem:[#allocation126_spill] sm:$0xff]  ;;  %26636 = vst [vmem:[#allocation125_spill] sm:$0xff] %v21765_v22  ;;  %v15869_v46 = vmul.f32 -1.442695, %v3463_v48  ;;  %v21772_v39 = vld [vmem:[%s19172_s10 + $0x1588] sm:$0xff]  ;;  %17470 = vrcp.f32 %v12831_v52  ;;  %v21786_v50 = vld [vmem:[%s19172_s10 + $0x1598] sm:$0xff] }
 0x3ef   : > { %v26635_v5 = vpack.c.bf16 %v26633_v32, %v26634_v9  ;;  %26637 = vst [vmem:[#allocation35_spill] sm:$0xff] %v21772_v39  ;;  %v15871_v31 = vmul.f32 -1.442695, %v3534_v56  ;;  %v21783_v35 = vld [vmem:[%s19172_s10 + $0x1d88] sm:$0xff]  ;;  %26639 = vst [vmem:[#allocation38_spill] sm:$0xff] %v21786_v50  ;;  %v21789_v32 = vld [vmem:[%s19172_s10 + $0x1d98] sm:$0xff]  ;;  %17472 = vpow2.f32 %v15868_v16  ;;  %v26647_v16 = vpack.c.bf16 %v20530_v18, %v20527_v54 }
 0x3f0   : > { %16682 = vmatprep.subr.bf16.mxu0 %v26632_v42  ;;  %v17451_v42 = vpop.eup %17450  ;;  %15789 = vmatmul.mubr.msk.f32.vlgmr.msra.gmra.mrb[62].mxu1 %vm520_vm3, %v19216_v7  ;;  %26638 = vst [vmem:[#allocation37_spill] sm:$0xff] %v21783_v35  ;;  %26640 = vst [vmem:[#allocation39_spill] sm:$0xff] %v21789_v32  ;;  %v26641_v52 = vld [vmem:[#allocation129_spill] sm:$0xff]  ;;  %v26642_v9 = vld [vmem:[#allocation128_spill] sm:$0xff]  ;;  %17474 = vpow2.f32 %v15870_v55  ;;  %v3602_v55 = vpop.f32.mrb[10].mxu0  ;;  %v26659_v32 = vpack.c.bf16 %v20560_v17, %v20557_v28 }
 0x3f1   : > { %16690 = vmatprep.subr.bf16.mxu1 %v26635_v5  ;;  %15788 = vmatmul.mubr.msk.f32.vlgmr.msra.gmra.mrb[62].mxu0 %vm520_vm3, %v19216_v7  ;;  %v17453_v56 = vpop.eup %17452  ;;  %v26643_v5 = vpack.c.bf16 %v26641_v52, %v26642_v9  ;;  %v26644_v61 = vld [vmem:[#allocation131_spill] sm:$0xff]  ;;  %v26645_v47 = vld [vmem:[#allocation130_spill] sm:$0xff]  ;;  %17476 = vpow2.f32 %v15869_v46  ;;  %v26651_v46 = vrot.slane %v20512_v23, %v20152_v26  ;;  %v21825_v52 = vld [vmem:[%s19172_s10 + $0x1580] sm:$0xff] }
 0x3f2   : > { %v26646_v45 = vpack.c.bf16 %v26644_v61, %v26645_v47  ;;  %v17455_v34 = vpop.eup %17454  ;;  %v13848_v0 = vcombine.low %v17449_v21, %v17453_v56  ;;  %v26648_v47 = vld [vmem:[#allocation42_spill] sm:$0xff]  ;;  %v3673_v21 = vpop.f32.mrb[10].mxu1  ;;  %7434 = vmatprep.mubr.f32.mxu0 %v26132_v4  ;;  %7505 = vmatprep.mubr.f32.mxu1 %v26132_v4  ;;  %v26650_v56 = vld [vmem:[#allocation47_spill] sm:$0xff]  ;;  %17478 = vpow2.f32 %v15871_v31  ;;  %26652 = vst [vmem:[#allocation40_spill] sm:$0xff] %v21825_v52  ;;  %v21828_v61 = vld [vmem:[%s19172_s10 + $0x1d80] sm:$0xff] }
 0x3f3   : > { %16684 = vmatpush1.bf16.msra.mxu0 %v26643_v5  ;;  %v17457_v9 = vpop.eup %17456  ;;  %v13849_v5 = vcombine.low %v17451_v42, %v17455_v34  ;;  %v3603_v42 = vadd.f32 %v3602_v55, %v26651_v46  ;;  %v21831_v60 = vld [vmem:[%s19172_s10 + $0x1590] sm:$0xff]  ;;  %v26654_v31 = vrot.slane %v20512_v23, %v20171_v59  ;;  %v26655_v55 = vrot.slane %v20512_v23, %v20174_v38  ;;  %v26656_v54 = vld [vmem:[#allocation44_spill] sm:$0xff]  ;;  %v26657_v2 = vld [vmem:[#allocation41_spill] sm:$0xff] }
 0x3f4   : > { %16692 = vmatpush1.bf16.msra.mxu1 %v26646_v45  ;;  %16686 = vmatprep.subr.bf16.mxu0 %v26647_v16  ;;  %v26649_v45 = vpack.c.bf16 %v20536_v53, %v26648_v47  ;;  %v17459_v53 = vpop.eup %17458  ;;  %v13856_v16 = vrot.slane %v13848_v0, %v26650_v56  ;;  %v12832_v34 = vadd.f32 1.0, %v17457_v9  ;;  %v3604_v47 = vpop.f32.mrb[11].mxu0  ;;  %26653 = vst [vmem:[#allocation127_spill] sm:$0xff] %v21831_v60  ;;  %v21853_v39 = vld [vmem:[%s19172_s10 + $0xda8] sm:$0xff]  ;;  %v26664_v28 = vld [vmem:[#allocation43_spill] sm:$0xff]  ;;  %v21874_v57 = vld [vmem:[%s19172_s10 + $0xda0] sm:$0xff] }
 0x3f5   : > { %v17461_v48 = vpop.eup %17460  ;;  %v13863_v0 = vrot.slane %v13849_v5, %v26650_v56  ;;  %v12834_v9 = vadd.f32 1.0, %v17459_v53  ;;  %v3674_v18 = vadd.f32 %v3673_v21, %v26654_v31  ;;  %v3605_v46 = vadd.f32 %v3604_v47, %v26655_v55  ;;  %v21847_v5 = vld [vmem:[%s19172_s10 + $0x1d90] sm:$0xff]  ;;  %v21850_v53 = vld [vmem:[%s19172_s10 + $0x5a8] sm:$0xff]  ;;  %v21865_v29 = vld [vmem:[%s19172_s10 + $0x5b8] sm:$0xff]  ;;  %26672 = vst [vmem:[#allocation42_spill] sm:$0xff] %v21874_v57 }
 0x3f6   : > { %16694 = vmatprep.subr.bf16.mxu1 %v26649_v45  ;;  %v3675_v45 = vpop.f32.mrb[11].mxu1  ;;  %v26658_v50 = vpack.c.bf16 %v26656_v54, %v26657_v2  ;;  %26660 = vst [vmem:[#allocation126_spill] sm:$0xff] %v21847_v5  ;;  %26661 = vst [vmem:[#allocation129_spill] sm:$0xff] %v21850_v53  ;;  %v17463_v21 = vpop.eup %17462  ;;  %17480 = vrcp.f32 %v12832_v34  ;;  %v12833_v47 = vadd.f32 1.0, %v17461_v48  ;;  %v15872_v31 = vmul.f32 -1.442695, %v3603_v42 }
 0x3f7   : > { %v26662_v2 = vrot.slane %v20512_v23, %v20203_v20  ;;  %v26663_v54 = vld [vmem:[#allocation46_spill] sm:$0xff]  ;;  %v26667_v55 = vld [vmem:[#allocation45_spill] sm:$0xff]  ;;  %26669 = vst [vmem:[#allocation128_spill] sm:$0xff] %v21865_v29  ;;  %v21868_v22 = vld [vmem:[%s19172_s10 + $0xdb8] sm:$0xff]  ;;  %v17465_v48 = vpop.eup %17464  ;;  %v13864_v42 = vcombine.low %v13856_v16, %v13863_v0  ;;  %17482 = vrcp.f32 %v12834_v9 }
 0x3f8   : > { %16688 = vmatpush1.bf16.msra.mxu0 %v26658_v50  ;;  %16696 = vmatpush1.bf16.msra.mxu1 %v26659_v32  ;;  %v26665_v17 = vpack.c.bf16 %v26663_v54, %v26664_v28  ;;  %v26666_v32 = vld [vmem:[#allocation48_spill] sm:$0xff]  ;;  %26670 = vst [vmem:[#allocation131_spill] sm:$0xff] %v21868_v22  ;;  %v21877_v54 = vld [vmem:[%s19172_s10 + $0x5b0] sm:$0xff]  ;;  %17484 = vrcp.f32 %v12833_v47  ;;  %v21891_v0 = vld [vmem:[%s20146_s24 + $0x48] sm:$0xff] }
 0x3f9   : > { %v3676_v50 = vadd.f32 %v3675_v45, %v26662_v2  ;;  %v26668_v35 = vpack.c.bf16 %v26666_v32, %v26667_v55  ;;  %v21871_v34 = vld [vmem:[%s19172_s10 + $0x5a0] sm:$0xff]  ;;  %v12835_v45 = vadd.f32 1.0, %v17463_v21  ;;  %v15874_v2 = vmul.f32 -1.442695, %v3674_v18  ;;  %26673 = vst [vmem:[#allocation47_spill] sm:$0xff] %v21877_v54  ;;  %v21880_v28 = vld [vmem:[%s19172_s10 + $0xdb0] sm:$0xff]  ;;  %15000 = vst [vmem:[%s21895_s7] sm:$0xff] %v13864_v42 }
 0x3fa   : > { %16698 = vmatprep.subr.bf16.mxu0 %v26665_v17  ;;  %26671 = vst [vmem:[#allocation130_spill] sm:$0xff] %v21871_v34  ;;  %26674 = vst [vmem:[#allocation44_spill] sm:$0xff] %v21880_v28  ;;  %v15873_v17 = vmul.f32 -1.442695, %v3605_v46  ;;  %v26676_v21 = vld [vmem:[#allocation133_spill] sm:$0xff]  ;;  %v26677_v47 = vld [vmem:[#allocation132_spill] sm:$0xff] }
 0x3fb   : > { %16706 = vmatprep.subr.bf16.mxu1 %v26668_v35  ;;  %v17467_v35 = vpop.eup %17466  ;;  %15790 = vmatmul.mubr.msk.f32.vlgmr.msra.gmra.mrb[64].mxu0 %vm520_vm3, %v19216_v7  ;;  %26675 = vst [vmem:[#allocation41_spill] sm:$0xff] %v21891_v0  ;;  %17486 = vrcp.f32 %v12835_v45  ;;  %v15875_v46 = vmul.f32 -1.442695, %v3676_v50  ;;  %v26678_v32 = vpack.c.bf16 %v26676_v21, %v26677_v47  ;;  %v26679_v55 = vld [vmem:[#allocation135_spill] sm:$0xff]  ;;  %v26680_v30 = vld [vmem:[#allocation134_spill] sm:$0xff]  ;;  %v26682_v42 = vld [vmem:[#allocation137_spill] sm:$0xff]  ;;  %v26685_v21 = vpack.c.bf16 %v20625_v40, %v20622_v3 }
 0x3fc   : > { %15791 = vmatmul.mubr.msk.f32.vlgmr.msra.gmra.mrb[64].mxu1 %vm520_vm3, %v19216_v7  ;;  %v17469_v9 = vpop.eup %17468  ;;  %v26681_v16 = vpack.c.bf16 %v26679_v55, %v26680_v30  ;;  %17488 = vpow2.f32 %v15872_v31  ;;  %v26683_v45 = vld [vmem:[#allocation136_spill] sm:$0xff]  ;;  %v3744_v55 = vpop.f32.mrb[12].mxu0  ;;  %7576 = vmatprep.mubr.f32.mxu0 %v26132_v4  ;;  %v26687_v3 = vrot.slane %v20512_v23, %v20243_v49  ;;  %v26691_v30 = vld [vmem:[#allocation51_spill] sm:$0xff]  ;;  %v21939_v60 = vld [vmem:[%s19172_s10 + $0x15a8] sm:$0xff] }
 0x3fd   : > { %16700 = vmatpush1.bf16.msra.mxu0 %v26678_v32  ;;  %v17471_v5 = vpop.eup %17470  ;;  %v13865_v52 = vcombine.low %v17465_v48, %v17469_v9  ;;  %v26684_v50 = vpack.c.bf16 %v26682_v42, %v26683_v45  ;;  %17490 = vpow2.f32 %v15874_v2  ;;  %v3815_v48 = vpop.f32.mrb[12].mxu1  ;;  %7647 = vmatprep.mubr.f32.mxu1 %v26132_v4  ;;  %v26686_v2 = vrot.slane %v20512_v23, %v20240_v24  ;;  %v26700_v18 = vld [vmem:[#allocation139_spill] sm:$0xff]  ;;  %v21960_v34 = vld [vmem:[%s19172_s10 + $0x15a0] sm:$0xff] }
 0x3fe   : > { %16708 = vmatpush1.bf16.msra.mxu1 %v26681_v16  ;;  %v17473_v47 = vpop.eup %17472  ;;  %v13866_v32 = vcombine.low %v17467_v35, %v17471_v5  ;;  %17492 = vpow2.f32 %v15873_v17  ;;  %v3746_v42 = vpop.f32.mrb[13].mxu0  ;;  %v26689_v17 = vld [vmem:[#allocation50_spill] sm:$0xff]  ;;  %v21957_v28 = vld [vmem:[%s19172_s10 + $0x1db8] sm:$0xff]  ;;  %26703 = vst [vmem:[#allocation48_spill] sm:$0xff] %v21960_v34  ;;  %v22016_v22 = vld [vmem:[%s19172_s10 + $0x5c0] sm:$0xff] }
 0x3ff   : > { %16702 = vmatprep.subr.bf16.mxu0 %v26684_v50  ;;  %16710 = vmatprep.subr.bf16.mxu1 %v26685_v21  ;;  %v17475_v40 = vpop.eup %17474  ;;  %v13873_v9 = vrot.slane %v13865_v52, %v26650_v56  ;;  %v12836_v5 = vadd.f32 1.0, %v17473_v47  ;;  %v3745_v35 = vadd.f32 %v3744_v55, %v26686_v2  ;;  %v3817_v45 = vpop.f32.mrb[13].mxu1  ;;  %17494 = vpow2.f32 %v15875_v46  ;;  %v26688_v47 = vld [vmem:[#allocation49_spill] sm:$0xff]  ;;  %v26692_v55 = vld [vmem:[#allocation52_spill] sm:$0xff]  ;;  %26702 = vst [vmem:[#allocation43_spill] sm:$0xff] %v21957_v28  ;;  %v26738_v34 = vld [vmem:[#allocation150_spill] sm:$0xff] }
 0x400   : > { %v17477_v50 = vpop.eup %17476  ;;  %v13880_v21 = vrot.slane %v13866_v32, %v26650_v56  ;;  %v12838_v31 = vadd.f32 1.0, %v17475_v40  ;;  %v3816_v52 = vadd.f32 %v3815_v48, %v26687_v3  ;;  %v26690_v16 = vpack.c.bf16 %v26688_v47, %v26689_v17  ;;  %v21942_v32 = vld [vmem:[%s19172_s10 + $0x1da8] sm:$0xff]  ;;  %v21945_v40 = vld [vmem:[%s19172_s10 + $0x15b8] sm:$0xff]  ;;  %v26696_v17 = vld [vmem:[#allocation138_spill] sm:$0xff]  ;;  %26724 = vst [vmem:[#allocation49_spill] sm:$0xff] %v22016_v22  ;;  %v3886_v29 = vpop.f32.mrb[14].mxu0 }
 0x401   : > { %v26693_v2 = vpack.c.bf16 %v26691_v30, %v26692_v55  ;;  %26694 = vst [vmem:[#allocation46_spill] sm:$0xff] %v21945_v40  ;;  %v17479_v46 = vpop.eup %17478  ;;  %17496 = vrcp.f32 %v12836_v5  ;;  %v12837_v48 = vadd.f32 1.0, %v17477_v50  ;;  %v15876_v3 = vmul.f32 -1.442695, %v3745_v35  ;;  %v26697_v30 = vld [vmem:[#allocation53_spill] sm:$0xff]  ;;  %v21963_v5 = vld [vmem:[%s19172_s10 + $0x1da0] sm:$0xff] }
 0x402   : > { %16704 = vmatpush1.bf16.msra.mxu0 %v26690_v16  ;;  %v26695_v16 = vrot.slane %v20512_v23, %v20246_v51  ;;  %v26698_v55 = vpack.c.bf16 %v26696_v17, %v26697_v30  ;;  %26704 = vst [vmem:[#allocation45_spill] sm:$0xff] %v21963_v5  ;;  %v13881_v35 = vcombine.low %v13873_v9, %v13880_v21  ;;  %17498 = vrcp.f32 %v12838_v31  ;;  %v21969_v17 = vld [vmem:[%s19172_s10 + $0x1db0] sm:$0xff]  ;;  %v21984_v9 = vld [vmem:[%s19172_s10 + $0xdc8] sm:$0xff]  ;;  %v21987_v21 = vld [vmem:[%s19172_s10 + $0x5d8] sm:$0xff] }
 0x403   : > { %16712 = vmatpush1.bf16.msra.mxu1 %v26693_v2  ;;  %v26699_v2 = vld [vmem:[#allocation140_spill] sm:$0xff]  ;;  %v15878_v50 = vmul.f32 -1.442695, %v3816_v52  ;;  %26706 = vst [vmem:[#allocation132_spill] sm:$0xff] %v21969_v17  ;;  %17500 = vrcp.f32 %v12837_v48  ;;  %26709 = vst [vmem:[#allocation134_spill] sm:$0xff] %v21984_v9  ;;  %v21990_v52 = vld [vmem:[%s19172_s10 + $0xdd8] sm:$0xff] }
 0x404   : > { %v3747_v47 = vadd.f32 %v3746_v42, %v26695_v16  ;;  %16714 = vmatprep.subr.bf16.mxu0 %v26698_v55  ;;  %v26701_v54 = vpack.c.bf16 %v26699_v2, %v26700_v18  ;;  %v12839_v42 = vadd.f32 1.0, %v17479_v46  ;;  %v21966_v16 = vld [vmem:[%s19172_s10 + $0x15b0] sm:$0xff]  ;;  %v21972_v18 = vld [vmem:[%s19172_s10 + $0x5c8] sm:$0xff]  ;;  %v26708_v55 = vrot.slane %v20512_v23, %v20273_v19  ;;  %26710 = vst [vmem:[#allocation137_spill] sm:$0xff] %v21987_v21  ;;  %v26737_v17 = vld [vmem:[#allocation151_spill] sm:$0xff] }
 0x405   : > { %26705 = vst [vmem:[#allocation133_spill] sm:$0xff] %v21966_v16  ;;  %26707 = vst [vmem:[#allocation135_spill] sm:$0xff] %v21972_v18  ;;  %15792 = vmatmul.mubr.msk.f32.vlgmr.msra.gmra.mrb[66].mxu0 %vm520_vm3, %v19216_v7  ;;  %v26712_v23 = vld [vmem:[#allocation142_spill] sm:$0xff]  ;;  %v3888_v18 = vpop.f32.mrb[15].mxu0  ;;  %v26730_v16 = vrot.slane %v20684_v12, %v20174_v38  ;;  %v26739_v5 = vpack.c.bf16 %v26737_v17, %v26738_v34  ;;  %v26832_v40 = vld [vmem:[#allocation180_spill] sm:$0xff] }
 0x406   : > { %16722 = vmatprep.subr.bf16.mxu1 %v26701_v54  ;;  %v17481_v54 = vpop.eup %17480  ;;  %v15877_v30 = vmul.f32 -1.442695, %v3747_v47  ;;  %v3818_v2 = vadd.f32 %v3817_v45, %v26708_v55  ;;  %15793 = vmatmul.mubr.msk.f32.vlgmr.msra.gmra.mrb[66].mxu1 %vm520_vm3, %v19216_v7  ;;  %26711 = vst [vmem:[#allocation136_spill] sm:$0xff] %v21990_v52  ;;  %15001 = vst [vmem:[%s21895_s7 + $0x8] sm:$0xff] %v13881_v35  ;;  %17502 = vrcp.f32 %v12839_v42  ;;  %v26713_v45 = vld [vmem:[#allocation141_spill] sm:$0xff]  ;;  %v26715_v47 = vld [vmem:[#allocation144_spill] sm:$0xff] }
 0x407   : > { %v17483_v46 = vpop.eup %17482  ;;  %v26714_v48 = vpack.c.bf16 %v26712_v23, %v26713_v45  ;;  %v26716_v55 = vld [vmem:[#allocation143_spill] sm:$0xff]  ;;  %17504 = vpow2.f32 %v15876_v3  ;;  %v26718_v42 = vld [vmem:[#allocation146_spill] sm:$0xff]  ;;  %v26719_v23 = vld [vmem:[#allocation145_spill] sm:$0xff]  ;;  %7718 = vmatprep.mubr.f32.mxu0 %v26132_v4  ;;  %7789 = vmatprep.mubr.f32.mxu1 %v26132_v4 }
 0x408   : > { %v26717_v57 = vpack.c.bf16 %v26715_v47, %v26716_v55  ;;  %v17485_v53 = vpop.eup %17484  ;;  %v15879_v35 = vmul.f32 -1.442695, %v3818_v2  ;;  %v26720_v45 = vpack.c.bf16 %v26718_v42, %v26719_v23  ;;  %17506 = vpow2.f32 %v15878_v50  ;;  %v3957_v42 = vpop.f32.mrb[14].mxu1 }
 0x409   : > { %16716 = vmatpush1.bf16.msra.mxu0 %v26714_v48  ;;  %v26721_v48 = vld [vmem:[#allocation148_spill] sm:$0xff]  ;;  %v17487_v3 = vpop.eup %17486  ;;  %v13882_v2 = vcombine.low %v17481_v54, %v17485_v53  ;;  %17508 = vpow2.f32 %v15877_v30  ;;  %v26728_v54 = vrot.slane %v20684_v12, %v20152_v26  ;;  %v26729_v55 = vrot.slane %v20684_v12, %v20171_v59  ;;  %v3959_v9 = vpop.f32.mrb[15].mxu1 }
 0x40a   : > { %16724 = vmatpush1.bf16.msra.mxu1 %v26717_v57  ;;  %16718 = vmatprep.subr.bf16.mxu0 %v26720_v45  ;;  %v26722_v57 = vld [vmem:[#allocation147_spill] sm:$0xff]  ;;  %v17489_v53 = vpop.eup %17488  ;;  %v13883_v50 = vcombine.low %v17483_v46, %v17487_v3  ;;  %17510 = vpow2.f32 %v15879_v35  ;;  %v3889_v30 = vadd.f32 %v3888_v18, %v26730_v16  ;;  %v26731_v46 = vpack.c.bf16 %v20724_v44, %v20721_v1  ;;  %v26752_v44 = vld [vmem:[#allocation156_spill] sm:$0xff] }
 0x40b   : > { %v26723_v47 = vpack.c.bf16 %v26721_v48, %v26722_v57  ;;  %v22025_v48 = vld [vmem:[%s19172_s10 + $0xdc0] sm:$0xff]  ;;  %v22028_v57 = vld [vmem:[%s19172_s10 + $0x5d0] sm:$0xff]  ;;  %v3887_v31 = vadd.f32 %v3886_v29, %v26728_v54  ;;  %v3958_v23 = vadd.f32 %v3957_v42, %v26729_v55  ;;  %v17491_v45 = vpop.eup %17490  ;;  %v13890_v21 = vrot.slane %v13882_v2, %v26650_v56  ;;  %v26732_v29 = vld [vmem:[#allocation55_spill] sm:$0xff] }
 0x40c   : > { %26725 = vst [vmem:[#allocation50_spill] sm:$0xff] %v22025_v48  ;;  %26726 = vst [vmem:[#allocation51_spill] sm:$0xff] %v22028_v57  ;;  %v12840_v52 = vadd.f32 1.0, %v17489_v53  ;;  %v26733_v3 = vpack.c.bf16 %v20730_v63, %v26732_v29  ;;  %v17493_v55 = vpop.eup %17492  ;;  %v13897_v42 = vrot.slane %v13883_v50, %v26650_v56  ;;  %v12842_v54 = vadd.f32 1.0, %v17491_v45  ;;  %v26734_v2 = vld [vmem:[#allocation149_spill] sm:$0xff]  ;;  %v26735_v53 = vld [vmem:[#allocation54_spill] sm:$0xff] }
 0x40d   : > { %16726 = vmatprep.subr.bf16.mxu1 %v26723_v47  ;;  %v22031_v47 = vld [vmem:[%s19172_s10 + $0xdd0] sm:$0xff]  ;;  %16720 = vmatpush1.bf16.msra.mxu0 %v26731_v46  ;;  %v26736_v35 = vpack.c.bf16 %v26734_v2, %v26735_v53  ;;  %v17495_v63 = vpop.eup %17494  ;;  %v12841_v16 = vadd.f32 1.0, %v17493_v55  ;;  %v15880_v18 = vmul.f32 -1.442695, %v3887_v31  ;;  %v26740_v45 = vrot.slane %v20684_v12, %v20203_v20  ;;  %v22064_v46 = vld [vmem:[%s19172_s10 + $0x15c8] sm:$0xff]  ;;  %v22074_v31 = vld [vmem:[%s19172_s10 + $0x15d8] sm:$0xff] }
 0x40e   : > { %26727 = vst [vmem:[#allocation52_spill] sm:$0xff] %v22031_v47  ;;  %16728 = vmatpush1.bf16.msra.mxu1 %v26733_v3  ;;  %17512 = vrcp.f32 %v12840_v52  ;;  %26741 = vst [vmem:[#allocation138_spill] sm:$0xff] %v22064_v46  ;;  %v17497_v34 = vpop.eup %17496  ;;  %v12843_v17 = vadd.f32 1.0, %v17495_v63  ;;  %v15882_v29 = vmul.f32 -1.442695, %v3958_v23  ;;  %v22071_v52 = vld [vmem:[%s19172_s10 + $0x1dc8] sm:$0xff] }
 0x40f   : > { %16730 = vmatprep.subr.bf16.mxu0 %v26736_v35  ;;  %16738 = vmatprep.subr.bf16.mxu1 %v26739_v5  ;;  %v3960_v50 = vadd.f32 %v3959_v9, %v26740_v45  ;;  %v13898_v5 = vcombine.low %v13890_v21, %v13897_v42  ;;  %17514 = vrcp.f32 %v12842_v54  ;;  %26742 = vst [vmem:[#allocation53_spill] sm:$0xff] %v22071_v52  ;;  %26743 = vst [vmem:[#allocation140_spill] sm:$0xff] %v22074_v31  ;;  %v22077_v3 = vld [vmem:[%s19172_s10 + $0x1dd8] sm:$0xff]  ;;  %v17499_v9 = vpop.eup %17498  ;;  %v26745_v21 = vld [vmem:[#allocation153_spill] sm:$0xff] }
 0x410   : > { %15794 = vmatmul.mubr.msk.f32.vlgmr.msra.gmra.mrb[68].mxu0 %vm520_vm3, %v19216_v7  ;;  %26744 = vst [vmem:[#allocation139_spill] sm:$0xff] %v22077_v3  ;;  %17516 = vrcp.f32 %v12841_v16  ;;  %v15881_v55 = vmul.f32 -1.442695, %v3889_v30  ;;  %v26746_v42 = vld [vmem:[#allocation152_spill] sm:$0xff]  ;;  %v26748_v23 = vld [vmem:[#allocation155_spill] sm:$0xff]  ;;  %v26749_v2 = vld [vmem:[#allocation154_spill] sm:$0xff]  ;;  %v17501_v45 = vpop.eup %17500 }
 0x411   : > { %15795 = vmatmul.mubr.msk.f32.vlgmr.msra.gmra.mrb[68].mxu1 %vm520_vm3, %v19216_v7  ;;  %v26747_v54 = vpack.c.bf16 %v26745_v21, %v26746_v42  ;;  %v26750_v53 = vpack.c.bf16 %v26748_v23, %v26749_v2  ;;  %15002 = vst [vmem:[%s21895_s7 + $0x10] sm:$0xff] %v13898_v5  ;;  %17518 = vrcp.f32 %v12843_v17  ;;  %v15883_v30 = vmul.f32 -1.442695, %v3960_v50  ;;  %v26751_v16 = vld [vmem:[#allocation157_spill] sm:$0xff]  ;;  %v26754_v42 = vld [vmem:[#allocation159_spill] sm:$0xff]  ;;  %v17503_v63 = vpop.eup %17502  ;;  %v4028_v17 = vpop.f32.mrb[16].mxu0  ;;  %7860 = vmatprep.mubr.f32.mxu0 %v26132_v4 }
 0x412   : > { %v26753_v21 = vpack.c.bf16 %v26751_v16, %v26752_v44  ;;  %v13899_v5 = vcombine.low %v17497_v34, %v17501_v45  ;;  %17520 = vpow2.f32 %v15880_v18  ;;  %v4099_v50 = vpop.f32.mrb[16].mxu1  ;;  %7931 = vmatprep.mubr.f32.mxu1 %v26132_v4  ;;  %v17505_v34 = vpop.eup %17504  ;;  %v13900_v18 = vcombine.low %v17499_v9, %v17503_v63  ;;  %v22119_v16 = vld [vmem:[%s19172_s10 + $0x15d0] sm:$0xff]  ;;  %v26763_v63 = vld [vmem:[#allocation161_spill] sm:$0xff]  ;;  %v22153_v57 = vld [vmem:[%s19172_s10 + $0xdf8] sm:$0xff] }
 0x413   : > { %16732 = vmatpush1.bf16.msra.mxu0 %v26747_v54  ;;  %16740 = vmatpush1.bf16.msra.mxu1 %v26750_v53  ;;  %v26755_v54 = vld [vmem:[#allocation158_spill] sm:$0xff]  ;;  %17522 = vpow2.f32 %v15882_v29  ;;  %v26759_v45 = vrot.slane %v20684_v12, %v20240_v24  ;;  %v4030_v2 = vpop.f32.mrb[17].mxu0  ;;  %v4101_v35 = vpop.f32.mrb[17].mxu1  ;;  %26761 = vst [vmem:[#allocation144_spill] sm:$0xff] %v22119_v16  ;;  %v12844_v31 = vadd.f32 1.0, %v17505_v34  ;;  %v26762_v29 = vrot.slane %v20684_v12, %v20246_v51  ;;  %v22138_v34 = vld [vmem:[%s19172_s10 + $0xde8] sm:$0xff] }
 0x414   : > { %16734 = vmatprep.subr.bf16.mxu0 %v26753_v21  ;;  %v26756_v23 = vpack.c.bf16 %v26754_v42, %v26755_v54  ;;  %v22107_v21 = vld [vmem:[%s19172_s10 + $0x15c0] sm:$0xff]  ;;  %v17507_v44 = vpop.eup %17506  ;;  %v13907_v1 = vrot.slane %v13899_v5, %v26650_v56  ;;  %17524 = vpow2.f32 %v15881_v55  ;;  %v22132_v3 = vld [vmem:[%s19172_s10 + $0x1dd0] sm:$0xff]  ;;  %v22135_v5 = vld [vmem:[%s19172_s10 + $0x5e8] sm:$0xff]  ;;  %26770 = vst [vmem:[#allocation145_spill] sm:$0xff] %v22138_v34  ;;  %v13914_v46 = vrot.slane %v13900_v18, %v26650_v56 }
 0x415   : > { %26757 = vst [vmem:[#allocation142_spill] sm:$0xff] %v22107_v21  ;;  %v22110_v42 = vld [vmem:[%s19172_s10 + $0x1dc0] sm:$0xff]  ;;  %v4029_v54 = vadd.f32 %v4028_v17, %v26759_v45  ;;  %v4031_v9 = vadd.f32 %v4030_v2, %v26762_v29  ;;  %26768 = vst [vmem:[#allocation143_spill] sm:$0xff] %v22132_v3  ;;  %v17509_v55 = vpop.eup %17508  ;;  %v12846_v52 = vadd.f32 1.0, %v17507_v44  ;;  %17526 = vpow2.f32 %v15883_v30  ;;  %v26771_v2 = vld [vmem:[#allocation163_spill] sm:$0xff] }
 0x416   : > { %16742 = vmatprep.subr.bf16.mxu1 %v26756_v23  ;;  %26758 = vst [vmem:[#allocation141_spill] sm:$0xff] %v22110_v42  ;;  %v26760_v23 = vrot.slane %v20684_v12, %v20243_v49  ;;  %v26764_v17 = vld [vmem:[#allocation160_spill] sm:$0xff]  ;;  %26769 = vst [vmem:[#allocation146_spill] sm:$0xff] %v22135_v5  ;;  %v26772_v29 = vld [vmem:[#allocation162_spill] sm:$0xff]  ;;  %v17511_v30 = vpop.eup %17510  ;;  %17528 = vrcp.f32 %v12844_v31  ;;  %v12845_v18 = vadd.f32 1.0, %v17509_v55 }
 0x417   : > { %v26765_v45 = vpack.c.bf16 %v26763_v63, %v26764_v17  ;;  %v26773_v63 = vpack.c.bf16 %v26771_v2, %v26772_v29  ;;  %v26774_v17 = vld [vmem:[#allocation165_spill] sm:$0xff]  ;;  %26778 = vst [vmem:[#allocation147_spill] sm:$0xff] %v22153_v57  ;;  %v22156_v44 = vld [vmem:[%s19172_s10 + $0x5e0] sm:$0xff]  ;;  %v15884_v2 = vmul.f32 -1.442695, %v4029_v54  ;;  %17530 = vrcp.f32 %v12846_v52  ;;  %v22169_v31 = vld [vmem:[%s19172_s10 + $0x5f0] sm:$0xff] }
 0x418   : > { %v4100_v53 = vadd.f32 %v4099_v50, %v26760_v23  ;;  %v26766_v50 = vld [vmem:[#allocation56_spill] sm:$0xff]  ;;  %26779 = vst [vmem:[#allocation55_spill] sm:$0xff] %v22156_v44  ;;  %26782 = vst [vmem:[#allocation54_spill] sm:$0xff] %v22169_v31  ;;  %v22172_v54 = vld [vmem:[%s19172_s10 + $0xdf0] sm:$0xff]  ;;  %17532 = vrcp.f32 %v12845_v18 }
 0x419   : > { %16736 = vmatpush1.bf16.msra.mxu0 %v26765_v45  ;;  %v26767_v23 = vpack.c.bf16 %v20818_v33, %v26766_v50  ;;  %v26775_v45 = vld [vmem:[#allocation164_spill] sm:$0xff]  ;;  %26783 = vst [vmem:[#allocation151_spill] sm:$0xff] %v22172_v54  ;;  %v26784_v52 = vld [vmem:[#allocation57_spill] sm:$0xff]  ;;  %v26785_v55 = vld [vmem:[#allocation58_spill] sm:$0xff] }
 0x41a   : > { %16746 = vmatprep.subr.bf16.mxu0 %v26773_v63  ;;  %v26776_v33 = vpack.c.bf16 %v26774_v17, %v26775_v45  ;;  %v15886_v29 = vmul.f32 -1.442695, %v4100_v53  ;;  %v22159_v63 = vld [vmem:[%s19172_s10 + $0xde0] sm:$0xff]  ;;  %v13915_v17 = vcombine.low %v13907_v1, %v13914_v46  ;;  %v12847_v45 = vadd.f32 1.0, %v17511_v30  ;;  %v22175_v53 = vld [vmem:[%s20146_s24 + $0x50] sm:$0xff]  ;;  %v17513_v1 = vpop.eup %17512  ;;  %v22212_v42 = vld [vmem:[%s19172_s10 + $0x15e8] sm:$0xff] }
 0x41b   : > { %16744 = vmatpush1.bf16.msra.mxu1 %v26767_v23  ;;  %v22150_v23 = vld [vmem:[%s19172_s10 + $0x5f8] sm:$0xff]  ;;  %26780 = vst [vmem:[#allocation149_spill] sm:$0xff] %v22159_v63  ;;  %v15885_v46 = vmul.f32 -1.442695, %v4031_v9  ;;  %v26786_v30 = vpack.c.bf16 %v26784_v52, %v26785_v55  ;;  %v17515_v47 = vpop.eup %17514  ;;  %v26790_v18 = vld [vmem:[#allocation168_spill] sm:$0xff]  ;;  %v26793_v52 = vld [vmem:[#allocation170_spill] sm:$0xff] }
 0x41c   : > { %16754 = vmatprep.subr.bf16.mxu1 %v26776_v33  ;;  %26777 = vst [vmem:[#allocation148_spill] sm:$0xff] %v22150_v23  ;;  %v26781_v33 = vrot.slane %v20684_v12, %v20273_v19  ;;  %15796 = vmatmul.mubr.msk.f32.vlgmr.msra.gmra.mrb[70].mxu0 %vm520_vm3, %v19216_v7  ;;  %v26787_v12 = vld [vmem:[#allocation59_spill] sm:$0xff]  ;;  %15003 = vst [vmem:[%s21895_s7 + $0x18] sm:$0xff] %v13915_v17  ;;  %17534 = vrcp.f32 %v12847_v45  ;;  %v26794_v55 = vld [vmem:[#allocation169_spill] sm:$0xff]  ;;  %v4170_v17 = vpop.f32.mrb[18].mxu0 }
 0x41d   : > { %16748 = vmatpush1.bf16.msra.mxu0 %v26786_v30  ;;  %v26791_v9 = vld [vmem:[#allocation167_spill] sm:$0xff]  ;;  %v26795_v30 = vpack.c.bf16 %v26793_v52, %v26794_v55  ;;  %17536 = vpow2.f32 %v15884_v2  ;;  %8002 = vmatprep.mubr.f32.mxu0 %v26132_v4  ;;  %v26796_v2 = vld [vmem:[#allocation166_spill] sm:$0xff]  ;;  %26798 = vst [vmem:[#allocation150_spill] sm:$0xff] %v22212_v42  ;;  %v22215_v45 = vld [vmem:[%s19172_s10 + $0x1de8] sm:$0xff] }
 0x41e   : > { %v4102_v50 = vadd.f32 %v4101_v35, %v26781_v33  ;;  %15797 = vmatmul.mubr.msk.f32.vlgmr.msra.gmra.mrb[70].mxu1 %vm520_vm3, %v19216_v7  ;;  %v26788_v35 = vld [vmem:[#allocation60_spill] sm:$0xff]  ;;  %v26792_v48 = vpack.c.bf16 %v26790_v18, %v26791_v9  ;;  %17538 = vpow2.f32 %v15886_v29  ;;  %v26797_v55 = vrot.slane %v26796_v2, %v20152_v26  ;;  %26799 = vst [vmem:[#allocation153_spill] sm:$0xff] %v22215_v45  ;;  %v26804_v31 = vld [vmem:[#allocation174_spill] sm:$0xff]  ;;  %v26805_v54 = vld [vmem:[#allocation173_spill] sm:$0xff] }
 0x41f   : > { %v26789_v33 = vpack.c.bf16 %v26787_v12, %v26788_v35  ;;  %8073 = vmatprep.mubr.f32.mxu1 %v26132_v4  ;;  %v4172_v35 = vpop.f32.mrb[19].mxu0  ;;  %17540 = vpow2.f32 %v15885_v46  ;;  %v26800_v29 = vrot.slane %v26796_v2, %v20171_v59  ;;  %v22229_v63 = vld [vmem:[%s19172_s10 + $0x15f8] sm:$0xff]  ;;  %v22245_v23 = vld [vmem:[%s19172_s10 + $0x15e0] sm:$0xff]  ;;  %v26821_v5 = vld [vmem:[#allocation178_spill] sm:$0xff] }
 0x420   : > { %v15887_v22 = vmul.f32 -1.442695, %v4102_v50  ;;  %16750 = vmatprep.subr.bf16.mxu0 %v26792_v48  ;;  %v4241_v50 = vpop.f32.mrb[18].mxu1  ;;  %v26806_v48 = vpack.c.bf16 %v26804_v31, %v26805_v54  ;;  %26807 = vst [vmem:[#allocation152_spill] sm:$0xff] %v22229_v63  ;;  %v26810_v54 = vld [vmem:[#allocation175_spill] sm:$0xff]  ;;  %v22248_v57 = vld [vmem:[%s19172_s10 + $0x1de0] sm:$0xff] }
 0x421   : > { %16756 = vmatpush1.bf16.msra.mxu1 %v26789_v33  ;;  %v17517_v33 = vpop.eup %17516  ;;  %v4243_v12 = vpop.f32.mrb[19].mxu1  ;;  %v26820_v45 = vld [vmem:[#allocation179_spill] sm:$0xff]  ;;  %v26823_v16 = vld [vmem:[#allocation62_spill] sm:$0xff]  ;;  %v22290_v3 = vld [vmem:[%s19172_s10 + $0xe00] sm:$0xff] }
 0x422   : > { %16758 = vmatprep.subr.bf16.mxu1 %v26795_v30  ;;  %v17519_v9 = vpop.eup %17518  ;;  %v13916_v52 = vcombine.low %v17513_v1, %v17517_v33  ;;  %v4171_v30 = vadd.f32 %v4170_v17, %v26797_v55  ;;  %v4242_v1 = vadd.f32 %v4241_v50, %v26800_v29  ;;  %v26801_v33 = vld [vmem:[#allocation172_spill] sm:$0xff]  ;;  %v26802_v17 = vld [vmem:[#allocation171_spill] sm:$0xff]  ;;  %17542 = vpow2.f32 %v15887_v22  ;;  %26827 = vst [vmem:[#allocation158_spill] sm:$0xff] %v22290_v3 }
 0x423   : > { %v17521_v21 = vpop.eup %17520  ;;  %v13917_v18 = vcombine.low %v17515_v47, %v17519_v9  ;;  %v26803_v55 = vpack.c.bf16 %v26801_v33, %v26802_v17  ;;  %v22232_v47 = vld [vmem:[%s19172_s10 + $0x1df8] sm:$0xff]  ;;  %v26809_v29 = vrot.slane %v26796_v2, %v20174_v38  ;;  %v26813_v17 = vld [vmem:[#allocation177_spill] sm:$0xff]  ;;  %v26822_v34 = vpack.c.bf16 %v26820_v45, %v26821_v5 }
 0x424   : > { %26808 = vst [vmem:[#allocation155_spill] sm:$0xff] %v22232_v47  ;;  %v17523_v46 = vpop.eup %17522  ;;  %v13924_v50 = vrot.slane %v13916_v52, %v26650_v56  ;;  %v12848_v9 = vadd.f32 1.0, %v17521_v21  ;;  %v15890_v42 = vmul.f32 -1.442695, %v4242_v1  ;;  %v22287_v47 = vld [vmem:[%s19172_s10 + $0x600] sm:$0xff]  ;;  %v26831_v1 = vld [vmem:[#allocation181_spill] sm:$0xff] }
 0x425   : > { %16752 = vmatpush1.bf16.msra.mxu0 %v26803_v55  ;;  %16760 = vmatpush1.bf16.msra.mxu1 %v26806_v48  ;;  %v4173_v31 = vadd.f32 %v4172_v35, %v26809_v29  ;;  %v26811_v48 = vld [vmem:[#allocation61_spill] sm:$0xff]  ;;  %v26814_v55 = vld [vmem:[#allocation176_spill] sm:$0xff]  ;;  %v17525_v52 = vpop.eup %17524  ;;  %v13931_v22 = vrot.slane %v13917_v18, %v26650_v56  ;;  %v12850_v21 = vadd.f32 1.0, %v17523_v46  ;;  %v26816_v35 = vrot.slane %v26796_v2, %v20203_v20 }
 0x426   : > { %v26812_v33 = vpack.c.bf16 %v26810_v54, %v26811_v48  ;;  %v26815_v44 = vpack.c.bf16 %v26813_v17, %v26814_v55  ;;  %v22257_v48 = vld [vmem:[%s19172_s10 + $0x15f0] sm:$0xff]  ;;  %v17527_v17 = vpop.eup %17526  ;;  %17544 = vrcp.f32 %v12848_v9  ;;  %v12849_v55 = vadd.f32 1.0, %v17525_v52  ;;  %v22272_v46 = vld [vmem:[%s19172_s10 + $0xe08] sm:$0xff]  ;;  %v22278_v54 = vld [vmem:[%s19172_s10 + $0xe18] sm:$0xff]  ;;  %26826 = vst [vmem:[#allocation159_spill] sm:$0xff] %v22287_v47 }
 0x427   : > { %v4244_v29 = vadd.f32 %v4243_v12, %v26816_v35  ;;  %v15888_v18 = vmul.f32 -1.442695, %v4171_v30  ;;  %v22275_v35 = vld [vmem:[%s19172_s10 + $0x618] sm:$0xff]  ;;  %26819 = vst [vmem:[#allocation156_spill] sm:$0xff] %v22278_v54  ;;  %v17529_v9 = vpop.eup %17528  ;;  %v13932_v52 = vcombine.low %v13924_v50, %v13931_v22  ;;  %17546 = vrcp.f32 %v12850_v21  ;;  %v26828_v22 = vld [vmem:[#allocation64_spill] sm:$0xff]  ;;  %v26829_v21 = vld [vmem:[#allocation65_spill] sm:$0xff] }
 0x428   : > { %16762 = vmatprep.subr.bf16.mxu0 %v26812_v33  ;;  %16770 = vmatprep.subr.bf16.mxu1 %v26815_v44  ;;  %v22260_v44 = vld [vmem:[%s19172_s10 + $0x1df0] sm:$0xff]  ;;  %v22263_v33 = vld [vmem:[%s19172_s10 + $0x608] sm:$0xff]  ;;  %26818 = vst [vmem:[#allocation157_spill] sm:$0xff] %v22275_v35  ;;  %v12851_v30 = vadd.f32 1.0, %v17527_v17  ;;  %v26824_v12 = vld [vmem:[#allocation63_spill] sm:$0xff]  ;;  %v17531_v0 = vpop.eup %17530  ;;  %17548 = vrcp.f32 %v12849_v55  ;;  %v26830_v17 = vpack.c.bf16 %v26828_v22, %v26829_v21  ;;  %v26833_v28 = vpack.c.bf16 %v26831_v1, %v26832_v40  ;;  %v4312_v55 = vpop.f32.mrb[20].mxu0 }
 0x429   : > { %26817 = vst [vmem:[#allocation154_spill] sm:$0xff] %v22263_v33  ;;  %15798 = vmatmul.mubr.msk.f32.vlgmr.msra.gmra.mrb[72].mxu0 %vm520_vm3, %v19216_v7  ;;  %15799 = vmatmul.mubr.msk.f32.vlgmr.msra.gmra.mrb[72].mxu1 %vm520_vm3, %v19216_v7  ;;  %v26825_v63 = vpack.c.bf16 %v26823_v16, %v26824_v12  ;;  %v15889_v50 = vmul.f32 -1.442695, %v4173_v31  ;;  %v17533_v45 = vpop.eup %17532  ;;  %15004 = vst [vmem:[%s21895_s7 + $0x20] sm:$0xff] %v13932_v52  ;;  %v15891_v31 = vmul.f32 -1.442695, %v4244_v29 }
 0x42a   : > { %16764 = vmatpush1.bf16.msra.mxu0 %v26822_v34  ;;  %v22303_v34 = vld [vmem:[%s19172_s10 + $0x610] sm:$0xff]  ;;  %17550 = vrcp.f32 %v12851_v30  ;;  %v4383_v12 = vpop.f32.mrb[20].mxu1  ;;  %8144 = vmatprep.mubr.f32.mxu0 %v26132_v4  ;;  %v17535_v22 = vpop.eup %17534  ;;  %v13933_v21 = vcombine.low %v17529_v9, %v17533_v45  ;;  %v26836_v52 = vrot.slane %v26796_v2, %v20240_v24  ;;  %v26838_v9 = vpack.c.bf16 %v20981_v62, %v20978_v41  ;;  %v26844_v41 = vld [vmem:[#allocation184_spill] sm:$0xff] }
 0x42b   : > { %16772 = vmatpush1.bf16.msra.mxu1 %v26825_v63  ;;  %16766 = vmatprep.subr.bf16.mxu0 %v26830_v17  ;;  %26834 = vst [vmem:[#allocation161_spill] sm:$0xff] %v22303_v34  ;;  %v22306_v63 = vld [vmem:[%s19172_s10 + $0xe10] sm:$0xff]  ;;  %17552 = vpow2.f32 %v15888_v18  ;;  %v4314_v29 = vpop.f32.mrb[21].mxu0  ;;  %v4385_v17 = vpop.f32.mrb[21].mxu1  ;;  %v13934_v5 = vcombine.low %v17531_v0, %v17535_v22  ;;  %v26839_v18 = vld [vmem:[#allocation183_spill] sm:$0xff]  ;;  %v26876_v47 = vld [vmem:[#allocation192_spill] sm:$0xff] }
 0x42c   : > { %16774 = vmatprep.subr.bf16.mxu1 %v26833_v28  ;;  %26835 = vst [vmem:[#allocation160_spill] sm:$0xff] %v22306_v63  ;;  %8215 = vmatprep.mubr.f32.mxu1 %v26132_v4  ;;  %v4313_v30 = vadd.f32 %v4312_v55, %v26836_v52  ;;  %v17537_v16 = vpop.eup %17536  ;;  %17554 = vpow2.f32 %v15890_v42  ;;  %v26837_v28 = vrot.slane %v26796_v2, %v20243_v49  ;;  %v26840_v45 = vld [vmem:[#allocation182_spill] sm:$0xff]  ;;  %v22373_v55 = vld [vmem:[%s19172_s10 + $0x1e00] sm:$0xff] }
 0x42d   : > { %v26841_v40 = vpack.c.bf16 %v26839_v18, %v26840_v45  ;;  %v17539_v52 = vpop.eup %17538  ;;  %v13941_v1 = vrot.slane %v13933_v21, %v26650_v56  ;;  %v12852_v0 = vadd.f32 1.0, %v17537_v16  ;;  %17556 = vpow2.f32 %v15889_v50  ;;  %v26846_v22 = vld [vmem:[#allocation66_spill] sm:$0xff]  ;;  %26861 = vst [vmem:[#allocation57_spill] sm:$0xff] %v22373_v55 }
 0x42e   : > { %v4384_v33 = vadd.f32 %v4383_v12, %v26837_v28  ;;  %16768 = vmatpush1.bf16.msra.mxu0 %v26838_v9  ;;  %v26842_v42 = vrot.slane %v26796_v2, %v20246_v51  ;;  %v26843_v28 = vld [vmem:[#allocation185_spill] sm:$0xff]  ;;  %v17541_v18 = vpop.eup %17540  ;;  %v13948_v21 = vrot.slane %v13934_v5, %v26650_v56  ;;  %v12854_v16 = vadd.f32 1.0, %v17539_v52  ;;  %v22370_v5 = vld [vmem:[%s19172_s10 + $0x1600] sm:$0xff]  ;;  %v22389_v34 = vld [vmem:[%s19172_s10 + $0x1e10] sm:$0xff] }
 0x42f   : > { %16776 = vmatpush1.bf16.msra.mxu1 %v26841_v40  ;;  %v26845_v62 = vpack.c.bf16 %v26843_v28, %v26844_v41  ;;  %v26847_v40 = vld [vmem:[#allocation67_spill] sm:$0xff]  ;;  %17558 = vpow2.f32 %v15891_v31  ;;  %v26849_v50 = vrot.slane %v26796_v2, %v20273_v19  ;;  %v15892_v28 = vmul.f32 -1.442695, %v4313_v30  ;;  %v22352_v31 = vld [vmem:[%s19172_s10 + $0x1608] sm:$0xff]  ;;  %26860 = vst [vmem:[#allocation164_spill] sm:$0xff] %v22370_v5  ;;  %26869 = vst [vmem:[#allocation59_spill] sm:$0xff] %v22389_v34 }
 0x430   : > { %v4315_v12 = vadd.f32 %v4314_v29, %v26842_v42  ;;  %v26848_v9 = vpack.c.bf16 %v26846_v22, %v26847_v40  ;;  %v17543_v29 = vpop.eup %17542  ;;  %17560 = vrcp.f32 %v12852_v0  ;;  %v12853_v42 = vadd.f32 1.0, %v17541_v18  ;;  %26850 = vst [vmem:[#allocation56_spill] sm:$0xff] %v22352_v31  ;;  %v22355_v2 = vld [vmem:[%s19172_s10 + $0x1e08] sm:$0xff]  ;;  %v26853_v41 = vld [vmem:[#allocation187_spill] sm:$0xff] }
 0x431   : > { %16778 = vmatprep.subr.bf16.mxu0 %v26845_v62  ;;  %v4386_v45 = vadd.f32 %v4385_v17, %v26849_v50  ;;  %15800 = vmatmul.mubr.msk.f32.vlgmr.msra.gmra.mrb[74].mxu0 %vm520_vm3, %v19216_v7  ;;  %26851 = vst [vmem:[#allocation163_spill] sm:$0xff] %v22355_v2  ;;  %v22358_v17 = vld [vmem:[%s19172_s10 + $0x1618] sm:$0xff]  ;;  %v13949_v52 = vcombine.low %v13941_v1, %v13948_v21  ;;  %17562 = vrcp.f32 %v12854_v16  ;;  %v12855_v30 = vadd.f32 1.0, %v17543_v29  ;;  %v26854_v62 = vld [vmem:[#allocation186_spill] sm:$0xff]  ;;  %v26856_v40 = vld [vmem:[#allocation189_spill] sm:$0xff]  ;;  %v17545_v1 = vpop.eup %17544 }
 0x432   : > { %16786 = vmatprep.subr.bf16.mxu1 %v26848_v9  ;;  %15801 = vmatmul.mubr.msk.f32.vlgmr.msra.gmra.mrb[74].mxu1 %vm520_vm3, %v19216_v7  ;;  %26852 = vst [vmem:[#allocation162_spill] sm:$0xff] %v22358_v17  ;;  %v15894_v0 = vmul.f32 -1.442695, %v4384_v33  ;;  %v26855_v22 = vpack.c.bf16 %v26853_v41, %v26854_v62  ;;  %v26857_v9 = vld [vmem:[#allocation188_spill] sm:$0xff]  ;;  %v22367_v50 = vld [vmem:[%s19172_s10 + $0x1e18] sm:$0xff]  ;;  %17564 = vrcp.f32 %v12853_v42  ;;  %v26863_v33 = vld [vmem:[#allocation69_spill] sm:$0xff]  ;;  %v17547_v42 = vpop.eup %17546 }
 0x433   : > { %v26858_v18 = vpack.c.bf16 %v26856_v40, %v26857_v9  ;;  %26859 = vst [vmem:[#allocation165_spill] sm:$0xff] %v22367_v50  ;;  %v15893_v21 = vmul.f32 -1.442695, %v4315_v12  ;;  %v26862_v16 = vld [vmem:[#allocation68_spill] sm:$0xff]  ;;  %v26865_v41 = vld [vmem:[#allocation70_spill] sm:$0xff]  ;;  %v26866_v62 = vld [vmem:[#allocation71_spill] sm:$0xff]  ;;  %17566 = vrcp.f32 %v12855_v30  ;;  %8286 = vmatprep.mubr.f32.mxu0 %v26132_v4  ;;  %8357 = vmatprep.mubr.f32.mxu1 %v26132_v4 }
 0x434   : > { %16780 = vmatpush1.bf16.msra.mxu0 %v26855_v22  ;;  %v26864_v29 = vpack.c.bf16 %v26862_v16, %v26863_v33  ;;  %v26867_v22 = vpack.c.bf16 %v26865_v41, %v26866_v62  ;;  %15005 = vst [vmem:[%s21895_s7 + $0x28] sm:$0xff] %v13949_v52  ;;  %v15895_v12 = vmul.f32 -1.442695, %v4386_v45  ;;  %v4454_v16 = vpop.f32.mrb[22].mxu0  ;;  %v4525_v33 = vpop.f32.mrb[22].mxu1  ;;  %17568 = vpow2.f32 %v15892_v28  ;;  %v26872_v31 = vld [vmem:[#allocation191_spill] sm:$0xff] }
 0x435   : > { %16788 = vmatpush1.bf16.msra.mxu1 %v26858_v18  ;;  %v22386_v18 = vld [vmem:[%s19172_s10 + $0x1610] sm:$0xff]  ;;  %v17549_v62 = vpop.eup %17548  ;;  %v26870_v52 = vrot.slane %v21038_v43, %v20152_v26  ;;  %v4456_v30 = vpop.f32.mrb[23].mxu0  ;;  %17570 = vpow2.f32 %v15894_v0  ;;  %v26871_v28 = vrot.slane %v21038_v43, %v20171_v59  ;;  %v22417_v9 = vld [vmem:[%s19172_s10 + $0x628] sm:$0xff]  ;;  %v22435_v34 = vld [vmem:[%s19172_s10 + $0xe38] sm:$0xff] }
 0x436   : > { %16782 = vmatprep.subr.bf16.mxu0 %v26864_v29  ;;  %16790 = vmatprep.subr.bf16.mxu1 %v26867_v22  ;;  %26868 = vst [vmem:[#allocation58_spill] sm:$0xff] %v22386_v18  ;;  %v4527_v22 = vpop.f32.mrb[23].mxu1  ;;  %v17551_v29 = vpop.eup %17550  ;;  %v13950_v63 = vcombine.low %v17545_v1, %v17549_v62  ;;  %v26873_v2 = vld [vmem:[#allocation190_spill] sm:$0xff]  ;;  %26878 = vst [vmem:[#allocation60_spill] sm:$0xff] %v22417_v9  ;;  %v22420_v1 = vld [vmem:[%s19172_s10 + $0xe28] sm:$0xff]  ;;  %17572 = vpow2.f32 %v15893_v21 }
 0x437   : > { %v4455_v45 = vadd.f32 %v4454_v16, %v26870_v52  ;;  %v4526_v41 = vadd.f32 %v4525_v33, %v26871_v28  ;;  %v26874_v16 = vpack.c.bf16 %v26872_v31, %v26873_v2  ;;  %v26875_v52 = vld [vmem:[#allocation193_spill] sm:$0xff]  ;;  %26879 = vst [vmem:[#allocation168_spill] sm:$0xff] %v22420_v1  ;;  %v17553_v0 = vpop.eup %17552  ;;  %v13951_v62 = vcombine.low %v17547_v42, %v17551_v29  ;;  %v26881_v28 = vld [vmem:[#allocation195_spill] sm:$0xff] }
 0x438   : > { %v26877_v3 = vpack.c.bf16 %v26875_v52, %v26876_v47  ;;  %v26880_v31 = vrot.slane %v21038_v43, %v20174_v38  ;;  %v26885_v52 = vld [vmem:[#allocation196_spill] sm:$0xff]  ;;  %v22432_v18 = vld [vmem:[%s19172_s10 + $0x638] sm:$0xff]  ;;  %26888 = vst [vmem:[#allocation170_spill] sm:$0xff] %v22435_v34  ;;  %v17555_v21 = vpop.eup %17554  ;;  %v13958_v42 = vrot.slane %v13950_v63, %v26650_v56  ;;  %v12856_v29 = vadd.f32 1.0, %v17553_v0  ;;  %v22458_v0 = vld [vmem:[%s19172_s10 + $0xe30] sm:$0xff]  ;;  %v4667_v63 = vpop.f32.mrb[24].mxu1 }
 0x439   : > { %16784 = vmatpush1.bf16.msra.mxu0 %v26874_v16  ;;  %v15896_v33 = vmul.f32 -1.442695, %v4455_v45  ;;  %v26882_v16 = vld [vmem:[#allocation194_spill] sm:$0xff]  ;;  %26887 = vst [vmem:[#allocation167_spill] sm:$0xff] %v22432_v18  ;;  %17574 = vpow2.f32 %v15895_v12  ;;  %v26889_v45 = vrot.slane %v21038_v43, %v20203_v20  ;;  %v22452_v12 = vld [vmem:[%s19172_s10 + $0xe20] sm:$0xff]  ;;  %26893 = vst [vmem:[#allocation171_spill] sm:$0xff] %v22458_v0 }
 0x43a   : > { %16792 = vmatpush1.bf16.msra.mxu1 %v26877_v3  ;;  %v4457_v2 = vadd.f32 %v4456_v30, %v26880_v31  ;;  %v26883_v47 = vpack.c.bf16 %v26881_v28, %v26882_v16  ;;  %v26884_v3 = vld [vmem:[#allocation197_spill] sm:$0xff]  ;;  %v22442_v31 = vld [vmem:[%s19172_s10 + $0x620] sm:$0xff]  ;;  %v17557_v28 = vpop.eup %17556  ;;  %v12858_v16 = vadd.f32 1.0, %v17555_v21  ;;  %26891 = vst [vmem:[#allocation166_spill] sm:$0xff] %v22452_v12  ;;  %v26898_v5 = vld [vmem:[#allocation75_spill] sm:$0xff] }
 0x43b   : > { %v26886_v40 = vpack.c.bf16 %v26884_v3, %v26885_v52  ;;  %v4528_v30 = vadd.f32 %v4527_v22, %v26889_v45  ;;  %26890 = vst [vmem:[#allocation169_spill] sm:$0xff] %v22442_v31  ;;  %17576 = vpow2.f32 %v15896_v33  ;;  %v22455_v22 = vld [vmem:[%s19172_s10 + $0x630] sm:$0xff]  ;;  %v15898_v3 = vmul.f32 -1.442695, %v4526_v41  ;;  %v26894_v33 = vld [vmem:[#allocation72_spill] sm:$0xff]  ;;  %v26895_v52 = vld [vmem:[#allocation73_spill] sm:$0xff] }
 0x43c   : > { %16794 = vmatprep.subr.bf16.mxu0 %v26883_v47  ;;  %15802 = vmatmul.mubr.msk.f32.vlgmr.msra.gmra.mrb[76].mxu0 %vm520_vm3, %v19216_v7  ;;  %26892 = vst [vmem:[#allocation172_spill] sm:$0xff] %v22455_v22  ;;  %v17559_v47 = vpop.eup %17558  ;;  %17578 = vrcp.f32 %v12856_v29  ;;  %v26896_v21 = vpack.c.bf16 %v26894_v33, %v26895_v52  ;;  %v26897_v45 = vld [vmem:[#allocation74_spill] sm:$0xff]  ;;  %v22469_v9 = vld [vmem:[%s20146_s24 + $0x58] sm:$0xff]  ;;  %v26900_v41 = vld [vmem:[#allocation76_spill] sm:$0xff] }
 0x43d   : > { %16802 = vmatprep.subr.bf16.mxu1 %v26886_v40  ;;  %v13965_v40 = vrot.slane %v13951_v62, %v26650_v56  ;;  %15803 = vmatmul.mubr.msk.f32.vlgmr.msra.gmra.mrb[76].mxu1 %vm520_vm3, %v19216_v7  ;;  %v12857_v62 = vadd.f32 1.0, %v17557_v28  ;;  %v26899_v55 = vpack.c.bf16 %v26897_v45, %v26898_v5  ;;  %v17561_v1 = vpop.eup %17560  ;;  %17580 = vrcp.f32 %v12858_v16  ;;  %v26901_v50 = vld [vmem:[#allocation77_spill] sm:$0xff]  ;;  %v26903_v33 = vld [vmem:[#allocation78_spill] sm:$0xff]  ;;  %v26904_v52 = vld [vmem:[#allocation79_spill] sm:$0xff]  ;;  %v4596_v45 = vpop.f32.mrb[24].mxu0 }
 0x43e   : > { %16796 = vmatpush1.bf16.msra.mxu0 %v26896_v21  ;;  %v12859_v29 = vadd.f32 1.0, %v17559_v47  ;;  %v15897_v28 = vmul.f32 -1.442695, %v4457_v2  ;;  %v26902_v35 = vpack.c.bf16 %v26900_v41, %v26901_v50  ;;  %v26905_v21 = vpack.c.bf16 %v26903_v33, %v26904_v52  ;;  %8428 = vmatprep.mubr.f32.mxu0 %v26132_v4  ;;  %v4669_v16 = vpop.f32.mrb[25].mxu1  ;;  %v22502_v50 = vld [vmem:[%s19172_s10 + $0x1628] sm:$0xff]  ;;  %v26919_v47 = vld [vmem:[#allocation204_spill] sm:$0xff] }
 0x43f   : > { %16804 = vmatpush1.bf16.msra.mxu1 %v26899_v55  ;;  %v13966_v17 = vcombine.low %v13958_v42, %v13965_v40  ;;  %v17563_v55 = vpop.eup %17562  ;;  %17582 = vrcp.f32 %v12857_v62  ;;  %v15899_v5 = vmul.f32 -1.442695, %v4528_v30  ;;  %8499 = vmatprep.mubr.f32.mxu1 %v26132_v4  ;;  %v26906_v42 = vrot.slane %v21038_v43, %v20240_v24  ;;  %v4598_v40 = vpop.f32.mrb[25].mxu0  ;;  %26913 = vst [vmem:[#allocation174_spill] sm:$0xff] %v22502_v50  ;;  %v22514_v62 = vld [vmem:[%s19172_s10 + $0x1e28] sm:$0xff]  ;;  %v22517_v22 = vld [vmem:[%s19172_s10 + $0x1638] sm:$0xff] }
 0x440   : > { %16798 = vmatprep.subr.bf16.mxu0 %v26902_v35  ;;  %16806 = vmatprep.subr.bf16.mxu1 %v26905_v21  ;;  %v17565_v35 = vpop.eup %17564  ;;  %17584 = vrcp.f32 %v12859_v29  ;;  %v26908_v29 = vld [vmem:[#allocation198_spill] sm:$0xff]  ;;  %v26910_v21 = vld [vmem:[#allocation201_spill] sm:$0xff]  ;;  %26921 = vst [vmem:[#allocation173_spill] sm:$0xff] %v22514_v62  ;;  %26922 = vst [vmem:[#allocation175_spill] sm:$0xff] %v22517_v22 }
 0x441   : > { %15006 = vst [vmem:[%s21895_s7 + $0x30] sm:$0xff] %v13966_v17  ;;  %v4597_v30 = vadd.f32 %v4596_v45, %v26906_v42  ;;  %v17567_v41 = vpop.eup %17566  ;;  %v13967_v33 = vcombine.low %v17561_v1, %v17565_v35  ;;  %17586 = vpow2.f32 %v15898_v3  ;;  %v26907_v17 = vld [vmem:[#allocation199_spill] sm:$0xff]  ;;  %v26911_v45 = vld [vmem:[#allocation200_spill] sm:$0xff]  ;;  %v22557_v12 = vld [vmem:[%s19172_s10 + $0x648] sm:$0xff] }
 0x442   : > { %v26909_v52 = vpack.c.bf16 %v26907_v17, %v26908_v29  ;;  %v26912_v42 = vpack.c.bf16 %v26910_v21, %v26911_v45  ;;  %v17569_v1 = vpop.eup %17568  ;;  %v13968_v35 = vcombine.low %v17563_v55, %v17567_v41  ;;  %17588 = vpow2.f32 %v15897_v28  ;;  %v26916_v21 = vld [vmem:[#allocation202_spill] sm:$0xff]  ;;  %v22520_v28 = vld [vmem:[%s19172_s10 + $0x1e38] sm:$0xff]  ;;  %v26941_v50 = vld [vmem:[#allocation84_spill] sm:$0xff] }
 0x443   : > { %v15900_v3 = vmul.f32 -1.442695, %v4597_v30  ;;  %v26914_v17 = vrot.slane %v21038_v43, %v20243_v49  ;;  %26923 = vst [vmem:[#allocation61_spill] sm:$0xff] %v22520_v28  ;;  %v17571_v55 = vpop.eup %17570  ;;  %v12860_v30 = vadd.f32 1.0, %v17569_v1  ;;  %17590 = vpow2.f32 %v15899_v5  ;;  %v22538_v5 = vld [vmem:[%s19172_s10 + $0x1e20] sm:$0xff]  ;;  %v22544_v1 = vld [vmem:[%s19172_s10 + $0x1e30] sm:$0xff] }
 0x444   : > { %16800 = vmatpush1.bf16.msra.mxu0 %v26909_v52  ;;  %16808 = vmatpush1.bf16.msra.mxu1 %v26912_v42  ;;  %v26915_v52 = vld [vmem:[#allocation203_spill] sm:$0xff]  ;;  %v26918_v42 = vld [vmem:[#allocation205_spill] sm:$0xff]  ;;  %v26924_v41 = vrot.slane %v21038_v43, %v20246_v51  ;;  %26927 = vst [vmem:[#allocation176_spill] sm:$0xff] %v22538_v5  ;;  %26929 = vst [vmem:[#allocation178_spill] sm:$0xff] %v22544_v1 }
 0x445   : > { %v4668_v29 = vadd.f32 %v4667_v63, %v26914_v17  ;;  %v26917_v45 = vpack.c.bf16 %v26915_v52, %v26916_v21  ;;  %v26920_v2 = vpack.c.bf16 %v26918_v42, %v26919_v47  ;;  %v13975_v63 = vrot.slane %v13967_v33, %v26650_v56  ;;  %v22527_v47 = vld [vmem:[%s19172_s10 + $0x1620] sm:$0xff]  ;;  %v26930_v42 = vld [vmem:[#allocation81_spill] sm:$0xff]  ;;  %v26940_v0 = vld [vmem:[#allocation87_spill] sm:$0xff] }
 0x446   : > { %v4599_v17 = vadd.f32 %v4598_v40, %v26924_v41  ;;  %26925 = vst [vmem:[#allocation177_spill] sm:$0xff] %v22527_v47  ;;  %v13982_v52 = vrot.slane %v13968_v35, %v26650_v56  ;;  %v12862_v21 = vadd.f32 1.0, %v17571_v55  ;;  %17592 = vpow2.f32 %v15900_v3  ;;  %v22541_v40 = vld [vmem:[%s19172_s10 + $0x1630] sm:$0xff]  ;;  %v26934_v41 = vld [vmem:[#allocation80_spill] sm:$0xff]  ;;  %v22572_v31 = vld [vmem:[%s19172_s10 + $0xe58] sm:$0xff] }
 0x447   : > { %16810 = vmatprep.subr.bf16.mxu0 %v26917_v45  ;;  %16818 = vmatprep.subr.bf16.mxu1 %v26920_v2  ;;  %v17573_v2 = vpop.eup %17572  ;;  %v26926_v45 = vrot.slane %v21038_v43, %v20273_v19  ;;  %26928 = vst [vmem:[#allocation179_spill] sm:$0xff] %v22541_v40  ;;  %17594 = vrcp.f32 %v12860_v30  ;;  %v26931_v43 = vld [vmem:[#allocation206_spill] sm:$0xff]  ;;  %v22560_v30 = vld [vmem:[%s19172_s10 + $0xe48] sm:$0xff]  ;;  %v15902_v18 = vmul.f32 -1.442695, %v4668_v29  ;;  %v26942_v62 = vpack.c.bf16 %v26940_v0, %v26941_v50  ;;  %v22575_v22 = vld [vmem:[%s19172_s10 + $0x640] sm:$0xff] }
 0x448   : > { %15804 = vmatmul.mubr.msk.f32.vlgmr.msra.gmra.mrb[78].mxu0 %vm520_vm3, %v19216_v7  ;;  %15805 = vmatmul.mubr.msk.f32.vlgmr.msra.gmra.mrb[78].mxu1 %vm520_vm3, %v19216_v7  ;;  %v17575_v35 = vpop.eup %17574  ;;  %v12861_v3 = vadd.f32 1.0, %v17573_v2  ;;  %v26932_v55 = vpack.c.bf16 %v26930_v42, %v26931_v43  ;;  %v22563_v2 = vld [vmem:[%s19172_s10 + $0x658] sm:$0xff]  ;;  %v13983_v43 = vcombine.low %v13975_v63, %v13982_v52  ;;  %17596 = vrcp.f32 %v12862_v21  ;;  %26943 = vst [vmem:[#allocation63_spill] sm:$0xff] %v22572_v31  ;;  %v22578_v28 = vld [vmem:[%s19172_s10 + $0xe40] sm:$0xff]  ;;  %v4738_v52 = vpop.f32.mrb[26].mxu0  ;;  %v26950_v47 = vld [vmem:[#allocation86_spill] sm:$0xff] }
 0x449   : > { %v4670_v33 = vadd.f32 %v4669_v16, %v26926_v45  ;;  %v26933_v16 = vld [vmem:[#allocation83_spill] sm:$0xff]  ;;  %26936 = vst [vmem:[#allocation62_spill] sm:$0xff] %v22563_v2  ;;  %v17577_v42 = vpop.eup %17576  ;;  %26944 = vst [vmem:[#allocation64_spill] sm:$0xff] %v22575_v22  ;;  %v15901_v29 = vmul.f32 -1.442695, %v4599_v17  ;;  %v4809_v21 = vpop.f32.mrb[26].mxu1  ;;  %8570 = vmatprep.mubr.f32.mxu0 %v26132_v4  ;;  %8641 = vmatprep.mubr.f32.mxu1 %v26132_v4 }
 0x44a   : > { %16812 = vmatpush1.bf16.msra.mxu0 %v26932_v55  ;;  %v26935_v45 = vpack.c.bf16 %v26933_v16, %v26934_v41  ;;  %v12863_v55 = vadd.f32 1.0, %v17575_v35  ;;  %v26937_v16 = vld [vmem:[#allocation85_spill] sm:$0xff]  ;;  %v26938_v41 = vld [vmem:[#allocation82_spill] sm:$0xff]  ;;  %26945 = vst [vmem:[#allocation65_spill] sm:$0xff] %v22578_v28  ;;  %v17579_v34 = vpop.eup %17578  ;;  %17598 = vrcp.f32 %v12861_v3  ;;  %v12864_v63 = vadd.f32 1.0, %v17577_v42  ;;  %15007 = vst [vmem:[%s21895_s7 + $0x38] sm:$0xff] %v13983_v43 }
 0x44b   : > { %v17581_v50 = vpop.eup %17580  ;;  %v26946_v35 = vrot.slane %v21219_v14, %v20152_v26  ;;  %v4740_v42 = vpop.f32.mrb[27].mxu0  ;;  %v26949_v0 = vld [vmem:[#allocation207_spill] sm:$0xff]  ;;  %v26986_v17 = vld [vmem:[#allocation102_spill] sm:$0xff] }
 0x44c   : > { %16820 = vmatpush1.bf16.msra.mxu1 %v26935_v45  ;;  %v26939_v45 = vpack.c.bf16 %v26937_v16, %v26938_v41  ;;  %17600 = vrcp.f32 %v12863_v55  ;;  %v4811_v16 = vpop.f32.mrb[27].mxu1  ;;  %v22591_v41 = vld [vmem:[%s19172_s10 + $0x650] sm:$0xff]  ;;  %v17583_v54 = vpop.eup %17582  ;;  %v26951_v43 = vpack.c.bf16 %v26949_v0, %v26950_v47  ;;  %v26953_v55 = vld [vmem:[#allocation208_spill] sm:$0xff]  ;;  %v26955_v47 = vrot.slane %v21219_v14, %v20171_v59 }
 0x44d   : > { %16822 = vmatprep.subr.bf16.mxu1 %v26942_v62  ;;  %v15903_v62 = vmul.f32 -1.442695, %v4670_v33  ;;  %v4739_v3 = vadd.f32 %v4738_v52, %v26946_v35  ;;  %26947 = vst [vmem:[#allocation181_spill] sm:$0xff] %v22591_v41  ;;  %17602 = vrcp.f32 %v12864_v63  ;;  %v26952_v33 = vld [vmem:[#allocation209_spill] sm:$0xff]  ;;  %v17585_v40 = vpop.eup %17584  ;;  %v13984_v1 = vcombine.low %v17579_v34, %v17583_v54  ;;  %v22682_v41 = vld [vmem:[%s19172_s10 + $0x1640] sm:$0xff]  ;;  %v22694_v22 = vld [vmem:[%s19172_s10 + $0x1650] sm:$0xff] }
 0x44e   : > { %16814 = vmatprep.subr.bf16.mxu0 %v26939_v45  ;;  %v22594_v45 = vld [vmem:[%s19172_s10 + $0xe50] sm:$0xff]  ;;  %v26954_v5 = vpack.c.bf16 %v26952_v33, %v26953_v55  ;;  %17604 = vpow2.f32 %v15902_v18  ;;  %v4810_v0 = vadd.f32 %v4809_v21, %v26955_v47  ;;  %v26958_v33 = vld [vmem:[#allocation89_spill] sm:$0xff]  ;;  %v17587_v35 = vpop.eup %17586  ;;  %v13985_v52 = vcombine.low %v17581_v50, %v17585_v40  ;;  %26989 = vst [vmem:[#allocation183_spill] sm:$0xff] %v22694_v22 }
 0x44f   : > { %26948 = vst [vmem:[#allocation180_spill] sm:$0xff] %v22594_v45  ;;  %16816 = vmatpush1.bf16.msra.mxu0 %v26951_v43  ;;  %v15904_v63 = vmul.f32 -1.442695, %v4739_v3  ;;  %v26957_v43 = vld [vmem:[#allocation88_spill] sm:$0xff]  ;;  %17606 = vpow2.f32 %v15901_v29  ;;  %v26960_v54 = vrot.slane %v21219_v14, %v20174_v38  ;;  %v17589_v3 = vpop.eup %17588  ;;  %v13992_v21 = vrot.slane %v13984_v1, %v26650_v56  ;;  %v26972_v18 = vld [vmem:[#allocation210_spill] sm:$0xff]  ;;  %v26987_v45 = vld [vmem:[#allocation99_spill] sm:$0xff] }
 0x450   : > { %16824 = vmatpush1.bf16.msra.mxu1 %v26954_v5  ;;  %v26956_v5 = vpack.c.bf16 %v21279_v15, %v21276_v13  ;;  %v26959_v55 = vpack.c.bf16 %v26957_v43, %v26958_v33  ;;  %v12866_v47 = vadd.f32 1.0, %v17587_v35  ;;  %17608 = vpow2.f32 %v15903_v62  ;;  %v17591_v40 = vpop.eup %17590  ;;  %v26965_v62 = vld [vmem:[#allocation92_spill] sm:$0xff]  ;;  %v26966_v35 = vld [vmem:[#allocation93_spill] sm:$0xff]  ;;  %v22697_v28 = vld [vmem:[%s19172_s10 + $0x1e50] sm:$0xff] }
 0x451   : > { %v4741_v34 = vadd.f32 %v4740_v42, %v26960_v54  ;;  %v26961_v15 = vrot.slane %v21219_v14, %v20203_v20  ;;  %v13999_v29 = vrot.slane %v13985_v52, %v26650_v56  ;;  %v12865_v50 = vadd.f32 1.0, %v17589_v3  ;;  %v26962_v42 = vld [vmem:[#allocation90_spill] sm:$0xff]  ;;  %v17593_v33 = vpop.eup %17592  ;;  %v26969_v52 = vld [vmem:[#allocation95_spill] sm:$0xff]  ;;  %26990 = vst [vmem:[#allocation182_spill] sm:$0xff] %v22697_v28 }
 0x452   : > { %16826 = vmatprep.subr.bf16.mxu0 %v26956_v5  ;;  %16834 = vmatprep.subr.bf16.mxu1 %v26959_v55  ;;  %17610 = vpow2.f32 %v15904_v63  ;;  %v26963_v5 = vld [vmem:[#allocation91_spill] sm:$0xff]  ;;  %v26967_v43 = vpack.c.bf16 %v26965_v62, %v26966_v35  ;;  %v12867_v55 = vadd.f32 1.0, %v17591_v40  ;;  %v15906_v54 = vmul.f32 -1.442695, %v4810_v0  ;;  %v4880_v0 = vpop.f32.mrb[28].mxu0  ;;  %v4951_v40 = vpop.f32.mrb[28].mxu1 }
 0x453   : > { %v4812_v13 = vadd.f32 %v4811_v16, %v26961_v15  ;;  %15806 = vmatmul.mubr.msk.f32.vlgmr.msra.gmra.mrb[80].mxu0 %vm520_vm3, %v19216_v7  ;;  %15807 = vmatmul.mubr.msk.f32.vlgmr.msra.gmra.mrb[80].mxu1 %vm520_vm3, %v19216_v7  ;;  %v26964_v1 = vpack.c.bf16 %v26962_v42, %v26963_v5  ;;  %17612 = vrcp.f32 %v12866_v47  ;;  %v26968_v15 = vld [vmem:[#allocation94_spill] sm:$0xff]  ;;  %v26971_v63 = vld [vmem:[#allocation211_spill] sm:$0xff]  ;;  %v14000_v62 = vcombine.low %v13992_v21, %v13999_v29 }
 0x454   : > { %16836 = vmatpush1.bf16.msra.mxu1 %v26967_v43  ;;  %v26970_v3 = vpack.c.bf16 %v26968_v15, %v26969_v52  ;;  %v26973_v42 = vpack.c.bf16 %v26971_v63, %v26972_v18  ;;  %17614 = vrcp.f32 %v12865_v50  ;;  %v12868_v35 = vadd.f32 1.0, %v17593_v33  ;;  %8712 = vmatprep.mubr.f32.mxu0 %v26132_v4  ;;  %v22650_v43 = vld [vmem:[%s19172_s10 + $0x1648] sm:$0xff]  ;;  %v4882_v33 = vpop.f32.mrb[29].mxu0  ;;  %v4953_v52 = vpop.f32.mrb[29].mxu1  ;;  %v22662_v63 = vld [vmem:[%s19172_s10 + $0x1658] sm:$0xff] }
 0x455   : > { %16828 = vmatpush1.bf16.msra.mxu0 %v26964_v1  ;;  %v17595_v1 = vpop.eup %17594  ;;  %v15905_v47 = vmul.f32 -1.442695, %v4741_v34  ;;  %8783 = vmatprep.mubr.f32.mxu1 %v26132_v4  ;;  %17616 = vrcp.f32 %v12867_v55  ;;  %v15907_v15 = vmul.f32 -1.442695, %v4812_v13  ;;  %v26974_v21 = vrot.slane %v21219_v14, %v20240_v24  ;;  %15008 = vst [vmem:[%s21895_s7 + $0x40] sm:$0xff] %v14000_v62 }
 0x456   : > { %16830 = vmatprep.subr.bf16.mxu0 %v26970_v3  ;;  %16838 = vmatprep.subr.bf16.mxu1 %v26973_v42  ;;  %v17597_v18 = vpop.eup %17596  ;;  %v26975_v34 = vrot.slane %v21219_v14, %v20243_v49  ;;  %v22659_v3 = vld [vmem:[%s19172_s10 + $0x1e48] sm:$0xff]  ;;  %17618 = vrcp.f32 %v12868_v35  ;;  %v26976_v13 = vrot.slane %v21219_v14, %v20246_v51  ;;  %v22679_v35 = vld [vmem:[%s19172_s10 + $0x1e58] sm:$0xff]  ;;  %v26988_v62 = vpack.c.bf16 %v26986_v17, %v26987_v45 }
 0x457   : > { %v4881_v29 = vadd.f32 %v4880_v0, %v26974_v21  ;;  %v17599_v42 = vpop.eup %17598  ;;  %v26977_v0 = vld [vmem:[#allocation20_spill] sm:$0xff]  ;;  %17620 = vpow2.f32 %v15906_v54  ;;  %v26991_v54 = vrot.slane %v21219_v14, %v20273_v19  ;;  %v22710_v17 = vld [vmem:[%s19172_s10 + $0xe68] sm:$0xff]  ;;  %v22734_v14 = vld [vmem:[%s19172_s10 + $0xe78] sm:$0xff] }
 0x458   : > { %v4952_v50 = vadd.f32 %v4951_v40, %v26975_v34  ;;  %v4883_v55 = vadd.f32 %v4882_v33, %v26976_v13  ;;  %v26978_v21 = vld [vmem:[#allocation96_spill] sm:$0xff]  ;;  %v26980_v40 = vld [vmem:[#allocation97_spill] sm:$0xff]  ;;  %v26981_v34 = vld [vmem:[#allocation98_spill] sm:$0xff]  ;;  %v17601_v13 = vpop.eup %17600  ;;  %17622 = vpow2.f32 %v15905_v47  ;;  %26993 = vst [vmem:[#allocation184_spill] sm:$0xff] %v22710_v17 }
 0x459   : > { %v26979_v5 = vpack.c.bf16 %v26977_v0, %v26978_v21  ;;  %v26982_v16 = vpack.c.bf16 %v26980_v40, %v26981_v34  ;;  %v22685_v33 = vld [vmem:[%s19172_s10 + $0x1e40] sm:$0xff]  ;;  %v15908_v0 = vmul.f32 -1.442695, %v4881_v29  ;;  %v22699_v2 = vpop.eup %17602  ;;  %v14002_v31 = vcombine.low %v17597_v18, %v17601_v13  ;;  %v26995_v13 = vld [vmem:[#allocation101_spill] sm:$0xff]  ;;  %v22731_v47 = vld [vmem:[%s19172_s10 + $0x678] sm:$0xff]  ;;  %27001 = vst [vmem:[#allocation67_spill] sm:$0xff] %v22734_v14 }
 0x45a   : > { %v15910_v21 = vmul.f32 -1.442695, %v4952_v50  ;;  %v26984_v40 = vld [vmem:[#allocation212_spill] sm:$0xff]  ;;  %v22707_v50 = vld [vmem:[%s19172_s10 + $0x668] sm:$0xff]  ;;  %v17605_v45 = vpop.eup %17604  ;;  %17624 = vpow2.f32 %v15907_v15  ;;  %27000 = vst [vmem:[#allocation66_spill] sm:$0xff] %v22731_v47 }
 0x45b   : > { %16832 = vmatpush1.bf16.msra.mxu0 %v26979_v5  ;;  %16840 = vmatpush1.bf16.msra.mxu1 %v26982_v16  ;;  %v14001_v5 = vcombine.low %v17595_v1, %v17599_v42  ;;  %v26983_v16 = vld [vmem:[#allocation100_spill] sm:$0xff]  ;;  %v4954_v1 = vadd.f32 %v4953_v52, %v26991_v54  ;;  %26992 = vst [vmem:[#allocation185_spill] sm:$0xff] %v22707_v50  ;;  %v17607_v18 = vpop.eup %17606  ;;  %17626 = vpow2.f32 %v15908_v0  ;;  %v26994_v15 = vld [vmem:[#allocation213_spill] sm:$0xff]  ;;  %v15909_v29 = vmul.f32 -1.442695, %v4883_v55  ;;  %v27010_v50 = vld [vmem:[#allocation103_spill] sm:$0xff] }
 0x45c   : > { %v26985_v34 = vpack.c.bf16 %v26983_v16, %v26984_v40  ;;  %16850 = vmatprep.subr.bf16.mxu1 %v26988_v62  ;;  %v14016_v52 = vrot.slane %v14002_v31, %v26650_v56  ;;  %v12870_v62 = vadd.f32 1.0, %v17605_v45  ;;  %v26997_v16 = vld [vmem:[#allocation215_spill] sm:$0xff]  ;;  %v26998_v40 = vld [vmem:[#allocation214_spill] sm:$0xff]  ;;  %v22737_v31 = vld [vmem:[%s19172_s10 + $0x660] sm:$0xff]  ;;  %v17609_v45 = vpop.eup %17608  ;;  %v12869_v0 = vadd.f32 1.0, %v17607_v18 }
 0x45d   : > { %v14009_v42 = vrot.slane %v14001_v5, %v26650_v56  ;;  %v26996_v5 = vpack.c.bf16 %v26994_v15, %v26995_v13  ;;  %27002 = vst [vmem:[#allocation187_spill] sm:$0xff] %v22737_v31  ;;  %17628 = vpow2.f32 %v15910_v21  ;;  %v27003_v15 = vpack.c.bf16 %v21434_v27, %v21431_v6  ;;  %v17611_v18 = vpop.eup %17610  ;;  %v5022_v21 = vpop.f32.mrb[30].mxu0  ;;  %v27011_v17 = vld [vmem:[#allocation104_spill] sm:$0xff]  ;;  %v27054_v14 = vld [vmem:[#allocation113_spill] sm:$0xff] }
 0x45e   : > { %16842 = vmatprep.subr.bf16.mxu0 %v26985_v34  ;;  %15808 = vmatmul.mubr.msk.f32.vlgmr.msra.gmra.mrb[82].mxu0 %vm520_vm3, %v19216_v7  ;;  %v26999_v34 = vpack.c.bf16 %v26997_v16, %v26998_v40  ;;  %v27004_v13 = vpack.c.bf16 %v21452_v11, %v21449_v36  ;;  %v22748_v16 = vld [vmem:[%s19172_s10 + $0xe60] sm:$0xff]  ;;  %v22751_v40 = vld [vmem:[%s19172_s10 + $0x670] sm:$0xff]  ;;  %17630 = vrcp.f32 %v12870_v62  ;;  %v12871_v6 = vadd.f32 1.0, %v17609_v45  ;;  %v17613_v36 = vpop.eup %17612  ;;  %v5024_v62 = vpop.f32.mrb[31].mxu0 }
 0x45f   : > { %15809 = vmatmul.mubr.msk.f32.vlgmr.msra.gmra.mrb[82].mxu1 %vm520_vm3, %v19216_v7  ;;  %16844 = vmatpush1.bf16.msra.mxu0 %v26996_v5  ;;  %27005 = vst [vmem:[#allocation186_spill] sm:$0xff] %v22748_v16  ;;  %27006 = vst [vmem:[#allocation189_spill] sm:$0xff] %v22751_v40  ;;  %v14017_v55 = vcombine.low %v14009_v42, %v14016_v52  ;;  %v15911_v27 = vmul.f32 -1.442695, %v4954_v1  ;;  %17632 = vrcp.f32 %v12869_v0  ;;  %v12872_v11 = vadd.f32 1.0, %v17611_v18  ;;  %v22765_v1 = vld [vmem:[%s20146_s24 + $0x60] sm:$0xff]  ;;  %v17615_v54 = vpop.eup %17614 }
 0x460   : > { %16852 = vmatpush1.bf16.msra.mxu1 %v26999_v34  ;;  %16846 = vmatprep.subr.bf16.mxu0 %v27003_v15  ;;  %v22754_v34 = vld [vmem:[%s19172_s10 + $0xe70] sm:$0xff]  ;;  %v5093_v15 = vpop.f32.mrb[30].mxu1  ;;  %v27009_v42 = vrot.slane %v21428_v37, %v20171_v59  ;;  %17634 = vrcp.f32 %v12871_v6  ;;  %v27012_v22 = vpack.c.bf16 %v27010_v50, %v27011_v17  ;;  %v27013_v0 = vld [vmem:[#allocation105_spill] sm:$0xff]  ;;  %v17617_v6 = vpop.eup %17616 }
 0x461   : > { %16854 = vmatprep.subr.bf16.mxu1 %v27004_v13  ;;  %27007 = vst [vmem:[#allocation188_spill] sm:$0xff] %v22754_v34  ;;  %8854 = vmatprep.mubr.f32.mxu0 %v26132_v4  ;;  %v27008_v13 = vrot.slane %v21428_v37, %v20152_v26  ;;  %v5095_v45 = vpop.f32.mrb[31].mxu1  ;;  %15009 = vst [vmem:[%s21895_s7 + $0x48] sm:$0xff] %v14017_v55  ;;  %v27014_v18 = vld [vmem:[#allocation106_spill] sm:$0xff]  ;;  %17636 = vrcp.f32 %v12872_v11  ;;  %v22787_v47 = vpop.eup %17618  ;;  %v27022_v55 = vrot.slane %v21428_v37, %v20174_v38  ;;  %v27033_v34 = vld [vmem:[#allocation108_spill] sm:$0xff] }
 0x462   : > { %8925 = vmatprep.mubr.f32.mxu1 %v26132_v4  ;;  %v5094_v52 = vadd.f32 %v5093_v15, %v27009_v42  ;;  %v27015_v28 = vpack.c.bf16 %v27013_v0, %v27014_v18  ;;  %v27016_v17 = vld [vmem:[#allocation22_spill] sm:$0xff]  ;;  %v27017_v42 = vld [vmem:[#allocation21_spill] sm:$0xff]  ;;  %v27019_v0 = vld [vmem:[#allocation24_spill] sm:$0xff]  ;;  %v14019_v15 = vcombine.low %v17613_v36, %v17617_v6  ;;  %17638 = vpow2.f32 %v15909_v29  ;;  %v17621_v11 = vpop.eup %17620 }
 0x463   : > { %v5023_v5 = vadd.f32 %v5022_v21, %v27008_v13  ;;  %16848 = vmatpush1.bf16.msra.mxu0 %v27012_v22  ;;  %v14018_v13 = vcombine.low %v22699_v2, %v17615_v54  ;;  %v27020_v18 = vld [vmem:[#allocation23_spill] sm:$0xff]  ;;  %v5025_v40 = vadd.f32 %v5024_v62, %v27022_v55  ;;  %v22795_v54 = vld [vmem:[%s19172_s10 + $0x1668] sm:$0xff]  ;;  %17640 = vpow2.f32 %v15911_v27  ;;  %v17623_v62 = vpop.eup %17622 }
 0x464   : > { %16856 = vmatpush1.bf16.msra.mxu1 %v27015_v28  ;;  %v15914_v50 = vmul.f32 -1.442695, %v5094_v52  ;;  %v27018_v28 = vpack.c.bf16 %v27016_v17, %v27017_v42  ;;  %v27021_v21 = vpack.c.bf16 %v27019_v0, %v27020_v18  ;;  %27023 = vst [vmem:[#allocation68_spill] sm:$0xff] %v22795_v54  ;;  %v12874_v55 = vadd.f32 1.0, %v17621_v11  ;;  %v27027_v17 = vld [vmem:[#allocation25_spill] sm:$0xff]  ;;  %v27030_v0 = vld [vmem:[#allocation27_spill] sm:$0xff]  ;;  %v17625_v36 = vpop.eup %17624 }
 0x465   : > { %v15912_v22 = vmul.f32 -1.442695, %v5023_v5  ;;  %v22798_v5 = vld [vmem:[%s19172_s10 + $0x1e68] sm:$0xff]  ;;  %v14026_v52 = vrot.slane %v14018_v13, %v26650_v56  ;;  %v27025_v27 = vrot.slane %v21428_v37, %v20203_v20  ;;  %v27026_v13 = vld [vmem:[#allocation26_spill] sm:$0xff]  ;;  %v12873_v29 = vadd.f32 1.0, %v17623_v62  ;;  %v27032_v2 = vld [vmem:[#allocation107_spill] sm:$0xff]  ;;  %v17627_v62 = vpop.eup %17626 }
 0x466   : > { %16858 = vmatprep.subr.bf16.mxu0 %v27018_v28  ;;  %16866 = vmatprep.subr.bf16.mxu1 %v27021_v21  ;;  %27024 = vst [vmem:[#allocation69_spill] sm:$0xff] %v22798_v5  ;;  %v14033_v21 = vrot.slane %v14019_v15, %v26650_v56  ;;  %v27028_v42 = vpack.c.bf16 %v27026_v13, %v27027_v17  ;;  %v27029_v28 = vld [vmem:[#allocation28_spill] sm:$0xff]  ;;  %v27036_v11 = vld [vmem:[#allocation110_spill] sm:$0xff]  ;;  %v22830_v13 = vld [vmem:[%s19172_s10 + $0x1678] sm:$0xff] }
 0x467   : > { %15810 = vmatmul.mubr.msk.f32.vlgmr.msra.gmra.mrb[84].mxu0 %vm520_vm3, %v19216_v7  ;;  %15811 = vmatmul.mubr.msk.f32.vlgmr.msra.gmra.mrb[84].mxu1 %vm520_vm3, %v19216_v7  ;;  %17642 = vpow2.f32 %v15912_v22  ;;  %v5096_v6 = vadd.f32 %v5095_v45, %v27025_v27  ;;  %v27031_v18 = vpack.c.bf16 %v27029_v28, %v27030_v0  ;;  %v27034_v15 = vpack.c.bf16 %v27032_v2, %v27033_v34  ;;  %v27035_v22 = vld [vmem:[#allocation109_spill] sm:$0xff]  ;;  %v22833_v17 = vld [vmem:[%s19172_s10 + $0x1e78] sm:$0xff]  ;;  %v5235_v28 = vpop.f32.mrb[32].mxu1  ;;  %v22841_v0 = vld [vmem:[%s19172_s10 + $0x1e60] sm:$0xff] }
 0x468   : > { %16860 = vmatpush1.bf16.msra.mxu0 %v27028_v42  ;;  %17644 = vpow2.f32 %v15914_v50  ;;  %v27037_v31 = vpack.c.bf16 %v27035_v22, %v27036_v11  ;;  %27038 = vst [vmem:[#allocation70_spill] sm:$0xff] %v22830_v13  ;;  %27039 = vst [vmem:[#allocation71_spill] sm:$0xff] %v22833_v17  ;;  %v22836_v50 = vld [vmem:[%s19172_s10 + $0x1660] sm:$0xff]  ;;  %v14034_v34 = vcombine.low %v14026_v52, %v14033_v21  ;;  %v12875_v2 = vadd.f32 1.0, %v17625_v36  ;;  %v5237_v22 = vpop.f32.mrb[33].mxu1  ;;  %v22850_v11 = vld [vmem:[%s19172_s10 + $0x1670] sm:$0xff] }
 0x469   : > { %16868 = vmatpush1.bf16.msra.mxu1 %v27031_v18  ;;  %16862 = vmatprep.subr.bf16.mxu0 %v27034_v15  ;;  %17646 = vrcp.f32 %v12874_v55  ;;  %v15913_v42 = vmul.f32 -1.442695, %v5025_v40  ;;  %v17629_v18 = vpop.eup %17628  ;;  %v12876_v15 = vadd.f32 1.0, %v17627_v62  ;;  %v27040_v52 = vrot.slane %v21428_v37, %v20240_v24  ;;  %27042 = vst [vmem:[#allocation191_spill] sm:$0xff] %v22850_v11  ;;  %v22853_v45 = vld [vmem:[%s19172_s10 + $0x1e70] sm:$0xff]  ;;  %v27044_v54 = vld [vmem:[#allocation111_spill] sm:$0xff] }
 0x46a   : > { %16870 = vmatprep.subr.bf16.mxu1 %v27037_v31  ;;  %v5164_v31 = vpop.f32.mrb[32].mxu0  ;;  %8996 = vmatprep.mubr.f32.mxu0 %v26132_v4  ;;  %17648 = vrcp.f32 %v12873_v29  ;;  %v27041_v40 = vrot.slane %v21428_v37, %v20243_v49  ;;  %27043 = vst [vmem:[#allocation190_spill] sm:$0xff] %v22853_v45  ;;  %v17631_v27 = vpop.eup %17630  ;;  %15010 = vst [vmem:[%s21895_s7 + $0x50] sm:$0xff] %v14034_v34  ;;  %v12878_v29 = vadd.f32 1.0, %v17629_v18  ;;  %v15915_v62 = vmul.f32 -1.442695, %v5096_v6 }
 0x46b   : > { %9067 = vmatprep.mubr.f32.mxu1 %v26132_v4  ;;  %v5165_v21 = vadd.f32 %v5164_v31, %v27040_v52  ;;  %v5166_v55 = vpop.f32.mrb[33].mxu0  ;;  %17650 = vrcp.f32 %v12875_v2  ;;  %v27045_v31 = vld [vmem:[#allocation112_spill] sm:$0xff]  ;;  %v22865_v16 = vld [vmem:[%s19172_s10 + $0x688] sm:$0xff]  ;;  %v22871_v2 = vld [vmem:[%s19172_s10 + $0x698] sm:$0xff]  ;;  %v17633_v18 = vpop.eup %17632 }
 0x46c   : > { %v5236_v36 = vadd.f32 %v5235_v28, %v27041_v40  ;;  %v27046_v52 = vpack.c.bf16 %v27044_v54, %v27045_v31  ;;  %v27047_v28 = vld [vmem:[#allocation114_spill] sm:$0xff]  ;;  %27049 = vst [vmem:[#allocation193_spill] sm:$0xff] %v22865_v16  ;;  %v22868_v34 = vld [vmem:[%s19172_s10 + $0xe88] sm:$0xff]  ;;  %27051 = vst [vmem:[#allocation195_spill] sm:$0xff] %v22871_v2  ;;  %17652 = vrcp.f32 %v12876_v15  ;;  %v27052_v54 = vrot.slane %v21428_v37, %v20246_v51  ;;  %v5306_v2 = vpop.f32.mrb[34].mxu0 }
 0x46d   : > { %v27048_v40 = vpack.c.bf16 %v21598_v25, %v27047_v28  ;;  %27050 = vst [vmem:[#allocation192_spill] sm:$0xff] %v22868_v34  ;;  %v15916_v6 = vmul.f32 -1.442695, %v5165_v21  ;;  %v27056_v28 = vld [vmem:[#allocation216_spill] sm:$0xff]  ;;  %v22885_v17 = vld [vmem:[%s19172_s10 + $0xe98] sm:$0xff]  ;;  %17654 = vrcp.f32 %v12878_v29  ;;  %v27065_v29 = vld [vmem:[#allocation217_spill] sm:$0xff] }
 0x46e   : > { %16864 = vmatpush1.bf16.msra.mxu0 %v27046_v52  ;;  %v5167_v31 = vadd.f32 %v5166_v55, %v27052_v54  ;;  %v27053_v52 = vld [vmem:[#allocation29_spill] sm:$0xff]  ;;  %v22888_v15 = vld [vmem:[%s19172_s10 + $0x680] sm:$0xff]  ;;  %v17635_v55 = vpop.eup %17634  ;;  %v14035_v54 = vcombine.low %v22787_v47, %v17633_v18  ;;  %17656 = vpow2.f32 %v15913_v42  ;;  %v27064_v42 = vld [vmem:[#allocation31_spill] sm:$0xff]  ;;  %v5377_v47 = vpop.f32.mrb[34].mxu1 }
 0x46f   : > { %16872 = vmatpush1.bf16.msra.mxu1 %v27048_v40  ;;  %v27055_v25 = vpack.c.bf16 %v27053_v52, %v27054_v14  ;;  %v27057_v40 = vld [vmem:[#allocation30_spill] sm:$0xff]  ;;  %27059 = vst [vmem:[#allocation194_spill] sm:$0xff] %v22888_v15  ;;  %v22891_v21 = vld [vmem:[%s19172_s10 + $0xe80] sm:$0xff]  ;;  %v15918_v14 = vmul.f32 -1.442695, %v5236_v36  ;;  %v27061_v52 = vrot.slane %v21428_v37, %v20273_v19  ;;  %17658 = vpow2.f32 %v15915_v62 }
 0x470   : > { %v27058_v5 = vpack.c.bf16 %v27056_v28, %v27057_v40  ;;  %27060 = vst [vmem:[#allocation197_spill] sm:$0xff] %v22891_v21  ;;  %v14036_v28 = vcombine.low %v17631_v27, %v17635_v55  ;;  %v22908_v36 = vld [vmem:[%s19172_s10 + $0x690] sm:$0xff]  ;;  %v14043_v27 = vrot.slane %v14035_v54, %v26650_v56  ;;  %v27066_v18 = vpack.c.bf16 %v27064_v42, %v27065_v29  ;;  %v27067_v55 = vld [vmem:[#allocation33_spill] sm:$0xff]  ;;  %v27070_v54 = vld [vmem:[#allocation116_spill] sm:$0xff] }
 0x471   : > { %16874 = vmatprep.subr.bf16.mxu0 %v27055_v25  ;;  %v22897_v25 = vpop.eup %17636  ;;  %15812 = vmatmul.mubr.msk.f32.vlgmr.msra.gmra.mrb[86].mxu0 %vm520_vm3, %v19216_v7  ;;  %27062 = vst [vmem:[#allocation196_spill] sm:$0xff] %v22908_v36  ;;  %v22911_v37 = vld [vmem:[%s19172_s10 + $0xe90] sm:$0xff]  ;;  %17660 = vpow2.f32 %v15916_v6  ;;  %v15917_v62 = vmul.f32 -1.442695, %v5167_v31  ;;  %v23035_v36 = vld [vmem:[%s19172_s10 + $0x6b8] sm:$0xff] }
 0x472   : > { %16882 = vmatprep.subr.bf16.mxu1 %v27058_v5  ;;  %v5238_v5 = vadd.f32 %v5237_v22, %v27061_v52  ;;  %15813 = vmatmul.mubr.msk.f32.vlgmr.msra.gmra.mrb[86].mxu1 %vm520_vm3, %v19216_v7  ;;  %27063 = vst [vmem:[#allocation72_spill] sm:$0xff] %v22911_v37  ;;  %v17639_v22 = vpop.eup %17638  ;;  %v27068_v52 = vld [vmem:[#allocation32_spill] sm:$0xff]  ;;  %v14050_v34 = vrot.slane %v14036_v28, %v26650_v56  ;;  %v27071_v45 = vld [vmem:[#allocation34_spill] sm:$0xff]  ;;  %17662 = vpow2.f32 %v15918_v14  ;;  %v5308_v14 = vpop.f32.mrb[35].mxu0  ;;  %27111 = vst [vmem:[#allocation198_spill] sm:$0xff] %v23035_v36 }
 0x473   : > { %16876 = vmatpush1.bf16.msra.mxu0 %v27066_v18  ;;  %v27069_v13 = vpack.c.bf16 %v27067_v55, %v27068_v52  ;;  %v17641_v16 = vpop.eup %17640  ;;  %v12877_v11 = vadd.f32 1.0, %v17639_v22  ;;  %v27072_v42 = vpack.c.bf16 %v27070_v54, %v27071_v45  ;;  %v27073_v29 = vld [vmem:[#allocation118_spill] sm:$0xff]  ;;  %v27074_v18 = vld [vmem:[#allocation115_spill] sm:$0xff]  ;;  %9138 = vmatprep.mubr.f32.mxu0 %v26132_v4  ;;  %v27076_v22 = vrot.slane %v21651_v10, %v20152_v26 }
 0x474   : > { %v27075_v55 = vpack.c.bf16 %v27073_v29, %v27074_v18  ;;  %v12879_v52 = vadd.f32 1.0, %v17641_v16  ;;  %v15919_v40 = vmul.f32 -1.442695, %v5238_v5  ;;  %9209 = vmatprep.mubr.f32.mxu1 %v26132_v4  ;;  %v14051_v31 = vcombine.low %v14043_v27, %v14050_v34  ;;  %v5379_v5 = vpop.f32.mrb[35].mxu1  ;;  %v27079_v27 = vld [vmem:[#allocation218_spill] sm:$0xff] }
 0x475   : > { %16884 = vmatpush1.bf16.msra.mxu1 %v27069_v13  ;;  %16878 = vmatprep.subr.bf16.mxu0 %v27072_v42  ;;  %v17643_v13 = vpop.eup %17642  ;;  %17664 = vrcp.f32 %v12877_v11  ;;  %v5307_v16 = vadd.f32 %v5306_v2, %v27076_v22  ;;  %v27077_v29 = vrot.slane %v21651_v10, %v20171_v59  ;;  %v27078_v11 = vrot.slane %v21651_v10, %v20174_v38 }
 0x476   : > { %16886 = vmatprep.subr.bf16.mxu1 %v27075_v55  ;;  %v17645_v45 = vpop.eup %17644  ;;  %v12880_v28 = vadd.f32 1.0, %v17643_v13  ;;  %17666 = vrcp.f32 %v12879_v52  ;;  %v27080_v55 = vld [vmem:[#allocation117_spill] sm:$0xff]  ;;  %v27082_v2 = vpack.c.bf16 %v21717_v58, %v21714_v8  ;;  %15011 = vst [vmem:[%s21895_s7 + $0x58] sm:$0xff] %v14051_v31 }
 0x477   : > { %v17647_v54 = vpop.eup %17646  ;;  %v12882_v42 = vadd.f32 1.0, %v17645_v45  ;;  %v5378_v18 = vadd.f32 %v5377_v47, %v27077_v29  ;;  %v5309_v34 = vadd.f32 %v5308_v14, %v27078_v11  ;;  %v27081_v13 = vpack.c.bf16 %v27079_v27, %v27080_v55  ;;  %v27083_v47 = vld [vmem:[#allocation119_spill] sm:$0xff]  ;;  %v27084_v45 = vld [vmem:[#allocation120_spill] sm:$0xff]  ;;  %v27086_v14 = vld [vmem:[#allocation121_spill] sm:$0xff] }
 0x478   : > { %v17649_v22 = vpop.eup %17648  ;;  %17668 = vrcp.f32 %v12880_v28  ;;  %v15920_v52 = vmul.f32 -1.442695, %v5307_v16  ;;  %v27085_v29 = vpack.c.bf16 %v27083_v47, %v27084_v45  ;;  %v27087_v11 = vld [vmem:[#allocation122_spill] sm:$0xff]  ;;  %v22962_v58 = vld [vmem:[%s19172_s10 + $0x1688] sm:$0xff]  ;;  %v22968_v28 = vld [vmem:[%s19172_s10 + $0x1698] sm:$0xff] }
 0x479   : > { %16880 = vmatpush1.bf16.msra.mxu0 %v27081_v13  ;;  %16888 = vmatpush1.bf16.msra.mxu1 %v27082_v2  ;;  %v27088_v6 = vpack.c.bf16 %v27086_v14, %v27087_v11  ;;  %27089 = vst [vmem:[#allocation73_spill] sm:$0xff] %v22962_v58  ;;  %v22965_v31 = vld [vmem:[%s19172_s10 + $0x1e88] sm:$0xff]  ;;  %27090 = vst [vmem:[#allocation74_spill] sm:$0xff] %v22968_v28  ;;  %v17651_v16 = vpop.eup %17650  ;;  %v14052_v55 = vcombine.low %v22897_v25, %v17649_v22  ;;  %17670 = vrcp.f32 %v12882_v42  ;;  %v22975_v47 = vld [vmem:[%s19172_s10 + $0x1e98] sm:$0xff] }
 0x47a   : > { %16890 = vmatprep.subr.bf16.mxu0 %v27085_v29  ;;  %v15922_v13 = vmul.f32 -1.442695, %v5378_v18  ;;  %27092 = vst [vmem:[#allocation75_spill] sm:$0xff] %v22975_v47  ;;  %v22978_v45 = vld [vmem:[%s19172_s10 + $0x1680] sm:$0xff]  ;;  %v22983_v14 = vpop.eup %17652  ;;  %v14053_v11 = vcombine.low %v17647_v54, %v17651_v16  ;;  %17672 = vpow2.f32 %v15917_v62  ;;  %v15921_v8 = vmul.f32 -1.442695, %v5309_v34 }
 0x47b   : > { %16898 = vmatprep.subr.bf16.mxu1 %v27088_v6  ;;  %v27091_v6 = vrot.slane %v21651_v10, %v20203_v20  ;;  %27093 = vst [vmem:[#allocation76_spill] sm:$0xff] %v22978_v45  ;;  %v22981_v29 = vld [vmem:[%s19172_s10 + $0x1e80] sm:$0xff]  ;;  %v22995_v42 = vld [vmem:[%s19172_s10 + $0x1e90] sm:$0xff]  ;;  %v22997_v18 = vpop.eup %17654  ;;  %v14060_v54 = vrot.slane %v14052_v55, %v26650_v56  ;;  %17674 = vpow2.f32 %v15919_v40  ;;  %v27097_v62 = vld [vmem:[#allocation123_spill] sm:$0xff] }
 0x47c   : > { %27094 = vst [vmem:[#allocation77_spill] sm:$0xff] %v22981_v29  ;;  %15814 = vmatmul.mubr.msk.f32.vlgmr.msra.gmra.mrb[88].mxu0 %vm520_vm3, %v19216_v7  ;;  %15815 = vmatmul.mubr.msk.f32.vlgmr.msra.gmra.mrb[88].mxu1 %vm520_vm3, %v19216_v7  ;;  %27096 = vst [vmem:[#allocation79_spill] sm:$0xff] %v22995_v42  ;;  %v27098_v34 = vld [vmem:[#allocation124_spill] sm:$0xff]  ;;  %v27100_v16 = vld [vmem:[#allocation125_spill] sm:$0xff]  ;;  %v17657_v37 = vpop.eup %17656  ;;  %v14067_v15 = vrot.slane %v14053_v11, %v26650_v56  ;;  %17676 = vpow2.f32 %v15920_v52 }
 0x47d   : > { %v5380_v2 = vadd.f32 %v5379_v5, %v27091_v6  ;;  %v22992_v5 = vld [vmem:[%s19172_s10 + $0x1690] sm:$0xff]  ;;  %v27099_v22 = vpack.c.bf16 %v27097_v62, %v27098_v34  ;;  %v27101_v6 = vld [vmem:[#allocation36_spill] sm:$0xff]  ;;  %v27103_v40 = vld [vmem:[#allocation37_spill] sm:$0xff]  ;;  %v17659_v25 = vpop.eup %17658  ;;  %v12881_v11 = vadd.f32 1.0, %v17657_v37  ;;  %17678 = vpow2.f32 %v15922_v13  ;;  %9280 = vmatprep.mubr.f32.mxu0 %v26132_v4  ;;  %9351 = vmatprep.mubr.f32.mxu1 %v26132_v4 }
 0x47e   : > { %27095 = vst [vmem:[#allocation78_spill] sm:$0xff] %v22992_v5  ;;  %v27102_v27 = vpack.c.bf16 %v27100_v16, %v27101_v6  ;;  %v27104_v55 = vld [vmem:[#allocation35_spill] sm:$0xff]  ;;  %v27107_v34 = vld [vmem:[#allocation38_spill] sm:$0xff]  ;;  %v23022_v6 = vld [vmem:[%s19172_s10 + $0x6a8] sm:$0xff]  ;;  %v12883_v37 = vadd.f32 1.0, %v17659_v25  ;;  %17680 = vpow2.f32 %v15921_v8  ;;  %v27110_v13 = vrot.slane %v21651_v10, %v20240_v24 }
 0x47f   : > { %16892 = vmatpush1.bf16.msra.mxu0 %v27099_v22  ;;  %v27105_v21 = vpack.c.bf16 %v27103_v40, %v27104_v55  ;;  %v27106_v62 = vld [vmem:[#allocation39_spill] sm:$0xff]  ;;  %27109 = vst [vmem:[#allocation199_spill] sm:$0xff] %v23022_v6  ;;  %v15923_v52 = vmul.f32 -1.442695, %v5380_v2  ;;  %v5448_v40 = vpop.f32.mrb[36].mxu0  ;;  %17682 = vrcp.f32 %v12881_v11  ;;  %v27114_v25 = vrot.slane %v21651_v10, %v20246_v51  ;;  %v27117_v42 = vld [vmem:[#allocation126_spill] sm:$0xff] }
 0x480   : > { %16900 = vmatpush1.bf16.msra.mxu1 %v27102_v27  ;;  %v27108_v22 = vpack.c.bf16 %v27106_v62, %v27107_v34  ;;  %v23029_v62 = vld [vmem:[%s19172_s10 + $0xea8] sm:$0xff]  ;;  %v17661_v34 = vpop.eup %17660  ;;  %v5449_v2 = vadd.f32 %v5448_v40, %v27110_v13  ;;  %v5450_v16 = vpop.f32.mrb[37].mxu0  ;;  %v23038_v45 = vld [vmem:[%s19172_s10 + $0xeb8] sm:$0xff]  ;;  %v27115_v40 = vld [vmem:[#allocation40_spill] sm:$0xff]  ;;  %17684 = vrcp.f32 %v12883_v37 }
 0x481   : > { %16894 = vmatprep.subr.bf16.mxu0 %v27105_v21  ;;  %v5519_v21 = vpop.f32.mrb[36].mxu1  ;;  %27112 = vst [vmem:[#allocation201_spill] sm:$0xff] %v23038_v45  ;;  %v17663_v55 = vpop.eup %17662  ;;  %v12884_v5 = vadd.f32 1.0, %v17661_v34  ;;  %v27116_v13 = vpack.c.bf16 %v21828_v61, %v27115_v40  ;;  %v27118_v29 = vld [vmem:[#allocation127_spill] sm:$0xff]  ;;  %v23053_v11 = vld [vmem:[%s19172_s10 + $0x6a0] sm:$0xff]  ;;  %v27122_v58 = vld [vmem:[#allocation129_spill] sm:$0xff] }
 0x482   : > { %16902 = vmatprep.subr.bf16.mxu1 %v27108_v22  ;;  %v14068_v22 = vcombine.low %v14060_v54, %v14067_v15  ;;  %v5521_v27 = vpop.f32.mrb[37].mxu1  ;;  %v27113_v15 = vrot.slane %v21651_v10, %v20243_v49  ;;  %v5451_v54 = vadd.f32 %v5450_v16, %v27114_v25  ;;  %v27119_v28 = vpack.c.bf16 %v27117_v42, %v27118_v29  ;;  %v23056_v34 = vld [vmem:[%s19172_s10 + $0xea0] sm:$0xff]  ;;  %v17665_v47 = vpop.eup %17664  ;;  %v27124_v25 = vld [vmem:[#allocation131_spill] sm:$0xff]  ;;  %v23068_v29 = vld [vmem:[%s19172_s10 + $0x6b0] sm:$0xff] }
 0x483   : > { %16896 = vmatpush1.bf16.msra.mxu0 %v27116_v13  ;;  %27120 = vst [vmem:[#allocation200_spill] sm:$0xff] %v23053_v11  ;;  %27121 = vst [vmem:[#allocation203_spill] sm:$0xff] %v23056_v34  ;;  %v27123_v16 = vpack.c.bf16 %v21853_v39, %v27122_v58  ;;  %v27125_v61 = vld [vmem:[#allocation128_spill] sm:$0xff]  ;;  %v23071_v42 = vld [vmem:[%s19172_s10 + $0xeb0] sm:$0xff]  ;;  %17686 = vrcp.f32 %v12884_v5 }
 0x484   : > { %v5520_v8 = vadd.f32 %v5519_v21, %v27113_v15  ;;  %16904 = vmatpush1.bf16.msra.mxu1 %v27119_v28  ;;  %15012 = vst [vmem:[%s21895_s7 + $0x60] sm:$0xff] %v14068_v22  ;;  %v12886_v21 = vadd.f32 1.0, %v17663_v55  ;;  %v15924_v15 = vmul.f32 -1.442695, %v5449_v2  ;;  %v27126_v40 = vpack.c.bf16 %v27124_v25, %v27125_v61  ;;  %27127 = vst [vmem:[#allocation202_spill] sm:$0xff] %v23068_v29  ;;  %v23074_v13 = vld [vmem:[%s20146_s24 + $0x68] sm:$0xff]  ;;  %v17667_v22 = vpop.eup %17666 }
 0x485   : > { %16906 = vmatprep.subr.bf16.mxu0 %v27123_v16  ;;  %27128 = vst [vmem:[#allocation205_spill] sm:$0xff] %v23071_v42  ;;  %v14069_v55 = vcombine.low %v22983_v14, %v17665_v47  ;;  %v23079_v58 = vpop.eup %17668  ;;  %v14070_v2 = vcombine.low %v22997_v18, %v17667_v22  ;;  %v15925_v16 = vmul.f32 -1.442695, %v5451_v54  ;;  %v27130_v25 = vld [vmem:[#allocation130_spill] sm:$0xff]  ;;  %v27132_v18 = vld [vmem:[#allocation44_spill] sm:$0xff]  ;;  %v27133_v54 = vld [vmem:[#allocation47_spill] sm:$0xff] }
 0x486   : > { %16914 = vmatprep.subr.bf16.mxu1 %v27126_v40  ;;  %v15926_v37 = vmul.f32 -1.442695, %v5520_v8  ;;  %17688 = vrcp.f32 %v12886_v21  ;;  %15816 = vmatmul.mubr.msk.f32.vlgmr.msra.gmra.mrb[90].mxu0 %vm520_vm3, %v19216_v7  ;;  %v23088_v14 = vpop.eup %17670  ;;  %v27129_v8 = vld [vmem:[#allocation42_spill] sm:$0xff]  ;;  %v27134_v21 = vpack.c.bf16 %v27132_v18, %v27133_v54  ;;  %v23129_v54 = vld [vmem:[%s19172_s10 + $0x16b8] sm:$0xff]  ;;  %v27151_v42 = vld [vmem:[#allocation132_spill] sm:$0xff] }
 0x487   : > { %15817 = vmatmul.mubr.msk.f32.vlgmr.msra.gmra.mrb[90].mxu1 %vm520_vm3, %v19216_v7  ;;  %v14077_v5 = vrot.slane %v14069_v55, %v26650_v56  ;;  %17690 = vpow2.f32 %v15923_v52  ;;  %v27131_v61 = vpack.c.bf16 %v27129_v8, %v27130_v25  ;;  %v17673_v47 = vpop.eup %17672  ;;  %v14084_v39 = vrot.slane %v14070_v2, %v26650_v56  ;;  %v27137_v25 = vld [vmem:[#allocation43_spill] sm:$0xff]  ;;  %v5661_v2 = vpop.f32.mrb[38].mxu1  ;;  %9422 = vmatprep.mubr.f32.mxu0 %v26132_v4  ;;  %v27152_v11 = vld [vmem:[#allocation133_spill] sm:$0xff]  ;;  %v23165_v45 = vld [vmem:[%s19172_s10 + $0x1eb0] sm:$0xff] }
 0x488   : > { %16916 = vmatpush1.bf16.msra.mxu1 %v27134_v21  ;;  %17692 = vpow2.f32 %v15924_v15  ;;  %v27135_v52 = vrot.slane %v21651_v10, %v20273_v19  ;;  %v27136_v8 = vpack.c.bf16 %v21942_v32, %v21939_v60  ;;  %v17675_v21 = vpop.eup %17674  ;;  %v12885_v22 = vadd.f32 1.0, %v17673_v47  ;;  %v5590_v15 = vpop.f32.mrb[38].mxu0  ;;  %9493 = vmatprep.mubr.f32.mxu1 %v26132_v4  ;;  %v23120_v32 = vld [vmem:[%s19172_s10 + $0x16a8] sm:$0xff]  ;;  %27144 = vst [vmem:[#allocation206_spill] sm:$0xff] %v23129_v54  ;;  %v23132_v10 = vld [vmem:[%s19172_s10 + $0x1eb8] sm:$0xff] }
 0x489   : > { %16908 = vmatpush1.bf16.msra.mxu0 %v27131_v61  ;;  %v27138_v61 = vld [vmem:[#allocation46_spill] sm:$0xff]  ;;  %17694 = vpow2.f32 %v15926_v37  ;;  %27140 = vst [vmem:[#allocation204_spill] sm:$0xff] %v23120_v32  ;;  %v17677_v47 = vpop.eup %17676  ;;  %v14085_v37 = vcombine.low %v14077_v5, %v14084_v39  ;;  %v5663_v60 = vpop.f32.mrb[39].mxu1  ;;  %27145 = vst [vmem:[#allocation83_spill] sm:$0xff] %v23132_v10  ;;  %v27153_v34 = vpack.c.bf16 %v27151_v42, %v27152_v11  ;;  %v27173_v10 = vld [vmem:[#allocation52_spill] sm:$0xff] }
 0x48a   : > { %v5522_v55 = vadd.f32 %v5521_v27, %v27135_v52  ;;  %16910 = vmatprep.subr.bf16.mxu0 %v27136_v8  ;;  %v27139_v18 = vpack.c.bf16 %v27137_v25, %v27138_v61  ;;  %v23123_v27 = vld [vmem:[%s19172_s10 + $0x1ea8] sm:$0xff]  ;;  %v12887_v52 = vadd.f32 1.0, %v17675_v21  ;;  %17696 = vpow2.f32 %v15925_v16  ;;  %v17679_v40 = vpop.eup %17678  ;;  %v23162_v42 = vld [vmem:[%s19172_s10 + $0x16b0] sm:$0xff]  ;;  %27163 = vst [vmem:[#allocation87_spill] sm:$0xff] %v23165_v45  ;;  %v27174_v32 = vld [vmem:[#allocation51_spill] sm:$0xff] }
 0x48b   : > { %27141 = vst [vmem:[#allocation81_spill] sm:$0xff] %v23123_v27  ;;  %v27142_v8 = vld [vmem:[#allocation41_spill] sm:$0xff]  ;;  %17698 = vrcp.f32 %v12885_v22  ;;  %v12888_v28 = vadd.f32 1.0, %v17677_v47  ;;  %v23147_v22 = vld [vmem:[%s19172_s10 + $0x16a0] sm:$0xff]  ;;  %v17681_v36 = vpop.eup %17680  ;;  %15013 = vst [vmem:[%s21895_s7 + $0x68] sm:$0xff] %v14085_v37  ;;  %v27175_v27 = vpack.c.bf16 %v27173_v10, %v27174_v32 }
 0x48c   : > { %16918 = vmatprep.subr.bf16.mxu1 %v27139_v18  ;;  %v27143_v25 = vrot.slane %v27142_v8, %v20152_v26  ;;  %v5592_v18 = vpop.f32.mrb[39].mxu0  ;;  %v27146_v39 = vrot.slane %v27142_v8, %v20171_v59  ;;  %v27147_v5 = vrot.slane %v27142_v8, %v20174_v38  ;;  %27154 = vst [vmem:[#allocation80_spill] sm:$0xff] %v23147_v22  ;;  %v23150_v47 = vld [vmem:[%s19172_s10 + $0x1ea0] sm:$0xff]  ;;  %17700 = vrcp.f32 %v12887_v52  ;;  %v17683_v37 = vpop.eup %17682  ;;  %v27180_v10 = vld [vmem:[#allocation139_spill] sm:$0xff]  ;;  %v27192_v45 = vld [vmem:[#allocation145_spill] sm:$0xff] }
 0x48d   : > { %16920 = vmatpush1.bf16.msra.mxu1 %v27153_v34  ;;  %27155 = vst [vmem:[#allocation85_spill] sm:$0xff] %v23150_v47  ;;  %27162 = vst [vmem:[#allocation82_spill] sm:$0xff] %v23162_v42  ;;  %17702 = vrcp.f32 %v12888_v28  ;;  %v23186_v28 = vld [vmem:[%s19172_s10 + $0xed8] sm:$0xff]  ;;  %v23192_v52 = vld [vmem:[%s19172_s10 + $0xec0] sm:$0xff] }
 0x48e   : > { %v5591_v61 = vadd.f32 %v5590_v15, %v27143_v25  ;;  %v5662_v16 = vadd.f32 %v5661_v2, %v27146_v39  ;;  %v5593_v21 = vadd.f32 %v5592_v18, %v27147_v5  ;;  %v27148_v15 = vld [vmem:[#allocation45_spill] sm:$0xff]  ;;  %v27149_v25 = vld [vmem:[#allocation48_spill] sm:$0xff]  ;;  %v12890_v2 = vadd.f32 1.0, %v17679_v40  ;;  %v27156_v39 = vld [vmem:[#allocation134_spill] sm:$0xff]  ;;  %27167 = vst [vmem:[#allocation209_spill] sm:$0xff] %v23186_v28 }
 0x48f   : > { %v27150_v29 = vpack.c.bf16 %v27148_v15, %v27149_v25  ;;  %v15927_v18 = vmul.f32 -1.442695, %v5522_v55  ;;  %v27157_v5 = vld [vmem:[#allocation135_spill] sm:$0xff]  ;;  %v27160_v25 = vld [vmem:[#allocation137_spill] sm:$0xff]  ;;  %v12889_v40 = vadd.f32 1.0, %v17681_v36  ;;  %27169 = vst [vmem:[#allocation88_spill] sm:$0xff] %v23192_v52  ;;  %v27185_v52 = vrot.slane %v27142_v8, %v20246_v51 }
 0x490   : > { %v27158_v15 = vpack.c.bf16 %v27156_v39, %v27157_v5  ;;  %v15928_v55 = vmul.f32 -1.442695, %v5591_v61  ;;  %v23170_v39 = vld [vmem:[%s19172_s10 + $0x6c8] sm:$0xff]  ;;  %17704 = vrcp.f32 %v12890_v2  ;;  %15819 = vmatmul.mubr.msk.f32.vlgmr.msra.gmra.mrb[92].mxu1 %vm520_vm3, %v19216_v7  ;;  %v23189_v61 = vld [vmem:[%s19172_s10 + $0x6c0] sm:$0xff]  ;;  %v27170_v2 = vld [vmem:[#allocation50_spill] sm:$0xff]  ;;  %v5803_v36 = vpop.f32.mrb[40].mxu1 }
 0x491   : > { %16912 = vmatpush1.bf16.msra.mxu0 %v27150_v29  ;;  %v27159_v29 = vld [vmem:[#allocation136_spill] sm:$0xff]  ;;  %27164 = vst [vmem:[#allocation84_spill] sm:$0xff] %v23170_v39  ;;  %v23173_v5 = vld [vmem:[%s19172_s10 + $0xec8] sm:$0xff]  ;;  %27168 = vst [vmem:[#allocation208_spill] sm:$0xff] %v23189_v61  ;;  %17706 = vrcp.f32 %v12889_v40  ;;  %9635 = vmatprep.mubr.f32.mxu1 %v26132_v4 }
 0x492   : > { %16922 = vmatprep.subr.bf16.mxu0 %v27158_v15  ;;  %v27161_v11 = vpack.c.bf16 %v27159_v29, %v27160_v25  ;;  %27165 = vst [vmem:[#allocation207_spill] sm:$0xff] %v23173_v5  ;;  %v23176_v15 = vld [vmem:[%s19172_s10 + $0x6d8] sm:$0xff]  ;;  %v17685_v29 = vpop.eup %17684  ;;  %v14086_v25 = vcombine.low %v23079_v58, %v17683_v37  ;;  %v27171_v37 = vld [vmem:[#allocation49_spill] sm:$0xff]  ;;  %17708 = vpow2.f32 %v15927_v18  ;;  %v27181_v32 = vld [vmem:[#allocation140_spill] sm:$0xff]  ;;  %v5732_v18 = vpop.f32.mrb[40].mxu0 }
 0x493   : > { %27166 = vst [vmem:[#allocation86_spill] sm:$0xff] %v23176_v15  ;;  %v23194_v34 = vpop.eup %17686  ;;  %v14087_v58 = vcombine.low %v23088_v14, %v17685_v29  ;;  %v27172_v54 = vpack.c.bf16 %v27170_v2, %v27171_v37  ;;  %v27176_v14 = vrot.slane %v27142_v8, %v20203_v20  ;;  %v27177_v40 = vld [vmem:[#allocation53_spill] sm:$0xff]  ;;  %17710 = vpow2.f32 %v15928_v55  ;;  %v5734_v2 = vpop.f32.mrb[41].mxu0  ;;  %v27187_v28 = vld [vmem:[#allocation142_spill] sm:$0xff] }
 0x494   : > { %16930 = vmatprep.subr.bf16.mxu1 %v27161_v11  ;;  %v15930_v11 = vmul.f32 -1.442695, %v5662_v16  ;;  %15818 = vmatmul.mubr.msk.f32.vlgmr.msra.gmra.mrb[92].mxu0 %vm520_vm3, %v19216_v7  ;;  %v15929_v16 = vmul.f32 -1.442695, %v5593_v21  ;;  %v23205_v22 = vpop.eup %17688  ;;  %v14094_v47 = vrot.slane %v14086_v25, %v26650_v56  ;;  %v27183_v55 = vrot.slane %v27142_v8, %v20240_v24 }
 0x495   : > { %16924 = vmatpush1.bf16.msra.mxu0 %v27172_v54  ;;  %16932 = vmatpush1.bf16.msra.mxu1 %v27175_v27  ;;  %v5664_v21 = vadd.f32 %v5663_v60, %v27176_v14  ;;  %v27178_v54 = vld [vmem:[#allocation138_spill] sm:$0xff]  ;;  %v27182_v27 = vpack.c.bf16 %v27180_v10, %v27181_v32  ;;  %v17691_v37 = vpop.eup %17690  ;;  %v14101_v25 = vrot.slane %v14087_v58, %v26650_v56  ;;  %v5805_v60 = vpop.f32.mrb[41].mxu1 }
 0x496   : > { %v27179_v29 = vpack.c.bf16 %v27177_v40, %v27178_v54  ;;  %9564 = vmatprep.mubr.f32.mxu0 %v26132_v4  ;;  %v23227_v40 = vld [vmem:[%s19172_s10 + $0x6d0] sm:$0xff]  ;;  %v12891_v10 = vadd.f32 1.0, %v17691_v37  ;;  %17712 = vpow2.f32 %v15930_v11  ;;  %v5733_v58 = vadd.f32 %v5732_v18, %v27183_v55  ;;  %v27186_v11 = vld [vmem:[#allocation141_spill] sm:$0xff]  ;;  %v27189_v18 = vld [vmem:[#allocation143_spill] sm:$0xff] }
 0x497   : > { %16934 = vmatprep.subr.bf16.mxu1 %v27182_v27  ;;  %v23230_v54 = vld [vmem:[%s19172_s10 + $0xed0] sm:$0xff]  ;;  %v27184_v32 = vrot.slane %v27142_v8, %v20243_v49  ;;  %v14102_v14 = vcombine.low %v14094_v47, %v14101_v25  ;;  %17714 = vpow2.f32 %v15929_v16  ;;  %v5735_v37 = vadd.f32 %v5734_v2, %v27185_v52  ;;  %v27190_v55 = vld [vmem:[#allocation144_spill] sm:$0xff]  ;;  %v27195_v16 = vld [vmem:[#allocation147_spill] sm:$0xff] }
 0x498   : > { %16926 = vmatprep.subr.bf16.mxu0 %v27179_v29  ;;  %v17693_v29 = vpop.eup %17692  ;;  %v27188_v39 = vpack.c.bf16 %v27186_v11, %v27187_v28  ;;  %v27191_v5 = vpack.c.bf16 %v27189_v18, %v27190_v55  ;;  %17716 = vrcp.f32 %v12891_v10  ;;  %v15931_v42 = vmul.f32 -1.442695, %v5664_v21  ;;  %v27193_v47 = vld [vmem:[#allocation146_spill] sm:$0xff]  ;;  %v27202_v18 = vld [vmem:[#allocation151_spill] sm:$0xff]  ;;  %v27237_v52 = vld [vmem:[#allocation161_spill] sm:$0xff] }
 0x499   : > { %v5804_v27 = vadd.f32 %v5803_v36, %v27184_v32  ;;  %v17695_v15 = vpop.eup %17694  ;;  %v12892_v61 = vadd.f32 1.0, %v17693_v29  ;;  %v27194_v25 = vpack.c.bf16 %v27192_v45, %v27193_v47  ;;  %v27196_v29 = vld [vmem:[#allocation148_spill] sm:$0xff]  ;;  %15014 = vst [vmem:[%s21895_s7 + $0x70] sm:$0xff] %v14102_v14  ;;  %v15932_v28 = vmul.f32 -1.442695, %v5733_v58  ;;  %v23270_v14 = vld [vmem:[%s19172_s10 + $0x1ec8] sm:$0xff] }
 0x49a   : > { %16928 = vmatpush1.bf16.msra.mxu0 %v27188_v39  ;;  %16936 = vmatpush1.bf16.msra.mxu1 %v27191_v5  ;;  %v17697_v36 = vpop.eup %17696  ;;  %v12894_v32 = vadd.f32 1.0, %v17695_v15  ;;  %v27197_v6 = vpack.c.bf16 %v27195_v16, %v27196_v29  ;;  %v27198_v15 = vrot.slane %v27142_v8, %v20273_v19  ;;  %v27199_v58 = vld [vmem:[#allocation149_spill] sm:$0xff]  ;;  %v27203_v55 = vld [vmem:[#allocation54_spill] sm:$0xff] }
 0x49b   : > { %16938 = vmatprep.subr.bf16.mxu0 %v27194_v25  ;;  %v17699_v39 = vpop.eup %17698  ;;  %17718 = vrcp.f32 %v12892_v61  ;;  %v12893_v5 = vadd.f32 1.0, %v17697_v36  ;;  %v15934_v10 = vmul.f32 -1.442695, %v5804_v27  ;;  %v23267_v61 = vld [vmem:[%s19172_s10 + $0x16c8] sm:$0xff]  ;;  %v27200_v27 = vld [vmem:[#allocation55_spill] sm:$0xff]  ;;  %v27204_v36 = vpack.c.bf16 %v27202_v18, %v27203_v55  ;;  %v27206_v16 = vld [vmem:[#allocation150_spill] sm:$0xff] }
 0x49c   : > { %16946 = vmatprep.subr.bf16.mxu1 %v27197_v6  ;;  %v5806_v21 = vadd.f32 %v5805_v60, %v27198_v15  ;;  %v17701_v45 = vpop.eup %17700  ;;  %v14103_v2 = vcombine.low %v23194_v34, %v17699_v39  ;;  %17720 = vrcp.f32 %v12894_v32  ;;  %v15933_v60 = vmul.f32 -1.442695, %v5735_v37  ;;  %v27205_v37 = vld [vmem:[#allocation153_spill] sm:$0xff]  ;;  %v27208_v39 = vld [vmem:[#allocation155_spill] sm:$0xff]  ;;  %v23324_v32 = vld [vmem:[%s19172_s10 + $0x1ed0] sm:$0xff] }
 0x49d   : > { %15820 = vmatmul.mubr.msk.f32.vlgmr.msra.gmra.mrb[94].mxu0 %vm520_vm3, %v19216_v7  ;;  %15821 = vmatmul.mubr.msk.f32.vlgmr.msra.gmra.mrb[94].mxu1 %vm520_vm3, %v19216_v7  ;;  %v23272_v8 = vpop.eup %17702  ;;  %v14104_v34 = vcombine.low %v23205_v22, %v17701_v45  ;;  %17722 = vrcp.f32 %v12893_v5  ;;  %v27201_v11 = vpack.c.bf16 %v27199_v58, %v27200_v27  ;;  %v27207_v29 = vpack.c.bf16 %v27205_v37, %v27206_v16  ;;  %v27209_v5 = vld [vmem:[#allocation152_spill] sm:$0xff]  ;;  %v23295_v58 = vld [vmem:[%s19172_s10 + $0x16d8] sm:$0xff]  ;;  %v23321_v45 = vld [vmem:[%s19172_s10 + $0x16d0] sm:$0xff] }
 0x49e   : > { %16948 = vmatpush1.bf16.msra.mxu1 %v27204_v36  ;;  %v23283_v47 = vpop.eup %17704  ;;  %v14111_v25 = vrot.slane %v14103_v2, %v26650_v56  ;;  %17724 = vpow2.f32 %v15931_v42  ;;  %v15935_v22 = vmul.f32 -1.442695, %v5806_v21  ;;  %v27210_v15 = vpack.c.bf16 %v27208_v39, %v27209_v5  ;;  %27211 = vst [vmem:[#allocation89_spill] sm:$0xff] %v23295_v58  ;;  %v5874_v42 = vpop.f32.mrb[42].mxu0  ;;  %9706 = vmatprep.mubr.f32.mxu0 %v26132_v4  ;;  %v23305_v55 = vld [vmem:[%s19172_s10 + $0x1ed8] sm:$0xff]  ;;  %v23308_v36 = vld [vmem:[%s19172_s10 + $0x16c0] sm:$0xff] }
 0x49f   : > { %16940 = vmatpush1.bf16.msra.mxu0 %v27201_v11  ;;  %v17707_v27 = vpop.eup %17706  ;;  %v14118_v2 = vrot.slane %v14104_v34, %v26650_v56  ;;  %17726 = vpow2.f32 %v15932_v28  ;;  %v5945_v21 = vpop.f32.mrb[42].mxu1  ;;  %9777 = vmatprep.mubr.f32.mxu1 %v26132_v4  ;;  %27212 = vst [vmem:[#allocation90_spill] sm:$0xff] %v23305_v55  ;;  %27213 = vst [vmem:[#allocation91_spill] sm:$0xff] %v23308_v36  ;;  %v23311_v34 = vld [vmem:[%s19172_s10 + $0x1ec0] sm:$0xff]  ;;  %v27215_v16 = vrot.slane %v22175_v53, %v20152_v26  ;;  %v27239_v58 = vld [vmem:[#allocation163_spill] sm:$0xff] }
 0x4a0   : > { %16942 = vmatprep.subr.bf16.mxu0 %v27207_v29  ;;  %16950 = vmatprep.subr.bf16.mxu1 %v27210_v15  ;;  %27214 = vst [vmem:[#allocation92_spill] sm:$0xff] %v23311_v34  ;;  %v17709_v28 = vpop.eup %17708  ;;  %v14120_v37 = vcombine.low %v23272_v8, %v17707_v27  ;;  %17728 = vpow2.f32 %v15934_v10  ;;  %v27216_v39 = vrot.slane %v22175_v53, %v20171_v59  ;;  %v5876_v15 = vpop.f32.mrb[43].mxu0  ;;  %27217 = vst [vmem:[#allocation93_spill] sm:$0xff] %v23321_v45 }
 0x4a1   : > { %v5875_v29 = vadd.f32 %v5874_v42, %v27215_v16  ;;  %v5947_v11 = vpop.f32.mrb[43].mxu1  ;;  %27218 = vst [vmem:[#allocation94_spill] sm:$0xff] %v23324_v32  ;;  %v17711_v6 = vpop.eup %17710  ;;  %v14119_v18 = vcombine.low %v14111_v25, %v14118_v2  ;;  %v12895_v10 = vadd.f32 1.0, %v17709_v28  ;;  %17730 = vpow2.f32 %v15933_v60  ;;  %v27222_v60 = vld [vmem:[#allocation154_spill] sm:$0xff]  ;;  %v27224_v2 = vld [vmem:[#allocation156_spill] sm:$0xff]  ;;  %v27225_v28 = vld [vmem:[#allocation157_spill] sm:$0xff] }
 0x4a2   : > { %v5946_v5 = vadd.f32 %v5945_v21, %v27216_v39  ;;  %v27219_v8 = vrot.slane %v22175_v53, %v20174_v38  ;;  %v27220_v42 = vpack.c.bf16 %v22248_v57, %v22245_v23  ;;  %v27221_v21 = vpack.c.bf16 %v22260_v44, %v22257_v48  ;;  %v17713_v16 = vpop.eup %17712  ;;  %v23346_v48 = vld [vmem:[%s19172_s10 + $0x6e8] sm:$0xff]  ;;  %v27236_v57 = vld [vmem:[#allocation160_spill] sm:$0xff]  ;;  %v23390_v32 = vld [vmem:[%s20146_s24 + $0x70] sm:$0xff] }
 0x4a3   : > { %v12896_v39 = vadd.f32 1.0, %v17711_v6  ;;  %17732 = vpow2.f32 %v15935_v22  ;;  %v27223_v25 = vpack.c.bf16 %v22272_v46, %v27222_v60  ;;  %v23349_v44 = vld [vmem:[%s19172_s10 + $0xee8] sm:$0xff]  ;;  %v17715_v6 = vpop.eup %17714  ;;  %15015 = vst [vmem:[%s21895_s7 + $0x78] sm:$0xff] %v14119_v18  ;;  %v12898_v46 = vadd.f32 1.0, %v17713_v16  ;;  %v23361_v60 = vld [vmem:[%s19172_s10 + $0x6e0] sm:$0xff]  ;;  %v23374_v16 = vld [vmem:[%s19172_s10 + $0x6f0] sm:$0xff] }
 0x4a4   : > { %v5877_v27 = vadd.f32 %v5876_v15, %v27219_v8  ;;  %16944 = vmatpush1.bf16.msra.mxu0 %v27220_v42  ;;  %16952 = vmatpush1.bf16.msra.mxu1 %v27221_v21  ;;  %v27226_v15 = vpack.c.bf16 %v27224_v2, %v27225_v28  ;;  %17734 = vrcp.f32 %v12895_v10  ;;  %v15936_v22 = vmul.f32 -1.442695, %v5875_v29  ;;  %v23355_v42 = vld [vmem:[%s19172_s10 + $0x6f8] sm:$0xff]  ;;  %27228 = vst [vmem:[#allocation211_spill] sm:$0xff] %v23361_v60  ;;  %v23371_v29 = vld [vmem:[%s19172_s10 + $0xee0] sm:$0xff]  ;;  %v23479_v60 = vld [vmem:[%s19172_s10 + $0x1ef0] sm:$0xff] }
 0x4a5   : > { %16954 = vmatprep.subr.bf16.mxu0 %v27223_v25  ;;  %27227 = vst [vmem:[#allocation95_spill] sm:$0xff] %v23355_v42  ;;  %v23358_v21 = vld [vmem:[%s19172_s10 + $0xef8] sm:$0xff]  ;;  %v17717_v25 = vpop.eup %17716  ;;  %17736 = vrcp.f32 %v12896_v39  ;;  %v12897_v2 = vadd.f32 1.0, %v17715_v6  ;;  %v15938_v28 = vmul.f32 -1.442695, %v5946_v5  ;;  %v27229_v18 = vrot.slane %v22175_v53, %v20203_v20  ;;  %27230 = vst [vmem:[#allocation210_spill] sm:$0xff] %v23371_v29 }
 0x4a6   : > { %16962 = vmatprep.subr.bf16.mxu1 %v27226_v15  ;;  %27231 = vst [vmem:[#allocation20_spill] sm:$0xff] %v23374_v16  ;;  %v23377_v15 = vld [vmem:[%s19172_s10 + $0xef0] sm:$0xff]  ;;  %v23379_v39 = vpop.eup %17718  ;;  %v14128_v5 = vrot.slane %v14120_v37, %v26650_v56  ;;  %v14121_v6 = vcombine.low %v23283_v47, %v17717_v25  ;;  %17738 = vrcp.f32 %v12898_v46  ;;  %v27234_v8 = vld [vmem:[#allocation159_spill] sm:$0xff]  ;;  %v27238_v45 = vpack.c.bf16 %v27236_v57, %v27237_v52  ;;  %v27240_v37 = vld [vmem:[#allocation56_spill] sm:$0xff]  ;;  %v6087_v25 = vpop.f32.mrb[44].mxu1 }
 0x4a7   : > { %v5948_v10 = vadd.f32 %v5947_v11, %v27229_v18  ;;  %15822 = vmatmul.mubr.msk.f32.vlgmr.msra.gmra.mrb[96].mxu0 %vm520_vm3, %v19216_v7  ;;  %15823 = vmatmul.mubr.msk.f32.vlgmr.msra.gmra.mrb[96].mxu1 %vm520_vm3, %v19216_v7  ;;  %27232 = vst [vmem:[#allocation96_spill] sm:$0xff] %v23377_v15  ;;  %v15937_v11 = vmul.f32 -1.442695, %v5877_v27  ;;  %v27233_v18 = vld [vmem:[#allocation158_spill] sm:$0xff]  ;;  %v23392_v36 = vpop.eup %17720  ;;  %17740 = vrcp.f32 %v12897_v2  ;;  %v27241_v55 = vpack.c.bf16 %v27239_v58, %v27240_v37  ;;  %v27242_v47 = vld [vmem:[#allocation165_spill] sm:$0xff]  ;;  %v6089_v37 = vpop.f32.mrb[45].mxu1 }
 0x4a8   : > { %v27235_v23 = vpack.c.bf16 %v27233_v18, %v27234_v8  ;;  %16964 = vmatpush1.bf16.msra.mxu1 %v27238_v45  ;;  %v27243_v27 = vld [vmem:[#allocation162_spill] sm:$0xff]  ;;  %v17723_v45 = vpop.eup %17722  ;;  %v14135_v57 = vrot.slane %v14121_v6, %v26650_v56  ;;  %17742 = vpow2.f32 %v15936_v22  ;;  %v6016_v8 = vpop.f32.mrb[44].mxu0  ;;  %9848 = vmatprep.mubr.f32.mxu0 %v26132_v4  ;;  %v27245_v6 = vrot.slane %v22175_v53, %v20240_v24 }
 0x4a9   : > { %v15939_v34 = vmul.f32 -1.442695, %v5948_v10  ;;  %v27244_v46 = vpack.c.bf16 %v27242_v47, %v27243_v27  ;;  %9919 = vmatprep.mubr.f32.mxu1 %v26132_v4  ;;  %v17725_v2 = vpop.eup %17724  ;;  %v14137_v10 = vcombine.low %v23379_v39, %v17723_v45  ;;  %17744 = vpow2.f32 %v15938_v28  ;;  %v6018_v18 = vpop.f32.mrb[45].mxu0  ;;  %v27247_v45 = vld [vmem:[#allocation57_spill] sm:$0xff]  ;;  %27274 = vst [vmem:[#allocation101_spill] sm:$0xff] %v23479_v60 }
 0x4aa   : > { %16956 = vmatpush1.bf16.msra.mxu0 %v27235_v23  ;;  %v6017_v22 = vadd.f32 %v6016_v8, %v27245_v6  ;;  %v17727_v27 = vpop.eup %17726  ;;  %v12899_v58 = vadd.f32 1.0, %v17725_v2  ;;  %17746 = vpow2.f32 %v15937_v11  ;;  %v27246_v39 = vrot.slane %v22175_v53, %v20243_v49  ;;  %v27250_v8 = vld [vmem:[#allocation59_spill] sm:$0xff]  ;;  %v27251_v6 = vld [vmem:[#allocation58_spill] sm:$0xff]  ;;  %v27255_v2 = vld [vmem:[#allocation60_spill] sm:$0xff] }
 0x4ab   : > { %16958 = vmatprep.subr.bf16.mxu0 %v27241_v55  ;;  %16966 = vmatprep.subr.bf16.mxu1 %v27244_v46  ;;  %v14136_v46 = vcombine.low %v14128_v5, %v14135_v57  ;;  %v27248_v55 = vld [vmem:[#allocation164_spill] sm:$0xff]  ;;  %v27252_v23 = vpack.c.bf16 %v27250_v8, %v27251_v6  ;;  %v17729_v47 = vpop.eup %17728  ;;  %v12900_v16 = vadd.f32 1.0, %v17727_v27  ;;  %17748 = vpow2.f32 %v15939_v34  ;;  %v23441_v27 = vld [vmem:[%s19172_s10 + $0x1ee8] sm:$0xff]  ;;  %v23449_v8 = vld [vmem:[%s19172_s10 + $0x16f8] sm:$0xff] }
 0x4ac   : > { %v6088_v28 = vadd.f32 %v6087_v25, %v27246_v39  ;;  %v27249_v52 = vpack.c.bf16 %v27247_v45, %v27248_v55  ;;  %v27253_v5 = vrot.slane %v22175_v53, %v20246_v51  ;;  %v27254_v57 = vld [vmem:[#allocation168_spill] sm:$0xff]  ;;  %v27257_v25 = vld [vmem:[#allocation170_spill] sm:$0xff]  ;;  %v27258_v39 = vld [vmem:[#allocation167_spill] sm:$0xff]  ;;  %27261 = vst [vmem:[#allocation98_spill] sm:$0xff] %v23441_v27  ;;  %v17731_v34 = vpop.eup %17730  ;;  %17750 = vrcp.f32 %v12899_v58 }
 0x4ad   : > { %16968 = vmatpush1.bf16.msra.mxu1 %v27252_v23  ;;  %v27256_v15 = vpack.c.bf16 %v27254_v57, %v27255_v2  ;;  %v27259_v55 = vpack.c.bf16 %v27257_v25, %v27258_v39  ;;  %v23438_v23 = vld [vmem:[%s19172_s10 + $0x16e8] sm:$0xff]  ;;  %15016 = vst [vmem:[%s21895_s7 + $0x80] sm:$0xff] %v14136_v46  ;;  %27262 = vst [vmem:[#allocation100_spill] sm:$0xff] %v23449_v8  ;;  %v17733_v6 = vpop.eup %17732  ;;  %17752 = vrcp.f32 %v12900_v16  ;;  %v15940_v57 = vmul.f32 -1.442695, %v6017_v22  ;;  %v23459_v58 = vld [vmem:[%s19172_s10 + $0x1ef8] sm:$0xff] }
 0x4ae   : > { %16960 = vmatpush1.bf16.msra.mxu0 %v27249_v52  ;;  %v6019_v11 = vadd.f32 %v6018_v18, %v27253_v5  ;;  %27260 = vst [vmem:[#allocation97_spill] sm:$0xff] %v23438_v23  ;;  %v12902_v18 = vadd.f32 1.0, %v17729_v47  ;;  %v12901_v5 = vadd.f32 1.0, %v17731_v34  ;;  %v27263_v2 = vrot.slane %v22175_v53, %v20273_v19  ;;  %27264 = vst [vmem:[#allocation212_spill] sm:$0xff] %v23459_v58  ;;  %v23462_v47 = vld [vmem:[%s19172_s10 + $0x16e0] sm:$0xff]  ;;  %v17735_v16 = vpop.eup %17734  ;;  %v27267_v53 = vld [vmem:[#allocation166_spill] sm:$0xff] }
 0x4af   : > { %16970 = vmatprep.subr.bf16.mxu0 %v27256_v15  ;;  %16978 = vmatprep.subr.bf16.mxu1 %v27259_v55  ;;  %27265 = vst [vmem:[#allocation102_spill] sm:$0xff] %v23462_v47  ;;  %v23465_v25 = vld [vmem:[%s19172_s10 + $0x1ee0] sm:$0xff]  ;;  %v12903_v22 = vadd.f32 1.0, %v17733_v6  ;;  %v15942_v39 = vmul.f32 -1.442695, %v6088_v28  ;;  %v27270_v34 = vld [vmem:[#allocation171_spill] sm:$0xff]  ;;  %v23481_v29 = vpop.eup %17736  ;;  %v14138_v28 = vcombine.low %v23392_v36, %v17735_v16 }
 0x4b0   : > { %v6090_v46 = vadd.f32 %v6089_v37, %v27263_v2  ;;  %15825 = vmatmul.mubr.msk.f32.vlgmr.msra.gmra.mrb[98].mxu1 %vm520_vm3, %v19216_v7  ;;  %27266 = vst [vmem:[#allocation99_spill] sm:$0xff] %v23465_v25  ;;  %17754 = vrcp.f32 %v12902_v18  ;;  %v27268_v37 = vld [vmem:[#allocation169_spill] sm:$0xff]  ;;  %v27271_v2 = vld [vmem:[#allocation172_spill] sm:$0xff]  ;;  %v23476_v52 = vld [vmem:[%s19172_s10 + $0x16f0] sm:$0xff]  ;;  %v14145_v18 = vrot.slane %v14137_v10, %v26650_v56  ;;  %v15941_v6 = vmul.f32 -1.442695, %v6019_v11  ;;  %v23497_v27 = vpop.eup %17738 }
 0x4b1   : > { %15824 = vmatmul.mubr.msk.f32.vlgmr.msra.gmra.mrb[98].mxu0 %vm520_vm3, %v19216_v7  ;;  %v27269_v55 = vpack.c.bf16 %v27267_v53, %v27268_v37  ;;  %v27272_v45 = vpack.c.bf16 %v27270_v34, %v27271_v2  ;;  %27273 = vst [vmem:[#allocation213_spill] sm:$0xff] %v23476_v52  ;;  %17756 = vrcp.f32 %v12901_v5  ;;  %v27275_v53 = vld [vmem:[#allocation173_spill] sm:$0xff]  ;;  %v27276_v37 = vld [vmem:[#allocation174_spill] sm:$0xff]  ;;  %v27279_v34 = vld [vmem:[#allocation175_spill] sm:$0xff]  ;;  %v6158_v10 = vpop.f32.mrb[46].mxu0  ;;  %v6229_v11 = vpop.f32.mrb[46].mxu1  ;;  %10061 = vmatprep.mubr.f32.mxu1 %v26132_v4 }
 0x4b2   : > { %v23492_v15 = vld [vmem:[%s19172_s10 + $0x708] sm:$0xff]  ;;  %17758 = vrcp.f32 %v12903_v22  ;;  %v15943_v36 = vmul.f32 -1.442695, %v6090_v46  ;;  %9990 = vmatprep.mubr.f32.mxu0 %v26132_v4  ;;  %v27281_v46 = vrot.slane %v22469_v9, %v20152_v26  ;;  %v23515_v5 = vld [vmem:[%s19172_s10 + $0xf18] sm:$0xff]  ;;  %v27286_v8 = vld [vmem:[#allocation178_spill] sm:$0xff] }
 0x4b3   : > { %16972 = vmatpush1.bf16.msra.mxu0 %v27269_v55  ;;  %16980 = vmatpush1.bf16.msra.mxu1 %v27272_v45  ;;  %v27277_v55 = vpack.c.bf16 %v27275_v53, %v27276_v37  ;;  %v27278_v45 = vld [vmem:[#allocation61_spill] sm:$0xff]  ;;  %v17741_v53 = vpop.eup %17740  ;;  %v14152_v37 = vrot.slane %v14138_v28, %v26650_v56  ;;  %17760 = vpow2.f32 %v15940_v57  ;;  %v27282_v57 = vrot.slane %v22469_v9, %v20171_v59  ;;  %v23530_v58 = vld [vmem:[%s19172_s10 + $0x700] sm:$0xff] }
 0x4b4   : > { %v27280_v2 = vpack.c.bf16 %v27278_v45, %v27279_v34  ;;  %v23495_v23 = vld [vmem:[%s19172_s10 + $0xf08] sm:$0xff]  ;;  %v6159_v22 = vadd.f32 %v6158_v10, %v27281_v46  ;;  %v6231_v45 = vpop.f32.mrb[47].mxu1  ;;  %v17743_v16 = vpop.eup %17742  ;;  %v14154_v47 = vcombine.low %v23481_v29, %v17741_v53  ;;  %17762 = vpow2.f32 %v15942_v39  ;;  %v27283_v10 = vld [vmem:[#allocation176_spill] sm:$0xff]  ;;  %v27287_v34 = vld [vmem:[#allocation179_spill] sm:$0xff] }
 0x4b5   : > { %16974 = vmatprep.subr.bf16.mxu0 %v27277_v55  ;;  %v6160_v55 = vpop.f32.mrb[47].mxu0  ;;  %v6230_v28 = vadd.f32 %v6229_v11, %v27282_v57  ;;  %v27284_v46 = vld [vmem:[#allocation177_spill] sm:$0xff]  ;;  %v27288_v52 = vpack.c.bf16 %v27286_v8, %v27287_v34  ;;  %v23533_v29 = vld [vmem:[%s19172_s10 + $0xf00] sm:$0xff]  ;;  %v17745_v39 = vpop.eup %17744  ;;  %v14153_v53 = vcombine.low %v14145_v18, %v14152_v37  ;;  %v12904_v42 = vadd.f32 1.0, %v17743_v16  ;;  %v27292_v34 = vld [vmem:[#allocation62_spill] sm:$0xff] }
 0x4b6   : > { %16982 = vmatprep.subr.bf16.mxu1 %v27280_v2  ;;  %v23512_v2 = vld [vmem:[%s19172_s10 + $0x718] sm:$0xff]  ;;  %v27285_v25 = vpack.c.bf16 %v27283_v10, %v27284_v46  ;;  %17764 = vpow2.f32 %v15941_v6  ;;  %v27289_v11 = vrot.slane %v22469_v9, %v20174_v38  ;;  %v27290_v8 = vpack.c.bf16 %v22560_v30, %v22557_v12  ;;  %v23545_v10 = vld [vmem:[%s19172_s10 + $0x710] sm:$0xff]  ;;  %v17747_v60 = vpop.eup %17746 }
 0x4b7   : > { %16984 = vmatpush1.bf16.msra.mxu1 %v27288_v52  ;;  %v27291_v52 = vld [vmem:[#allocation63_spill] sm:$0xff]  ;;  %27294 = vst [vmem:[#allocation215_spill] sm:$0xff] %v23545_v10  ;;  %v23548_v46 = vld [vmem:[%s19172_s10 + $0xf10] sm:$0xff]  ;;  %v12906_v18 = vadd.f32 1.0, %v17745_v39  ;;  %17766 = vpow2.f32 %v15943_v36  ;;  %v27295_v6 = vrot.slane %v22469_v9, %v20203_v20  ;;  %v17749_v12 = vpop.eup %17748  ;;  %15017 = vst [vmem:[%s21895_s7 + $0x88] sm:$0xff] %v14153_v53  ;;  %v12905_v30 = vadd.f32 1.0, %v17747_v60 }
 0x4b8   : > { %16976 = vmatpush1.bf16.msra.mxu0 %v27285_v25  ;;  %v6161_v25 = vadd.f32 %v6160_v55, %v27289_v11  ;;  %v27293_v57 = vpack.c.bf16 %v27291_v52, %v27292_v34  ;;  %17768 = vrcp.f32 %v12904_v42  ;;  %v15944_v55 = vmul.f32 -1.442695, %v6159_v22  ;;  %v17751_v39 = vpop.eup %17750  ;;  %v27297_v52 = vld [vmem:[#allocation64_spill] sm:$0xff]  ;;  %v27300_v60 = vld [vmem:[#allocation181_spill] sm:$0xff] }
 0x4b9   : > { %16986 = vmatprep.subr.bf16.mxu0 %v27290_v8  ;;  %v6232_v16 = vadd.f32 %v6231_v45, %v27295_v6  ;;  %17770 = vrcp.f32 %v12906_v18  ;;  %v12907_v45 = vadd.f32 1.0, %v17749_v12  ;;  %v15946_v11 = vmul.f32 -1.442695, %v6230_v28  ;;  %v27296_v8 = vld [vmem:[#allocation65_spill] sm:$0xff]  ;;  %v27299_v42 = vld [vmem:[#allocation180_spill] sm:$0xff] }
 0x4ba   : > { %16994 = vmatprep.subr.bf16.mxu1 %v27293_v57  ;;  %15827 = vmatmul.mubr.msk.f32.vlgmr.msra.gmra.mrb[100].mxu1 %vm520_vm3, %v19216_v7  ;;  %v27298_v34 = vpack.c.bf16 %v27296_v8, %v27297_v52  ;;  %v27301_v22 = vpack.c.bf16 %v27299_v42, %v27300_v60  ;;  %v17753_v57 = vpop.eup %17752  ;;  %v14162_v6 = vrot.slane %v14154_v47, %v26650_v56  ;;  %17772 = vrcp.f32 %v12905_v30  ;;  %v6371_v42 = vpop.f32.mrb[48].mxu1  ;;  %v27312_v30 = vld [vmem:[#allocation185_spill] sm:$0xff] }
 0x4bb   : > { %15826 = vmatmul.mubr.msk.f32.vlgmr.msra.gmra.mrb[100].mxu0 %vm520_vm3, %v19216_v7  ;;  %v14155_v36 = vcombine.low %v23497_v27, %v17751_v39  ;;  %v15945_v18 = vmul.f32 -1.442695, %v6161_v25  ;;  %v27302_v28 = vpack.c.bf16 %v22659_v3, %v22650_v43  ;;  %v27303_v12 = vpack.c.bf16 %v22679_v35, %v22662_v63  ;;  %v17755_v8 = vpop.eup %17754  ;;  %10203 = vmatprep.mubr.f32.mxu1 %v26132_v4  ;;  %v23653_v43 = vld [vmem:[%s19172_s10 + $0x728] sm:$0xff] }
 0x4bc   : > { %16988 = vmatpush1.bf16.msra.mxu0 %v27298_v34  ;;  %16996 = vmatpush1.bf16.msra.mxu1 %v27301_v22  ;;  %17774 = vrcp.f32 %v12907_v45  ;;  %v15947_v52 = vmul.f32 -1.442695, %v6232_v16  ;;  %v6300_v34 = vpop.f32.mrb[48].mxu0  ;;  %v17757_v3 = vpop.eup %17756  ;;  %v27304_v63 = vrot.slane %v22469_v9, %v20240_v24  ;;  %v27305_v60 = vrot.slane %v22469_v9, %v20243_v49  ;;  %27327 = vst [vmem:[#allocation105_spill] sm:$0xff] %v23653_v43  ;;  %v23656_v27 = vld [vmem:[%s19172_s10 + $0xf28] sm:$0xff] }
 0x4bd   : > { %16990 = vmatprep.subr.bf16.mxu0 %v27302_v28  ;;  %16998 = vmatprep.subr.bf16.mxu1 %v27303_v12  ;;  %v14169_v47 = vrot.slane %v14155_v36, %v26650_v56  ;;  %17776 = vpow2.f32 %v15944_v55  ;;  %v6302_v25 = vpop.f32.mrb[49].mxu0  ;;  %v6373_v16 = vpop.f32.mrb[49].mxu1  ;;  %v14171_v45 = vcombine.low %v17753_v57, %v17757_v3  ;;  %v27306_v55 = vrot.slane %v22469_v9, %v20246_v51  ;;  %v27308_v12 = vld [vmem:[#allocation182_spill] sm:$0xff] }
 0x4be   : > { %10132 = vmatprep.mubr.f32.mxu0 %v26132_v4  ;;  %v6301_v35 = vadd.f32 %v6300_v34, %v27304_v63  ;;  %v17759_v39 = vpop.eup %17758  ;;  %17778 = vpow2.f32 %v15946_v11  ;;  %v6372_v22 = vadd.f32 %v6371_v42, %v27305_v60  ;;  %v27307_v28 = vpack.c.bf16 %v22685_v33, %v22682_v41  ;;  %v27309_v34 = vld [vmem:[#allocation183_spill] sm:$0xff]  ;;  %v27311_v60 = vld [vmem:[#allocation184_spill] sm:$0xff]  ;;  %v27315_v41 = vld [vmem:[#allocation66_spill] sm:$0xff]  ;;  %27328 = vst [vmem:[#allocation106_spill] sm:$0xff] %v23656_v27 }
 0x4bf   : > { %v6303_v36 = vadd.f32 %v6302_v25, %v27306_v55  ;;  %v27310_v63 = vpack.c.bf16 %v27308_v12, %v27309_v34  ;;  %v17761_v57 = vpop.eup %17760  ;;  %v14170_v11 = vcombine.low %v14162_v6, %v14169_v47  ;;  %v14172_v3 = vcombine.low %v17755_v8, %v17759_v39  ;;  %v27314_v55 = vld [vmem:[#allocation67_spill] sm:$0xff]  ;;  %v23612_v12 = vld [vmem:[%s19172_s10 + $0x1f08] sm:$0xff]  ;;  %v23625_v39 = vld [vmem:[%s19172_s10 + $0x1700] sm:$0xff] }
 0x4c0   : > { %16992 = vmatpush1.bf16.msra.mxu0 %v27307_v28  ;;  %17780 = vpow2.f32 %v15945_v18  ;;  %v15948_v42 = vmul.f32 -1.442695, %v6301_v35  ;;  %v27313_v25 = vpack.c.bf16 %v27311_v60, %v27312_v30  ;;  %v27316_v33 = vpack.c.bf16 %v27314_v55, %v27315_v41  ;;  %v23609_v28 = vld [vmem:[%s19172_s10 + $0x1708] sm:$0xff]  ;;  %27318 = vst [vmem:[#allocation103_spill] sm:$0xff] %v23612_v12  ;;  %v17763_v34 = vpop.eup %17762  ;;  %v23619_v35 = vld [vmem:[%s19172_s10 + $0x1718] sm:$0xff]  ;;  %v23674_v12 = vld [vmem:[%s19172_s10 + $0xf20] sm:$0xff] }
 0x4c1   : > { %17000 = vmatpush1.bf16.msra.mxu1 %v27310_v63  ;;  %27317 = vst [vmem:[#allocation214_spill] sm:$0xff] %v23609_v28  ;;  %v14179_v6 = vrot.slane %v14171_v45, %v26650_v56  ;;  %v12908_v8 = vadd.f32 1.0, %v17761_v57  ;;  %17782 = vpow2.f32 %v15947_v52  ;;  %v27319_v18 = vrot.slane %v22469_v9, %v20273_v19  ;;  %v23622_v30 = vld [vmem:[%s19172_s10 + $0x1f18] sm:$0xff]  ;;  %v17765_v63 = vpop.eup %17764  ;;  %15018 = vst [vmem:[%s21895_s7 + $0x90] sm:$0xff] %v14170_v11  ;;  %v23636_v52 = vld [vmem:[%s19172_s10 + $0x1f00] sm:$0xff] }
 0x4c2   : > { %17002 = vmatprep.subr.bf16.mxu0 %v27313_v25  ;;  %17010 = vmatprep.subr.bf16.mxu1 %v27316_v33  ;;  %v14186_v60 = vrot.slane %v14172_v3, %v26650_v56  ;;  %v12910_v45 = vadd.f32 1.0, %v17763_v34  ;;  %17784 = vpow2.f32 %v15948_v42  ;;  %v23642_v57 = vld [vmem:[%s19172_s10 + $0x1f10] sm:$0xff]  ;;  %v17767_v11 = vpop.eup %17766  ;;  %v12909_v3 = vadd.f32 1.0, %v17765_v63  ;;  %v27322_v55 = vld [vmem:[#allocation187_spill] sm:$0xff]  ;;  %v27324_v33 = vld [vmem:[#allocation188_spill] sm:$0xff]  ;;  %27338 = vst [vmem:[#allocation23_spill] sm:$0xff] %v23674_v12 }
 0x4c3   : > { %v6374_v47 = vadd.f32 %v6373_v16, %v27319_v18  ;;  %15828 = vmatmul.mubr.msk.f32.vlgmr.msra.gmra.mrb[102].mxu0 %vm520_vm3, %v19216_v7  ;;  %v23639_v16 = vld [vmem:[%s19172_s10 + $0x1710] sm:$0xff]  ;;  %17786 = vrcp.f32 %v12908_v8  ;;  %v15950_v42 = vmul.f32 -1.442695, %v6372_v22  ;;  %v27325_v34 = vld [vmem:[#allocation189_spill] sm:$0xff]  ;;  %v23659_v8 = vld [vmem:[%s19172_s10 + $0x738] sm:$0xff]  ;;  %v17769_v63 = vpop.eup %17768  ;;  %v12911_v53 = vadd.f32 1.0, %v17767_v11 }
 0x4c4   : > { %15829 = vmatmul.mubr.msk.f32.vlgmr.msra.gmra.mrb[102].mxu1 %vm520_vm3, %v19216_v7  ;;  %27320 = vst [vmem:[#allocation104_spill] sm:$0xff] %v23639_v16  ;;  %v27321_v25 = vld [vmem:[#allocation186_spill] sm:$0xff]  ;;  %v27326_v18 = vpack.c.bf16 %v27324_v33, %v27325_v34  ;;  %27329 = vst [vmem:[#allocation22_spill] sm:$0xff] %v23659_v8  ;;  %v14187_v22 = vcombine.low %v14179_v6, %v14186_v60  ;;  %17788 = vrcp.f32 %v12910_v45  ;;  %v27333_v33 = vld [vmem:[#allocation71_spill] sm:$0xff]  ;;  %v17771_v10 = vpop.eup %17770  ;;  %v6442_v60 = vpop.f32.mrb[50].mxu0  ;;  %10274 = vmatprep.mubr.f32.mxu0 %v26132_v4 }
 0x4c5   : > { %v27323_v41 = vpack.c.bf16 %v27321_v25, %v27322_v55  ;;  %v15949_v25 = vmul.f32 -1.442695, %v6303_v36  ;;  %v27330_v55 = vld [vmem:[#allocation69_spill] sm:$0xff]  ;;  %v27334_v34 = vld [vmem:[#allocation70_spill] sm:$0xff]  ;;  %v23668_v9 = vld [vmem:[%s19172_s10 + $0xf38] sm:$0xff]  ;;  %17790 = vrcp.f32 %v12909_v3  ;;  %v6513_v36 = vpop.f32.mrb[50].mxu1  ;;  %10345 = vmatprep.mubr.f32.mxu1 %v26132_v4  ;;  %v17773_v11 = vpop.eup %17772 }
 0x4c6   : > { %17012 = vmatpush1.bf16.msra.mxu1 %v27326_v18  ;;  %v27335_v18 = vpack.c.bf16 %v27333_v33, %v27334_v34  ;;  %27336 = vst [vmem:[#allocation21_spill] sm:$0xff] %v23668_v9  ;;  %v23671_v28 = vld [vmem:[%s19172_s10 + $0x720] sm:$0xff]  ;;  %v15951_v6 = vmul.f32 -1.442695, %v6374_v47  ;;  %15019 = vst [vmem:[%s21895_s7 + $0x98] sm:$0xff] %v14187_v22  ;;  %17792 = vrcp.f32 %v12911_v53  ;;  %v6444_v47 = vpop.f32.mrb[51].mxu0  ;;  %v14188_v45 = vcombine.low %v17769_v63, %v17773_v11 }
 0x4c7   : > { %17004 = vmatpush1.bf16.msra.mxu0 %v27323_v41  ;;  %v27331_v41 = vld [vmem:[#allocation68_spill] sm:$0xff]  ;;  %27337 = vst [vmem:[#allocation24_spill] sm:$0xff] %v23671_v28  ;;  %17794 = vpow2.f32 %v15950_v42  ;;  %v27340_v53 = vpack.c.bf16 %v22841_v0, %v22836_v50  ;;  %v27341_v22 = vld [vmem:[#allocation190_spill] sm:$0xff]  ;;  %v27344_v42 = vrot.slane %v22765_v1, %v20171_v59  ;;  %v27346_v0 = vld [vmem:[#allocation193_spill] sm:$0xff] }
 0x4c8   : > { %v27332_v37 = vpack.c.bf16 %v27330_v55, %v27331_v41  ;;  %17014 = vmatprep.subr.bf16.mxu1 %v27335_v18  ;;  %v27339_v55 = vrot.slane %v22765_v1, %v20152_v26  ;;  %v6515_v41 = vpop.f32.mrb[51].mxu1  ;;  %v17775_v18 = vpop.eup %17774  ;;  %17796 = vpow2.f32 %v15949_v25  ;;  %v27345_v50 = vld [vmem:[#allocation192_spill] sm:$0xff]  ;;  %v14196_v25 = vrot.slane %v14188_v45, %v26650_v56  ;;  %v27376_v28 = vld [vmem:[#allocation78_spill] sm:$0xff] }
 0x4c9   : > { %v17777_v34 = vpop.eup %17776  ;;  %v14189_v43 = vcombine.low %v17771_v10, %v17775_v18  ;;  %v6514_v63 = vadd.f32 %v6513_v36, %v27344_v42  ;;  %v27347_v11 = vpack.c.bf16 %v27345_v50, %v27346_v0  ;;  %17798 = vpow2.f32 %v15951_v6  ;;  %v23799_v12 = vld [vmem:[%s19172_s10 + $0x1f30] sm:$0xff] }
 0x4ca   : > { %17006 = vmatprep.subr.bf16.mxu0 %v27332_v37  ;;  %v6443_v3 = vadd.f32 %v6442_v60, %v27339_v55  ;;  %v27342_v60 = vld [vmem:[#allocation191_spill] sm:$0xff]  ;;  %v17779_v10 = vpop.eup %17778  ;;  %v27352_v36 = vrot.slane %v22765_v1, %v20174_v38  ;;  %v27353_v0 = vrot.slane %v22765_v1, %v20203_v20  ;;  %27385 = vst [vmem:[#allocation112_spill] sm:$0xff] %v23799_v12  ;;  %v27410_v12 = vld [vmem:[#allocation82_spill] sm:$0xff] }
 0x4cb   : > { %17008 = vmatpush1.bf16.msra.mxu0 %v27340_v53  ;;  %v27343_v55 = vpack.c.bf16 %v27341_v22, %v27342_v60  ;;  %v27348_v53 = vld [vmem:[#allocation195_spill] sm:$0xff]  ;;  %v23710_v60 = vld [vmem:[%s19172_s10 + $0x730] sm:$0xff]  ;;  %v17781_v42 = vpop.eup %17780  ;;  %v12914_v50 = vadd.f32 1.0, %v17779_v10  ;;  %v15954_v33 = vmul.f32 -1.442695, %v6514_v63 }
 0x4cc   : > { %v15952_v27 = vmul.f32 -1.442695, %v6443_v3  ;;  %17018 = vmatprep.subr.bf16.mxu0 %v27347_v11  ;;  %v27349_v22 = vpack.c.bf16 %v22885_v17, %v27348_v53  ;;  %27350 = vst [vmem:[#allocation26_spill] sm:$0xff] %v23710_v60  ;;  %v23716_v37 = vld [vmem:[%s20146_s24 + $0x78] sm:$0xff]  ;;  %v12912_v3 = vadd.f32 1.0, %v17777_v34  ;;  %v6445_v18 = vadd.f32 %v6444_v47, %v27352_v36  ;;  %v17783_v6 = vpop.eup %17782  ;;  %v27354_v47 = vld [vmem:[#allocation197_spill] sm:$0xff] }
 0x4cd   : > { %17016 = vmatpush1.bf16.msra.mxu1 %v27343_v55  ;;  %v23713_v55 = vld [vmem:[%s19172_s10 + $0xf30] sm:$0xff]  ;;  %v14203_v17 = vrot.slane %v14189_v43, %v26650_v56  ;;  %v6516_v11 = vadd.f32 %v6515_v41, %v27353_v0  ;;  %v12913_v45 = vadd.f32 1.0, %v17781_v42  ;;  %v27358_v53 = vld [vmem:[#allocation196_spill] sm:$0xff]  ;;  %v23741_v36 = vld [vmem:[%s19172_s10 + $0x1728] sm:$0xff]  ;;  %v17785_v0 = vpop.eup %17784  ;;  %v12915_v42 = vadd.f32 1.0, %v17783_v6 }
 0x4ce   : > { %17026 = vmatprep.subr.bf16.mxu1 %v27349_v22  ;;  %27351 = vst [vmem:[#allocation25_spill] sm:$0xff] %v23713_v55  ;;  %17800 = vpow2.f32 %v15952_v27  ;;  %15830 = vmatmul.mubr.msk.f32.vlgmr.msra.gmra.mrb[104].mxu0 %vm520_vm3, %v19216_v7  ;;  %v27355_v43 = vld [vmem:[#allocation194_spill] sm:$0xff]  ;;  %v27357_v27 = vld [vmem:[#allocation72_spill] sm:$0xff]  ;;  %27360 = vst [vmem:[#allocation28_spill] sm:$0xff] %v23741_v36  ;;  %v17787_v60 = vpop.eup %17786  ;;  %v15953_v63 = vmul.f32 -1.442695, %v6445_v18 }
 0x4cf   : > { %17802 = vrcp.f32 %v12912_v3  ;;  %v27356_v34 = vpack.c.bf16 %v27354_v47, %v27355_v43  ;;  %v27359_v22 = vpack.c.bf16 %v27357_v27, %v27358_v53  ;;  %v14204_v3 = vcombine.low %v14196_v25, %v14203_v17  ;;  %v27361_v47 = vld [vmem:[#allocation73_spill] sm:$0xff]  ;;  %v27364_v27 = vld [vmem:[#allocation74_spill] sm:$0xff]  ;;  %v23753_v41 = vld [vmem:[%s19172_s10 + $0x1738] sm:$0xff]  ;;  %v6584_v17 = vpop.f32.mrb[52].mxu0  ;;  %10416 = vmatprep.mubr.f32.mxu0 %v26132_v4  ;;  %v17789_v6 = vpop.eup %17788 }
 0x4d0   : > { %15831 = vmatmul.mubr.msk.f32.vlgmr.msra.gmra.mrb[104].mxu1 %vm520_vm3, %v19216_v7  ;;  %17804 = vrcp.f32 %v12914_v50  ;;  %v27362_v43 = vpack.c.bf16 %v22965_v31, %v27361_v47  ;;  %27367 = vst [vmem:[#allocation107_spill] sm:$0xff] %v23753_v41  ;;  %v23756_v10 = vld [vmem:[%s19172_s10 + $0x1f38] sm:$0xff]  ;;  %v12916_v25 = vadd.f32 1.0, %v17785_v0  ;;  %v6655_v31 = vpop.f32.mrb[52].mxu1  ;;  %v15955_v47 = vmul.f32 -1.442695, %v6516_v11  ;;  %v17791_v50 = vpop.eup %17790 }
 0x4d1   : > { %17020 = vmatpush1.bf16.msra.mxu0 %v27356_v34  ;;  %17028 = vmatpush1.bf16.msra.mxu1 %v27359_v22  ;;  %v27363_v34 = vld [vmem:[#allocation75_spill] sm:$0xff]  ;;  %v23750_v22 = vld [vmem:[%s19172_s10 + $0x1f28] sm:$0xff]  ;;  %27368 = vst [vmem:[#allocation108_spill] sm:$0xff] %v23756_v10  ;;  %17806 = vrcp.f32 %v12913_v45  ;;  %15020 = vst [vmem:[%s21895_s7 + $0xa0] sm:$0xff] %v14204_v3  ;;  %v27369_v45 = vrot.slane %v22765_v1, %v20240_v24  ;;  %v6586_v0 = vpop.f32.mrb[53].mxu0  ;;  %v14205_v8 = vcombine.low %v17787_v60, %v17791_v50 }
 0x4d2   : > { %17022 = vmatprep.subr.bf16.mxu0 %v27362_v43  ;;  %v27365_v53 = vpack.c.bf16 %v27363_v34, %v27364_v27  ;;  %27366 = vst [vmem:[#allocation27_spill] sm:$0xff] %v23750_v22  ;;  %10487 = vmatprep.mubr.f32.mxu1 %v26132_v4  ;;  %17808 = vrcp.f32 %v12915_v42  ;;  %v6657_v34 = vpop.f32.mrb[53].mxu1  ;;  %v23769_v27 = vld [vmem:[%s19172_s10 + $0x1720] sm:$0xff]  ;;  %v27372_v3 = vld [vmem:[#allocation77_spill] sm:$0xff]  ;;  %v27375_v55 = vld [vmem:[#allocation79_spill] sm:$0xff] }
 0x4d3   : > { %v6585_v43 = vadd.f32 %v6584_v17, %v27369_v45  ;;  %27370 = vst [vmem:[#allocation109_spill] sm:$0xff] %v23769_v27  ;;  %17810 = vrcp.f32 %v12916_v25  ;;  %v27373_v42 = vld [vmem:[#allocation76_spill] sm:$0xff]  ;;  %v27377_v17 = vpack.c.bf16 %v27375_v55, %v27376_v28  ;;  %v17793_v25 = vpop.eup %17792  ;;  %v27379_v55 = vld [vmem:[#allocation199_spill] sm:$0xff]  ;;  %v27382_v45 = vld [vmem:[#allocation198_spill] sm:$0xff] }
 0x4d4   : > { %17030 = vmatprep.subr.bf16.mxu1 %v27365_v53  ;;  %v23772_v53 = vld [vmem:[%s19172_s10 + $0x1f20] sm:$0xff]  ;;  %v27374_v11 = vpack.c.bf16 %v27372_v3, %v27373_v42  ;;  %17812 = vpow2.f32 %v15954_v33  ;;  %v27378_v42 = vrot.slane %v22765_v1, %v20243_v49  ;;  %v23796_v36 = vld [vmem:[%s19172_s10 + $0x1730] sm:$0xff]  ;;  %v17795_v41 = vpop.eup %17794  ;;  %v14206_v60 = vcombine.low %v17789_v6, %v17793_v25  ;;  %v27396_v27 = vld [vmem:[#allocation81_spill] sm:$0xff] }
 0x4d5   : > { %27371 = vst [vmem:[#allocation110_spill] sm:$0xff] %v23772_v53  ;;  %17032 = vmatpush1.bf16.msra.mxu1 %v27377_v17  ;;  %v15956_v3 = vmul.f32 -1.442695, %v6585_v43  ;;  %v27381_v17 = vld [vmem:[#allocation201_spill] sm:$0xff]  ;;  %27384 = vst [vmem:[#allocation111_spill] sm:$0xff] %v23796_v36  ;;  %17814 = vpow2.f32 %v15953_v63  ;;  %v27386_v33 = vrot.slane %v22765_v1, %v20246_v51  ;;  %v27389_v63 = vrot.slane %v22765_v1, %v20273_v19  ;;  %v27399_v53 = vld [vmem:[#allocation83_spill] sm:$0xff] }
 0x4d6   : > { %17024 = vmatpush1.bf16.msra.mxu0 %v27374_v11  ;;  %v6656_v28 = vadd.f32 %v6655_v31, %v27378_v42  ;;  %v27380_v11 = vpack.c.bf16 %v23029_v62, %v27379_v55  ;;  %v27383_v18 = vpack.c.bf16 %v27381_v17, %v27382_v45  ;;  %v23807_v62 = vld [vmem:[%s19172_s10 + $0x748] sm:$0xff]  ;;  %v14213_v45 = vrot.slane %v14205_v8, %v26650_v56  ;;  %v27390_v8 = vld [vmem:[#allocation203_spill] sm:$0xff]  ;;  %v23861_v17 = vld [vmem:[%s19172_s10 + $0xf50] sm:$0xff] }
 0x4d7   : > { %v6587_v50 = vadd.f32 %v6586_v0, %v27386_v33  ;;  %27387 = vst [vmem:[#allocation114_spill] sm:$0xff] %v23807_v62  ;;  %v23810_v43 = vld [vmem:[%s19172_s10 + $0xf48] sm:$0xff]  ;;  %v12918_v42 = vadd.f32 1.0, %v17795_v41  ;;  %17816 = vpow2.f32 %v15955_v47  ;;  %v6658_v6 = vadd.f32 %v6657_v34, %v27389_v63  ;;  %v27391_v41 = vld [vmem:[#allocation200_spill] sm:$0xff]  ;;  %v27394_v34 = vld [vmem:[#allocation202_spill] sm:$0xff] }
 0x4d8   : > { %17034 = vmatprep.subr.bf16.mxu0 %v27380_v11  ;;  %17042 = vmatprep.subr.bf16.mxu1 %v27383_v18  ;;  %27388 = vst [vmem:[#allocation29_spill] sm:$0xff] %v23810_v43  ;;  %v17797_v18 = vpop.eup %17796  ;;  %v14220_v25 = vrot.slane %v14206_v60, %v26650_v56  ;;  %17818 = vpow2.f32 %v15956_v3  ;;  %v27392_v47 = vpack.c.bf16 %v27390_v8, %v27391_v41  ;;  %v27393_v1 = vld [vmem:[#allocation205_spill] sm:$0xff]  ;;  %v23830_v33 = vld [vmem:[%s19172_s10 + $0x758] sm:$0xff]  ;;  %v15958_v60 = vmul.f32 -1.442695, %v6656_v28  ;;  %v27400_v8 = vld [vmem:[#allocation206_spill] sm:$0xff] }
 0x4d9   : > { %15832 = vmatmul.mubr.msk.f32.vlgmr.msra.gmra.mrb[106].mxu0 %vm520_vm3, %v19216_v7  ;;  %15833 = vmatmul.mubr.msk.f32.vlgmr.msra.gmra.mrb[106].mxu1 %vm520_vm3, %v19216_v7  ;;  %v17799_v0 = vpop.eup %17798  ;;  %v12917_v55 = vadd.f32 1.0, %v17797_v18  ;;  %v27395_v11 = vpack.c.bf16 %v27393_v1, %v27394_v34  ;;  %17820 = vrcp.f32 %v12918_v42  ;;  %v27397_v18 = vld [vmem:[#allocation204_spill] sm:$0xff]  ;;  %v27401_v41 = vpack.c.bf16 %v27399_v53, %v27400_v8  ;;  %v23841_v1 = vld [vmem:[%s19172_s10 + $0xf58] sm:$0xff]  ;;  %v6797_v53 = vpop.f32.mrb[54].mxu1  ;;  %v27406_v43 = vld [vmem:[#allocation85_spill] sm:$0xff] }
 0x4da   : > { %17036 = vmatpush1.bf16.msra.mxu0 %v27392_v47  ;;  %v17801_v63 = vpop.eup %17800  ;;  %v12919_v31 = vadd.f32 1.0, %v17799_v0  ;;  %v27398_v3 = vpack.c.bf16 %v27396_v27, %v27397_v18  ;;  %v23844_v34 = vld [vmem:[%s19172_s10 + $0x740] sm:$0xff]  ;;  %v14221_v28 = vcombine.low %v14213_v45, %v14220_v25  ;;  %v15957_v0 = vmul.f32 -1.442695, %v6587_v50  ;;  %v6726_v18 = vpop.f32.mrb[54].mxu0  ;;  %10558 = vmatprep.mubr.f32.mxu0 %v26132_v4  ;;  %v23858_v50 = vld [vmem:[%s19172_s10 + $0x750] sm:$0xff] }
 0x4db   : > { %17044 = vmatpush1.bf16.msra.mxu1 %v27395_v11  ;;  %v23847_v11 = vld [vmem:[%s19172_s10 + $0xf40] sm:$0xff]  ;;  %v17803_v42 = vpop.eup %17802  ;;  %17822 = vrcp.f32 %v12917_v55  ;;  %v12920_v27 = vadd.f32 1.0, %v17801_v63  ;;  %10629 = vmatprep.mubr.f32.mxu1 %v26132_v4  ;;  %v15959_v8 = vmul.f32 -1.442695, %v6658_v6  ;;  %v27403_v45 = vrot.slane %v23074_v13, %v20171_v59  ;;  %v6728_v55 = vpop.f32.mrb[55].mxu0  ;;  %27404 = vst [vmem:[#allocation113_spill] sm:$0xff] %v23858_v50 }
 0x4dc   : > { %17038 = vmatprep.subr.bf16.mxu0 %v27398_v3  ;;  %17046 = vmatprep.subr.bf16.mxu1 %v27401_v41  ;;  %v17805_v3 = vpop.eup %17804  ;;  %17824 = vrcp.f32 %v12919_v31  ;;  %v27402_v41 = vrot.slane %v23074_v13, %v20152_v26  ;;  %v6799_v63 = vpop.f32.mrb[55].mxu1  ;;  %15021 = vst [vmem:[%s21895_s7 + $0xa8] sm:$0xff] %v14221_v28  ;;  %v27405_v31 = vrot.slane %v23074_v13, %v20174_v38  ;;  %v27407_v36 = vld [vmem:[#allocation80_spill] sm:$0xff]  ;;  %v27443_v50 = vld [vmem:[#allocation95_spill] sm:$0xff] }
 0x4dd   : > { %v6798_v25 = vadd.f32 %v6797_v53, %v27403_v45  ;;  %v17807_v62 = vpop.eup %17806  ;;  %17826 = vrcp.f32 %v12920_v27  ;;  %v27444_v45 = vpack.c.bf16 %v23358_v21, %v27443_v50 }
 0x4de   : > { %v6727_v47 = vadd.f32 %v6726_v18, %v27402_v41  ;;  %v6729_v6 = vadd.f32 %v6728_v55, %v27405_v31  ;;  %v27408_v18 = vpack.c.bf16 %v27406_v43, %v27407_v36  ;;  %v27409_v41 = vld [vmem:[#allocation87_spill] sm:$0xff]  ;;  %v17809_v28 = vpop.eup %17808  ;;  %v14222_v27 = vcombine.low %v17803_v42, %v17807_v62  ;;  %v27413_v31 = vld [vmem:[#allocation84_spill] sm:$0xff]  ;;  %v27415_v36 = vld [vmem:[#allocation209_spill] sm:$0xff] }
 0x4df   : > { %v27411_v53 = vpack.c.bf16 %v27409_v41, %v27410_v12  ;;  %17828 = vpow2.f32 %v15958_v60  ;;  %v15962_v9 = vmul.f32 -1.442695, %v6798_v25  ;;  %v27412_v55 = vld [vmem:[#allocation207_spill] sm:$0xff]  ;;  %v27416_v43 = vld [vmem:[#allocation86_spill] sm:$0xff]  ;;  %v23883_v12 = vpop.eup %17810  ;;  %v14223_v41 = vcombine.low %v17805_v3, %v17809_v28  ;;  %v23949_v42 = vld [vmem:[%s19172_s10 + $0x768] sm:$0xff] }
 0x4e0   : > { %17040 = vmatpush1.bf16.msra.mxu0 %v27408_v18  ;;  %v15960_v22 = vmul.f32 -1.442695, %v6727_v47  ;;  %v27414_v16 = vpack.c.bf16 %v27412_v55, %v27413_v31  ;;  %v27417_v18 = vpack.c.bf16 %v27415_v36, %v27416_v43  ;;  %17830 = vpow2.f32 %v15957_v0  ;;  %v17813_v60 = vpop.eup %17812  ;;  %v23909_v31 = vld [vmem:[%s19172_s10 + $0x1748] sm:$0xff]  ;;  %v23915_v43 = vld [vmem:[%s19172_s10 + $0x1758] sm:$0xff]  ;;  %v23946_v55 = vld [vmem:[%s19172_s10 + $0x1f50] sm:$0xff]  ;;  %27432 = vst [vmem:[#allocation217_spill] sm:$0xff] %v23949_v42 }
 0x4e1   : > { %17048 = vmatpush1.bf16.msra.mxu1 %v27411_v53  ;;  %v27418_v53 = vrot.slane %v23074_v13, %v20203_v20  ;;  %17832 = vpow2.f32 %v15959_v8  ;;  %v17815_v0 = vpop.eup %17814  ;;  %v14237_v3 = vrot.slane %v14223_v41, %v26650_v56  ;;  %v12922_v25 = vadd.f32 1.0, %v17813_v60  ;;  %v27419_v8 = vld [vmem:[#allocation88_spill] sm:$0xff]  ;;  %v23912_v36 = vld [vmem:[%s19172_s10 + $0x1f48] sm:$0xff]  ;;  %v27424_v60 = vld [vmem:[#allocation90_spill] sm:$0xff] }
 0x4e2   : > { %17050 = vmatprep.subr.bf16.mxu0 %v27414_v16  ;;  %17058 = vmatprep.subr.bf16.mxu1 %v27417_v18  ;;  %v14230_v16 = vrot.slane %v14222_v27, %v26650_v56  ;;  %17834 = vpow2.f32 %v15960_v22  ;;  %v27422_v27 = vpack.c.bf16 %v23230_v54, %v23227_v40  ;;  %v17817_v18 = vpop.eup %17816  ;;  %v12921_v22 = vadd.f32 1.0, %v17815_v0  ;;  %v27425_v40 = vld [vmem:[#allocation89_spill] sm:$0xff]  ;;  %v27434_v47 = vld [vmem:[#allocation91_spill] sm:$0xff] }
 0x4e3   : > { %v6800_v10 = vadd.f32 %v6799_v63, %v27418_v53  ;;  %15834 = vmatmul.mubr.msk.f32.vlgmr.msra.gmra.mrb[108].mxu0 %vm520_vm3, %v19216_v7  ;;  %v27420_v63 = vld [vmem:[#allocation208_spill] sm:$0xff]  ;;  %17836 = vpow2.f32 %v15962_v9  ;;  %v15961_v41 = vmul.f32 -1.442695, %v6729_v6  ;;  %v27423_v53 = vpack.c.bf16 %v23270_v14, %v23267_v61  ;;  %v17819_v0 = vpop.eup %17818  ;;  %v6868_v6 = vpop.f32.mrb[56].mxu0  ;;  %v27437_v62 = vld [vmem:[#allocation93_spill] sm:$0xff] }
 0x4e4   : > { %15835 = vmatmul.mubr.msk.f32.vlgmr.msra.gmra.mrb[108].mxu1 %vm520_vm3, %v19216_v7  ;;  %v27421_v28 = vpack.c.bf16 %v27419_v8, %v27420_v63  ;;  %v27426_v54 = vpack.c.bf16 %v27424_v60, %v27425_v40  ;;  %v23926_v63 = vld [vmem:[%s19172_s10 + $0x1f58] sm:$0xff]  ;;  %v14238_v9 = vcombine.low %v14230_v16, %v14237_v3  ;;  %17838 = vrcp.f32 %v12922_v25  ;;  %10700 = vmatprep.mubr.f32.mxu0 %v26132_v4  ;;  %v17821_v60 = vpop.eup %17820  ;;  %v6870_v25 = vpop.f32.mrb[57].mxu0  ;;  %v23943_v8 = vld [vmem:[%s19172_s10 + $0x1750] sm:$0xff] }
 0x4e5   : > { %17060 = vmatpush1.bf16.msra.mxu1 %v27422_v27  ;;  %v23932_v27 = vld [vmem:[%s19172_s10 + $0x1f40] sm:$0xff]  ;;  %v12923_v61 = vadd.f32 1.0, %v17817_v18  ;;  %v15963_v14 = vmul.f32 -1.442695, %v6800_v10  ;;  %10771 = vmatprep.mubr.f32.mxu1 %v26132_v4  ;;  %17840 = vrcp.f32 %v12921_v22  ;;  %v12924_v40 = vadd.f32 1.0, %v17819_v0  ;;  %27431 = vst [vmem:[#allocation31_spill] sm:$0xff] %v23943_v8  ;;  %v17823_v22 = vpop.eup %17822 }
 0x4e6   : > { %17052 = vmatpush1.bf16.msra.mxu0 %v27421_v28  ;;  %17062 = vmatprep.subr.bf16.mxu1 %v27426_v54  ;;  %v23929_v28 = vld [vmem:[%s19172_s10 + $0x1740] sm:$0xff]  ;;  %27428 = vst [vmem:[#allocation30_spill] sm:$0xff] %v23932_v27  ;;  %v27429_v54 = vrot.slane %v23074_v13, %v20240_v24  ;;  %v27430_v3 = vrot.slane %v23074_v13, %v20243_v49  ;;  %15022 = vst [vmem:[%s21895_s7 + $0xb0] sm:$0xff] %v14238_v9  ;;  %v23965_v9 = vld [vmem:[%s19172_s10 + $0xf68] sm:$0xff] }
 0x4e7   : > { %17054 = vmatprep.subr.bf16.mxu0 %v27423_v53  ;;  %27427 = vst [vmem:[#allocation216_spill] sm:$0xff] %v23929_v28  ;;  %v6939_v53 = vpop.f32.mrb[56].mxu1  ;;  %17842 = vrcp.f32 %v12923_v61  ;;  %v27433_v0 = vld [vmem:[#allocation92_spill] sm:$0xff]  ;;  %27439 = vst [vmem:[#allocation33_spill] sm:$0xff] %v23965_v9  ;;  %v23968_v61 = vld [vmem:[%s19172_s10 + $0x778] sm:$0xff] }
 0x4e8   : > { %v6869_v16 = vadd.f32 %v6868_v6, %v27429_v54  ;;  %v6940_v10 = vadd.f32 %v6939_v53, %v27430_v3  ;;  %v6941_v18 = vpop.f32.mrb[57].mxu1  ;;  %v27435_v6 = vpack.c.bf16 %v27433_v0, %v27434_v47  ;;  %v27436_v54 = vld [vmem:[#allocation94_spill] sm:$0xff]  ;;  %27440 = vst [vmem:[#allocation32_spill] sm:$0xff] %v23968_v61  ;;  %v23971_v47 = vld [vmem:[%s19172_s10 + $0xf78] sm:$0xff]  ;;  %v14239_v0 = vcombine.low %v23883_v12, %v17823_v22  ;;  %v23981_v3 = vld [vmem:[%s19172_s10 + $0x760] sm:$0xff] }
 0x4e9   : > { %v27438_v53 = vpack.c.bf16 %v27436_v54, %v27437_v62  ;;  %27441 = vst [vmem:[#allocation116_spill] sm:$0xff] %v23971_v47  ;;  %v17825_v62 = vpop.eup %17824  ;;  %17844 = vrcp.f32 %v12924_v40  ;;  %v27445_v12 = vrot.slane %v23074_v13, %v20246_v51  ;;  %v27451_v8 = vld [vmem:[#allocation20_spill] sm:$0xff]  ;;  %v27454_v61 = vld [vmem:[#allocation97_spill] sm:$0xff] }
 0x4ea   : > { %17056 = vmatpush1.bf16.msra.mxu0 %v27435_v6  ;;  %v15964_v6 = vmul.f32 -1.442695, %v6869_v16  ;;  %v15966_v54 = vmul.f32 -1.442695, %v6940_v10  ;;  %v23983_v28 = vpop.eup %17826  ;;  %v14240_v27 = vcombine.low %v17821_v60, %v17825_v62  ;;  %17846 = vpow2.f32 %v15961_v41  ;;  %v23991_v10 = vld [vmem:[%s19172_s10 + $0xf60] sm:$0xff]  ;;  %v27453_v41 = vld [vmem:[#allocation98_spill] sm:$0xff] }
 0x4eb   : > { %17064 = vmatpush1.bf16.msra.mxu1 %v27438_v53  ;;  %v27442_v53 = vpack.c.bf16 %v23349_v44, %v23346_v48  ;;  %v6871_v40 = vadd.f32 %v6870_v25, %v27445_v12  ;;  %v23994_v48 = vld [vmem:[%s19172_s10 + $0x770] sm:$0xff]  ;;  %v17829_v21 = vpop.eup %17828  ;;  %v14247_v50 = vrot.slane %v14239_v0, %v26650_v56  ;;  %17848 = vpow2.f32 %v15963_v14  ;;  %v27450_v16 = vld [vmem:[#allocation96_spill] sm:$0xff] }
 0x4ec   : > { %17074 = vmatprep.subr.bf16.mxu1 %v27444_v45  ;;  %v23997_v44 = vld [vmem:[%s19172_s10 + $0xf70] sm:$0xff]  ;;  %v17831_v60 = vpop.eup %17830  ;;  %v14254_v25 = vrot.slane %v14240_v27, %v26650_v56  ;;  %v12926_v22 = vadd.f32 1.0, %v17829_v21  ;;  %17850 = vpow2.f32 %v15964_v6  ;;  %v27446_v14 = vrot.slane %v23074_v13, %v20273_v19  ;;  %v27456_v6 = vld [vmem:[#allocation212_spill] sm:$0xff] }
 0x4ed   : > { %17066 = vmatprep.subr.bf16.mxu0 %v27442_v53  ;;  %15836 = vmatmul.mubr.msk.f32.vlgmr.msra.gmra.mrb[110].mxu0 %vm520_vm3, %v19216_v7  ;;  %v27447_v0 = vld [vmem:[#allocation210_spill] sm:$0xff]  ;;  %v27448_v53 = vld [vmem:[#allocation211_spill] sm:$0xff]  ;;  %v27452_v45 = vpack.c.bf16 %v27450_v16, %v27451_v8  ;;  %v17833_v42 = vpop.eup %17832  ;;  %v12925_v9 = vadd.f32 1.0, %v17831_v60  ;;  %17852 = vpow2.f32 %v15966_v54  ;;  %v27455_v27 = vpack.c.bf16 %v27453_v41, %v27454_v61  ;;  %v27457_v21 = vld [vmem:[#allocation100_spill] sm:$0xff]  ;;  %v7010_v61 = vpop.f32.mrb[58].mxu0 }
 0x4ee   : > { %15837 = vmatmul.mubr.msk.f32.vlgmr.msra.gmra.mrb[110].mxu1 %vm520_vm3, %v19216_v7  ;;  %v6942_v62 = vadd.f32 %v6941_v18, %v27446_v14  ;;  %v27449_v12 = vpack.c.bf16 %v27447_v0, %v27448_v53  ;;  %v27458_v47 = vpack.c.bf16 %v27456_v6, %v27457_v21  ;;  %v24029_v14 = vld [vmem:[%s20146_s24 + $0x80] sm:$0xff]  ;;  %v17835_v8 = vpop.eup %17834  ;;  %v14255_v16 = vcombine.low %v14247_v50, %v14254_v25  ;;  %v7081_v41 = vpop.f32.mrb[58].mxu1  ;;  %v27462_v6 = vld [vmem:[#allocation102_spill] sm:$0xff] }
 0x4ef   : > { %17076 = vmatpush1.bf16.msra.mxu1 %v27452_v45  ;;  %17854 = vrcp.f32 %v12926_v22  ;;  %v12927_v54 = vadd.f32 1.0, %v17833_v42  ;;  %v15965_v45 = vmul.f32 -1.442695, %v6871_v40  ;;  %10842 = vmatprep.mubr.f32.mxu0 %v26132_v4  ;;  %v12928_v60 = vadd.f32 1.0, %v17835_v8  ;;  %v7012_v42 = vpop.f32.mrb[59].mxu0  ;;  %v7083_v40 = vpop.f32.mrb[59].mxu1 }
 0x4f0   : > { %17068 = vmatpush1.bf16.msra.mxu0 %v27449_v12  ;;  %17078 = vmatprep.subr.bf16.mxu1 %v27458_v47  ;;  %v17837_v47 = vpop.eup %17836  ;;  %17856 = vrcp.f32 %v12925_v9  ;;  %v27459_v0 = vrot.slane %v23390_v32, %v20152_v26  ;;  %v27460_v50 = vrot.slane %v23390_v32, %v20171_v59  ;;  %15023 = vst [vmem:[%s21895_s7 + $0xb8] sm:$0xff] %v14255_v16  ;;  %v27461_v9 = vld [vmem:[#allocation99_spill] sm:$0xff]  ;;  %v27464_v8 = vld [vmem:[#allocation101_spill] sm:$0xff]  ;;  %v24164_v13 = vld [vmem:[%s19172_s10 + $0x790] sm:$0xff] }
 0x4f1   : > { %17070 = vmatprep.subr.bf16.mxu0 %v27455_v27  ;;  %10913 = vmatprep.mubr.f32.mxu1 %v26132_v4  ;;  %v17839_v22 = vpop.eup %17838  ;;  %17858 = vrcp.f32 %v12927_v54  ;;  %v12930_v12 = vadd.f32 1.0, %v17837_v47  ;;  %v15967_v27 = vmul.f32 -1.442695, %v6942_v62  ;;  %v27463_v21 = vpack.c.bf16 %v27461_v9, %v27462_v6  ;;  %27493 = vst [vmem:[#allocation218_spill] sm:$0xff] %v24164_v13 }
 0x4f2   : > { %v7011_v53 = vadd.f32 %v7010_v61, %v27459_v0  ;;  %v7082_v25 = vadd.f32 %v7081_v41, %v27460_v50  ;;  %v27465_v61 = vld [vmem:[#allocation213_spill] sm:$0xff]  ;;  %v17841_v18 = vpop.eup %17840  ;;  %17860 = vrcp.f32 %v12928_v60  ;;  %v27467_v54 = vrot.slane %v23390_v32, %v20174_v38  ;;  %v24066_v60 = vld [vmem:[%s19172_s10 + $0x1778] sm:$0xff] }
 0x4f3   : > { %v27466_v0 = vpack.c.bf16 %v27464_v8, %v27465_v61  ;;  %v24049_v50 = vld [vmem:[%s19172_s10 + $0x1768] sm:$0xff]  ;;  %v27468_v47 = vpack.c.bf16 %v23495_v23, %v23492_v15  ;;  %v27469_v9 = vpack.c.bf16 %v23515_v5, %v23512_v2  ;;  %v14256_v8 = vcombine.low %v23983_v28, %v17841_v18  ;;  %v24086_v18 = vld [vmem:[%s19172_s10 + $0x1760] sm:$0xff] }
 0x4f4   : > { %17072 = vmatpush1.bf16.msra.mxu0 %v27463_v21  ;;  %v15968_v16 = vmul.f32 -1.442695, %v7011_v53  ;;  %v7013_v62 = vadd.f32 %v7012_v42, %v27467_v54  ;;  %v24063_v21 = vld [vmem:[%s19172_s10 + $0x1f68] sm:$0xff]  ;;  %v24069_v53 = vld [vmem:[%s19172_s10 + $0x1f78] sm:$0xff]  ;;  %v17843_v42 = vpop.eup %17842  ;;  %17862 = vrcp.f32 %v12930_v12  ;;  %v15970_v23 = vmul.f32 -1.442695, %v7082_v25 }
 0x4f5   : > { %17080 = vmatpush1.bf16.msra.mxu1 %v27466_v0  ;;  %17082 = vmatprep.subr.bf16.mxu0 %v27468_v47  ;;  %v27470_v15 = vrot.slane %v23390_v32, %v20203_v20  ;;  %v24075_v2 = vpop.eup %17844  ;;  %v14257_v61 = vcombine.low %v17839_v22, %v17843_v42  ;;  %17864 = vpow2.f32 %v15965_v45  ;;  %v24089_v25 = vld [vmem:[%s19172_s10 + $0x1f60] sm:$0xff]  ;;  %v14264_v45 = vrot.slane %v14256_v8, %v26650_v56  ;;  %v27472_v12 = vld [vmem:[#allocation215_spill] sm:$0xff] }
 0x4f6   : > { %17090 = vmatprep.subr.bf16.mxu1 %v27469_v9  ;;  %17866 = vpow2.f32 %v15967_v27  ;;  %v27471_v22 = vpack.c.bf16 %v23533_v29, %v23530_v58  ;;  %v27473_v54 = vpack.c.bf16 %v23548_v46, %v27472_v12  ;;  %v15969_v27 = vmul.f32 -1.442695, %v7013_v62  ;;  %v27474_v8 = vld [vmem:[#allocation103_spill] sm:$0xff]  ;;  %v27475_v58 = vld [vmem:[#allocation214_spill] sm:$0xff]  ;;  %v7223_v62 = vpop.f32.mrb[60].mxu1 }
 0x4f7   : > { %v7084_v5 = vadd.f32 %v7083_v40, %v27470_v15  ;;  %15838 = vmatmul.mubr.msk.f32.vlgmr.msra.gmra.mrb[112].mxu0 %vm520_vm3, %v19216_v7  ;;  %v17847_v40 = vpop.eup %17846  ;;  %v14271_v15 = vrot.slane %v14257_v61, %v26650_v56  ;;  %17868 = vpow2.f32 %v15968_v16  ;;  %v27476_v29 = vpack.c.bf16 %v27474_v8, %v27475_v58  ;;  %v24113_v12 = vld [vmem:[%s19172_s10 + $0x1f70] sm:$0xff] }
 0x4f8   : > { %15839 = vmatmul.mubr.msk.f32.vlgmr.msra.gmra.mrb[112].mxu1 %vm520_vm3, %v19216_v7  ;;  %17084 = vmatpush1.bf16.msra.mxu0 %v27471_v22  ;;  %v17849_v42 = vpop.eup %17848  ;;  %v12929_v28 = vadd.f32 1.0, %v17847_v40  ;;  %v27477_v46 = vpack.c.bf16 %v23622_v30, %v23619_v35  ;;  %v24110_v22 = vld [vmem:[%s19172_s10 + $0x1770] sm:$0xff]  ;;  %17870 = vpow2.f32 %v15970_v23  ;;  %v7152_v40 = vpop.f32.mrb[60].mxu0  ;;  %v24123_v30 = vld [vmem:[%s19172_s10 + $0xf88] sm:$0xff]  ;;  %v27479_v35 = vrot.slane %v23390_v32, %v20243_v49 }
 0x4f9   : > { %17092 = vmatpush1.bf16.msra.mxu1 %v27473_v54  ;;  %17086 = vmatprep.subr.bf16.mxu0 %v27476_v29  ;;  %v24116_v54 = vld [vmem:[%s19172_s10 + $0x788] sm:$0xff]  ;;  %v17851_v0 = vpop.eup %17850  ;;  %v12931_v61 = vadd.f32 1.0, %v17849_v42  ;;  %v15971_v16 = vmul.f32 -1.442695, %v7084_v5  ;;  %v14272_v58 = vcombine.low %v14264_v45, %v14271_v15  ;;  %v27478_v5 = vrot.slane %v23390_v32, %v20240_v24  ;;  %v7154_v29 = vpop.f32.mrb[61].mxu0  ;;  %v27482_v15 = vld [vmem:[#allocation104_spill] sm:$0xff] }
 0x4fa   : > { %17094 = vmatprep.subr.bf16.mxu1 %v27477_v46  ;;  %10984 = vmatprep.mubr.f32.mxu0 %v26132_v4  ;;  %v17853_v8 = vpop.eup %17852  ;;  %17872 = vrcp.f32 %v12929_v28  ;;  %v12932_v23 = vadd.f32 1.0, %v17851_v0  ;;  %v7225_v46 = vpop.f32.mrb[61].mxu1  ;;  %v7224_v9 = vadd.f32 %v7223_v62, %v27479_v35  ;;  %v27480_v45 = vrot.slane %v23390_v32, %v20246_v51 }
 0x4fb   : > { %11055 = vmatprep.mubr.f32.mxu1 %v26132_v4  ;;  %v7153_v42 = vadd.f32 %v7152_v40, %v27478_v5  ;;  %v17855_v6 = vpop.eup %17854  ;;  %17874 = vrcp.f32 %v12931_v61  ;;  %v12934_v41 = vadd.f32 1.0, %v17853_v8  ;;  %v27481_v0 = vpack.c.bf16 %v23636_v52, %v23625_v39  ;;  %v24141_v61 = vld [vmem:[%s19172_s10 + $0x798] sm:$0xff]  ;;  %v24147_v5 = vld [vmem:[%s19172_s10 + $0x780] sm:$0xff]  ;;  %15024 = vst [vmem:[%s21895_s7 + $0xc0] sm:$0xff] %v14272_v58  ;;  %v27489_v39 = vld [vmem:[#allocation21_spill] sm:$0xff] }
 0x4fc   : > { %v7155_v28 = vadd.f32 %v7154_v29, %v27480_v45  ;;  %v27483_v40 = vpack.c.bf16 %v23642_v57, %v27482_v15  ;;  %27484 = vst [vmem:[#allocation34_spill] sm:$0xff] %v24141_v61  ;;  %v24144_v8 = vld [vmem:[%s19172_s10 + $0xf98] sm:$0xff]  ;;  %27485 = vst [vmem:[#allocation118_spill] sm:$0xff] %v24147_v5  ;;  %v17857_v62 = vpop.eup %17856  ;;  %17876 = vrcp.f32 %v12932_v23  ;;  %v27486_v29 = vld [vmem:[#allocation106_spill] sm:$0xff] }
 0x4fd   : > { %17088 = vmatpush1.bf16.msra.mxu0 %v27481_v0  ;;  %v15972_v35 = vmul.f32 -1.442695, %v7153_v42  ;;  %v27487_v45 = vld [vmem:[#allocation105_spill] sm:$0xff]  ;;  %v27490_v52 = vld [vmem:[#allocation22_spill] sm:$0xff]  ;;  %v17859_v23 = vpop.eup %17858  ;;  %v14273_v42 = vcombine.low %v24075_v2, %v17857_v62  ;;  %17878 = vrcp.f32 %v12934_v41  ;;  %v27516_v5 = vld [vmem:[#allocation111_spill] sm:$0xff] }
 0x4fe   : > { %17096 = vmatpush1.bf16.msra.mxu1 %v27483_v40  ;;  %v27488_v47 = vpack.c.bf16 %v27486_v29, %v27487_v45  ;;  %v27491_v0 = vpack.c.bf16 %v27489_v39, %v27490_v52  ;;  %v24161_v40 = vld [vmem:[%s19172_s10 + $0xf80] sm:$0xff]  ;;  %v24167_v58 = vld [vmem:[%s19172_s10 + $0xf90] sm:$0xff]  ;;  %v27495_v29 = vrot.slane %v23390_v32, %v20273_v19  ;;  %v24173_v39 = vpop.eup %17860  ;;  %v14274_v52 = vcombine.low %v17855_v6, %v17859_v23  ;;  %v27496_v32 = vld [vmem:[#allocation23_spill] sm:$0xff]  ;;  %v7365_v23 = vpop.f32.mrb[62].mxu1 }
 0x4ff   : > { %27492 = vst [vmem:[#allocation115_spill] sm:$0xff] %v24161_v40  ;;  %27494 = vst [vmem:[#allocation117_spill] sm:$0xff] %v24167_v58  ;;  %17880 = vpow2.f32 %v15969_v27  ;;  %v24181_v41 = vpop.eup %17862  ;;  %v27499_v6 = vld [vmem:[#allocation25_spill] sm:$0xff]  ;;  %v27500_v27 = vld [vmem:[#allocation26_spill] sm:$0xff] }
 0x500   : > { %17098 = vmatprep.subr.bf16.mxu0 %v27488_v47  ;;  %17106 = vmatprep.subr.bf16.mxu1 %v27491_v0  ;;  %v15974_v47 = vmul.f32 -1.442695, %v7224_v9  ;;  %v7226_v45 = vadd.f32 %v7225_v46, %v27495_v29  ;;  %v15973_v0 = vmul.f32 -1.442695, %v7155_v28  ;;  %v14281_v9 = vrot.slane %v14273_v42, %v26650_v56  ;;  %v27497_v46 = vld [vmem:[#allocation24_spill] sm:$0xff]  ;;  %v17865_v2 = vpop.eup %17864  ;;  %v27502_v42 = vld [vmem:[#allocation27_spill] sm:$0xff] }
 0x501   : > { %15840 = vmatmul.mubr.msk.f32.vlgmr.msra.gmra.mrb[114].mxu0 %vm520_vm3, %v19216_v7  ;;  %15841 = vmatmul.mubr.msk.f32.vlgmr.msra.gmra.mrb[114].mxu1 %vm520_vm3, %v19216_v7  ;;  %17882 = vpow2.f32 %v15971_v16  ;;  %v27498_v62 = vpack.c.bf16 %v27496_v32, %v27497_v46  ;;  %v27501_v28 = vpack.c.bf16 %v27499_v6, %v27500_v27  ;;  %v14288_v15 = vrot.slane %v14274_v52, %v26650_v56  ;;  %v27503_v16 = vld [vmem:[#allocation28_spill] sm:$0xff]  ;;  %v27506_v46 = vld [vmem:[#allocation107_spill] sm:$0xff]  ;;  %v7294_v52 = vpop.f32.mrb[62].mxu0  ;;  %v24216_v27 = vld [vmem:[%s19172_s10 + $0x1f88] sm:$0xff] }
 0x502   : > { %17884 = vpow2.f32 %v15972_v35  ;;  %v27504_v57 = vpack.c.bf16 %v27502_v42, %v27503_v16  ;;  %v27505_v32 = vld [vmem:[#allocation108_spill] sm:$0xff]  ;;  %v12933_v29 = vadd.f32 1.0, %v17865_v2  ;;  %v15975_v35 = vmul.f32 -1.442695, %v7226_v45  ;;  %11126 = vmatprep.mubr.f32.mxu0 %v26132_v4  ;;  %11197 = vmatprep.mubr.f32.mxu1 %v26132_v4  ;;  %v7296_v2 = vpop.f32.mrb[63].mxu0 }
 0x503   : > { %17100 = vmatpush1.bf16.msra.mxu0 %v27498_v62  ;;  %17108 = vmatpush1.bf16.msra.mxu1 %v27501_v28  ;;  %v27507_v62 = vpack.c.bf16 %v27505_v32, %v27506_v46  ;;  %v17867_v28 = vpop.eup %17866  ;;  %17886 = vpow2.f32 %v15974_v47  ;;  %v14289_v16 = vcombine.low %v14281_v9, %v14288_v15  ;;  %v27508_v47 = vrot.slane %v23716_v37, %v20152_v26  ;;  %v7367_v46 = vpop.f32.mrb[63].mxu1  ;;  %v27515_v58 = vld [vmem:[#allocation112_spill] sm:$0xff] }
 0x504   : > { %17102 = vmatprep.subr.bf16.mxu0 %v27504_v57  ;;  %v17869_v42 = vpop.eup %17868  ;;  %v12935_v32 = vadd.f32 1.0, %v17867_v28  ;;  %17888 = vpow2.f32 %v15973_v0  ;;  %v27510_v15 = vrot.slane %v23716_v37, %v20171_v59  ;;  %v27511_v0 = vrot.slane %v23716_v37, %v20174_v38  ;;  %v24237_v61 = vld [vmem:[%s19172_s10 + $0x1780] sm:$0xff] }
 0x505   : > { %17110 = vmatprep.subr.bf16.mxu1 %v27507_v62  ;;  %v7295_v45 = vadd.f32 %v7294_v52, %v27508_v47  ;;  %v24213_v62 = vld [vmem:[%s19172_s10 + $0x1788] sm:$0xff]  ;;  %v17871_v6 = vpop.eup %17870  ;;  %17890 = vrcp.f32 %v12933_v29  ;;  %v12936_v57 = vadd.f32 1.0, %v17869_v42  ;;  %v27512_v52 = vld [vmem:[#allocation110_spill] sm:$0xff]  ;;  %v27517_v40 = vpack.c.bf16 %v27515_v58, %v27516_v5  ;;  %v24231_v29 = vld [vmem:[%s19172_s10 + $0x1798] sm:$0xff]  ;;  %15025 = vst [vmem:[%s21895_s7 + $0xc8] sm:$0xff] %v14289_v16 }
 0x506   : > { %27509 = vst [vmem:[#allocation119_spill] sm:$0xff] %v24213_v62  ;;  %v7366_v9 = vadd.f32 %v7365_v23, %v27510_v15  ;;  %v7297_v28 = vadd.f32 %v7296_v2, %v27511_v0  ;;  %v27513_v47 = vld [vmem:[#allocation109_spill] sm:$0xff]  ;;  %27518 = vst [vmem:[#allocation120_spill] sm:$0xff] %v24231_v29  ;;  %v24234_v42 = vld [vmem:[%s19172_s10 + $0x1f98] sm:$0xff]  ;;  %v17873_v23 = vpop.eup %17872  ;;  %17892 = vrcp.f32 %v12935_v32  ;;  %v12938_v2 = vadd.f32 1.0, %v17871_v6 }
 0x507   : > { %v27514_v13 = vpack.c.bf16 %v27512_v52, %v27513_v47  ;;  %17112 = vmatpush1.bf16.msra.mxu1 %v27517_v40  ;;  %27519 = vst [vmem:[#allocation121_spill] sm:$0xff] %v24234_v42  ;;  %v15976_v15 = vmul.f32 -1.442695, %v7295_v45  ;;  %v27520_v0 = vld [vmem:[#allocation29_spill] sm:$0xff]  ;;  %v27523_v5 = vpack.c.bf16 %v23841_v1, %v23830_v33  ;;  %v24249_v58 = vld [vmem:[%s19172_s10 + $0x1f80] sm:$0xff]  ;;  %v24252_v47 = vld [vmem:[%s19172_s10 + $0x1790] sm:$0xff]  ;;  %v17875_v6 = vpop.eup %17874  ;;  %v14290_v32 = vcombine.low %v24173_v39, %v17873_v23 }
 0x508   : > { %v24255_v16 = vld [vmem:[%s19172_s10 + $0x1f90] sm:$0xff]  ;;  %17894 = vrcp.f32 %v12936_v57  ;;  %v15978_v45 = vmul.f32 -1.442695, %v7366_v9  ;;  %v24261_v1 = vld [vmem:[%s19172_s10 + $0x7a8] sm:$0xff]  ;;  %v15977_v40 = vmul.f32 -1.442695, %v7297_v28  ;;  %v27528_v28 = vpack.c.bf16 %v23847_v11, %v23844_v34 }
 0x509   : > { %17104 = vmatpush1.bf16.msra.mxu0 %v27514_v13  ;;  %v27521_v13 = vld [vmem:[#allocation114_spill] sm:$0xff]  ;;  %17122 = vmatprep.subr.bf16.mxu1 %v27523_v5  ;;  %v14291_v5 = vcombine.low %v24181_v41, %v17875_v6  ;;  %17896 = vrcp.f32 %v12938_v2  ;;  %v24279_v57 = vld [vmem:[%s19172_s10 + $0xfb8] sm:$0xff]  ;;  %v24282_v9 = vld [vmem:[%s19172_s10 + $0x7a0] sm:$0xff]  ;;  %v14298_v41 = vrot.slane %v14290_v32, %v26650_v56  ;;  %v27531_v34 = vrot.slane %v23716_v37, %v20203_v20 }
 0x50a   : > { %v27522_v52 = vpack.c.bf16 %v27520_v0, %v27521_v13  ;;  %v24264_v0 = vld [vmem:[%s19172_s10 + $0xfa8] sm:$0xff]  ;;  %v24267_v13 = vld [vmem:[%s19172_s10 + $0x7b8] sm:$0xff]  ;;  %15843 = vmatmul.mubr.msk.f32.vlgmr.msra.gmra.mrb[116].mxu1 %vm520_vm3, %v19216_v7  ;;  %27525 = vst [vmem:[#allocation123_spill] sm:$0xff] %v24279_v57  ;;  %27526 = vst [vmem:[#allocation124_spill] sm:$0xff] %v24282_v9  ;;  %17898 = vpow2.f32 %v15975_v35  ;;  %v27533_v35 = vpack.c.bf16 %v23926_v63, %v23915_v43 }
 0x50b   : > { %27524 = vst [vmem:[#allocation122_spill] sm:$0xff] %v24267_v13  ;;  %v24285_v23 = vld [vmem:[%s19172_s10 + $0xfa0] sm:$0xff]  ;;  %v27529_v2 = vld [vmem:[#allocation113_spill] sm:$0xff]  ;;  %v14305_v62 = vrot.slane %v14291_v5, %v26650_v56  ;;  %17900 = vpow2.f32 %v15976_v15  ;;  %v7368_v11 = vadd.f32 %v7367_v46, %v27531_v34  ;;  %v7436_v15 = vpop.f32.mrb[64].mxu0  ;;  %v7507_v5 = vpop.f32.mrb[64].mxu1  ;;  %11339 = vmatprep.mubr.f32.mxu1 %v26132_v4  ;;  %v24319_v43 = vld [vmem:[%s19172_s10 + $0x7b0] sm:$0xff]  ;;  %v27535_v29 = vrot.slane %v23716_v37, %v20243_v49 }
 0x50c   : > { %17114 = vmatprep.subr.bf16.mxu0 %v27522_v52  ;;  %v24269_v52 = vpop.eup %17876  ;;  %15842 = vmatmul.mubr.msk.f32.vlgmr.msra.gmra.mrb[116].mxu0 %vm520_vm3, %v19216_v7  ;;  %27527 = vst [vmem:[#allocation125_spill] sm:$0xff] %v24285_v23  ;;  %v27530_v6 = vpack.c.bf16 %v23861_v17, %v27529_v2  ;;  %v27532_v17 = vpack.c.bf16 %v23912_v36, %v23909_v31  ;;  %17902 = vpow2.f32 %v15978_v45  ;;  %v24322_v63 = vld [vmem:[%s19172_s10 + $0xfb0] sm:$0xff]  ;;  %v24328_v32 = vld [vmem:[%s20146_s24 + $0x88] sm:$0xff]  ;;  %v27545_v57 = vld [vmem:[#allocation116_spill] sm:$0xff] }
 0x50d   : > { %v24287_v33 = vpop.eup %17878  ;;  %17116 = vmatpush1.bf16.msra.mxu0 %v27528_v28  ;;  %11268 = vmatprep.mubr.f32.mxu0 %v26132_v4  ;;  %17904 = vpow2.f32 %v15977_v40  ;;  %v7508_v39 = vadd.f32 %v7507_v5, %v27535_v29  ;;  %v27537_v40 = vld [vmem:[#allocation30_spill] sm:$0xff]  ;;  %v27542_v13 = vld [vmem:[#allocation33_spill] sm:$0xff] }
 0x50e   : > { %17124 = vmatpush1.bf16.msra.mxu1 %v27530_v6  ;;  %v17881_v42 = vpop.eup %17880  ;;  %17118 = vmatprep.subr.bf16.mxu0 %v27532_v17  ;;  %v27534_v6 = vrot.slane %v23716_v37, %v20240_v24  ;;  %v7438_v17 = vpop.f32.mrb[65].mxu0  ;;  %v27543_v29 = vld [vmem:[#allocation217_spill] sm:$0xff] }
 0x50f   : > { %17126 = vmatprep.subr.bf16.mxu1 %v27533_v35  ;;  %v17883_v28 = vpop.eup %17882  ;;  %v12937_v2 = vadd.f32 1.0, %v17881_v42  ;;  %v14306_v42 = vcombine.low %v14298_v41, %v14305_v62  ;;  %v7509_v35 = vpop.f32.mrb[65].mxu1  ;;  %v27536_v62 = vrot.slane %v23716_v37, %v20246_v51  ;;  %v27544_v5 = vpack.c.bf16 %v27542_v13, %v27543_v29 }
 0x510   : > { %v17885_v46 = vpop.eup %17884  ;;  %v12939_v45 = vadd.f32 1.0, %v17883_v28  ;;  %v7437_v34 = vadd.f32 %v7436_v15, %v27534_v6  ;;  %v27538_v28 = vld [vmem:[#allocation216_spill] sm:$0xff]  ;;  %v27540_v15 = vld [vmem:[#allocation31_spill] sm:$0xff] }
 0x511   : > { %v17887_v31 = vpop.eup %17886  ;;  %17906 = vrcp.f32 %v12937_v2  ;;  %v12940_v36 = vadd.f32 1.0, %v17885_v46  ;;  %v7439_v41 = vadd.f32 %v7438_v17, %v27536_v62  ;;  %v27539_v9 = vpack.c.bf16 %v27537_v40, %v27538_v28  ;;  %15026 = vst [vmem:[%s21895_s7 + $0xd0] sm:$0xff] %v14306_v42  ;;  %v27546_v17 = vld [vmem:[#allocation32_spill] sm:$0xff]  ;;  %v24370_v28 = vld [vmem:[%s19172_s10 + $0x1fb8] sm:$0xff] }
 0x512   : > { %v27541_v6 = vpack.c.bf16 %v23946_v55, %v27540_v15  ;;  %v17889_v23 = vpop.eup %17888  ;;  %17908 = vrcp.f32 %v12939_v45  ;;  %v12942_v2 = vadd.f32 1.0, %v17887_v31  ;;  %v15979_v46 = vmul.f32 -1.442695, %v7368_v11  ;;  %v24354_v31 = vld [vmem:[%s19172_s10 + $0x17a8] sm:$0xff] }
 0x513   : > { %17120 = vmatpush1.bf16.msra.mxu0 %v27539_v9  ;;  %v27547_v62 = vpack.c.bf16 %v27545_v57, %v27546_v17  ;;  %v17171_v9 = vpack.c.bf16 %v24322_v63, %v24319_v43  ;;  %v17891_v55 = vpop.eup %17890  ;;  %17910 = vrcp.f32 %v12940_v36  ;;  %v12941_v42 = vadd.f32 1.0, %v17889_v23  ;;  %v24364_v36 = vld [vmem:[%s19172_s10 + $0x1fa8] sm:$0xff] }
 0x514   : > { %17128 = vmatpush1.bf16.msra.mxu1 %v27541_v6  ;;  %17130 = vmatprep.subr.bf16.mxu0 %v27544_v5  ;;  %v15980_v45 = vmul.f32 -1.442695, %v7437_v34  ;;  %v2232_v11 = vrot.slane %v24328_v32, %v20152_v26  ;;  %v17893_v13 = vpop.eup %17892  ;;  %v14307_v40 = vcombine.low %v24269_v52, %v17891_v55  ;;  %17912 = vrcp.f32 %v12942_v2  ;;  %v24367_v34 = vld [vmem:[%s19172_s10 + $0x17b8] sm:$0xff]  ;;  %v7649_v55 = vpop.f32.mrb[66].mxu1 }
 0x515   : > { %17138 = vmatprep.subr.bf16.mxu1 %v27547_v62  ;;  %v15982_v57 = vmul.f32 -1.442695, %v7508_v39  ;;  %v24372_v15 = vpop.eup %17894  ;;  %v14308_v52 = vcombine.low %v24287_v33, %v17893_v13  ;;  %17914 = vrcp.f32 %v12941_v42  ;;  %v15981_v39 = vmul.f32 -1.442695, %v7439_v41 }
 0x516   : > { %15844 = vmatmul.mubr.msk.f32.vlgmr.msra.gmra.mrb[118].mxu0 %vm520_vm3, %v19216_v7  ;;  %v27548_v6 = vpack.c.bf16 %v23991_v10, %v23981_v3  ;;  %v27549_v2 = vpack.c.bf16 %v23997_v44, %v23994_v48  ;;  %v24383_v5 = vpop.eup %17896  ;;  %v14315_v17 = vrot.slane %v14307_v40, %v26650_v56  ;;  %17916 = vpow2.f32 %v15979_v46  ;;  %v7578_v46 = vpop.f32.mrb[66].mxu0 }
 0x517   : > { %15845 = vmatmul.mubr.msk.f32.vlgmr.msra.gmra.mrb[118].mxu1 %vm520_vm3, %v19216_v7  ;;  %v27550_v33 = vrot.slane %v23716_v37, %v20273_v19  ;;  %v27551_v3 = vpack.c.bf16 %v24063_v21, %v24049_v50  ;;  %v27552_v10 = vpack.c.bf16 %v24069_v53, %v24066_v60  ;;  %v17899_v44 = vpop.eup %17898  ;;  %v14322_v62 = vrot.slane %v14308_v52, %v26650_v56  ;;  %v24405_v21 = vld [vmem:[%s19172_s10 + $0x17a0] sm:$0xff]  ;;  %v7580_v52 = vpop.f32.mrb[67].mxu0 }
 0x518   : > { %17132 = vmatpush1.bf16.msra.mxu0 %v27548_v6  ;;  %17140 = vmatpush1.bf16.msra.mxu1 %v27549_v2  ;;  %17918 = vpow2.f32 %v15980_v45  ;;  %v17165_v37 = vpack.c.bf16 %v24364_v36, %v24354_v31  ;;  %v17173_v50 = vpack.c.bf16 %v24370_v28, %v24367_v34  ;;  %v24408_v60 = vld [vmem:[%s19172_s10 + $0x1fa0] sm:$0xff]  ;;  %v17901_v53 = vpop.eup %17900  ;;  %v27553_v42 = vrot.slane %v24029_v14, %v20152_v26  ;;  %v7651_v6 = vpop.f32.mrb[67].mxu1  ;;  %v24595_v28 = vld [vmem:[%s19172_s10 + $0x7e8] sm:$0xff] }
 0x519   : > { %v7510_v41 = vadd.f32 %v7509_v35, %v27550_v33  ;;  %17134 = vmatprep.subr.bf16.mxu0 %v27551_v3  ;;  %17142 = vmatprep.subr.bf16.mxu1 %v27552_v10  ;;  %v12943_v35 = vadd.f32 1.0, %v17899_v44  ;;  %17920 = vpow2.f32 %v15982_v57  ;;  %v27554_v13 = vrot.slane %v24029_v14, %v20171_v59  ;;  %v17903_v2 = vpop.eup %17902 }
 0x51a   : > { %11410 = vmatprep.mubr.f32.mxu0 %v26132_v4  ;;  %11481 = vmatprep.mubr.f32.mxu1 %v26132_v4  ;;  %v7579_v45 = vadd.f32 %v7578_v46, %v27553_v42  ;;  %v14323_v33 = vcombine.low %v14315_v17, %v14322_v62  ;;  %v12944_v3 = vadd.f32 1.0, %v17901_v53  ;;  %17922 = vpow2.f32 %v15981_v39  ;;  %v24429_v42 = vld [vmem:[%s19172_s10 + $0x1fb0] sm:$0xff]  ;;  %v17905_v17 = vpop.eup %17904 }
 0x51b   : > { %v7650_v40 = vadd.f32 %v7649_v55, %v27554_v13  ;;  %v27555_v10 = vrot.slane %v24029_v14, %v20174_v38  ;;  %v27556_v44 = vpack.c.bf16 %v24089_v25, %v24086_v18  ;;  %v27557_v46 = vpack.c.bf16 %v24113_v12, %v24110_v22  ;;  %v24426_v55 = vld [vmem:[%s19172_s10 + $0x17b0] sm:$0xff]  ;;  %v24440_v12 = vld [vmem:[%s19172_s10 + $0x7c8] sm:$0xff] }
 0x51c   : > { %17924 = vrcp.f32 %v12943_v35  ;;  %v12946_v39 = vadd.f32 1.0, %v17903_v2  ;;  %v15983_v62 = vmul.f32 -1.442695, %v7510_v41  ;;  %v27558_v53 = vpack.c.bf16 %v24123_v30, %v24116_v54  ;;  %v27559_v18 = vld [vmem:[#allocation34_spill] sm:$0xff]  ;;  %v24443_v13 = vld [vmem:[%s19172_s10 + $0xfc8] sm:$0xff]  ;;  %15027 = vst [vmem:[%s21895_s7 + $0xd8] sm:$0xff] %v14323_v33 }
 0x51d   : > { %v7581_v57 = vadd.f32 %v7580_v52, %v27555_v10  ;;  %17136 = vmatpush1.bf16.msra.mxu0 %v27556_v44  ;;  %17144 = vmatpush1.bf16.msra.mxu1 %v27557_v46  ;;  %v27560_v25 = vpack.c.bf16 %v24144_v8, %v27559_v18  ;;  %v17907_v52 = vpop.eup %17906  ;;  %17926 = vrcp.f32 %v12944_v3  ;;  %v12945_v41 = vadd.f32 1.0, %v17905_v17  ;;  %v24450_v35 = vld [vmem:[%s19172_s10 + $0x7d8] sm:$0xff]  ;;  %v24456_v10 = vld [vmem:[%s19172_s10 + $0x7c0] sm:$0xff]  ;;  %v24469_v3 = vld [vmem:[%s19172_s10 + $0x7d0] sm:$0xff] }
 0x51e   : > { %17146 = vmatprep.subr.bf16.mxu0 %v27558_v53  ;;  %v15984_v54 = vmul.f32 -1.442695, %v7579_v45  ;;  %v27561_v30 = vrot.slane %v24029_v14, %v20203_v20  ;;  %v24453_v2 = vld [vmem:[%s19172_s10 + $0xfd8] sm:$0xff]  ;;  %v17909_v44 = vpop.eup %17908  ;;  %v14324_v46 = vcombine.low %v24372_v15, %v17907_v52  ;;  %17928 = vrcp.f32 %v12946_v39  ;;  %v24472_v17 = vld [vmem:[%s19172_s10 + $0xfd0] sm:$0xff]  ;;  %v27565_v52 = vld [vmem:[#allocation117_spill] sm:$0xff] }
 0x51f   : > { %17154 = vmatprep.subr.bf16.mxu1 %v27560_v25  ;;  %v15986_v33 = vmul.f32 -1.442695, %v7650_v40  ;;  %v24474_v53 = vpop.eup %17910  ;;  %v14325_v15 = vcombine.low %v24383_v5, %v17909_v44  ;;  %17930 = vrcp.f32 %v12945_v41  ;;  %v15985_v40 = vmul.f32 -1.442695, %v7581_v57  ;;  %v27562_v39 = vld [vmem:[#allocation115_spill] sm:$0xff]  ;;  %v27563_v18 = vld [vmem:[#allocation118_spill] sm:$0xff] }
 0x520   : > { %v7652_v8 = vadd.f32 %v7651_v6, %v27561_v30  ;;  %15846 = vmatmul.mubr.msk.f32.vlgmr.msra.gmra.mrb[120].mxu0 %vm520_vm3, %v19216_v7  ;;  %15847 = vmatmul.mubr.msk.f32.vlgmr.msra.gmra.mrb[120].mxu1 %vm520_vm3, %v19216_v7  ;;  %v24466_v6 = vld [vmem:[%s19172_s10 + $0xfc0] sm:$0xff]  ;;  %v27564_v25 = vpack.c.bf16 %v27562_v39, %v27563_v18  ;;  %v27566_v30 = vld [vmem:[#allocation218_spill] sm:$0xff]  ;;  %v17177_v29 = vpack.c.bf16 %v24443_v13, %v24440_v12  ;;  %v24485_v45 = vpop.eup %17912  ;;  %17932 = vpow2.f32 %v15983_v62  ;;  %v27568_v5 = vld [vmem:[#allocation119_spill] sm:$0xff] }
 0x521   : > { %v27567_v48 = vpack.c.bf16 %v27565_v52, %v27566_v30  ;;  %v14332_v22 = vrot.slane %v14324_v46, %v26650_v56  ;;  %v27569_v57 = vpack.c.bf16 %v24216_v27, %v27568_v5  ;;  %v27570_v41 = vld [vmem:[#allocation121_spill] sm:$0xff]  ;;  %v27571_v44 = vld [vmem:[#allocation120_spill] sm:$0xff]  ;;  %v17915_v18 = vpop.eup %17914  ;;  %17934 = vpow2.f32 %v15984_v54  ;;  %v7720_v52 = vpop.f32.mrb[68].mxu0  ;;  %11552 = vmatprep.mubr.f32.mxu0 %v26132_v4  ;;  %11623 = vmatprep.mubr.f32.mxu1 %v26132_v4 }
 0x522   : > { %17148 = vmatpush1.bf16.msra.mxu0 %v27564_v25  ;;  %v15987_v23 = vmul.f32 -1.442695, %v7652_v8  ;;  %v27572_v39 = vpack.c.bf16 %v27570_v41, %v27571_v44  ;;  %v14339_v25 = vrot.slane %v14325_v15, %v26650_v56  ;;  %v7791_v30 = vpop.f32.mrb[68].mxu1  ;;  %v17917_v8 = vpop.eup %17916  ;;  %v14341_v46 = vcombine.low %v24474_v53, %v17915_v18 }
 0x523   : > { %17156 = vmatpush1.bf16.msra.mxu1 %v27567_v48  ;;  %17150 = vmatprep.subr.bf16.mxu0 %v27569_v57  ;;  %17936 = vpow2.f32 %v15986_v33  ;;  %v27573_v15 = vrot.slane %v24029_v14, %v20240_v24  ;;  %v27574_v5 = vrot.slane %v24029_v14, %v20243_v49  ;;  %v7722_v41 = vpop.f32.mrb[69].mxu0  ;;  %v7793_v44 = vpop.f32.mrb[69].mxu1  ;;  %v12947_v48 = vadd.f32 1.0, %v17917_v8  ;;  %v24536_v8 = vld [vmem:[%s19172_s10 + $0x1fc8] sm:$0xff] }
 0x524   : > { %17158 = vmatprep.subr.bf16.mxu1 %v27572_v39  ;;  %v17919_v39 = vpop.eup %17918  ;;  %v14340_v27 = vcombine.low %v14332_v22, %v14339_v25  ;;  %17938 = vpow2.f32 %v15985_v40  ;;  %v27575_v62 = vrot.slane %v24029_v14, %v20246_v51  ;;  %v27576_v33 = vpack.c.bf16 %v24249_v58, %v24237_v61  ;;  %v27579_v40 = vld [vmem:[#allocation123_spill] sm:$0xff]  ;;  %v27580_v25 = vld [vmem:[#allocation122_spill] sm:$0xff]  ;;  %v7933_v31 = vpop.f32.mrb[70].mxu1 }
 0x525   : > { %v7721_v54 = vadd.f32 %v7720_v52, %v27573_v15  ;;  %v7792_v57 = vadd.f32 %v7791_v30, %v27574_v5  ;;  %v27577_v18 = vpack.c.bf16 %v24255_v16, %v24252_v47  ;;  %v17921_v52 = vpop.eup %17920  ;;  %v12948_v30 = vadd.f32 1.0, %v17919_v39  ;;  %v24539_v15 = vld [vmem:[%s19172_s10 + $0x17d8] sm:$0xff] }
 0x526   : > { %v7723_v53 = vadd.f32 %v7722_v41, %v27575_v62  ;;  %17152 = vmatpush1.bf16.msra.mxu0 %v27576_v33  ;;  %17940 = vpow2.f32 %v15987_v23  ;;  %v27578_v22 = vpack.c.bf16 %v24264_v0, %v24261_v1  ;;  %v27581_v62 = vpack.c.bf16 %v27579_v40, %v27580_v25  ;;  %v17923_v47 = vpop.eup %17922  ;;  %15028 = vst [vmem:[%s21895_s7 + $0xe0] sm:$0xff] %v14340_v27  ;;  %v24533_v0 = vld [vmem:[%s19172_s10 + $0x17c8] sm:$0xff]  ;;  %v24552_v33 = vld [vmem:[%s19172_s10 + $0x17c0] sm:$0xff]  ;;  %v24568_v25 = vld [vmem:[%s19172_s10 + $0x17d0] sm:$0xff] }
 0x527   : > { %17160 = vmatpush1.bf16.msra.mxu1 %v27577_v18  ;;  %v2248_v61 = vrot.slane %v24328_v32, %v20240_v24  ;;  %v2256_v58 = vrot.slane %v24328_v32, %v20243_v49  ;;  %17942 = vrcp.f32 %v12947_v48  ;;  %v12950_v16 = vadd.f32 1.0, %v17921_v52  ;;  %v17925_v5 = vpop.eup %17924  ;;  %v24555_v18 = vld [vmem:[%s19172_s10 + $0x1fc0] sm:$0xff] }
 0x528   : > { %17162 = vmatprep.subr.bf16.mxu0 %v27578_v22  ;;  %17170 = vmatprep.subr.bf16.mxu1 %v27581_v62  ;;  %v15988_v23 = vmul.f32 -1.442695, %v7721_v54  ;;  %v2252_v1 = vrot.slane %v24328_v32, %v20246_v51  ;;  %17944 = vrcp.f32 %v12948_v30  ;;  %v12949_v41 = vadd.f32 1.0, %v17923_v47  ;;  %v24549_v54 = vld [vmem:[%s19172_s10 + $0x1fd8] sm:$0xff]  ;;  %v24557_v52 = vpop.eup %17926  ;;  %v27584_v22 = vld [vmem:[#allocation124_spill] sm:$0xff]  ;;  %v24571_v62 = vld [vmem:[%s19172_s10 + $0x1fd0] sm:$0xff] }
 0x529   : > { %v15990_v27 = vmul.f32 -1.442695, %v7792_v57  ;;  %v27582_v48 = vrot.slane %v24029_v14, %v20273_v19  ;;  %15848 = vmatmul.mubr.msk.f32.vlgmr.msra.gmra.mrb[122].mxu0 %vm520_vm3, %v19216_v7  ;;  %v14349_v57 = vrot.slane %v14341_v46, %v26650_v56  ;;  %v14342_v30 = vcombine.low %v24485_v45, %v17925_v5  ;;  %v24573_v47 = vpop.eup %17928 }
 0x52a   : > { %15849 = vmatmul.mubr.msk.f32.vlgmr.msra.gmra.mrb[122].mxu1 %vm520_vm3, %v19216_v7  ;;  %17946 = vrcp.f32 %v12950_v16  ;;  %v15989_v14 = vmul.f32 -1.442695, %v7723_v53  ;;  %v17181_v63 = vpack.c.bf16 %v24536_v8, %v24533_v0  ;;  %v7862_v53 = vpop.f32.mrb[70].mxu0  ;;  %11694 = vmatprep.mubr.f32.mxu0 %v26132_v4  ;;  %v17189_v36 = vpack.c.bf16 %v24549_v54, %v24539_v15  ;;  %v7935_v15 = vpop.f32.mrb[71].mxu1  ;;  %v24614_v54 = vld [vmem:[%s19172_s10 + $0x7e0] sm:$0xff] }
 0x52b   : > { %v7794_v39 = vadd.f32 %v7793_v44, %v27582_v48  ;;  %v27583_v44 = vld [vmem:[#allocation125_spill] sm:$0xff]  ;;  %17172 = vmatpush1.bf16.msra.mxu1 %v17171_v9  ;;  %17948 = vrcp.f32 %v12949_v41  ;;  %v24585_v9 = vpop.eup %17930  ;;  %v14356_v46 = vrot.slane %v14342_v30, %v26650_v56  ;;  %11765 = vmatprep.mubr.f32.mxu1 %v26132_v4  ;;  %v17183_v34 = vpack.c.bf16 %v24555_v18, %v24552_v33  ;;  %v7864_v41 = vpop.f32.mrb[71].mxu0  ;;  %v24617_v30 = vld [vmem:[%s19172_s10 + $0xfe0] sm:$0xff]  ;;  %v1363_v33 = vld [vmem:[%s19172_s10 + $0x17f0] sm:$0xff] }
 0x52c   : > { %v27585_v40 = vpack.c.bf16 %v27583_v44, %v27584_v22  ;;  %17174 = vmatprep.subr.bf16.mxu1 %v17173_v50  ;;  %17950 = vpow2.f32 %v15988_v23  ;;  %v24601_v50 = vld [vmem:[%s19172_s10 + $0x7f8] sm:$0xff]  ;;  %v17933_v16 = vpop.eup %17932  ;;  %v14358_v23 = vcombine.low %v24557_v52, %v24585_v9  ;;  %v7863_v5 = vadd.f32 %v7862_v53, %v2232_v11  ;;  %v1619_v18 = vld [vmem:[%s19172_s10 + $0x1ff0] sm:$0xff] }
 0x52d   : > { %v15991_v45 = vmul.f32 -1.442695, %v7794_v39  ;;  %17952 = vpow2.f32 %v15990_v27  ;;  %v17191_v48 = vpack.c.bf16 %v24571_v62, %v24568_v25  ;;  %v24611_v39 = vld [vmem:[%s19172_s10 + $0xff8] sm:$0xff]  ;;  %v17935_v44 = vpop.eup %17934  ;;  %v14357_v52 = vcombine.low %v14349_v57, %v14356_v46 }
 0x52e   : > { %17164 = vmatpush1.bf16.msra.mxu0 %v27585_v40  ;;  %v12951_v27 = vadd.f32 1.0, %v17933_v16  ;;  %17954 = vpow2.f32 %v15989_v14  ;;  %v27586_v11 = vrot.slane %v24328_v32, %v20171_v59  ;;  %v27587_v40 = vpack.c.bf16 %v24408_v60, %v24405_v21  ;;  %v17937_v53 = vpop.eup %17936  ;;  %v24640_v60 = vld [vmem:[%s19172_s10 + $0x7f0] sm:$0xff] }
 0x52f   : > { %17166 = vmatprep.subr.bf16.mxu0 %v17165_v37  ;;  %v24598_v37 = vld [vmem:[%s19172_s10 + $0xfe8] sm:$0xff]  ;;  %v27588_v9 = vpack.c.bf16 %v24429_v42, %v24426_v55  ;;  %v12952_v43 = vadd.f32 1.0, %v17935_v44  ;;  %17956 = vpow2.f32 %v15991_v45  ;;  %v27589_v57 = vrot.slane %v24328_v32, %v20174_v38  ;;  %v24643_v55 = vld [vmem:[%s19172_s10 + $0xff0] sm:$0xff]  ;;  %v17939_v42 = vpop.eup %17938  ;;  %15029 = vst [vmem:[%s21895_s7 + $0xe8] sm:$0xff] %v14357_v52 }
 0x530   : > { %v7934_v22 = vadd.f32 %v7933_v31, %v27586_v11  ;;  %v27590_v14 = vpack.c.bf16 %v24453_v2, %v24450_v35  ;;  %v17193_v21 = vpack.c.bf16 %v24598_v37, %v24595_v28  ;;  %17958 = vrcp.f32 %v12951_v27  ;;  %v17941_v13 = vpop.eup %17940  ;;  %v24669_v52 = vld [vmem:[%s19172_s10 + $0x17e8] sm:$0xff] }
 0x531   : > { %17176 = vmatpush1.bf16.msra.mxu1 %v27588_v9  ;;  %v7865_v46 = vadd.f32 %v7864_v41, %v27589_v57  ;;  %v12954_v45 = vadd.f32 1.0, %v17937_v53  ;;  %v17201_v12 = vpack.c.bf16 %v24611_v39, %v24601_v50  ;;  %17960 = vrcp.f32 %v12952_v43  ;;  %v24658_v50 = vld [vmem:[%s20146_s24 + $0x90] sm:$0xff]  ;;  %v17943_v41 = vpop.eup %17942  ;;  %v24672_v27 = vld [vmem:[%s19172_s10 + $0x1fe8] sm:$0xff]  ;;  %v8004_v53 = vpop.f32.mrb[72].mxu0 }
 0x532   : > { %17168 = vmatpush1.bf16.msra.mxu0 %v27587_v40  ;;  %17186 = vmatprep.subr.bf16.mxu1 %v27590_v14  ;;  %v12953_v35 = vadd.f32 1.0, %v17939_v42  ;;  %v15992_v2 = vmul.f32 -1.442695, %v7863_v5  ;;  %v27591_v31 = vrot.slane %v24328_v32, %v20203_v20  ;;  %v12955_v39 = vadd.f32 1.0, %v17941_v13  ;;  %v24674_v11 = vpop.eup %17944  ;;  %v8075_v57 = vpop.f32.mrb[72].mxu1 }
 0x533   : > { %17178 = vmatprep.subr.bf16.mxu0 %v17177_v29  ;;  %v17195_v29 = vpack.c.bf16 %v24617_v30, %v24614_v54  ;;  %17962 = vrcp.f32 %v12954_v45  ;;  %v15994_v43 = vmul.f32 -1.442695, %v7934_v22  ;;  %v27592_v5 = vpack.c.bf16 %v24466_v6, %v24456_v10  ;;  %v1364_v6 = vld [vmem:[%s19172_s10 + $0x17f8] sm:$0xff] }
 0x534   : > { %v7936_v16 = vadd.f32 %v7935_v15, %v27591_v31  ;;  %15851 = vmatmul.mubr.msk.f32.vlgmr.msra.gmra.mrb[124].mxu1 %vm520_vm3, %v19216_v7  ;;  %v27593_v15 = vpack.c.bf16 %v24472_v17, %v24469_v3  ;;  %v17203_v44 = vpack.c.bf16 %v24643_v55, %v24640_v60  ;;  %v14366_v40 = vrot.slane %v14358_v23, %v26650_v56  ;;  %v1620_v3 = vld [vmem:[%s19172_s10 + $0x1ff8] sm:$0xff]  ;;  %v24683_v17 = vpop.eup %17946  ;;  %v8006_v23 = vpop.f32.mrb[73].mxu0 }
 0x535   : > { %15850 = vmatmul.mubr.msk.f32.vlgmr.msra.gmra.mrb[124].mxu0 %vm520_vm3, %v19216_v7  ;;  %v14359_v22 = vcombine.low %v24573_v47, %v17943_v41  ;;  %17964 = vrcp.f32 %v12953_v35  ;;  %v15993_v10 = vmul.f32 -1.442695, %v7865_v46  ;;  %11907 = vmatprep.mubr.f32.mxu1 %v26132_v4  ;;  %v2264_v47 = vrot.slane %v24658_v50, %v20152_v26  ;;  %v17949_v8 = vpop.eup %17948  ;;  %v8077_v46 = vpop.f32.mrb[73].mxu1  ;;  %v1361_v35 = vld [vmem:[%s19172_s10 + $0x17e0] sm:$0xff] }
 0x536   : > { %17180 = vmatpush1.bf16.msra.mxu0 %v27592_v5  ;;  %17188 = vmatpush1.bf16.msra.mxu1 %v27593_v15  ;;  %17966 = vrcp.f32 %v12955_v39  ;;  %v15995_v9 = vmul.f32 -1.442695, %v7936_v16  ;;  %v2272_v0 = vrot.slane %v24658_v50, %v20171_v59  ;;  %v17197_v14 = vpack.c.bf16 %v24672_v27, %v24669_v52  ;;  %v17951_v42 = vpop.eup %17950  ;;  %v8217_v54 = vpop.f32.mrb[74].mxu1 }
 0x537   : > { %17182 = vmatprep.subr.bf16.mxu0 %v17181_v63  ;;  %17190 = vmatprep.subr.bf16.mxu1 %v17189_v36  ;;  %v14373_v63 = vrot.slane %v14359_v22, %v26650_v56  ;;  %17968 = vpow2.f32 %v15992_v2  ;;  %v8005_v36 = vadd.f32 %v8004_v53, %v2248_v61  ;;  %v14375_v45 = vcombine.low %v24674_v11, %v17949_v8  ;;  %v1617_v2 = vld [vmem:[%s19172_s10 + $0x1fe0] sm:$0xff]  ;;  %v17953_v31 = vpop.eup %17952 }
 0x538   : > { %11836 = vmatprep.mubr.f32.mxu0 %v26132_v4  ;;  %17970 = vpow2.f32 %v15994_v43  ;;  %v8076_v13 = vadd.f32 %v8075_v57, %v2256_v58  ;;  %v17205_v61 = vpack.c.bf16 %v1620_v3, %v1364_v6  ;;  %v12956_v41 = vadd.f32 1.0, %v17951_v42  ;;  %v17955_v25 = vpop.eup %17954  ;;  %v8219_v6 = vpop.f32.mrb[75].mxu1 }
 0x539   : > { %v14374_v16 = vcombine.low %v14366_v40, %v14373_v63  ;;  %17972 = vpow2.f32 %v15993_v10  ;;  %v8007_v58 = vadd.f32 %v8006_v23, %v2252_v1  ;;  %v12958_v62 = vadd.f32 1.0, %v17953_v31  ;;  %v17957_v43 = vpop.eup %17956  ;;  %v8146_v10 = vpop.f32.mrb[74].mxu0 }
 0x53a   : > { %17184 = vmatpush1.bf16.msra.mxu0 %v17183_v34  ;;  %17192 = vmatpush1.bf16.msra.mxu1 %v17191_v48  ;;  %17974 = vpow2.f32 %v15995_v9  ;;  %v27594_v34 = vrot.slane %v24328_v32, %v20273_v19  ;;  %v2268_v39 = vrot.slane %v24658_v50, %v20174_v38  ;;  %v12957_v1 = vadd.f32 1.0, %v17955_v25  ;;  %v17959_v37 = vpop.eup %17958 }
 0x53b   : > { %17194 = vmatprep.subr.bf16.mxu0 %v17193_v21  ;;  %17202 = vmatprep.subr.bf16.mxu1 %v17201_v12  ;;  %15030 = vst [vmem:[%s21895_s7 + $0xf0] sm:$0xff] %v14374_v16  ;;  %17976 = vrcp.f32 %v12956_v41  ;;  %v15996_v5 = vmul.f32 -1.442695, %v8005_v36  ;;  %v17199_v28 = vpack.c.bf16 %v1617_v2, %v1361_v35  ;;  %v12959_v21 = vadd.f32 1.0, %v17957_v43  ;;  %v17961_v15 = vpop.eup %17960 }
 0x53c   : > { %v8078_v48 = vadd.f32 %v8077_v46, %v27594_v34  ;;  %17978 = vrcp.f32 %v12958_v62  ;;  %v15998_v32 = vmul.f32 -1.442695, %v8076_v13  ;;  %v17207_v12 = vpack.c.bf16 %v1619_v18, %v1363_v33  ;;  %v24758_v33 = vld [vmem:[%s20146_s24 + $0x98] sm:$0xff]  ;;  %v8359_v62 = vpop.f32.mrb[76].mxu1 }
 0x53d   : > { %15852 = vmatmul.mubr.msk.f32.vlgmr.msra.gmra.mrb[126].mxu0 %vm520_vm3, %v19216_v7  ;;  %15853 = vmatmul.mubr.msk.f32.vlgmr.msra.gmra.mrb[126].mxu1 %vm520_vm3, %v19216_v7  ;;  %v14383_v52 = vrot.slane %v14375_v45, %v26650_v56  ;;  %v14376_v27 = vcombine.low %v24683_v17, %v17959_v37  ;;  %17980 = vrcp.f32 %v12957_v1  ;;  %v15997_v11 = vmul.f32 -1.442695, %v8007_v58  ;;  %v17963_v40 = vpop.eup %17962 }
 0x53e   : > { %17196 = vmatpush1.bf16.msra.mxu0 %v17195_v29  ;;  %17204 = vmatpush1.bf16.msra.mxu1 %v17203_v44  ;;  %17982 = vrcp.f32 %v12959_v21  ;;  %v15999_v22 = vmul.f32 -1.442695, %v8078_v48  ;;  %v2276_v30 = vrot.slane %v24658_v50, %v20203_v20  ;;  %v8147_v29 = vadd.f32 %v8146_v10, %v2264_v47  ;;  %v8148_v44 = vpop.f32.mrb[75].mxu0 }
 0x53f   : > { %17198 = vmatprep.subr.bf16.mxu0 %v17197_v14  ;;  %17206 = vmatprep.subr.bf16.mxu1 %v17205_v61  ;;  %v17965_v60 = vpop.eup %17964  ;;  %v14390_v55 = vrot.slane %v14376_v27, %v26650_v56  ;;  %17984 = vpow2.f32 %v15996_v5  ;;  %v8218_v9 = vadd.f32 %v8217_v54, %v2272_v0  ;;  %v8149_v53 = vadd.f32 %v8148_v44, %v2268_v39  ;;  %v8288_v25 = vpop.f32.mrb[76].mxu0 }
 0x540   : > { %11978 = vmatprep.mubr.f32.mxu0 %v26132_v4  ;;  %12049 = vmatprep.mubr.f32.mxu1 %v26132_v4  ;;  %v17967_v3 = vpop.eup %17966  ;;  %v14392_v17 = vcombine.low %v17961_v15, %v17965_v60  ;;  %17986 = vpow2.f32 %v15998_v32  ;;  %v16000_v63 = vmul.f32 -1.442695, %v8147_v29  ;;  %v8220_v46 = vadd.f32 %v8219_v6, %v2276_v30  ;;  %v8290_v43 = vpop.f32.mrb[77].mxu0 }
 0x541   : > { %v17969_v4 = vpop.eup %17968  ;;  %v14391_v57 = vcombine.low %v14383_v52, %v14390_v55  ;;  %v14393_v8 = vcombine.low %v17963_v40, %v17967_v3  ;;  %17988 = vpow2.f32 %v15997_v11  ;;  %v2280_v45 = vrot.slane %v24658_v50, %v20240_v24  ;;  %v8361_v5 = vpop.f32.mrb[77].mxu1 }
 0x542   : > { %17200 = vmatpush1.bf16.msra.mxu0 %v17199_v28  ;;  %17208 = vmatpush1.bf16.msra.mxu1 %v17207_v12  ;;  %v17971_v36 = vpop.eup %17970  ;;  %v14400_v47 = vrot.slane %v14392_v17, %v26650_v56  ;;  %v12960_v23 = vadd.f32 1.0, %v17969_v4  ;;  %17990 = vpow2.f32 %v15999_v22  ;;  %v16002_v35 = vmul.f32 -1.442695, %v8218_v9 }
 0x543   : > { %v17973_v14 = vpop.eup %17972  ;;  %15031 = vst [vmem:[%s21895_s7 + $0xf8] sm:$0xff] %v14391_v57  ;;  %v14407_v42 = vrot.slane %v14393_v8, %v26650_v56  ;;  %v12962_v0 = vadd.f32 1.0, %v17971_v36  ;;  %17992 = vpow2.f32 %v16000_v63  ;;  %v2288_v2 = vrot.slane %v24658_v50, %v20243_v49  ;;  %v8430_v57 = vpop.f32.mrb[78].mxu0 }
 0x544   : > { %v17975_v13 = vpop.eup %17974  ;;  %17994 = vrcp.f32 %v12960_v23  ;;  %v12961_v61 = vadd.f32 1.0, %v17973_v14  ;;  %v16001_v58 = vmul.f32 -1.442695, %v8149_v53  ;;  %v2284_v34 = vrot.slane %v24658_v50, %v20246_v51  ;;  %v8501_v8 = vpop.f32.mrb[78].mxu1 }
 0x545   : > { %15854 = vmatmul.mubr.msk.f32.vlgmr.msra.gmra.mrb[128].mxu0 %vm520_vm3, %v19216_v7  ;;  %15855 = vmatmul.mubr.msk.f32.vlgmr.msra.gmra.mrb[128].mxu1 %vm520_vm3, %v19216_v7  ;;  %v17977_v31 = vpop.eup %17976  ;;  %v14408_v16 = vcombine.low %v14400_v47, %v14407_v42  ;;  %17996 = vrcp.f32 %v12962_v0  ;;  %v12963_v41 = vadd.f32 1.0, %v17975_v13  ;;  %v16003_v7 = vmul.f32 -1.442695, %v8220_v46  ;;  %v8432_v46 = vpop.f32.mrb[79].mxu0 }
 0x546   : > { %v17979_v18 = vpop.eup %17978  ;;  %17998 = vrcp.f32 %v12961_v61  ;;  %v8289_v39 = vadd.f32 %v8288_v25, %v2280_v45  ;;  %v2292_v1 = vrot.slane %v24658_v50, %v20273_v19  ;;  %v2296_v21 = vrot.slane %v24758_v33, %v20152_v26  ;;  %v8503_v42 = vpop.f32.mrb[79].mxu1 }
 0x547   : > { %v17981_v48 = vpop.eup %17980  ;;  %15032 = vst [vmem:[%s21895_s7 + $0x100] sm:$0xff] %v14408_v16  ;;  %18000 = vrcp.f32 %v12963_v41  ;;  %v8360_v52 = vadd.f32 %v8359_v62, %v2288_v2  ;;  %v8291_v22 = vadd.f32 %v8290_v43, %v2284_v34  ;;  %v2304_v29 = vrot.slane %v24758_v33, %v20171_v59 }
 0x548   : > { %v17983_v28 = vpop.eup %17982  ;;  %v14409_v37 = vcombine.low %v17977_v31, %v17981_v48  ;;  %18002 = vpow2.f32 %v16002_v35  ;;  %v16004_v15 = vmul.f32 -1.442695, %v8289_v39  ;;  %v8362_v30 = vadd.f32 %v8361_v5, %v2292_v1 }
 0x549   : > { %v17985_v32 = vpop.eup %17984  ;;  %v14410_v12 = vcombine.low %v17979_v18, %v17983_v28  ;;  %18004 = vpow2.f32 %v16001_v58  ;;  %v16006_v17 = vmul.f32 -1.442695, %v8360_v52  ;;  %v16005_v4 = vmul.f32 -1.442695, %v8291_v22  ;;  %v8572_v52 = vpop.f32.mrb[80].mxu0 }
 0x54a   : > { %v17987_v27 = vpop.eup %17986  ;;  %v14417_v11 = vrot.slane %v14409_v37, %v26650_v56  ;;  %v12964_v40 = vadd.f32 1.0, %v17985_v32  ;;  %18006 = vpow2.f32 %v16003_v7  ;;  %v2300_v63 = vrot.slane %v24758_v33, %v20174_v38 }
 0x54b   : > { %v17989_v10 = vpop.eup %17988  ;;  %v14424_v50 = vrot.slane %v14410_v12, %v26650_v56  ;;  %v12966_v54 = vadd.f32 1.0, %v17987_v27  ;;  %18008 = vpow2.f32 %v16004_v15  ;;  %v16007_v47 = vmul.f32 -1.442695, %v8362_v30  ;;  %v8643_v27 = vpop.f32.mrb[80].mxu1 }
 0x54c   : > { %v17991_v60 = vpop.eup %17990  ;;  %18010 = vrcp.f32 %v12964_v40  ;;  %v12965_v55 = vadd.f32 1.0, %v17989_v10  ;;  %v8431_v23 = vadd.f32 %v8430_v57, %v2296_v21  ;;  %v2308_v14 = vrot.slane %v24758_v33, %v20203_v20 }
 0x54d   : > { %v17993_v44 = vpop.eup %17992  ;;  %v14425_v6 = vcombine.low %v14417_v11, %v14424_v50  ;;  %18012 = vrcp.f32 %v12966_v54  ;;  %v12967_v3 = vadd.f32 1.0, %v17991_v60  ;;  %v2312_v45 = vrot.slane %v24758_v33, %v20240_v24  ;;  %v8574_v50 = vpop.f32.mrb[81].mxu0  ;;  %v24788_v60 = vld [vmem:[%s20146_s24 + $0xa0] sm:$0xff] }
 0x54e   : > { %v17995_v9 = vpop.eup %17994  ;;  %18014 = vrcp.f32 %v12965_v55  ;;  %v12968_v53 = vadd.f32 1.0, %v17993_v44  ;;  %v16008_v35 = vmul.f32 -1.442695, %v8431_v23  ;;  %v8502_v2 = vadd.f32 %v8501_v8, %v2304_v29  ;;  %v8645_v54 = vpop.f32.mrb[81].mxu1 }
 0x54f   : > { %v17997_v36 = vpop.eup %17996  ;;  %15033 = vst [vmem:[%s21895_s7 + $0x108] sm:$0xff] %v14425_v6  ;;  %18016 = vrcp.f32 %v12967_v3  ;;  %v8433_v41 = vadd.f32 %v8432_v46, %v2300_v63  ;;  %v2320_v58 = vrot.slane %v24758_v33, %v20243_v49  ;;  %v8504_v62 = vadd.f32 %v8503_v42, %v2308_v14 }
 0x550   : > { %v17999_v0 = vpop.eup %17998  ;;  %18018 = vrcp.f32 %v12968_v53  ;;  %v2316_v43 = vrot.slane %v24758_v33, %v20246_v51  ;;  %v16010_v28 = vmul.f32 -1.442695, %v8502_v2  ;;  %v2324_v37 = vrot.slane %v24758_v33, %v20273_v19  ;;  %v8785_v2 = vpop.f32.mrb[82].mxu1 }
 0x551   : > { %v18001_v13 = vpop.eup %18000  ;;  %v14426_v61 = vcombine.low %v17995_v9, %v17999_v0  ;;  %18020 = vpow2.f32 %v16006_v17  ;;  %v16009_v15 = vmul.f32 -1.442695, %v8433_v41  ;;  %v16011_v40 = vmul.f32 -1.442695, %v8504_v62 }
 0x552   : > { %v18003_v31 = vpop.eup %18002  ;;  %v14427_v16 = vcombine.low %v17997_v36, %v18001_v13  ;;  %18022 = vpow2.f32 %v16005_v4  ;;  %v8573_v22 = vadd.f32 %v8572_v52, %v2312_v45  ;;  %v8644_v10 = vadd.f32 %v8643_v27, %v2320_v58 }
 0x553   : > { %v18005_v18 = vpop.eup %18004  ;;  %v14434_v7 = vrot.slane %v14426_v61, %v26650_v56  ;;  %v12970_v25 = vadd.f32 1.0, %v18003_v31  ;;  %18024 = vpow2.f32 %v16007_v47  ;;  %v8575_v33 = vadd.f32 %v8574_v50, %v2316_v43 }
 0x554   : > { %v18007_v34 = vpop.eup %18006  ;;  %v14441_v48 = vrot.slane %v14427_v16, %v26650_v56  ;;  %v12969_v39 = vadd.f32 1.0, %v18005_v18  ;;  %18026 = vpow2.f32 %v16008_v35  ;;  %v16012_v44 = vmul.f32 -1.442695, %v8573_v22  ;;  %v8714_v35 = vpop.f32.mrb[82].mxu0 }
 0x555   : > { %v18009_v1 = vpop.eup %18008  ;;  %18028 = vrcp.f32 %v12970_v25  ;;  %v12971_v5 = vadd.f32 1.0, %v18007_v34  ;;  %v16014_v6 = vmul.f32 -1.442695, %v8644_v10  ;;  %v8646_v9 = vadd.f32 %v8645_v54, %v2324_v37  ;;  %v8716_v18 = vpop.f32.mrb[83].mxu0 }
 0x556   : > { %v18011_v21 = vpop.eup %18010  ;;  %v14442_v32 = vcombine.low %v14434_v7, %v14441_v48  ;;  %18030 = vrcp.f32 %v12969_v39  ;;  %v12972_v12 = vadd.f32 1.0, %v18009_v1  ;;  %v2328_v57 = vrot.slane %v24788_v60, %v20152_v26  ;;  %v8787_v7 = vpop.f32.mrb[83].mxu1 }
 0x557   : > { %v18013_v11 = vpop.eup %18012  ;;  %18032 = vrcp.f32 %v12971_v5  ;;  %v2336_v8 = vrot.slane %v24788_v60, %v20171_v59  ;;  %v16013_v14 = vmul.f32 -1.442695, %v8575_v33  ;;  %v2332_v42 = vrot.slane %v24788_v60, %v20174_v38 }
 0x558   : > { %v18015_v30 = vpop.eup %18014  ;;  %15034 = vst [vmem:[%s21895_s7 + $0x110] sm:$0xff] %v14442_v32  ;;  %18034 = vrcp.f32 %v12972_v12  ;;  %v16015_v61 = vmul.f32 -1.442695, %v8646_v9  ;;  %v8715_v41 = vadd.f32 %v8714_v35, %v2328_v57  ;;  %v2340_v62 = vrot.slane %v24788_v60, %v20203_v20 }
 0x559   : > { %v18017_v55 = vpop.eup %18016  ;;  %v14443_v29 = vcombine.low %v18011_v21, %v18015_v30  ;;  %18036 = vpow2.f32 %v16010_v28  ;;  %v8786_v58 = vadd.f32 %v8785_v2, %v2336_v8  ;;  %v8717_v28 = vadd.f32 %v8716_v18, %v2332_v42 }
 0x55a   : > { %v18019_v3 = vpop.eup %18018  ;;  %v14444_v17 = vcombine.low %v18013_v11, %v18017_v55  ;;  %18038 = vpow2.f32 %v16009_v15  ;;  %v16016_v39 = vmul.f32 -1.442695, %v8715_v41  ;;  %v2344_v32 = vrot.slane %v24788_v60, %v20240_v24 }
 0x55b   : > { %v18021_v53 = vpop.eup %18020  ;;  %v14451_v4 = vrot.slane %v14443_v29, %v26650_v56  ;;  %18040 = vpow2.f32 %v16011_v40  ;;  %v16018_v43 = vmul.f32 -1.442695, %v8786_v58  ;;  %v2352_v12 = vrot.slane %v24788_v60, %v20243_v49  ;;  %v8856_v29 = vpop.f32.mrb[84].mxu0 }
 0x55c   : > { %v18023_v63 = vpop.eup %18022  ;;  %v14458_v36 = vrot.slane %v14444_v17, %v26650_v56  ;;  %v12974_v47 = vadd.f32 1.0, %v18021_v53  ;;  %18042 = vpow2.f32 %v16012_v44  ;;  %v8788_v11 = vadd.f32 %v8787_v7, %v2340_v62  ;;  %v8927_v44 = vpop.f32.mrb[84].mxu1 }
 0x55d   : > { %v18025_v23 = vpop.eup %18024  ;;  %v12973_v46 = vadd.f32 1.0, %v18023_v63  ;;  %18044 = vpow2.f32 %v16014_v6  ;;  %v2348_v10 = vrot.slane %v24788_v60, %v20246_v51  ;;  %v2356_v50 = vrot.slane %v24788_v60, %v20273_v19  ;;  %v8858_v53 = vpop.f32.mrb[85].mxu0  ;;  %v24813_v63 = vld [vmem:[%s20146_s24 + $0xa8] sm:$0xff] }
 0x55e   : > { %v18027_v0 = vpop.eup %18026  ;;  %v14459_v45 = vcombine.low %v14451_v4, %v14458_v36  ;;  %18046 = vrcp.f32 %v12974_v47  ;;  %v12975_v13 = vadd.f32 1.0, %v18025_v23  ;;  %v16017_v55 = vmul.f32 -1.442695, %v8717_v28  ;;  %v8929_v4 = vpop.f32.mrb[85].mxu1 }
 0x55f   : > { %v18029_v31 = vpop.eup %18028  ;;  %18048 = vrcp.f32 %v12973_v46  ;;  %v12976_v16 = vadd.f32 1.0, %v18027_v0  ;;  %v8857_v17 = vadd.f32 %v8856_v29, %v2344_v32  ;;  %v8928_v9 = vadd.f32 %v8927_v44, %v2352_v12 }
 0x560   : > { %v18031_v25 = vpop.eup %18030  ;;  %15035 = vst [vmem:[%s21895_s7 + $0x118] sm:$0xff] %v14459_v45  ;;  %18050 = vrcp.f32 %v12975_v13  ;;  %v16019_v8 = vmul.f32 -1.442695, %v8788_v11  ;;  %v8859_v23 = vadd.f32 %v8858_v53, %v2348_v10  ;;  %v8930_v0 = vadd.f32 %v8929_v4, %v2356_v50 }
 0x561   : > { %v18033_v34 = vpop.eup %18032  ;;  %v14460_v48 = vcombine.low %v18019_v3, %v18031_v25  ;;  %18052 = vrcp.f32 %v12976_v16  ;;  %v16020_v47 = vmul.f32 -1.442695, %v8857_v17  ;;  %v16022_v42 = vmul.f32 -1.442695, %v8928_v9 }
 0x562   : > { %v18035_v1 = vpop.eup %18034  ;;  %v14461_v5 = vcombine.low %v18029_v31, %v18033_v34  ;;  %18054 = vpow2.f32 %v16013_v14  ;;  %v2368_v31 = vrot.slane %v24813_v63, %v20171_v59  ;;  %v2364_v16 = vrot.slane %v24813_v63, %v20174_v38 }
 0x563   : > { %v18037_v37 = vpop.eup %18036  ;;  %v14468_v21 = vrot.slane %v14460_v48, %v26650_v56  ;;  %18056 = vpow2.f32 %v16015_v61  ;;  %v2360_v61 = vrot.slane %v24813_v63, %v20152_v26  ;;  %v16021_v7 = vmul.f32 -1.442695, %v8859_v23  ;;  %v8998_v48 = vpop.f32.mrb[86].mxu0 }
 0x564   : > { %v18039_v15 = vpop.eup %18038  ;;  %v14475_v52 = vrot.slane %v14461_v5, %v26650_v56  ;;  %v12978_v27 = vadd.f32 1.0, %v18037_v37  ;;  %18058 = vpow2.f32 %v16016_v39  ;;  %v16023_v34 = vmul.f32 -1.442695, %v8930_v0  ;;  %v9069_v39 = vpop.f32.mrb[86].mxu1 }
 0x565   : > { %v18041_v40 = vpop.eup %18040  ;;  %v12977_v22 = vadd.f32 1.0, %v18039_v15  ;;  %18060 = vpow2.f32 %v16018_v43  ;;  %v2372_v43 = vrot.slane %v24813_v63, %v20203_v20  ;;  %v8999_v37 = vadd.f32 %v8998_v48, %v2360_v61  ;;  %v9071_v32 = vpop.f32.mrb[87].mxu1 }
 0x566   : > { %v18043_v54 = vpop.eup %18042  ;;  %v14476_v30 = vcombine.low %v14468_v21, %v14475_v52  ;;  %18062 = vrcp.f32 %v12978_v27  ;;  %v12979_v33 = vadd.f32 1.0, %v18041_v40  ;;  %v9000_v21 = vpop.f32.mrb[87].mxu0  ;;  %v9070_v52 = vadd.f32 %v9069_v39, %v2368_v31 }
 0x567   : > { %v18045_v6 = vpop.eup %18044  ;;  %18064 = vrcp.f32 %v12977_v22  ;;  %v12980_v3 = vadd.f32 1.0, %v18043_v54  ;;  %v9001_v27 = vadd.f32 %v9000_v21, %v2364_v16  ;;  %v16024_v40 = vmul.f32 -1.442695, %v8999_v37 }
 0x568   : > { %v18047_v57 = vpop.eup %18046  ;;  %15036 = vst [vmem:[%s21895_s7 + $0x120] sm:$0xff] %v14476_v30  ;;  %18066 = vrcp.f32 %v12979_v33  ;;  %v12982_v60 = vadd.f32 1.0, %v18045_v6  ;;  %v16026_v50 = vmul.f32 -1.442695, %v9070_v52  ;;  %v9072_v54 = vadd.f32 %v9071_v32, %v2372_v43 }
 0x569   : > { %v18049_v36 = vpop.eup %18048  ;;  %18068 = vrcp.f32 %v12980_v3  ;;  %v2376_v29 = vrot.slane %v24813_v63, %v20240_v24  ;;  %v2384_v3 = vrot.slane %v24813_v63, %v20243_v49  ;;  %v2380_v17 = vrot.slane %v24813_v63, %v20246_v51 }
 0x56a   : > { %v18051_v46 = vpop.eup %18050  ;;  %v14477_v14 = vcombine.low %v18035_v1, %v18049_v36  ;;  %18070 = vrcp.f32 %v12982_v60  ;;  %v16027_v60 = vmul.f32 -1.442695, %v9072_v54  ;;  %v9211_v36 = vpop.f32.mrb[88].mxu1 }
 0x56b   : > { %v18053_v45 = vpop.eup %18052  ;;  %v14478_v13 = vcombine.low %v18047_v57, %v18051_v46  ;;  %18072 = vpow2.f32 %v16017_v55  ;;  %v16025_v55 = vmul.f32 -1.442695, %v9001_v27  ;;  %v9213_v0 = vpop.f32.mrb[89].mxu1  ;;  %v9212_v61 = vadd.f32 %v9211_v36, %v2384_v3 }
 0x56c   : > { %v18055_v35 = vpop.eup %18054  ;;  %v14485_v2 = vrot.slane %v14477_v14, %v26650_v56  ;;  %18074 = vpow2.f32 %v16019_v8  ;;  %v9140_v8 = vpop.f32.mrb[88].mxu0 }
 0x56d   : > { %v18057_v41 = vpop.eup %18056  ;;  %v14492_v58 = vrot.slane %v14478_v13, %v26650_v56  ;;  %v12981_v18 = vadd.f32 1.0, %v18055_v35  ;;  %18076 = vpow2.f32 %v16020_v47  ;;  %v9141_v14 = vadd.f32 %v9140_v8, %v2376_v29  ;;  %v9353_v52 = vpop.f32.mrb[90].mxu1 }
 0x56e   : > { %v18059_v25 = vpop.eup %18058  ;;  %v12983_v62 = vadd.f32 1.0, %v18057_v41  ;;  %18078 = vpow2.f32 %v16022_v42  ;;  %v9142_v42 = vpop.f32.mrb[89].mxu0 }
 0x56f   : > { %v18061_v1 = vpop.eup %18060  ;;  %v14493_v5 = vcombine.low %v14485_v2, %v14492_v58  ;;  %18080 = vrcp.f32 %v12981_v18  ;;  %v12984_v28 = vadd.f32 1.0, %v18059_v25  ;;  %v9143_v35 = vadd.f32 %v9142_v42, %v2380_v17  ;;  %v24835_v2 = vld [vmem:[%s20146_s24 + $0xb0] sm:$0xff] }
 0x570   : > { %v18063_v12 = vpop.eup %18062  ;;  %18082 = vrcp.f32 %v12983_v62  ;;  %v12986_v15 = vadd.f32 1.0, %v18061_v1  ;;  %v16028_v41 = vmul.f32 -1.442695, %v9141_v14  ;;  %v2388_v58 = vrot.slane %v24813_v63, %v20273_v19 }
 0x571   : > { %v18065_v11 = vpop.eup %18064  ;;  %15037 = vst [vmem:[%s21895_s7 + $0x128] sm:$0xff] %v14493_v5  ;;  %18084 = vrcp.f32 %v12984_v28  ;;  %v16030_v25 = vmul.f32 -1.442695, %v9212_v61  ;;  %v16029_v48 = vmul.f32 -1.442695, %v9143_v35  ;;  %v2392_v39 = vrot.slane %v24835_v2, %v20152_v26 }
 0x572   : > { %v18067_v22 = vpop.eup %18066  ;;  %v14494_v10 = vcombine.low %v18053_v45, %v18065_v11  ;;  %18086 = vrcp.f32 %v12986_v15  ;;  %v2400_v5 = vrot.slane %v24835_v2, %v20171_v59  ;;  %v2396_v63 = vrot.slane %v24835_v2, %v20174_v38  ;;  %v9282_v15 = vpop.f32.mrb[90].mxu0 }
 0x573   : > { %v18069_v30 = vpop.eup %18068  ;;  %v14495_v33 = vcombine.low %v18063_v12, %v18067_v22  ;;  %18088 = vpow2.f32 %v16021_v7  ;;  %v9214_v21 = vadd.f32 %v9213_v0, %v2388_v58  ;;  %v9283_v22 = vadd.f32 %v9282_v15, %v2392_v39 }
 0x574   : > { %v18071_v44 = vpop.eup %18070  ;;  %v14502_v6 = vrot.slane %v14494_v10, %v26650_v56  ;;  %18090 = vpow2.f32 %v16023_v34  ;;  %v9284_v10 = vpop.f32.mrb[91].mxu0  ;;  %v2404_v3 = vrot.slane %v24835_v2, %v20203_v20  ;;  %v2416_v36 = vrot.slane %v24835_v2, %v20243_v49 }
 0x575   : > { %v18073_v9 = vpop.eup %18072  ;;  %v14509_v53 = vrot.slane %v14495_v33, %v26650_v56  ;;  %18092 = vpow2.f32 %v16024_v40  ;;  %v9354_v33 = vadd.f32 %v9353_v52, %v2400_v5  ;;  %v2412_v14 = vrot.slane %v24835_v2, %v20246_v51  ;;  %v9424_v35 = vpop.f32.mrb[92].mxu0 }
 0x576   : > { %v18075_v4 = vpop.eup %18074  ;;  %v12985_v57 = vadd.f32 1.0, %v18073_v9  ;;  %18094 = vpow2.f32 %v16026_v50  ;;  %v9355_v50 = vpop.f32.mrb[91].mxu1 }
 0x577   : > { %v18077_v47 = vpop.eup %18076  ;;  %v14510_v23 = vcombine.low %v14502_v6, %v14509_v53  ;;  %v12987_v46 = vadd.f32 1.0, %v18075_v4  ;;  %18096 = vpow2.f32 %v16025_v55  ;;  %v9285_v55 = vadd.f32 %v9284_v10, %v2396_v63 }
 0x578   : > { %v18079_v45 = vpop.eup %18078  ;;  %18098 = vrcp.f32 %v12985_v57  ;;  %v12988_v13 = vadd.f32 1.0, %v18077_v47  ;;  %v16031_v6 = vmul.f32 -1.442695, %v9214_v21  ;;  %v16032_v53 = vmul.f32 -1.442695, %v9283_v22 }
 0x579   : > { %v18081_v31 = vpop.eup %18080  ;;  %15038 = vst [vmem:[%s21895_s7 + $0x130] sm:$0xff] %v14510_v23  ;;  %18100 = vrcp.f32 %v12987_v46  ;;  %v12990_v16 = vadd.f32 1.0, %v18079_v45  ;;  %v2408_v4 = vrot.slane %v24835_v2, %v20240_v24  ;;  %v16034_v8 = vmul.f32 -1.442695, %v9354_v33 }
 0x57a   : > { %v18083_v18 = vpop.eup %18082  ;;  %v14511_v7 = vcombine.low %v18069_v30, %v18081_v31  ;;  %18102 = vrcp.f32 %v12988_v13  ;;  %v16033_v46 = vmul.f32 -1.442695, %v9285_v55  ;;  %v9356_v45 = vadd.f32 %v9355_v50, %v2404_v3  ;;  %v9495_v31 = vpop.f32.mrb[92].mxu1 }
 0x57b   : > { %v18085_v62 = vpop.eup %18084  ;;  %v14512_v34 = vcombine.low %v18071_v44, %v18083_v18  ;;  %18104 = vrcp.f32 %v12990_v16  ;;  %v2420_v16 = vrot.slane %v24835_v2, %v20273_v19 }
 0x57c   : > { %v18087_v43 = vpop.eup %18086  ;;  %v14519_v1 = vrot.slane %v14511_v7, %v26650_v56  ;;  %18106 = vpow2.f32 %v16027_v60  ;;  %v9425_v7 = vadd.f32 %v9424_v35, %v2408_v4 }
 0x57d   : > { %v18089_v28 = vpop.eup %18088  ;;  %v14526_v37 = vrot.slane %v14512_v34, %v26650_v56  ;;  %18108 = vpow2.f32 %v16028_v41  ;;  %v24862_v41 = vld [vmem:[%s20146_s24 + $0xb8] sm:$0xff]  ;;  %v9497_v34 = vpop.f32.mrb[93].mxu1 }
 0x57e   : > { %v18091_v32 = vpop.eup %18090  ;;  %v12989_v12 = vadd.f32 1.0, %v18089_v28  ;;  %18110 = vpow2.f32 %v16030_v25  ;;  %v9496_v25 = vadd.f32 %v9495_v31, %v2416_v36  ;;  %v16035_v28 = vmul.f32 -1.442695, %v9356_v45 }
 0x57f   : > { %v18093_v27 = vpop.eup %18092  ;;  %v14527_v11 = vcombine.low %v14519_v1, %v14526_v37  ;;  %v12991_v40 = vadd.f32 1.0, %v18091_v32  ;;  %18112 = vpow2.f32 %v16029_v48  ;;  %v2424_v2 = vrot.slane %v24862_v41, %v20152_v26 }
 0x580   : > { %v18095_v54 = vpop.eup %18094  ;;  %18114 = vrcp.f32 %v12989_v12  ;;  %v12992_v30 = vadd.f32 1.0, %v18093_v27  ;;  %v16036_v32 = vmul.f32 -1.442695, %v9425_v7  ;;  %v9498_v12 = vadd.f32 %v9497_v34, %v2420_v16 }
 0x581   : > { %v18097_v29 = vpop.eup %18096  ;;  %15039 = vst [vmem:[%s21895_s7 + $0x138] sm:$0xff] %v14527_v11  ;;  %18116 = vrcp.f32 %v12991_v40  ;;  %v12994_v44 = vadd.f32 1.0, %v18095_v54  ;;  %v16038_v27 = vmul.f32 -1.442695, %v9496_v25  ;;  %v2432_v11 = vrot.slane %v24862_v41, %v20171_v59 }
 0x582   : > { %v18099_v17 = vpop.eup %18098  ;;  %18118 = vrcp.f32 %v12992_v30  ;;  %v12993_v9 = vadd.f32 1.0, %v18097_v29  ;;  %v2428_v50 = vrot.slane %v24862_v41, %v20174_v38  ;;  %v16039_v33 = vmul.f32 -1.442695, %v9498_v12 }
 0x583   : > { %v18101_v57 = vpop.eup %18100  ;;  %v14528_v60 = vcombine.low %v18085_v62, %v18099_v17  ;;  %18120 = vrcp.f32 %v12994_v44  ;;  %v9426_v62 = vpop.f32.mrb[93].mxu0  ;;  %v2436_v3 = vrot.slane %v24862_v41, %v20203_v20 }
 0x584   : > { %v18103_v47 = vpop.eup %18102  ;;  %v14529_v23 = vcombine.low %v18087_v43, %v18101_v57  ;;  %18122 = vrcp.f32 %v12993_v9  ;;  %v9427_v1 = vadd.f32 %v9426_v62, %v2412_v14  ;;  %v9566_v44 = vpop.f32.mrb[94].mxu0 }
 0x585   : > { %v18105_v42 = vpop.eup %18104  ;;  %v14536_v0 = vrot.slane %v14528_v60, %v26650_v56  ;;  %18124 = vpow2.f32 %v16031_v6  ;;  %v9637_v6 = vpop.f32.mrb[94].mxu1 }
 0x586   : > { %v18107_v13 = vpop.eup %18106  ;;  %v14543_v61 = vrot.slane %v14529_v23, %v26650_v56  ;;  %18126 = vpow2.f32 %v16032_v53  ;;  %v16037_v10 = vmul.f32 -1.442695, %v9427_v1  ;;  %v9567_v53 = vadd.f32 %v9566_v44, %v2424_v2  ;;  %v9568_v57 = vpop.f32.mrb[95].mxu0 }
 0x587   : > { %v18109_v58 = vpop.eup %18108  ;;  %v12995_v18 = vadd.f32 1.0, %v18107_v13  ;;  %18128 = vpow2.f32 %v16034_v8  ;;  %v9638_v4 = vadd.f32 %v9637_v6, %v2432_v11  ;;  %v9639_v60 = vpop.f32.mrb[95].mxu1  ;;  %v9569_v23 = vadd.f32 %v9568_v57, %v2428_v50 }
 0x588   : > { %v18111_v48 = vpop.eup %18110  ;;  %v14544_v39 = vcombine.low %v14536_v0, %v14543_v61  ;;  %v12996_v43 = vadd.f32 1.0, %v18109_v58  ;;  %18130 = vpow2.f32 %v16033_v46  ;;  %v16040_v13 = vmul.f32 -1.442695, %v9567_v53 }
 0x589   : > { %v18113_v5 = vpop.eup %18112  ;;  %18132 = vrcp.f32 %v12995_v18  ;;  %v12998_v63 = vadd.f32 1.0, %v18111_v48  ;;  %v2448_v61 = vrot.slane %v24862_v41, %v20243_v49  ;;  %v16042_v16 = vmul.f32 -1.442695, %v9638_v4 }
 0x58a   : > { %v18115_v37 = vpop.eup %18114  ;;  %15040 = vst [vmem:[%s21895_s7 + $0x140] sm:$0xff] %v14544_v39  ;;  %18134 = vrcp.f32 %v12996_v43  ;;  %v12997_v21 = vadd.f32 1.0, %v18113_v5  ;;  %v9640_v58 = vadd.f32 %v9639_v60, %v2436_v3  ;;  %v16041_v62 = vmul.f32 -1.442695, %v9569_v23  ;;  %v9708_v5 = vpop.f32.mrb[96].mxu0 }
 0x58b   : > { %v18117_v15 = vpop.eup %18116  ;;  %v14545_v52 = vcombine.low %v18103_v47, %v18115_v37  ;;  %18136 = vrcp.f32 %v12998_v63  ;;  %v2444_v39 = vrot.slane %v24862_v41, %v20246_v51  ;;  %v9779_v63 = vpop.f32.mrb[96].mxu1 }
 0x58c   : > { %v18119_v40 = vpop.eup %18118  ;;  %v14546_v22 = vcombine.low %v18105_v42, %v18117_v15  ;;  %18138 = vrcp.f32 %v12997_v21  ;;  %v2440_v42 = vrot.slane %v24862_v41, %v20240_v24  ;;  %v16043_v48 = vmul.f32 -1.442695, %v9640_v58  ;;  %v9710_v21 = vpop.f32.mrb[97].mxu0  ;;  %v24887_v15 = vld [vmem:[%s20146_s24 + $0xc0] sm:$0xff] }
 0x58d   : > { %v18121_v54 = vpop.eup %18120  ;;  %v14553_v30 = vrot.slane %v14545_v52, %v26650_v56  ;;  %18140 = vpow2.f32 %v16035_v28  ;;  %v9781_v12 = vpop.f32.mrb[97].mxu1  ;;  %v9711_v50 = vadd.f32 %v9710_v21, %v2444_v39  ;;  %v2460_v53 = vrot.slane %v24887_v15, %v20174_v38 }
 0x58e   : > { %v18123_v55 = vpop.eup %18122  ;;  %v14560_v29 = vrot.slane %v14546_v22, %v26650_v56  ;;  %18142 = vpow2.f32 %v16036_v32  ;;  %v9709_v37 = vadd.f32 %v9708_v5, %v2440_v42  ;;  %v2452_v32 = vrot.slane %v24862_v41, %v20273_v19  ;;  %v9850_v23 = vpop.f32.mrb[98].mxu0 }
 0x58f   : > { %v18125_v17 = vpop.eup %18124  ;;  %v14562_v9 = vcombine.low %v18119_v40, %v18123_v55  ;;  %18144 = vpow2.f32 %v16038_v27  ;;  %v9780_v40 = vadd.f32 %v9779_v63, %v2448_v61  ;;  %v2464_v41 = vrot.slane %v24887_v15, %v20171_v59 }
 0x590   : > { %v18127_v8 = vpop.eup %18126  ;;  %v14561_v36 = vcombine.low %v14553_v30, %v14560_v29  ;;  %v12999_v47 = vadd.f32 1.0, %v18125_v17  ;;  %18146 = vpow2.f32 %v16037_v10  ;;  %v16044_v44 = vmul.f32 -1.442695, %v9709_v37 }
 0x591   : > { %v18129_v46 = vpop.eup %18128  ;;  %v13000_v14 = vadd.f32 1.0, %v18127_v8  ;;  %18148 = vpow2.f32 %v16039_v33  ;;  %v14570_v7 = vrot.slane %v14562_v9, %v26650_v56  ;;  %v2456_v33 = vrot.slane %v24887_v15, %v20152_v26 }
 0x592   : > { %v18131_v0 = vpop.eup %18130  ;;  %15041 = vst [vmem:[%s21895_s7 + $0x148] sm:$0xff] %v14561_v36  ;;  %18150 = vrcp.f32 %v12999_v47  ;;  %v13002_v45 = vadd.f32 1.0, %v18129_v46  ;;  %v9782_v6 = vadd.f32 %v9781_v12, %v2452_v32  ;;  %v16046_v9 = vmul.f32 -1.442695, %v9780_v40  ;;  %v9921_v46 = vpop.f32.mrb[98].mxu1 }
 0x593   : > { %v18133_v35 = vpop.eup %18132  ;;  %18152 = vrcp.f32 %v13000_v14  ;;  %v13001_v31 = vadd.f32 1.0, %v18131_v0  ;;  %v16045_v8 = vmul.f32 -1.442695, %v9711_v50  ;;  %v2468_v14 = vrot.slane %v24887_v15, %v20203_v20  ;;  %v9923_v61 = vpop.f32.mrb[99].mxu1 }
 0x594   : > { %v18135_v18 = vpop.eup %18134  ;;  %v14563_v25 = vcombine.low %v18121_v54, %v18133_v35  ;;  %18154 = vrcp.f32 %v13002_v45  ;;  %v16047_v47 = vmul.f32 -1.442695, %v9782_v6  ;;  %v9851_v45 = vadd.f32 %v9850_v23, %v2456_v33 }
 0x595   : > { %v18137_v34 = vpop.eup %18136  ;;  %18156 = vrcp.f32 %v13001_v31  ;;  %v2472_v39 = vrot.slane %v24887_v15, %v20240_v24  ;;  %v2480_v63 = vrot.slane %v24887_v15, %v20243_v49  ;;  %v2476_v21 = vrot.slane %v24887_v15, %v20246_v51 }
 0x596   : > { %v18139_v43 = vpop.eup %18138  ;;  %v14577_v1 = vrot.slane %v14563_v25, %v26650_v56  ;;  %18158 = vpow2.f32 %v16040_v13  ;;  %v9852_v13 = vpop.f32.mrb[99].mxu0  ;;  %v16048_v5 = vmul.f32 -1.442695, %v9851_v45  ;;  %v2484_v50 = vrot.slane %v24887_v15, %v20273_v19 }
 0x597   : > { %v18141_v28 = vpop.eup %18140  ;;  %v14579_v2 = vcombine.low %v18135_v18, %v18139_v43  ;;  %18160 = vpow2.f32 %v16042_v16  ;;  %v9922_v16 = vadd.f32 %v9921_v46, %v2464_v41  ;;  %v9853_v25 = vadd.f32 %v9852_v13, %v2460_v53 }
 0x598   : > { %v18143_v52 = vpop.eup %18142  ;;  %v14578_v27 = vcombine.low %v14570_v7, %v14577_v1  ;;  %v13003_v11 = vadd.f32 1.0, %v18141_v28  ;;  %18162 = vpow2.f32 %v16041_v62 }
 0x599   : > { %v18145_v22 = vpop.eup %18144  ;;  %v13004_v10 = vadd.f32 1.0, %v18143_v52  ;;  %18164 = vpow2.f32 %v16043_v48  ;;  %v14587_v57 = vrot.slane %v14579_v2, %v26650_v56  ;;  %v9924_v48 = vadd.f32 %v9923_v61, %v2468_v14 }
 0x59a   : > { %v18147_v54 = vpop.eup %18146  ;;  %15042 = vst [vmem:[%s21895_s7 + $0x150] sm:$0xff] %v14578_v27  ;;  %18166 = vrcp.f32 %v13003_v11  ;;  %v13006_v30 = vadd.f32 1.0, %v18145_v22  ;;  %v16050_v37 = vmul.f32 -1.442695, %v9922_v16  ;;  %v16049_v27 = vmul.f32 -1.442695, %v9853_v25 }
 0x59b   : > { %v18149_v55 = vpop.eup %18148  ;;  %18168 = vrcp.f32 %v13004_v10  ;;  %v13005_v29 = vadd.f32 1.0, %v18147_v54  ;;  %v16051_v40 = vmul.f32 -1.442695, %v9924_v48  ;;  %v9992_v22 = vpop.f32.mrb[100].mxu0 }
 0x59c   : > { %v18151_v3 = vpop.eup %18150  ;;  %18170 = vrcp.f32 %v13006_v30  ;;  %v13007_v17 = vadd.f32 1.0, %v18149_v55  ;;  %v10063_v10 = vpop.f32.mrb[100].mxu1  ;;  %v9993_v33 = vadd.f32 %v9992_v22, %v2472_v39 }
 0x59d   : > { %v18153_v4 = vpop.eup %18152  ;;  %v14580_v60 = vcombine.low %v18137_v34, %v18151_v3  ;;  %18172 = vrcp.f32 %v13005_v29  ;;  %v9994_v41 = vpop.f32.mrb[101].mxu0  ;;  %v10064_v6 = vadd.f32 %v10063_v10, %v2480_v63 }
 0x59e   : > { %v18155_v36 = vpop.eup %18154  ;;  %18174 = vrcp.f32 %v13007_v17  ;;  %v10065_v55 = vpop.f32.mrb[101].mxu1  ;;  %v9995_v3 = vadd.f32 %v9994_v41, %v2476_v21  ;;  %v24912_v17 = vld [vmem:[%s20146_s24 + $0xc8] sm:$0xff]  ;;  %v16052_v15 = vmul.f32 -1.442695, %v9993_v33 }
 0x59f   : > { %v18157_v42 = vpop.eup %18156  ;;  %v14594_v0 = vrot.slane %v14580_v60, %v26650_v56  ;;  %18176 = vpow2.f32 %v16044_v44  ;;  %v2488_v14 = vrot.slane %v24912_v17, %v20152_v26  ;;  %v16054_v45 = vmul.f32 -1.442695, %v10064_v6  ;;  %v10205_v25 = vpop.f32.mrb[102].mxu1  ;;  %v24933_v6 = vld [vmem:[%s20146_s24 + $0xd0] sm:$0xff] }
 0x5a0   : > { %v18159_v35 = vpop.eup %18158  ;;  %v14596_v31 = vcombine.low %v18153_v4, %v18157_v42  ;;  %18178 = vpow2.f32 %v16046_v9  ;;  %v2496_v13 = vrot.slane %v24912_v17, %v20171_v59  ;;  %v16053_v16 = vmul.f32 -1.442695, %v9995_v3 }
 0x5a1   : > { %v18161_v58 = vpop.eup %18160  ;;  %v14595_v18 = vcombine.low %v14587_v57, %v14594_v0  ;;  %v13008_v7 = vadd.f32 1.0, %v18159_v35  ;;  %18180 = vpow2.f32 %v16045_v8  ;;  %v2512_v33 = vrot.slane %v24912_v17, %v20243_v49 }
 0x5a2   : > { %v18163_v62 = vpop.eup %18162  ;;  %v13010_v34 = vadd.f32 1.0, %v18161_v58  ;;  %18182 = vpow2.f32 %v16047_v47  ;;  %v14604_v12 = vrot.slane %v14596_v31, %v26650_v56 }
 0x5a3   : > { %v18165_v43 = vpop.eup %18164  ;;  %15043 = vst [vmem:[%s21895_s7 + $0x158] sm:$0xff] %v14595_v18  ;;  %18184 = vrcp.f32 %v13008_v7  ;;  %v13009_v1 = vadd.f32 1.0, %v18163_v62  ;;  %v10134_v7 = vpop.f32.mrb[102].mxu0  ;;  %v2492_v62 = vrot.slane %v24912_v17, %v20174_v38 }
 0x5a4   : > { %v18167_v28 = vpop.eup %18166  ;;  %18186 = vrcp.f32 %v13010_v34  ;;  %v13011_v2 = vadd.f32 1.0, %v18165_v43  ;;  %v10135_v48 = vadd.f32 %v10134_v7, %v2488_v14  ;;  %v10136_v39 = vpop.f32.mrb[103].mxu0  ;;  %v2500_v43 = vrot.slane %v24912_v17, %v20203_v20 }
 0x5a5   : > { %v18169_v32 = vpop.eup %18168  ;;  %v14597_v52 = vcombine.low %v18155_v36, %v18167_v28  ;;  %18188 = vrcp.f32 %v13009_v1  ;;  %v10066_v36 = vadd.f32 %v10065_v55, %v2484_v50  ;;  %v10207_v1 = vpop.f32.mrb[103].mxu1  ;;  %v2504_v28 = vrot.slane %v24912_v17, %v20240_v24 }
 0x5a6   : > { %v18171_v11 = vpop.eup %18170  ;;  %18190 = vrcp.f32 %v13011_v2  ;;  %v16056_v21 = vmul.f32 -1.442695, %v10135_v48  ;;  %v10208_v50 = vadd.f32 %v10207_v1, %v2500_v43 }
 0x5a7   : > { %v18173_v54 = vpop.eup %18172  ;;  %v14611_v30 = vrot.slane %v14597_v52, %v26650_v56  ;;  %18192 = vpow2.f32 %v16048_v5  ;;  %v16055_v18 = vmul.f32 -1.442695, %v10066_v36 }
 0x5a8   : > { %v18175_v29 = vpop.eup %18174  ;;  %v14613_v44 = vcombine.low %v18169_v32, %v18173_v54  ;;  %18194 = vpow2.f32 %v16050_v37  ;;  %v10206_v32 = vadd.f32 %v10205_v25, %v2496_v13 }
 0x5a9   : > { %v18177_v9 = vpop.eup %18176  ;;  %v14612_v53 = vcombine.low %v14604_v12, %v14611_v30  ;;  %v14614_v4 = vcombine.low %v18171_v11, %v18175_v29  ;;  %18196 = vpow2.f32 %v16049_v27  ;;  %v10137_v11 = vadd.f32 %v10136_v39, %v2492_v62 }
 0x5aa   : > { %v18179_v57 = vpop.eup %18178  ;;  %v14621_v60 = vrot.slane %v14613_v44, %v26650_v56  ;;  %v13012_v8 = vadd.f32 1.0, %v18177_v9  ;;  %18198 = vpow2.f32 %v16051_v40  ;;  %v16058_v44 = vmul.f32 -1.442695, %v10206_v32 }
 0x5ab   : > { %v18181_v47 = vpop.eup %18180  ;;  %15044 = vst [vmem:[%s21895_s7 + $0x160] sm:$0xff] %v14612_v53  ;;  %v14628_v23 = vrot.slane %v14614_v4, %v26650_v56  ;;  %v13014_v46 = vadd.f32 1.0, %v18179_v57  ;;  %18200 = vpow2.f32 %v16052_v15  ;;  %v16057_v53 = vmul.f32 -1.442695, %v10137_v11  ;;  %v10276_v4 = vpop.f32.mrb[104].mxu0 }
 0x5ac   : > { %v18183_v42 = vpop.eup %18182  ;;  %18202 = vrcp.f32 %v13012_v8  ;;  %v13013_v0 = vadd.f32 1.0, %v18181_v47  ;;  %v10347_v15 = vpop.f32.mrb[104].mxu1  ;;  %v2508_v57 = vrot.slane %v24912_v17, %v20246_v51  ;;  %v16059_v8 = vmul.f32 -1.442695, %v10208_v50 }
 0x5ad   : > { %v18185_v61 = vpop.eup %18184  ;;  %v14629_v35 = vcombine.low %v14621_v60, %v14628_v23  ;;  %18204 = vrcp.f32 %v13014_v46  ;;  %v13015_v31 = vadd.f32 1.0, %v18183_v42  ;;  %v10277_v36 = vadd.f32 %v10276_v4, %v2504_v28  ;;  %v10278_v47 = vpop.f32.mrb[105].mxu0 }
 0x5ae   : > { %v18187_v58 = vpop.eup %18186  ;;  %18206 = vrcp.f32 %v13013_v0  ;;  %v2516_v23 = vrot.slane %v24912_v17, %v20273_v19  ;;  %v10349_v46 = vpop.f32.mrb[105].mxu1  ;;  %v2520_v42 = vrot.slane %v24933_v6, %v20152_v26  ;;  %v2524_v39 = vrot.slane %v24933_v6, %v20174_v38 }
 0x5af   : > { %v18189_v34 = vpop.eup %18188  ;;  %15045 = vst [vmem:[%s21895_s7 + $0x168] sm:$0xff] %v14629_v35  ;;  %18208 = vrcp.f32 %v13015_v31  ;;  %v16060_v13 = vmul.f32 -1.442695, %v10277_v36  ;;  %v10418_v32 = vpop.f32.mrb[106].mxu0  ;;  %v2536_v4 = vrot.slane %v24933_v6, %v20240_v24 }
 0x5b0   : > { %v18191_v5 = vpop.eup %18190  ;;  %v14630_v63 = vcombine.low %v18185_v61, %v18189_v34  ;;  %18210 = vpow2.f32 %v16054_v45  ;;  %v10348_v61 = vadd.f32 %v10347_v15, %v2512_v33  ;;  %v10350_v25 = vadd.f32 %v10349_v46, %v2516_v23 }
 0x5b1   : > { %v18193_v2 = vpop.eup %18192  ;;  %v14631_v37 = vcombine.low %v18187_v58, %v18191_v5  ;;  %18212 = vpow2.f32 %v16053_v16  ;;  %v10279_v16 = vadd.f32 %v10278_v47, %v2508_v57  ;;  %v2528_v58 = vrot.slane %v24933_v6, %v20171_v59 }
 0x5b2   : > { %v18195_v12 = vpop.eup %18194  ;;  %v14638_v52 = vrot.slane %v14630_v63, %v26650_v56  ;;  %v13016_v27 = vadd.f32 1.0, %v18193_v2  ;;  %18214 = vpow2.f32 %v16055_v18  ;;  %v16062_v5 = vmul.f32 -1.442695, %v10348_v61 }
 0x5b3   : > { %v18197_v40 = vpop.eup %18196  ;;  %v14645_v22 = vrot.slane %v14631_v37, %v26650_v56  ;;  %v13018_v10 = vadd.f32 1.0, %v18195_v12  ;;  %18216 = vpow2.f32 %v16056_v21  ;;  %v2532_v63 = vrot.slane %v24933_v6, %v20203_v20  ;;  %v10489_v12 = vpop.f32.mrb[106].mxu1 }
 0x5b4   : > { %v18199_v54 = vpop.eup %18198  ;;  %18218 = vrcp.f32 %v13016_v27  ;;  %v13017_v30 = vadd.f32 1.0, %v18197_v40  ;;  %v16061_v21 = vmul.f32 -1.442695, %v10279_v16  ;;  %v16063_v27 = vmul.f32 -1.442695, %v10350_v25 }
 0x5b5   : > { %v18201_v41 = vpop.eup %18200  ;;  %v14646_v55 = vcombine.low %v14638_v52, %v14645_v22  ;;  %18220 = vrcp.f32 %v13018_v10  ;;  %v13019_v29 = vadd.f32 1.0, %v18199_v54  ;;  %v10419_v11 = vadd.f32 %v10418_v32, %v2520_v42  ;;  %v10420_v22 = vpop.f32.mrb[107].mxu0 }
 0x5b6   : > { %v18203_v3 = vpop.eup %18202  ;;  %18222 = vrcp.f32 %v13017_v30  ;;  %v13020_v9 = vadd.f32 1.0, %v18201_v41  ;;  %v10490_v40 = vadd.f32 %v10489_v12, %v2528_v58  ;;  %v10491_v10 = vpop.f32.mrb[107].mxu1  ;;  %v10421_v54 = vadd.f32 %v10420_v22, %v2524_v39 }
 0x5b7   : > { %v18205_v60 = vpop.eup %18204  ;;  %15046 = vst [vmem:[%s21895_s7 + $0x170] sm:$0xff] %v14646_v55  ;;  %18224 = vrcp.f32 %v13019_v29  ;;  %v16064_v41 = vmul.f32 -1.442695, %v10419_v11  ;;  %v2544_v15 = vrot.slane %v24933_v6, %v20243_v49  ;;  %v2540_v46 = vrot.slane %v24933_v6, %v20246_v51  ;;  %v10631_v61 = vpop.f32.mrb[108].mxu1 }
 0x5b8   : > { %v18207_v14 = vpop.eup %18206  ;;  %18226 = vrcp.f32 %v13020_v9  ;;  %v16066_v55 = vmul.f32 -1.442695, %v10490_v40  ;;  %v16065_v23 = vmul.f32 -1.442695, %v10421_v54  ;;  %v2548_v25 = vrot.slane %v24933_v6, %v20273_v19 }
 0x5b9   : > { %v18209_v0 = vpop.eup %18208  ;;  %v14647_v45 = vcombine.low %v18203_v3, %v18207_v14  ;;  %18228 = vpow2.f32 %v16058_v44  ;;  %v10492_v3 = vadd.f32 %v10491_v10, %v2532_v63  ;;  %v10632_v58 = vadd.f32 %v10631_v61, %v2544_v15 }
 0x5ba   : > { %v18211_v35 = vpop.eup %18210  ;;  %v14648_v31 = vcombine.low %v18205_v60, %v18209_v0  ;;  %18230 = vpow2.f32 %v16057_v53 }
 0x5bb   : > { %v18213_v18 = vpop.eup %18212  ;;  %v14655_v17 = vrot.slane %v14647_v45, %v26650_v56  ;;  %v13022_v7 = vadd.f32 1.0, %v18211_v35  ;;  %18232 = vpow2.f32 %v16059_v8  ;;  %v16067_v45 = vmul.f32 -1.442695, %v10492_v3 }
 0x5bc   : > { %v18215_v62 = vpop.eup %18214  ;;  %v14662_v34 = vrot.slane %v14648_v31, %v26650_v56  ;;  %v13021_v48 = vadd.f32 1.0, %v18213_v18  ;;  %18234 = vpow2.f32 %v16060_v13  ;;  %v10560_v13 = vpop.f32.mrb[108].mxu0 }
 0x5bd   : > { %v18217_v43 = vpop.eup %18216  ;;  %18236 = vrcp.f32 %v13022_v7  ;;  %v13023_v1 = vadd.f32 1.0, %v18215_v62  ;;  %v10561_v16 = vadd.f32 %v10560_v13, %v2536_v4  ;;  %v10562_v18 = vpop.f32.mrb[109].mxu0  ;;  %v24963_v62 = vld [vmem:[%s20146_s24 + $0xd8] sm:$0xff] }
 0x5be   : > { %v18219_v28 = vpop.eup %18218  ;;  %v14663_v2 = vcombine.low %v14655_v17, %v14662_v34  ;;  %18238 = vrcp.f32 %v13021_v48  ;;  %v13024_v37 = vadd.f32 1.0, %v18217_v43  ;;  %v10633_v17 = vpop.f32.mrb[109].mxu1  ;;  %v16070_v43 = vmul.f32 -1.442695, %v10632_v58 }
 0x5bf   : > { %v18221_v52 = vpop.eup %18220  ;;  %18240 = vrcp.f32 %v13023_v1  ;;  %v16068_v39 = vmul.f32 -1.442695, %v10561_v16  ;;  %v10563_v63 = vadd.f32 %v10562_v18, %v2540_v46  ;;  %v2560_v6 = vrot.slane %v24963_v62, %v20171_v59 }
 0x5c0   : > { %v18223_v50 = vpop.eup %18222  ;;  %15047 = vst [vmem:[%s21895_s7 + $0x178] sm:$0xff] %v14663_v2  ;;  %18242 = vrcp.f32 %v13024_v37  ;;  %v2552_v37 = vrot.slane %v24963_v62, %v20152_v26  ;;  %v2556_v40 = vrot.slane %v24963_v62, %v20174_v38  ;;  %v2564_v22 = vrot.slane %v24963_v62, %v20203_v20 }
 0x5c1   : > { %v18225_v30 = vpop.eup %18224  ;;  %v14664_v33 = vcombine.low %v18219_v28, %v18223_v50  ;;  %18244 = vpow2.f32 %v16062_v5 }
 0x5c2   : > { %v18227_v29 = vpop.eup %18226  ;;  %v14665_v44 = vcombine.low %v18221_v52, %v18225_v30  ;;  %18246 = vpow2.f32 %v16061_v21  ;;  %v10634_v52 = vadd.f32 %v10633_v17, %v2548_v25  ;;  %v16069_v30 = vmul.f32 -1.442695, %v10563_v63 }
 0x5c3   : > { %v18229_v9 = vpop.eup %18228  ;;  %v14672_v53 = vrot.slane %v14664_v33, %v26650_v56  ;;  %18248 = vpow2.f32 %v16063_v27  ;;  %v10702_v33 = vpop.f32.mrb[110].mxu0 }
 0x5c4   : > { %v18231_v57 = vpop.eup %18230  ;;  %v14679_v60 = vrot.slane %v14665_v44, %v26650_v56  ;;  %v13026_v8 = vadd.f32 1.0, %v18229_v9  ;;  %18250 = vpow2.f32 %v16064_v41  ;;  %v10773_v41 = vpop.f32.mrb[110].mxu1  ;;  %v10703_v44 = vadd.f32 %v10702_v33, %v2552_v37 }
 0x5c5   : > { %v18233_v36 = vpop.eup %18232  ;;  %v13025_v47 = vadd.f32 1.0, %v18231_v57  ;;  %18252 = vpow2.f32 %v16066_v55  ;;  %v10774_v3 = vadd.f32 %v10773_v41, %v2560_v6  ;;  %v10704_v9 = vpop.f32.mrb[111].mxu0  ;;  %v16071_v57 = vmul.f32 -1.442695, %v10634_v52  ;;  %v24987_v52 = vld [vmem:[%s20146_s24 + $0xe0] sm:$0xff] }
 0x5c6   : > { %v18235_v14 = vpop.eup %18234  ;;  %v14680_v42 = vcombine.low %v14672_v53, %v14679_v60  ;;  %18254 = vrcp.f32 %v13026_v8  ;;  %v13027_v0 = vadd.f32 1.0, %v18233_v36  ;;  %v10775_v53 = vpop.f32.mrb[111].mxu1  ;;  %v16072_v8 = vmul.f32 -1.442695, %v10703_v44 }
 0x5c7   : > { %v18237_v35 = vpop.eup %18236  ;;  %18256 = vrcp.f32 %v13025_v47  ;;  %v13028_v31 = vadd.f32 1.0, %v18235_v14  ;;  %v10705_v36 = vadd.f32 %v10704_v9, %v2556_v40  ;;  %v16074_v46 = vmul.f32 -1.442695, %v10774_v3 }
 0x5c8   : > { %v18239_v7 = vpop.eup %18238  ;;  %15048 = vst [vmem:[%s21895_s7 + $0x180] sm:$0xff] %v14680_v42  ;;  %18258 = vrcp.f32 %v13027_v0  ;;  %v10776_v14 = vadd.f32 %v10775_v53, %v2564_v22  ;;  %v2584_v33 = vrot.slane %v24987_v52, %v20152_v26  ;;  %v2588_v44 = vrot.slane %v24987_v52, %v20174_v38 }
 0x5c9   : > { %v18241_v34 = vpop.eup %18240  ;;  %v14681_v48 = vcombine.low %v18227_v29, %v18239_v7  ;;  %18260 = vrcp.f32 %v13028_v31  ;;  %v2572_v31 = vrot.slane %v24963_v62, %v20246_v51  ;;  %v16073_v17 = vmul.f32 -1.442695, %v10705_v36 }
 0x5ca   : > { %v18243_v1 = vpop.eup %18242  ;;  %v14682_v5 = vcombine.low %v18237_v35, %v18241_v34  ;;  %18262 = vpow2.f32 %v16065_v23  ;;  %v2576_v35 = vrot.slane %v24963_v62, %v20243_v49  ;;  %v16075_v34 = vmul.f32 -1.442695, %v10776_v14 }
 0x5cb   : > { %v18245_v28 = vpop.eup %18244  ;;  %v14689_v2 = vrot.slane %v14681_v48, %v26650_v56  ;;  %18264 = vpow2.f32 %v16067_v45  ;;  %v2568_v45 = vrot.slane %v24963_v62, %v20240_v24  ;;  %v10844_v48 = vpop.f32.mrb[112].mxu0 }
 0x5cc   : > { %v18247_v21 = vpop.eup %18246  ;;  %v14696_v32 = vrot.slane %v14682_v5, %v26650_v56  ;;  %v13030_v12 = vadd.f32 1.0, %v18245_v28  ;;  %18266 = vpow2.f32 %v16068_v39  ;;  %v10915_v39 = vpop.f32.mrb[112].mxu1 }
 0x5cd   : > { %v18249_v27 = vpop.eup %18248  ;;  %v13029_v11 = vadd.f32 1.0, %v18247_v21  ;;  %18268 = vpow2.f32 %v16070_v43  ;;  %v2580_v43 = vrot.slane %v24963_v62, %v20273_v19  ;;  %v10845_v28 = vadd.f32 %v10844_v48, %v2568_v45  ;;  %v10917_v37 = vpop.f32.mrb[113].mxu1 }
 0x5ce   : > { %v18251_v10 = vpop.eup %18250  ;;  %v14697_v50 = vcombine.low %v14689_v2, %v14696_v32  ;;  %18270 = vrcp.f32 %v13030_v12  ;;  %v13031_v54 = vadd.f32 1.0, %v18249_v27  ;;  %v10846_v2 = vpop.f32.mrb[113].mxu0  ;;  %v10916_v32 = vadd.f32 %v10915_v39, %v2576_v35 }
 0x5cf   : > { %v18253_v55 = vpop.eup %18252  ;;  %18272 = vrcp.f32 %v13029_v11  ;;  %v13032_v29 = vadd.f32 1.0, %v18251_v10  ;;  %v10847_v12 = vadd.f32 %v10846_v2, %v2572_v31  ;;  %v16076_v11 = vmul.f32 -1.442695, %v10845_v28 }
 0x5d0   : > { %v18255_v4 = vpop.eup %18254  ;;  %15049 = vst [vmem:[%s21895_s7 + $0x188] sm:$0xff] %v14697_v50  ;;  %18274 = vrcp.f32 %v13031_v54  ;;  %v13034_v15 = vadd.f32 1.0, %v18253_v55  ;;  %v16078_v22 = vmul.f32 -1.442695, %v10916_v32  ;;  %v10918_v10 = vadd.f32 %v10917_v37, %v2580_v43 }
 0x5d1   : > { %v18257_v60 = vpop.eup %18256  ;;  %18276 = vrcp.f32 %v13032_v29  ;;  %v2592_v29 = vrot.slane %v24987_v52, %v20171_v59  ;;  %v2600_v48 = vrot.slane %v24987_v52, %v20240_v24 }
 0x5d2   : > { %v18259_v47 = vpop.eup %18258  ;;  %v14698_v23 = vcombine.low %v18243_v1, %v18257_v60  ;;  %18278 = vrcp.f32 %v13034_v15  ;;  %v16079_v15 = vmul.f32 -1.442695, %v10918_v10  ;;  %v25010_v10 = vld [vmem:[%s20146_s24 + $0xe8] sm:$0xff] }
 0x5d3   : > { %v18261_v42 = vpop.eup %18260  ;;  %v14699_v0 = vcombine.low %v18255_v4, %v18259_v47  ;;  %18280 = vpow2.f32 %v16069_v30  ;;  %v16077_v30 = vmul.f32 -1.442695, %v10847_v12 }
 0x5d4   : > { %v18263_v13 = vpop.eup %18262  ;;  %v14706_v61 = vrot.slane %v14698_v23, %v26650_v56  ;;  %18282 = vpow2.f32 %v16071_v57  ;;  %v10986_v57 = vpop.f32.mrb[114].mxu0 }
 0x5d5   : > { %v18265_v16 = vpop.eup %18264  ;;  %v14713_v58 = vrot.slane %v14699_v0, %v26650_v56  ;;  %v13033_v18 = vadd.f32 1.0, %v18263_v13  ;;  %18284 = vpow2.f32 %v16072_v8  ;;  %v11057_v60 = vpop.f32.mrb[114].mxu1  ;;  %v10987_v23 = vadd.f32 %v10986_v57, %v2584_v33 }
 0x5d6   : > { %v18267_v7 = vpop.eup %18266  ;;  %v13035_v25 = vadd.f32 1.0, %v18265_v16  ;;  %18286 = vpow2.f32 %v16074_v46  ;;  %v10988_v46 = vpop.f32.mrb[115].mxu0  ;;  %v11058_v45 = vadd.f32 %v11057_v60, %v2592_v29  ;;  %v2596_v16 = vrot.slane %v24987_v52, %v20203_v20 }
 0x5d7   : > { %v18269_v1 = vpop.eup %18268  ;;  %v14714_v5 = vcombine.low %v14706_v61, %v14713_v58  ;;  %18288 = vrcp.f32 %v13033_v18  ;;  %v13036_v63 = vadd.f32 1.0, %v18267_v7  ;;  %v11059_v14 = vpop.f32.mrb[115].mxu1  ;;  %v10989_v13 = vadd.f32 %v10988_v46, %v2588_v44 }
 0x5d8   : > { %v18271_v6 = vpop.eup %18270  ;;  %18290 = vrcp.f32 %v13035_v25  ;;  %v13038_v21 = vadd.f32 1.0, %v18269_v1  ;;  %v16080_v31 = vmul.f32 -1.442695, %v10987_v23  ;;  %v2608_v1 = vrot.slane %v24987_v52, %v20243_v49 }
 0x5d9   : > { %v18273_v27 = vpop.eup %18272  ;;  %15050 = vst [vmem:[%s21895_s7 + $0x190] sm:$0xff] %v14714_v5  ;;  %18292 = vrcp.f32 %v13036_v63  ;;  %v2604_v5 = vrot.slane %v24987_v52, %v20246_v51  ;;  %v11060_v2 = vadd.f32 %v11059_v14, %v2596_v16  ;;  %v2612_v44 = vrot.slane %v24987_v52, %v20273_v19 }
 0x5da   : > { %v18275_v40 = vpop.eup %18274  ;;  %v14715_v62 = vcombine.low %v18261_v42, %v18273_v27  ;;  %18294 = vrcp.f32 %v13038_v21  ;;  %v2620_v52 = vrot.slane %v25010_v10, %v20174_v38 }
 0x5db   : > { %v18277_v50 = vpop.eup %18276  ;;  %v14716_v54 = vcombine.low %v18271_v6, %v18275_v40  ;;  %18296 = vpow2.f32 %v16073_v17  ;;  %v16082_v17 = vmul.f32 -1.442695, %v11058_v45  ;;  %v16083_v29 = vmul.f32 -1.442695, %v11060_v2 }
 0x5dc   : > { %v18279_v41 = vpop.eup %18278  ;;  %v14723_v55 = vrot.slane %v14715_v62, %v26650_v56  ;;  %18298 = vpow2.f32 %v16075_v34  ;;  %v16081_v34 = vmul.f32 -1.442695, %v10989_v13 }
 0x5dd   : > { %v18281_v3 = vpop.eup %18280  ;;  %v14730_v9 = vrot.slane %v14716_v54, %v26650_v56  ;;  %18300 = vpow2.f32 %v16076_v11  ;;  %v11199_v32 = vpop.f32.mrb[116].mxu1 }
 0x5de   : > { %v18283_v53 = vpop.eup %18282  ;;  %v13037_v4 = vadd.f32 1.0, %v18281_v3  ;;  %18302 = vpow2.f32 %v16078_v22  ;;  %v11201_v22 = vpop.f32.mrb[117].mxu1 }
 0x5df   : > { %v18285_v8 = vpop.eup %18284  ;;  %v14731_v36 = vcombine.low %v14723_v55, %v14730_v9  ;;  %v13039_v47 = vadd.f32 1.0, %v18283_v53  ;;  %18304 = vpow2.f32 %v16077_v30  ;;  %v11128_v21 = vpop.f32.mrb[116].mxu0  ;;  %v11200_v30 = vadd.f32 %v11199_v32, %v2608_v1 }
 0x5e0   : > { %v18287_v42 = vpop.eup %18286  ;;  %18306 = vrcp.f32 %v13037_v4  ;;  %v13040_v0 = vadd.f32 1.0, %v18285_v8  ;;  %v11129_v40 = vadd.f32 %v11128_v21, %v2600_v48  ;;  %v11130_v62 = vpop.f32.mrb[117].mxu0  ;;  %v2616_v4 = vrot.slane %v25010_v10, %v20152_v26 }
 0x5e1   : > { %v18289_v61 = vpop.eup %18288  ;;  %15051 = vst [vmem:[%s21895_s7 + $0x198] sm:$0xff] %v14731_v36  ;;  %18308 = vrcp.f32 %v13039_v47  ;;  %v13042_v35 = vadd.f32 1.0, %v18287_v42  ;;  %v11131_v33 = vadd.f32 %v11130_v62, %v2604_v5  ;;  %v16086_v60 = vmul.f32 -1.442695, %v11200_v30 }
 0x5e2   : > { %v18291_v58 = vpop.eup %18290  ;;  %v14732_v18 = vcombine.low %v18277_v50, %v18289_v61  ;;  %18310 = vrcp.f32 %v13040_v0  ;;  %v16084_v53 = vmul.f32 -1.442695, %v11129_v40  ;;  %v2624_v8 = vrot.slane %v25010_v10, %v20171_v59 }
 0x5e3   : > { %v18293_v7 = vpop.eup %18292  ;;  %v14733_v25 = vcombine.low %v18279_v41, %v18291_v58  ;;  %18312 = vrcp.f32 %v13042_v35  ;;  %v16085_v23 = vmul.f32 -1.442695, %v11131_v33  ;;  %v11202_v42 = vadd.f32 %v11201_v22, %v2612_v44 }
 0x5e4   : > { %v18295_v39 = vpop.eup %18294  ;;  %v14740_v43 = vrot.slane %v14732_v18, %v26650_v56  ;;  %18314 = vpow2.f32 %v16079_v15  ;;  %v2628_v35 = vrot.slane %v25010_v10, %v20203_v20  ;;  %v2636_v22 = vrot.slane %v25010_v10, %v20246_v51 }
 0x5e5   : > { %v18297_v63 = vpop.eup %18296  ;;  %v14747_v28 = vrot.slane %v14733_v25, %v26650_v56  ;;  %18316 = vpow2.f32 %v16080_v31  ;;  %v16087_v5 = vmul.f32 -1.442695, %v11202_v42  ;;  %v2644_v44 = vrot.slane %v25010_v10, %v20273_v19 }
 0x5e6   : > { %v18299_v37 = vpop.eup %18298  ;;  %v13041_v6 = vadd.f32 1.0, %v18297_v63  ;;  %18318 = vpow2.f32 %v16082_v17  ;;  %v2632_v63 = vrot.slane %v25010_v10, %v20240_v24 }
 0x5e7   : > { %v18301_v12 = vpop.eup %18300  ;;  %v14748_v27 = vcombine.low %v14740_v43, %v14747_v28  ;;  %v13043_v11 = vadd.f32 1.0, %v18299_v37  ;;  %18320 = vpow2.f32 %v16081_v34 }
 0x5e8   : > { %v18303_v50 = vpop.eup %18302  ;;  %18322 = vrcp.f32 %v13041_v6  ;;  %v13044_v54 = vadd.f32 1.0, %v18301_v12 }
 0x5e9   : > { %v18305_v41 = vpop.eup %18304  ;;  %15052 = vst [vmem:[%s21895_s7 + $0x1a0] sm:$0xff] %v14748_v27  ;;  %18324 = vrcp.f32 %v13043_v11  ;;  %v13046_v55 = vadd.f32 1.0, %v18303_v50  ;;  %v11270_v13 = vpop.f32.mrb[118].mxu0  ;;  %v2640_v27 = vrot.slane %v25010_v10, %v20243_v49 }
 0x5ea   : > { %v18307_v3 = vpop.eup %18306  ;;  %18326 = vrcp.f32 %v13044_v54  ;;  %v13045_v9 = vadd.f32 1.0, %v18305_v41  ;;  %v11341_v61 = vpop.f32.mrb[118].mxu1  ;;  %v11271_v58 = vadd.f32 %v11270_v13, %v2616_v4 }
 0x5eb   : > { %v18309_v15 = vpop.eup %18308  ;;  %v14749_v57 = vcombine.low %v18293_v7, %v18307_v3  ;;  %18328 = vrcp.f32 %v13046_v55  ;;  %v11342_v18 = vadd.f32 %v11341_v61, %v2624_v8  ;;  %v11272_v17 = vpop.f32.mrb[119].mxu0  ;;  %v25037_v3 = vld [vmem:[%s20146_s24 + $0xf0] sm:$0xff] }
 0x5ec   : > { %v18311_v36 = vpop.eup %18310  ;;  %v14750_v47 = vcombine.low %v18295_v39, %v18309_v15  ;;  %18330 = vrcp.f32 %v13045_v9  ;;  %v11343_v7 = vpop.f32.mrb[119].mxu1  ;;  %v11273_v39 = vadd.f32 %v11272_v17, %v2620_v52  ;;  %v16088_v37 = vmul.f32 -1.442695, %v11271_v58 }
 0x5ed   : > { %v18313_v46 = vpop.eup %18312  ;;  %v14757_v14 = vrot.slane %v14749_v57, %v26650_v56  ;;  %18332 = vpow2.f32 %v16083_v29  ;;  %v11344_v6 = vadd.f32 %v11343_v7, %v2628_v35  ;;  %v16090_v12 = vmul.f32 -1.442695, %v11342_v18 }
 0x5ee   : > { %v18315_v0 = vpop.eup %18314  ;;  %v14764_v45 = vrot.slane %v14750_v47, %v26650_v56  ;;  %18334 = vpow2.f32 %v16084_v53  ;;  %v16089_v62 = vmul.f32 -1.442695, %v11273_v39  ;;  %v2648_v10 = vrot.slane %v25037_v3, %v20152_v26 }
 0x5ef   : > { %v18317_v31 = vpop.eup %18316  ;;  %v13047_v16 = vadd.f32 1.0, %v18315_v0  ;;  %18336 = vpow2.f32 %v16086_v60  ;;  %v16091_v30 = vmul.f32 -1.442695, %v11344_v6 }
 0x5f0   : > { %v18319_v25 = vpop.eup %18318  ;;  %v14765_v34 = vcombine.low %v14757_v14, %v14764_v45  ;;  %v13048_v48 = vadd.f32 1.0, %v18317_v31  ;;  %18338 = vpow2.f32 %v16085_v23  ;;  %v2656_v45 = vrot.slane %v25037_v3, %v20171_v59 }
 0x5f1   : > { %v18321_v43 = vpop.eup %18320  ;;  %18340 = vrcp.f32 %v13047_v16  ;;  %v13050_v1 = vadd.f32 1.0, %v18319_v25 }
 0x5f2   : > { %v18323_v28 = vpop.eup %18322  ;;  %15053 = vst [vmem:[%s21895_s7 + $0x1a8] sm:$0xff] %v14765_v34  ;;  %18342 = vrcp.f32 %v13048_v48  ;;  %v13049_v2 = vadd.f32 1.0, %v18321_v43  ;;  %v2652_v34 = vrot.slane %v25037_v3, %v20174_v38 }
 0x5f3   : > { %v18325_v21 = vpop.eup %18324  ;;  %v14766_v32 = vcombine.low %v18311_v36, %v18323_v28  ;;  %18344 = vrcp.f32 %v13050_v1  ;;  %v11412_v55 = vpop.f32.mrb[120].mxu0 }
 0x5f4   : > { %v18327_v11 = vpop.eup %18326  ;;  %v14767_v40 = vcombine.low %v18313_v46, %v18325_v21  ;;  %18346 = vrcp.f32 %v13049_v2  ;;  %v11483_v29 = vpop.f32.mrb[120].mxu1  ;;  %v11413_v4 = vadd.f32 %v11412_v55, %v2632_v63 }
 0x5f5   : > { %v18329_v50 = vpop.eup %18328  ;;  %v14774_v54 = vrot.slane %v14766_v32, %v26650_v56  ;;  %18348 = vpow2.f32 %v16087_v5  ;;  %v11484_v15 = vadd.f32 %v11483_v29, %v2640_v27  ;;  %v11414_v57 = vpop.f32.mrb[121].mxu0 }
 0x5f6   : > { %v18331_v33 = vpop.eup %18330  ;;  %v14781_v41 = vrot.slane %v14767_v40, %v26650_v56  ;;  %18350 = vpow2.f32 %v16088_v37  ;;  %v11485_v60 = vpop.f32.mrb[121].mxu1  ;;  %v11415_v23 = vadd.f32 %v11414_v57, %v2636_v22  ;;  %v16092_v0 = vmul.f32 -1.442695, %v11413_v4 }
 0x5f7   : > { %v18333_v9 = vpop.eup %18332  ;;  %v14783_v53 = vcombine.low %v18327_v11, %v18331_v33  ;;  %18352 = vpow2.f32 %v16090_v12  ;;  %v16094_v35 = vmul.f32 -1.442695, %v11484_v15  ;;  %v11486_v31 = vadd.f32 %v11485_v60, %v2644_v44 }
 0x5f8   : > { %v18335_v8 = vpop.eup %18334  ;;  %v14782_v36 = vcombine.low %v14774_v54, %v14781_v41  ;;  %v13051_v47 = vadd.f32 1.0, %v18333_v9  ;;  %18354 = vpow2.f32 %v16089_v62  ;;  %v16093_v17 = vmul.f32 -1.442695, %v11415_v23 }
 0x5f9   : > { %v18337_v52 = vpop.eup %18336  ;;  %v13052_v46 = vadd.f32 1.0, %v18335_v8  ;;  %18356 = vpow2.f32 %v16091_v30  ;;  %v14791_v58 = vrot.slane %v14783_v53, %v26650_v56  ;;  %v16095_v25 = vmul.f32 -1.442695, %v11486_v31 }
 0x5fa   : > { %v18339_v14 = vpop.eup %18338  ;;  %15054 = vst [vmem:[%s21895_s7 + $0x1b0] sm:$0xff] %v14782_v36  ;;  %18358 = vrcp.f32 %v13051_v47  ;;  %v13054_v42 = vadd.f32 1.0, %v18337_v52  ;;  %v2660_v37 = vrot.slane %v25037_v3, %v20203_v20  ;;  %v2664_v54 = vrot.slane %v25037_v3, %v20240_v24 }
 0x5fb   : > { %v18341_v13 = vpop.eup %18340  ;;  %18360 = vrcp.f32 %v13052_v46  ;;  %v13053_v61 = vadd.f32 1.0, %v18339_v14  ;;  %v2672_v30 = vrot.slane %v25037_v3, %v20243_v49  ;;  %v2668_v4 = vrot.slane %v25037_v3, %v20246_v51 }
 0x5fc   : > { %v18343_v16 = vpop.eup %18342  ;;  %v14784_v18 = vcombine.low %v18329_v50, %v18341_v13  ;;  %18362 = vrcp.f32 %v13054_v42  ;;  %v11554_v43 = vpop.f32.mrb[122].mxu0  ;;  %v2676_v46 = vrot.slane %v25037_v3, %v20273_v19  ;;  %v25062_v13 = vld [vmem:[%s20146_s24 + $0xf8] sm:$0xff] }
 0x5fd   : > { %v18345_v7 = vpop.eup %18344  ;;  %18364 = vrcp.f32 %v13053_v61  ;;  %v11625_v1 = vpop.f32.mrb[122].mxu1  ;;  %v11555_v28 = vadd.f32 %v11554_v43, %v2648_v10 }
 0x5fe   : > { %v18347_v48 = vpop.eup %18346  ;;  %v14798_v39 = vrot.slane %v14784_v18, %v26650_v56  ;;  %18366 = vpow2.f32 %v16092_v0  ;;  %v11556_v2 = vpop.f32.mrb[123].mxu0  ;;  %v11626_v27 = vadd.f32 %v11625_v1, %v2656_v45  ;;  %v2688_v1 = vrot.slane %v25062_v13, %v20171_v59 }
 0x5ff   : > { %v18349_v5 = vpop.eup %18348  ;;  %v14800_v63 = vcombine.low %v18343_v16, %v18347_v48  ;;  %18368 = vpow2.f32 %v16094_v35  ;;  %v11627_v6 = vpop.f32.mrb[123].mxu1  ;;  %v11557_v62 = vadd.f32 %v11556_v2, %v2652_v34  ;;  %v16096_v55 = vmul.f32 -1.442695, %v11555_v28 }
 0x600   : > { %v18351_v21 = vpop.eup %18350  ;;  %v14799_v32 = vcombine.low %v14791_v58, %v14798_v39  ;;  %v13055_v12 = vadd.f32 1.0, %v18349_v5  ;;  %18370 = vpow2.f32 %v16093_v17  ;;  %v11628_v29 = vadd.f32 %v11627_v6, %v2660_v37 }
 0x601   : > { %v18353_v11 = vpop.eup %18352  ;;  %v13056_v40 = vadd.f32 1.0, %v18351_v21  ;;  %18372 = vpow2.f32 %v16095_v25  ;;  %v16098_v53 = vmul.f32 -1.442695, %v11626_v27  ;;  %v14808_v57 = vrot.slane %v14800_v63, %v26650_v56 }
 0x602   : > { %v18355_v22 = vpop.eup %18354  ;;  %15055 = vst [vmem:[%s21895_s7 + $0x1b8] sm:$0xff] %v14799_v32  ;;  %18374 = vrcp.f32 %v13055_v12  ;;  %v13058_v50 = vadd.f32 1.0, %v18353_v11  ;;  %v16097_v8 = vmul.f32 -1.442695, %v11557_v62  ;;  %v16099_v47 = vmul.f32 -1.442695, %v11628_v29 }
 0x603   : > { %v18357_v33 = vpop.eup %18356  ;;  %18376 = vrcp.f32 %v13056_v40  ;;  %v13057_v41 = vadd.f32 1.0, %v18355_v22  ;;  %v2680_v34 = vrot.slane %v25062_v13, %v20152_v26  ;;  %v2684_v2 = vrot.slane %v25062_v13, %v20174_v38 }
 0x604   : > { %v18359_v44 = vpop.eup %18358  ;;  %18378 = vrcp.f32 %v13058_v50  ;;  %v13059_v9 = vadd.f32 1.0, %v18357_v33  ;;  %v2692_v59 = vrot.slane %v25062_v13, %v20203_v20 }
 0x605   : > { %v18361_v15 = vpop.eup %18360  ;;  %v14801_v60 = vcombine.low %v18345_v7, %v18359_v44  ;;  %18380 = vrcp.f32 %v13057_v41 }
 0x606   : > { %v18363_v36 = vpop.eup %18362  ;;  %18382 = vrcp.f32 %v13059_v9 }
 0x607   : > { %v11767_v52 = vpop.f32.mrb[124].mxu1  ;;  %v18365_v10 = vpop.eup %18364  ;;  %v14815_v14 = vrot.slane %v14801_v60, %v26650_v56  ;;  %18384 = vpow2.f32 %v16096_v55 }
 0x608   : > { %v11696_v23 = vpop.f32.mrb[124].mxu0  ;;  %v11769_v45 = vpop.f32.mrb[125].mxu1  ;;  %v14817_v35 = vcombine.low %v18361_v15, %v18365_v10  ;;  %18386 = vpow2.f32 %v16098_v53  ;;  %v11768_v31 = vadd.f32 %v11767_v52, %v2672_v30 }
 0x609   : > { %v11697_v42 = vadd.f32 %v11696_v23, %v2664_v54  ;;  %v11698_v0 = vpop.f32.mrb[125].mxu0  ;;  %v18367_v61 = vpop.eup %18366  ;;  %v14816_v58 = vcombine.low %v14808_v57, %v14815_v14  ;;  %18388 = vpow2.f32 %v16097_v8  ;;  %v11770_v25 = vadd.f32 %v11769_v45, %v2676_v46 }
 0x60a   : > { %v18369_v16 = vpop.eup %18368  ;;  %v13060_v18 = vadd.f32 1.0, %v18367_v61  ;;  %v11699_v17 = vadd.f32 %v11698_v0, %v2668_v4  ;;  %18390 = vpow2.f32 %v16099_v47  ;;  %v16102_v28 = vmul.f32 -1.442695, %v11768_v31 }
 0x60b   : > { %v18371_v3 = vpop.eup %18370  ;;  %v13062_v7 = vadd.f32 1.0, %v18369_v16  ;;  %15056 = vst [vmem:[%s21895_s7 + $0x1c0] sm:$0xff] %v14816_v58  ;;  %v16100_v43 = vmul.f32 -1.442695, %v11697_v42  ;;  %v14825_v6 = vrot.slane %v14817_v35, %v26650_v56  ;;  %v16103_v12 = vmul.f32 -1.442695, %v11770_v25 }
 0x60c   : > { %v18373_v48 = vpop.eup %18372  ;;  %18392 = vrcp.f32 %v13060_v18  ;;  %v13061_v39 = vadd.f32 1.0, %v18371_v3  ;;  %v16101_v26 = vmul.f32 -1.442695, %v11699_v17  ;;  %v2704_v46 = vrot.slane %v25062_v13, %v20243_v49 }
 0x60d   : > { %v18375_v5 = vpop.eup %18374  ;;  %18394 = vrcp.f32 %v13062_v7  ;;  %v13063_v63 = vadd.f32 1.0, %v18373_v48  ;;  %v2708_v49 = vrot.slane %v25062_v13, %v20273_v19 }
 0x60e   : > { %v18377_v37 = vpop.eup %18376  ;;  %v14818_v21 = vcombine.low %v18363_v36, %v18375_v5  ;;  %18396 = vrcp.f32 %v13061_v39  ;;  %v2696_v36 = vrot.slane %v25062_v13, %v20240_v24  ;;  %v2700_v24 = vrot.slane %v25062_v13, %v20246_v51 }
 0x60f   : > { %v18379_v32 = vpop.eup %18378  ;;  %18398 = vrcp.f32 %v13063_v63 }
 0x610   : > { %v11838_v27 = vpop.f32.mrb[126].mxu0  ;;  %v11909_v11 = vpop.f32.mrb[126].mxu1  ;;  %v14832_v62 = vrot.slane %v14818_v21, %v26650_v56  ;;  %18400 = vpow2.f32 %v16100_v43 }
 0x611   : > { %v18381_v40 = vpop.eup %18380  ;;  %v11839_v22 = vadd.f32 %v11838_v27, %v2680_v34  ;;  %v11840_v38 = vpop.f32.mrb[127].mxu0  ;;  %18402 = vpow2.f32 %v16102_v28  ;;  %v11910_v33 = vadd.f32 %v11909_v11, %v2688_v1 }
 0x612   : > { %v11911_v50 = vpop.f32.mrb[127].mxu1  ;;  %v18383_v54 = vpop.eup %18382  ;;  %v14834_v30 = vcombine.low %v18377_v37, %v18381_v40  ;;  %v11841_v41 = vadd.f32 %v11840_v38, %v2684_v2  ;;  %v14833_v29 = vcombine.low %v14825_v6, %v14832_v62  ;;  %18404 = vpow2.f32 %v16101_v26 }
 0x613   : > { %v18385_v55 = vpop.eup %18384  ;;  %v14835_v44 = vcombine.low %v18379_v32, %v18383_v54  ;;  %v16104_v9 = vmul.f32 -1.442695, %v11839_v22  ;;  %18406 = vpow2.f32 %v16103_v12  ;;  %v11912_v15 = vadd.f32 %v11911_v50, %v2692_v59 }
 0x614   : > { %v18387_v53 = vpop.eup %18386  ;;  %v14842_v20 = vrot.slane %v14834_v30, %v26650_v56  ;;  %v13064_v4 = vadd.f32 1.0, %v18385_v55  ;;  %15057 = vst [vmem:[%s21895_s7 + $0x1c8] sm:$0xff] %v14833_v29  ;;  %v16106_v52 = vmul.f32 -1.442695, %v11910_v33  ;;  %v16105_v0 = vmul.f32 -1.442695, %v11841_v41 }
 0x615   : > { %v18389_v57 = vpop.eup %18388  ;;  %v14849_v60 = vrot.slane %v14835_v44, %v26650_v56  ;;  %v13066_v8 = vadd.f32 1.0, %v18387_v53  ;;  %18408 = vpow2.f32 %v16104_v9  ;;  %v16107_v61 = vmul.f32 -1.442695, %v11912_v15 }
 0x616   : > { %v18391_v47 = vpop.eup %18390  ;;  %18410 = vrcp.f32 %v13064_v4  ;;  %v13065_v23 = vadd.f32 1.0, %v18389_v57 }
 0x617   : > { %v18393_v10 = vpop.eup %18392  ;;  %v14850_v14 = vcombine.low %v14842_v20, %v14849_v60  ;;  %18412 = vrcp.f32 %v13066_v8  ;;  %v13067_v42 = vadd.f32 1.0, %v18391_v47 }
 0x618   : > { %v18395_v45 = vpop.eup %18394  ;;  %18414 = vrcp.f32 %v13065_v23  ;;  %v11980_v35 = vpop.f32.mrb[128].mxu0 }
 0x619   : > { %v12051_v31 = vpop.f32.mrb[128].mxu1  ;;  %v18397_v16 = vpop.eup %18396  ;;  %15058 = vst [vmem:[%s21895_s7 + $0x1d0] sm:$0xff] %v14850_v14  ;;  %18416 = vrcp.f32 %v13067_v42  ;;  %v11981_v58 = vadd.f32 %v11980_v35, %v2696_v36 }
 0x61a   : > { %v11982_v18 = vpop.f32.mrb[129].mxu0  ;;  %v12053_v17 = vpop.f32.mrb[129].mxu1  ;;  %v14851_v7 = vcombine.low %v18393_v10, %v18397_v16  ;;  %18418 = vpow2.f32 %v16106_v52  ;;  %v12052_v39 = vadd.f32 %v12051_v31, %v2704_v46 }
 0x61b   : > { %v18399_v3 = vpop.eup %18398  ;;  %18420 = vpow2.f32 %v16105_v0  ;;  %v16108_v48 = vmul.f32 -1.442695, %v11981_v58  ;;  %v11983_v5 = vadd.f32 %v11982_v18, %v2700_v24  ;;  %v12054_v13 = vadd.f32 %v12053_v17, %v2708_v49 }
 0x61c   : > { %v18401_v25 = vpop.eup %18400  ;;  %v14852_v34 = vcombine.low %v18395_v45, %v18399_v3  ;;  %v14859_v51 = vrot.slane %v14851_v7, %v26650_v56  ;;  %18422 = vpow2.f32 %v16107_v61  ;;  %v16110_v32 = vmul.f32 -1.442695, %v12052_v39 }
 0x61d   : > { %v18403_v43 = vpop.eup %18402  ;;  %v13068_v1 = vadd.f32 1.0, %v18401_v25  ;;  %18424 = vpow2.f32 %v16108_v48  ;;  %v16109_v27 = vmul.f32 -1.442695, %v11983_v5  ;;  %v16111_v59 = vmul.f32 -1.442695, %v12054_v13 }
 0x61e   : > { %v18405_v63 = vpop.eup %18404  ;;  %v14866_v28 = vrot.slane %v14852_v34, %v26650_v56  ;;  %v13070_v19 = vadd.f32 1.0, %v18403_v43 }
 0x61f   : > { %v18407_v2 = vpop.eup %18406  ;;  %18426 = vrcp.f32 %v13068_v1  ;;  %v13069_v37 = vadd.f32 1.0, %v18405_v63 }
 0x620   : > { %v18409_v6 = vpop.eup %18408  ;;  %v14867_v21 = vcombine.low %v14859_v51, %v14866_v28  ;;  %18428 = vrcp.f32 %v13070_v19  ;;  %v13071_v26 = vadd.f32 1.0, %v18407_v2 }
 0x621   : > { %v18411_v12 = vpop.eup %18410  ;;  %18430 = vrcp.f32 %v13069_v37  ;;  %v13072_v62 = vadd.f32 1.0, %v18409_v6 }
 0x622   : > { %v18413_v11 = vpop.eup %18412  ;;  %15059 = vst [vmem:[%s21895_s7 + $0x1d8] sm:$0xff] %v14867_v21  ;;  %18432 = vrcp.f32 %v13071_v26 }
 0x623   : > { %v18415_v40 = vpop.eup %18414  ;;  %18434 = vpow2.f32 %v16110_v32 }
 0x624   : > { %v18417_v22 = vpop.eup %18416  ;;  %v14868_v38 = vcombine.low %v18411_v12, %v18415_v40  ;;  %18436 = vpow2.f32 %v16109_v27 }
 0x625   : > { %v18419_v50 = vpop.eup %18418  ;;  %v14869_v54 = vcombine.low %v18413_v11, %v18417_v22  ;;  %18438 = vpow2.f32 %v16111_v59 }
 0x626   : > { %v18421_v30 = vpop.eup %18420  ;;  %v14876_v33 = vrot.slane %v14868_v38, %v26650_v56  ;;  %v13074_v41 = vadd.f32 1.0, %v18419_v50  ;;  %18440 = vrcp.f32 %v13072_v62 }
 0x627   : > { %v18423_v55 = vpop.eup %18422  ;;  %v14883_v29 = vrot.slane %v14869_v54, %v26650_v56  ;;  %v13073_v44 = vadd.f32 1.0, %v18421_v30 }
 0x628   : > { %v18425_v9 = vpop.eup %18424  ;;  %18442 = vrcp.f32 %v13074_v41  ;;  %v13075_v53 = vadd.f32 1.0, %v18423_v55 }
 0x629   : > { %v18427_v20 = vpop.eup %18426  ;;  %v14884_v4 = vcombine.low %v14876_v33, %v14883_v29  ;;  %18444 = vrcp.f32 %v13073_v44  ;;  %v13076_v36 = vadd.f32 1.0, %v18425_v9 }
 0x62a   : > { %v18429_v15 = vpop.eup %18428  ;;  %18446 = vrcp.f32 %v13075_v53 }
 0x62b   : > { %v18431_v57 = vpop.eup %18430  ;;  %15060 = vst [vmem:[%s21895_s7 + $0x1e0] sm:$0xff] %v14884_v4  ;;  %18448 = vrcp.f32 %v13076_v36 }
 0x62c   : > { %v18433_v60 = vpop.eup %18432  ;;  %v14885_v8 = vcombine.low %v18427_v20, %v18431_v57 }
 0x62d   : > { %v14886_v47 = vcombine.low %v18429_v15, %v18433_v60  ;;  %v18435_v23 = vpop.eup %18434 }
 0x62e   : > { %v14893_v52 = vrot.slane %v14885_v8, %v26650_v56  ;;  %v18437_v46 = vpop.eup %18436  ;;  %v13078_v14 = vadd.f32 1.0, %v18435_v23 }
 0x62f   : > { %v14900_v10 = vrot.slane %v14886_v47, %v26650_v56  ;;  %v18439_v42 = vpop.eup %18438  ;;  %v13077_v0 = vadd.f32 1.0, %v18437_v46 }
 0x630   : > { %v18441_v45 = vpop.eup %18440  ;;  %18450 = vrcp.f32 %v13078_v14  ;;  %v13079_v35 = vadd.f32 1.0, %v18439_v42 }
 0x631   : > { %v14901_v61 = vcombine.low %v14893_v52, %v14900_v10  ;;  %18452 = vrcp.f32 %v13077_v0 }
 0x632   : > { %v18443_v31 = vpop.eup %18442  ;;  %18454 = vrcp.f32 %v13079_v35 }
 0x633   : > { %v18445_v24 = vpop.eup %18444  ;;  %15061 = vst [vmem:[%s21895_s7 + $0x1e8] sm:$0xff] %v14901_v61 }
 0x634   : > { %v18447_v16 = vpop.eup %18446  ;;  %v14902_v58 = vcombine.low %v18441_v45, %v18445_v24 }
 0x635   : > { %v14903_v18 = vcombine.low %v18443_v31, %v18447_v16  ;;  %v18449_v7 = vpop.eup %18448 }
 0x636   : > { %v14910_v49 = vrot.slane %v14902_v58, %v26650_v56 }
 0x637   : > { %v14917_v17 = vrot.slane %v14903_v18, %v26650_v56 }
 0x639   : > { %v14918_v3 = vcombine.low %v14910_v49, %v14917_v17 }
 0x63a   : > { %v18451_v25 = vpop.eup %18450 }
 0x63b   : > { %15062 = vst [vmem:[%s21895_s7 + $0x1f0] sm:$0xff] %v14918_v3  ;;  %v18453_v34 = vpop.eup %18452 }
 0x63c   : > { %v18455_v48 = vpop.eup %18454  ;;  %v14919_v39 = vcombine.low %v18449_v7, %v18453_v34 }
 0x63d   : > { %v14920_v43 = vcombine.low %v18451_v25, %v18455_v48  ;;  %15070 = sbr.rel (!%p27595_p7) target bundleno = 1769 (0x6e9), region = 80 }
 0x63e   : > { %v14927_v51 = vrot.slane %v14919_v39, %v26650_v56 }
 0x63f   : > { %v14934_v1 = vrot.slane %v14920_v43, %v26650_v56 }
 0x641   : > { %v14935_v5 = vcombine.low %v14927_v51, %v14934_v1 }
 0x643   : > { %15063 = vst [vmem:[%s21895_s7 + $0x1f8] sm:$0xff] %v14935_v5 }
 0x644   : > { %s27617_s18 = smov (!%p15073_p6, %s15072_s18), 256 }
 0x645   : > { %s16114_s29 = sshll.u32 %s27617_s18, 5  ;;  %s25111_s9 = sshll.u32 %s27617_s18, 1 }
 0x646   : > { %p16118_p9 = scmp.eq.s32.totalorder %s16114_s29, 0 }
 0x647   : > { %p15083_p12 = scmp.lt.u32.totalorder (!%p16118_p9), %s25111_s9, 8 }
 0x648   : > { %15082 = sbr.rel (%p16118_p9) target bundleno = 1769 (0x6e9), region = 84 }
 0x64f   : > { %15086 = sbr.rel (%p15083_p12) target bundleno = 1760 (0x6e0), region = 88  ;;  %s25115_s12 = sand.u32 (!%p15083_p12), 7, %s25111_s9  }
 0x650   : > { %p15102_p0 = scmp.eq.s32.totalorder (!%p15083_p12), %s25115_s12, 0  ;;  %p16119_p5 = scmp.ne.s32.totalorder (!%p15083_p12), %s25115_s12, 0 }
 0x656   : > { %15105 = sbr.rel (%p16119_p5) target bundleno = 1689 (0x699), region = 103  ;;  %s15106_s28 = sshrl.u32 (!%p16119_p5), %s25111_s9, 3 }
 0x657   : > { %s25122_s30 = sshrl.u32 (!%p16119_p5), %s15106_s28, 6 }
 0x658   : > { %p16120_p2 = scmp.le.s32.totalorder (!%p16119_p5), %s25122_s30, 0 }
 0x65d   : > { %15565 = sbr.rel (%p16120_p2) target bundleno = 1669 (0x685), region = 198  ;;  %s27597_s17 = smov (!%p16120_p2), %s25109_s22 }
 0x65e   : > { %s27598_s13 = smov (!%p16120_p2), %s21895_s7  ;;  %s25131_s14 = smov (!%p16120_p2), 0  }
 0x65f   : > { %s25133_s23 = smov (!%p16120_p2), 0  }
 0x664 LB: >> { %v15119_v56 = vld [vmem:[%s18770_s13] sm:$0xff]  ;;  %v15121_v63 = vld [vmem:[%s18770_s13 + $0x8] sm:$0xff]  ;;  %v15123_v28 = vld [vmem:[%s18770_s13 + $0x10] sm:$0xff]  ;;  %s15247_s16 = sadd.s32 1, %s18774_s14  ;;  %s15113_s23 = sadd.s32 1, %s18778_s23   ;;  %s18778_s23 = sphi %s25133_s23, %s15113_s23   ;;  %s18774_s14 = sphi %s25131_s14, %s27601_s14   ;;  %s18770_s13 = sphi %s27598_s13, %s27600_s13   ;;  %s18766_s17 = sphi %s27597_s17, %s27599_s17  }
 0x665   : >> { %15120 = vst [vmem:[%s18766_s17] sm:$0xff] %v15119_v56  ;;  %15122 = vst [vmem:[%s18766_s17 + $0x8] sm:$0xff] %v15121_v63  ;;  %v15125_v19 = vld [vmem:[%s18770_s13 + $0x18] sm:$0xff]  ;;  %v15127_v13 = vld [vmem:[%s18770_s13 + $0x20] sm:$0xff]  ;;  %p15248_p8 = scmp.ge.s32.totalorder %s15247_s16, %s25122_s30  ;;  %p15112_p4 = scmp.ge.s32.totalorder %s15113_s23, %s25122_s30 }
 0x666   : >> { %15124 = vst [vmem:[%s18766_s17 + $0x10] sm:$0xff] %v15123_v28  ;;  %v15129_v2 = vld [vmem:[%s18770_s13 + $0x28] sm:$0xff]  ;;  %15126 = vst [vmem:[%s18766_s17 + $0x18] sm:$0xff] %v15125_v19  ;;  %v15131_v37 = vld [vmem:[%s18770_s13 + $0x30] sm:$0xff] }
 0x667   : >> { %15128 = vst [vmem:[%s18766_s17 + $0x20] sm:$0xff] %v15127_v13  ;;  %15130 = vst [vmem:[%s18766_s17 + $0x28] sm:$0xff] %v15129_v2  ;;  %v15133_v6 = vld [vmem:[%s18770_s13 + $0x38] sm:$0xff]  ;;  %v15135_v21 = vld [vmem:[%s18770_s13 + $0x40] sm:$0xff]  ;;  %s27619_s16 = smov (%p15248_p8, %s15247_s16), 0 }
 0x668   : >> { %15132 = vst [vmem:[%s18766_s17 + $0x30] sm:$0xff] %v15131_v37  ;;  %15134 = vst [vmem:[%s18766_s17 + $0x38] sm:$0xff] %v15133_v6  ;;  %v15137_v26 = vld [vmem:[%s18770_s13 + $0x48] sm:$0xff]  ;;  %v15139_v32 = vld [vmem:[%s18770_s13 + $0x50] sm:$0xff]  ;;  %s16121_s10 = sshll.u32 %s27619_s16, 9  ;;  %s27601_s14 = smov %s27619_s16 }
 0x669   : >> { %15136 = vst [vmem:[%s18766_s17 + $0x40] sm:$0xff] %v15135_v21  ;;  %v15141_v12 = vld [vmem:[%s18770_s13 + $0x58] sm:$0xff]  ;;  %15138 = vst [vmem:[%s18766_s17 + $0x48] sm:$0xff] %v15137_v26  ;;  %v15143_v27 = vld [vmem:[%s18770_s13 + $0x60] sm:$0xff]  ;;  %s25189_s11 = scalar_lea.vmem %s21895_s7, %s16121_s10 [#allocation13]   ;;  %s25192_s24 = scalar_lea.vmem %s25109_s22, %s16121_s10  }
 0x66a   : >> { %15140 = vst [vmem:[%s18766_s17 + $0x50] sm:$0xff] %v15139_v32  ;;  %15142 = vst [vmem:[%s18766_s17 + $0x58] sm:$0xff] %v15141_v12  ;;  %v15145_v11 = vld [vmem:[%s18770_s13 + $0x68] sm:$0xff]  ;;  %v15147_v59 = vld [vmem:[%s18770_s13 + $0x70] sm:$0xff] }
 0x66b   : >> { %15144 = vst [vmem:[%s18766_s17 + $0x60] sm:$0xff] %v15143_v27  ;;  %15146 = vst [vmem:[%s18766_s17 + $0x68] sm:$0xff] %v15145_v11  ;;  %v15149_v40 = vld [vmem:[%s18770_s13 + $0x78] sm:$0xff]  ;;  %v15151_v62 = vld [vmem:[%s18770_s13 + $0x80] sm:$0xff] }
 0x66c   : >> { %15148 = vst [vmem:[%s18766_s17 + $0x70] sm:$0xff] %v15147_v59  ;;  %v15153_v22 = vld [vmem:[%s18770_s13 + $0x88] sm:$0xff]  ;;  %15150 = vst [vmem:[%s18766_s17 + $0x78] sm:$0xff] %v15149_v40  ;;  %v15155_v38 = vld [vmem:[%s18770_s13 + $0x90] sm:$0xff] }
 0x66d   : >> { %15152 = vst [vmem:[%s18766_s17 + $0x80] sm:$0xff] %v15151_v62  ;;  %15154 = vst [vmem:[%s18766_s17 + $0x88] sm:$0xff] %v15153_v22  ;;  %v15157_v50 = vld [vmem:[%s18770_s13 + $0x98] sm:$0xff]  ;;  %v15159_v54 = vld [vmem:[%s18770_s13 + $0xa0] sm:$0xff] }
 0x66e   : >> { %15156 = vst [vmem:[%s18766_s17 + $0x90] sm:$0xff] %v15155_v38  ;;  %15158 = vst [vmem:[%s18766_s17 + $0x98] sm:$0xff] %v15157_v50  ;;  %v15161_v30 = vld [vmem:[%s18770_s13 + $0xa8] sm:$0xff]  ;;  %v15163_v33 = vld [vmem:[%s18770_s13 + $0xb0] sm:$0xff] }
 0x66f   : >> { %15160 = vst [vmem:[%s18766_s17 + $0xa0] sm:$0xff] %v15159_v54  ;;  %v15165_v41 = vld [vmem:[%s18770_s13 + $0xb8] sm:$0xff]  ;;  %15162 = vst [vmem:[%s18766_s17 + $0xa8] sm:$0xff] %v15161_v30  ;;  %v15167_v55 = vld [vmem:[%s18770_s13 + $0xc0] sm:$0xff] }
 0x670   : >> { %15164 = vst [vmem:[%s18766_s17 + $0xb0] sm:$0xff] %v15163_v33  ;;  %15166 = vst [vmem:[%s18766_s17 + $0xb8] sm:$0xff] %v15165_v41  ;;  %v15169_v29 = vld [vmem:[%s18770_s13 + $0xc8] sm:$0xff]  ;;  %v15171_v44 = vld [vmem:[%s18770_s13 + $0xd0] sm:$0xff] }
 0x671   : >> { %15168 = vst [vmem:[%s18766_s17 + $0xc0] sm:$0xff] %v15167_v55  ;;  %15170 = vst [vmem:[%s18766_s17 + $0xc8] sm:$0xff] %v15169_v29  ;;  %v15173_v9 = vld [vmem:[%s18770_s13 + $0xd8] sm:$0xff]  ;;  %v15175_v53 = vld [vmem:[%s18770_s13 + $0xe0] sm:$0xff] }
 0x672   : >> { %15172 = vst [vmem:[%s18766_s17 + $0xd0] sm:$0xff] %v15171_v44  ;;  %v15177_v20 = vld [vmem:[%s18770_s13 + $0xe8] sm:$0xff]  ;;  %15174 = vst [vmem:[%s18766_s17 + $0xd8] sm:$0xff] %v15173_v9  ;;  %v15179_v4 = vld [vmem:[%s18770_s13 + $0xf0] sm:$0xff] }
 0x673   : >> { %15176 = vst [vmem:[%s18766_s17 + $0xe0] sm:$0xff] %v15175_v53  ;;  %15178 = vst [vmem:[%s18766_s17 + $0xe8] sm:$0xff] %v15177_v20  ;;  %v15181_v15 = vld [vmem:[%s18770_s13 + $0xf8] sm:$0xff]  ;;  %v15183_v57 = vld [vmem:[%s18770_s13 + $0x100] sm:$0xff] }
 0x674   : >> { %15180 = vst [vmem:[%s18766_s17 + $0xf0] sm:$0xff] %v15179_v4  ;;  %15182 = vst [vmem:[%s18766_s17 + $0xf8] sm:$0xff] %v15181_v15  ;;  %v15185_v60 = vld [vmem:[%s18770_s13 + $0x108] sm:$0xff]  ;;  %v15187_v8 = vld [vmem:[%s18770_s13 + $0x110] sm:$0xff] }
 0x675   : >> { %15184 = vst [vmem:[%s18766_s17 + $0x100] sm:$0xff] %v15183_v57  ;;  %v15189_v36 = vld [vmem:[%s18770_s13 + $0x118] sm:$0xff]  ;;  %15186 = vst [vmem:[%s18766_s17 + $0x108] sm:$0xff] %v15185_v60  ;;  %v15191_v47 = vld [vmem:[%s18770_s13 + $0x120] sm:$0xff] }
 0x676   : >> { %15188 = vst [vmem:[%s18766_s17 + $0x110] sm:$0xff] %v15187_v8  ;;  %15190 = vst [vmem:[%s18766_s17 + $0x118] sm:$0xff] %v15189_v36  ;;  %v15193_v23 = vld [vmem:[%s18770_s13 + $0x128] sm:$0xff]  ;;  %v15195_v52 = vld [vmem:[%s18770_s13 + $0x130] sm:$0xff] }
 0x677   : >> { %15192 = vst [vmem:[%s18766_s17 + $0x120] sm:$0xff] %v15191_v47  ;;  %15194 = vst [vmem:[%s18766_s17 + $0x128] sm:$0xff] %v15193_v23  ;;  %v15197_v46 = vld [vmem:[%s18770_s13 + $0x138] sm:$0xff]  ;;  %v15199_v10 = vld [vmem:[%s18770_s13 + $0x140] sm:$0xff] }
 0x678   : >> { %15196 = vst [vmem:[%s18766_s17 + $0x130] sm:$0xff] %v15195_v52  ;;  %v15201_v14 = vld [vmem:[%s18770_s13 + $0x148] sm:$0xff]  ;;  %15198 = vst [vmem:[%s18766_s17 + $0x138] sm:$0xff] %v15197_v46  ;;  %v15203_v42 = vld [vmem:[%s18770_s13 + $0x150] sm:$0xff] }
 0x679   : >> { %15200 = vst [vmem:[%s18766_s17 + $0x140] sm:$0xff] %v15199_v10  ;;  %15202 = vst [vmem:[%s18766_s17 + $0x148] sm:$0xff] %v15201_v14  ;;  %v15205_v0 = vld [vmem:[%s18770_s13 + $0x158] sm:$0xff]  ;;  %v15207_v45 = vld [vmem:[%s18770_s13 + $0x160] sm:$0xff] }
 0x67a   : >> { %15204 = vst [vmem:[%s18766_s17 + $0x150] sm:$0xff] %v15203_v42  ;;  %15206 = vst [vmem:[%s18766_s17 + $0x158] sm:$0xff] %v15205_v0  ;;  %v15209_v61 = vld [vmem:[%s18770_s13 + $0x168] sm:$0xff]  ;;  %v15211_v35 = vld [vmem:[%s18770_s13 + $0x170] sm:$0xff] }
 0x67b   : >> { %15208 = vst [vmem:[%s18766_s17 + $0x160] sm:$0xff] %v15207_v45  ;;  %v15213_v31 = vld [vmem:[%s18770_s13 + $0x178] sm:$0xff]  ;;  %15210 = vst [vmem:[%s18766_s17 + $0x168] sm:$0xff] %v15209_v61  ;;  %v15215_v24 = vld [vmem:[%s18770_s13 + $0x180] sm:$0xff] }
 0x67c   : >> { %15212 = vst [vmem:[%s18766_s17 + $0x170] sm:$0xff] %v15211_v35  ;;  %15214 = vst [vmem:[%s18766_s17 + $0x178] sm:$0xff] %v15213_v31  ;;  %v15217_v16 = vld [vmem:[%s18770_s13 + $0x188] sm:$0xff]  ;;  %v15219_v58 = vld [vmem:[%s18770_s13 + $0x190] sm:$0xff] }
 0x67d   : >> { %15216 = vst [vmem:[%s18766_s17 + $0x180] sm:$0xff] %v15215_v24  ;;  %15218 = vst [vmem:[%s18766_s17 + $0x188] sm:$0xff] %v15217_v16  ;;  %v15221_v18 = vld [vmem:[%s18770_s13 + $0x198] sm:$0xff]  ;;  %v15223_v49 = vld [vmem:[%s18770_s13 + $0x1a0] sm:$0xff] }
 0x67e   : >> { %15220 = vst [vmem:[%s18766_s17 + $0x190] sm:$0xff] %v15219_v58  ;;  %v15225_v17 = vld [vmem:[%s18770_s13 + $0x1a8] sm:$0xff]  ;;  %15222 = vst [vmem:[%s18766_s17 + $0x198] sm:$0xff] %v15221_v18  ;;  %v15227_v3 = vld [vmem:[%s18770_s13 + $0x1b0] sm:$0xff]  ;;  %15115 = sbr.rel (!%p15112_p4) target bundleno = 1636 (0x664), region = 204 }
 0x67f   : >> { %15224 = vst [vmem:[%s18766_s17 + $0x1a0] sm:$0xff] %v15223_v49  ;;  %15226 = vst [vmem:[%s18766_s17 + $0x1a8] sm:$0xff] %v15225_v17  ;;  %v15229_v7 = vld [vmem:[%s18770_s13 + $0x1b8] sm:$0xff]  ;;  %v15231_v25 = vld [vmem:[%s18770_s13 + $0x1c0] sm:$0xff] }
 0x680   : >> { %15228 = vst [vmem:[%s18766_s17 + $0x1b0] sm:$0xff] %v15227_v3  ;;  %15230 = vst [vmem:[%s18766_s17 + $0x1b8] sm:$0xff] %v15229_v7  ;;  %v15233_v34 = vld [vmem:[%s18770_s13 + $0x1c8] sm:$0xff]  ;;  %v15235_v48 = vld [vmem:[%s18770_s13 + $0x1d0] sm:$0xff] }
 0x681   : >> { %15232 = vst [vmem:[%s18766_s17 + $0x1c0] sm:$0xff] %v15231_v25  ;;  %v15237_v39 = vld [vmem:[%s18770_s13 + $0x1d8] sm:$0xff]  ;;  %15234 = vst [vmem:[%s18766_s17 + $0x1c8] sm:$0xff] %v15233_v34  ;;  %v15239_v43 = vld [vmem:[%s18770_s13 + $0x1e0] sm:$0xff] }
 0x682   : >> { %15236 = vst [vmem:[%s18766_s17 + $0x1d0] sm:$0xff] %v15235_v48  ;;  %15238 = vst [vmem:[%s18766_s17 + $0x1d8] sm:$0xff] %v15237_v39  ;;  %v15241_v51 = vld [vmem:[%s18770_s13 + $0x1e8] sm:$0xff]  ;;  %v15243_v1 = vld [vmem:[%s18770_s13 + $0x1f0] sm:$0xff] }
 0x683   : >> { %15240 = vst [vmem:[%s18766_s17 + $0x1e0] sm:$0xff] %v15239_v43  ;;  %15242 = vst [vmem:[%s18766_s17 + $0x1e8] sm:$0xff] %v15241_v51  ;;  %v15245_v5 = vld [vmem:[%s18770_s13 + $0x1f8] sm:$0xff]  ;;  %s27600_s13 = smov %s25189_s11 }
 0x684   : >> { %15244 = vst [vmem:[%s18766_s17 + $0x1f0] sm:$0xff] %v15243_v1  ;;  %15246 = vst [vmem:[%s18766_s17 + $0x1f8] sm:$0xff] %v15245_v5  ;;  %s27599_s17 = smov %s25192_s24 }
 0x685 PF: > { %s25298_s15 = sand.u32 63, %s15106_s28   ;;  %s16146_s20 = sshll.u32 %s25122_s30, 13 }
 0x686   : > { %s15258_s19 = sshra.s32 %s16146_s20, 4  ;;  %p16126_p11 = scmp.le.s32.totalorder %s25298_s15, 0 }
 0x687   : > { %s15259_s18 = scalar_lea.vmem %s21895_s7, %s15258_s19 [#allocation13]   ;;  %s15262_s8 = scalar_lea.vmem %s25109_s22, %s15258_s19  }
 0x688   : > { %15579 = sbr.rel (%p16126_p11) target bundleno = 1689 (0x699), region = 209  ;;  %s18780_s27 = smov (!%p16126_p11), %s15262_s8  }
 0x689   : > { %s18784_s21 = smov (!%p16126_p11), %s15259_s18   ;;  %s18788_s29 = smov (!%p16126_p11), 0  }
 0x68a   : > { %s18792_s23 = smov (!%p16126_p11), 0  }
 0x68f LB: >> { %v15274_v56 = vld [vmem:[%s18786_s21] sm:$0xff]  ;;  %s15276_s28 = sadd.s32 1, %s18790_s29  ;;  %s15268_s23 = sadd.s32 1, %s18794_s23   ;;  %s18794_s23 = sphi %s18792_s23, %s15268_s23   ;;  %s18790_s29 = sphi %s18788_s29, %s18789_s29   ;;  %s18786_s21 = sphi %s18784_s21, %s15281_s21   ;;  %s18782_s27 = sphi %s18780_s27, %s15282_s27  }
 0x690   : >> { %15275 = vst [vmem:[%s18782_s27] sm:$0xff] %v15274_v56  ;;  %p15277_p1 = scmp.ge.s32.totalorder %s15276_s28, %s25298_s15  ;;  %p15267_p10 = scmp.ge.s32.totalorder %s15268_s23, %s25298_s15 }
 0x692   : >> { %s27621_s28 = smov (%p15277_p1, %s15276_s28), 0  ;;  %15270 = sbr.rel (!%p15267_p10) target bundleno = 1679 (0x68f), region = 215 }
 0x693   : >> { %s16127_s30 = sshll.u32 %s27621_s28, 3  ;;  %s18789_s29 = smov %s27621_s28  }
 0x694   : >> { %s15281_s21 = scalar_lea.vmem %s15259_s18, %s16127_s30 [#allocation13]   ;;  %s15282_s27 = scalar_lea.vmem %s15262_s8, %s16127_s30  }
 0x699 PF: > { %15285 = sbr.rel (%p15102_p0) target bundleno = 1760 (0x6e0), region = 121  ;;  %s25310_s17 = ssub.s32 (!%p15102_p0), %s25111_s9, %s25115_s12 }
 0x69a   : > { %s15291_s13 = sshrl.u32 (!%p15102_p0), %s25111_s9, 3  ;;  %s15288_s14 = scalar_lea.vmem (!%p15102_p0), %s21895_s7, %s25310_s17 [#allocation13] }
 0x69b   : > { %s15290_s16 = scalar_lea.vmem (!%p15102_p0), %s25109_s22, %s25310_s17  ;;  %s25319_s10 = sshrl.u32 (!%p15102_p0), %s15291_s13, 6 }
 0x69c   : > { %p16129_p13 = scmp.le.s32.totalorder (!%p15102_p0), %s25319_s10, 0 }
 0x6a0   : > { %15593 = sbr.rel (%p16129_p13) target bundleno = 1736 (0x6c8), region = 220  ;;  %s27602_s11 = smov (!%p16129_p13), %s25109_s22 }
 0x6a1   : > { %s27603_s24 = smov (!%p16129_p13), %s21895_s7  ;;  %s25328_s15 = smov (!%p16129_p13), 0  }
 0x6a2   : > { %s25330_s20 = smov (!%p16129_p13), 0  }
 0x6a7 LB: >> { %v15304_v63 = vld [vmem:[%s18802_s24] sm:$0xff]  ;;  %v15306_v28 = vld [vmem:[%s18802_s24 + $0x8] sm:$0xff]  ;;  %v15308_v19 = vld [vmem:[%s18802_s24 + $0x10] sm:$0xff]  ;;  %s15432_s19 = sadd.s32 1, %s18806_s15  ;;  %s15298_s20 = sadd.s32 1, %s18810_s20   ;;  %s18810_s20 = sphi %s25330_s20, %s15298_s20   ;;  %s18806_s15 = sphi %s25328_s15, %s27606_s15   ;;  %s18802_s24 = sphi %s27603_s24, %s27605_s24   ;;  %s18798_s11 = sphi %s27602_s11, %s27604_s11  }
 0x6a8   : >> { %15305 = vst [vmem:[%s18798_s11] sm:$0xff] %v15304_v63  ;;  %15307 = vst [vmem:[%s18798_s11 + $0x8] sm:$0xff] %v15306_v28  ;;  %v15310_v13 = vld [vmem:[%s18802_s24 + $0x18] sm:$0xff]  ;;  %v15312_v2 = vld [vmem:[%s18802_s24 + $0x20] sm:$0xff]  ;;  %p15433_p3 = scmp.ge.s32.totalorder %s15432_s19, %s25319_s10  ;;  %p15297_p7 = scmp.ge.s32.totalorder %s15298_s20, %s25319_s10 }
 0x6a9   : >> { %15309 = vst [vmem:[%s18798_s11 + $0x10] sm:$0xff] %v15308_v19  ;;  %v15314_v37 = vld [vmem:[%s18802_s24 + $0x28] sm:$0xff]  ;;  %15311 = vst [vmem:[%s18798_s11 + $0x18] sm:$0xff] %v15310_v13  ;;  %v15316_v6 = vld [vmem:[%s18802_s24 + $0x30] sm:$0xff] }
 0x6aa   : >> { %15313 = vst [vmem:[%s18798_s11 + $0x20] sm:$0xff] %v15312_v2  ;;  %15315 = vst [vmem:[%s18798_s11 + $0x28] sm:$0xff] %v15314_v37  ;;  %v15318_v21 = vld [vmem:[%s18802_s24 + $0x38] sm:$0xff]  ;;  %v15320_v26 = vld [vmem:[%s18802_s24 + $0x40] sm:$0xff]  ;;  %s27623_s19 = smov (%p15433_p3, %s15432_s19), 0 }
 0x6ab   : >> { %15317 = vst [vmem:[%s18798_s11 + $0x30] sm:$0xff] %v15316_v6  ;;  %15319 = vst [vmem:[%s18798_s11 + $0x38] sm:$0xff] %v15318_v21  ;;  %v15322_v32 = vld [vmem:[%s18802_s24 + $0x48] sm:$0xff]  ;;  %v15324_v12 = vld [vmem:[%s18802_s24 + $0x50] sm:$0xff]  ;;  %s16130_s18 = sshll.u32 %s27623_s19, 9  ;;  %s27606_s15 = smov %s27623_s19 }
 0x6ac   : >> { %15321 = vst [vmem:[%s18798_s11 + $0x40] sm:$0xff] %v15320_v26  ;;  %v15326_v27 = vld [vmem:[%s18802_s24 + $0x58] sm:$0xff]  ;;  %15323 = vst [vmem:[%s18798_s11 + $0x48] sm:$0xff] %v15322_v32  ;;  %v15328_v11 = vld [vmem:[%s18802_s24 + $0x60] sm:$0xff]  ;;  %s25386_s8 = scalar_lea.vmem %s21895_s7, %s16130_s18 [#allocation13]   ;;  %s25389_s27 = scalar_lea.vmem %s25109_s22, %s16130_s18  }
 0x6ad   : >> { %15325 = vst [vmem:[%s18798_s11 + $0x50] sm:$0xff] %v15324_v12  ;;  %15327 = vst [vmem:[%s18798_s11 + $0x58] sm:$0xff] %v15326_v27  ;;  %v15330_v59 = vld [vmem:[%s18802_s24 + $0x68] sm:$0xff]  ;;  %v15332_v40 = vld [vmem:[%s18802_s24 + $0x70] sm:$0xff] }
 0x6ae   : >> { %15329 = vst [vmem:[%s18798_s11 + $0x60] sm:$0xff] %v15328_v11  ;;  %15331 = vst [vmem:[%s18798_s11 + $0x68] sm:$0xff] %v15330_v59  ;;  %v15334_v62 = vld [vmem:[%s18802_s24 + $0x78] sm:$0xff]  ;;  %v15336_v22 = vld [vmem:[%s18802_s24 + $0x80] sm:$0xff] }
 0x6af   : >> { %15333 = vst [vmem:[%s18798_s11 + $0x70] sm:$0xff] %v15332_v40  ;;  %v15338_v38 = vld [vmem:[%s18802_s24 + $0x88] sm:$0xff]  ;;  %15335 = vst [vmem:[%s18798_s11 + $0x78] sm:$0xff] %v15334_v62  ;;  %v15340_v50 = vld [vmem:[%s18802_s24 + $0x90] sm:$0xff] }
 0x6b0   : >> { %15337 = vst [vmem:[%s18798_s11 + $0x80] sm:$0xff] %v15336_v22  ;;  %15339 = vst [vmem:[%s18798_s11 + $0x88] sm:$0xff] %v15338_v38  ;;  %v15342_v54 = vld [vmem:[%s18802_s24 + $0x98] sm:$0xff]  ;;  %v15344_v30 = vld [vmem:[%s18802_s24 + $0xa0] sm:$0xff] }
 0x6b1   : >> { %15341 = vst [vmem:[%s18798_s11 + $0x90] sm:$0xff] %v15340_v50  ;;  %15343 = vst [vmem:[%s18798_s11 + $0x98] sm:$0xff] %v15342_v54  ;;  %v15346_v33 = vld [vmem:[%s18802_s24 + $0xa8] sm:$0xff]  ;;  %v15348_v41 = vld [vmem:[%s18802_s24 + $0xb0] sm:$0xff] }
 0x6b2   : >> { %15345 = vst [vmem:[%s18798_s11 + $0xa0] sm:$0xff] %v15344_v30  ;;  %v15350_v55 = vld [vmem:[%s18802_s24 + $0xb8] sm:$0xff]  ;;  %15347 = vst [vmem:[%s18798_s11 + $0xa8] sm:$0xff] %v15346_v33  ;;  %v15352_v29 = vld [vmem:[%s18802_s24 + $0xc0] sm:$0xff] }
 0x6b3   : >> { %15349 = vst [vmem:[%s18798_s11 + $0xb0] sm:$0xff] %v15348_v41  ;;  %15351 = vst [vmem:[%s18798_s11 + $0xb8] sm:$0xff] %v15350_v55  ;;  %v15354_v44 = vld [vmem:[%s18802_s24 + $0xc8] sm:$0xff]  ;;  %v15356_v9 = vld [vmem:[%s18802_s24 + $0xd0] sm:$0xff] }
 0x6b4   : >> { %15353 = vst [vmem:[%s18798_s11 + $0xc0] sm:$0xff] %v15352_v29  ;;  %15355 = vst [vmem:[%s18798_s11 + $0xc8] sm:$0xff] %v15354_v44  ;;  %v15358_v53 = vld [vmem:[%s18802_s24 + $0xd8] sm:$0xff]  ;;  %v15360_v20 = vld [vmem:[%s18802_s24 + $0xe0] sm:$0xff] }
 0x6b5   : >> { %15357 = vst [vmem:[%s18798_s11 + $0xd0] sm:$0xff] %v15356_v9  ;;  %v15362_v4 = vld [vmem:[%s18802_s24 + $0xe8] sm:$0xff]  ;;  %15359 = vst [vmem:[%s18798_s11 + $0xd8] sm:$0xff] %v15358_v53  ;;  %v15364_v15 = vld [vmem:[%s18802_s24 + $0xf0] sm:$0xff] }
 0x6b6   : >> { %15361 = vst [vmem:[%s18798_s11 + $0xe0] sm:$0xff] %v15360_v20  ;;  %15363 = vst [vmem:[%s18798_s11 + $0xe8] sm:$0xff] %v15362_v4  ;;  %v15366_v57 = vld [vmem:[%s18802_s24 + $0xf8] sm:$0xff]  ;;  %v15368_v60 = vld [vmem:[%s18802_s24 + $0x100] sm:$0xff] }
 0x6b7   : >> { %15365 = vst [vmem:[%s18798_s11 + $0xf0] sm:$0xff] %v15364_v15  ;;  %15367 = vst [vmem:[%s18798_s11 + $0xf8] sm:$0xff] %v15366_v57  ;;  %v15370_v8 = vld [vmem:[%s18802_s24 + $0x108] sm:$0xff]  ;;  %v15372_v36 = vld [vmem:[%s18802_s24 + $0x110] sm:$0xff] }
 0x6b8   : >> { %15369 = vst [vmem:[%s18798_s11 + $0x100] sm:$0xff] %v15368_v60  ;;  %v15374_v47 = vld [vmem:[%s18802_s24 + $0x118] sm:$0xff]  ;;  %15371 = vst [vmem:[%s18798_s11 + $0x108] sm:$0xff] %v15370_v8  ;;  %v15376_v23 = vld [vmem:[%s18802_s24 + $0x120] sm:$0xff] }
 0x6b9   : >> { %15373 = vst [vmem:[%s18798_s11 + $0x110] sm:$0xff] %v15372_v36  ;;  %15375 = vst [vmem:[%s18798_s11 + $0x118] sm:$0xff] %v15374_v47  ;;  %v15378_v52 = vld [vmem:[%s18802_s24 + $0x128] sm:$0xff]  ;;  %v15380_v46 = vld [vmem:[%s18802_s24 + $0x130] sm:$0xff] }
 0x6ba   : >> { %15377 = vst [vmem:[%s18798_s11 + $0x120] sm:$0xff] %v15376_v23  ;;  %15379 = vst [vmem:[%s18798_s11 + $0x128] sm:$0xff] %v15378_v52  ;;  %v15382_v10 = vld [vmem:[%s18802_s24 + $0x138] sm:$0xff]  ;;  %v15384_v14 = vld [vmem:[%s18802_s24 + $0x140] sm:$0xff] }
 0x6bb   : >> { %15381 = vst [vmem:[%s18798_s11 + $0x130] sm:$0xff] %v15380_v46  ;;  %v15386_v42 = vld [vmem:[%s18802_s24 + $0x148] sm:$0xff]  ;;  %15383 = vst [vmem:[%s18798_s11 + $0x138] sm:$0xff] %v15382_v10  ;;  %v15388_v0 = vld [vmem:[%s18802_s24 + $0x150] sm:$0xff] }
 0x6bc   : >> { %15385 = vst [vmem:[%s18798_s11 + $0x140] sm:$0xff] %v15384_v14  ;;  %15387 = vst [vmem:[%s18798_s11 + $0x148] sm:$0xff] %v15386_v42  ;;  %v15390_v45 = vld [vmem:[%s18802_s24 + $0x158] sm:$0xff]  ;;  %v15392_v61 = vld [vmem:[%s18802_s24 + $0x160] sm:$0xff] }
 0x6bd   : >> { %15389 = vst [vmem:[%s18798_s11 + $0x150] sm:$0xff] %v15388_v0  ;;  %15391 = vst [vmem:[%s18798_s11 + $0x158] sm:$0xff] %v15390_v45  ;;  %v15394_v35 = vld [vmem:[%s18802_s24 + $0x168] sm:$0xff]  ;;  %v15396_v31 = vld [vmem:[%s18802_s24 + $0x170] sm:$0xff] }
 0x6be   : >> { %15393 = vst [vmem:[%s18798_s11 + $0x160] sm:$0xff] %v15392_v61  ;;  %v15398_v24 = vld [vmem:[%s18802_s24 + $0x178] sm:$0xff]  ;;  %15395 = vst [vmem:[%s18798_s11 + $0x168] sm:$0xff] %v15394_v35  ;;  %v15400_v16 = vld [vmem:[%s18802_s24 + $0x180] sm:$0xff] }
 0x6bf   : >> { %15397 = vst [vmem:[%s18798_s11 + $0x170] sm:$0xff] %v15396_v31  ;;  %15399 = vst [vmem:[%s18798_s11 + $0x178] sm:$0xff] %v15398_v24  ;;  %v15402_v58 = vld [vmem:[%s18802_s24 + $0x188] sm:$0xff]  ;;  %v15404_v18 = vld [vmem:[%s18802_s24 + $0x190] sm:$0xff] }
 0x6c0   : >> { %15401 = vst [vmem:[%s18798_s11 + $0x180] sm:$0xff] %v15400_v16  ;;  %15403 = vst [vmem:[%s18798_s11 + $0x188] sm:$0xff] %v15402_v58  ;;  %v15406_v49 = vld [vmem:[%s18802_s24 + $0x198] sm:$0xff]  ;;  %v15408_v17 = vld [vmem:[%s18802_s24 + $0x1a0] sm:$0xff] }
 0x6c1   : >> { %15405 = vst [vmem:[%s18798_s11 + $0x190] sm:$0xff] %v15404_v18  ;;  %v15410_v3 = vld [vmem:[%s18802_s24 + $0x1a8] sm:$0xff]  ;;  %15407 = vst [vmem:[%s18798_s11 + $0x198] sm:$0xff] %v15406_v49  ;;  %v15412_v7 = vld [vmem:[%s18802_s24 + $0x1b0] sm:$0xff]  ;;  %15300 = sbr.rel (!%p15297_p7) target bundleno = 1703 (0x6a7), region = 226 }
 0x6c2   : >> { %15409 = vst [vmem:[%s18798_s11 + $0x1a0] sm:$0xff] %v15408_v17  ;;  %15411 = vst [vmem:[%s18798_s11 + $0x1a8] sm:$0xff] %v15410_v3  ;;  %v15414_v25 = vld [vmem:[%s18802_s24 + $0x1b8] sm:$0xff]  ;;  %v15416_v34 = vld [vmem:[%s18802_s24 + $0x1c0] sm:$0xff] }
 0x6c3   : >> { %15413 = vst [vmem:[%s18798_s11 + $0x1b0] sm:$0xff] %v15412_v7  ;;  %15415 = vst [vmem:[%s18798_s11 + $0x1b8] sm:$0xff] %v15414_v25  ;;  %v15418_v48 = vld [vmem:[%s18802_s24 + $0x1c8] sm:$0xff]  ;;  %v15420_v39 = vld [vmem:[%s18802_s24 + $0x1d0] sm:$0xff] }
 0x6c4   : >> { %15417 = vst [vmem:[%s18798_s11 + $0x1c0] sm:$0xff] %v15416_v34  ;;  %v15422_v43 = vld [vmem:[%s18802_s24 + $0x1d8] sm:$0xff]  ;;  %15419 = vst [vmem:[%s18798_s11 + $0x1c8] sm:$0xff] %v15418_v48  ;;  %v15424_v51 = vld [vmem:[%s18802_s24 + $0x1e0] sm:$0xff] }
 0x6c5   : >> { %15421 = vst [vmem:[%s18798_s11 + $0x1d0] sm:$0xff] %v15420_v39  ;;  %15423 = vst [vmem:[%s18798_s11 + $0x1d8] sm:$0xff] %v15422_v43  ;;  %v15426_v1 = vld [vmem:[%s18802_s24 + $0x1e8] sm:$0xff]  ;;  %v15428_v5 = vld [vmem:[%s18802_s24 + $0x1f0] sm:$0xff] }
 0x6c6   : >> { %15425 = vst [vmem:[%s18798_s11 + $0x1e0] sm:$0xff] %v15424_v51  ;;  %15427 = vst [vmem:[%s18798_s11 + $0x1e8] sm:$0xff] %v15426_v1  ;;  %v15430_v56 = vld [vmem:[%s18802_s24 + $0x1f8] sm:$0xff]  ;;  %s27605_s24 = smov %s25386_s8 }
 0x6c7   : >> { %15429 = vst [vmem:[%s18798_s11 + $0x1f0] sm:$0xff] %v15428_v5  ;;  %15431 = vst [vmem:[%s18798_s11 + $0x1f8] sm:$0xff] %v15430_v56  ;;  %s27604_s11 = smov %s25389_s27 }
 0x6c8 PF: > { %s25495_s21 = sand.u32 63, %s15291_s13   ;;  %s16148_s29 = sshll.u32 %s25319_s10, 13 }
 0x6c9   : > { %s15443_s23 = sshra.s32 %s16148_s29, 4  ;;  %p16135_p6 = scmp.le.s32.totalorder %s25495_s21, 0 }
 0x6ca   : > { %s15444_s28 = scalar_lea.vmem %s21895_s7, %s15443_s23 [#allocation13]   ;;  %s15447_s30 = scalar_lea.vmem %s25109_s22, %s15443_s23  }
 0x6cb   : > { %15607 = sbr.rel (%p16135_p6) target bundleno = 1756 (0x6dc), region = 231  ;;  %s18812_s18 = smov (!%p16135_p6), %s15447_s30  }
 0x6cc   : > { %s18816_s19 = smov (!%p16135_p6), %s15444_s28   ;;  %s18820_s8 = smov (!%p16135_p6), 0  }
 0x6cd   : > { %s18824_s20 = smov (!%p16135_p6), 0  }
 0x6d2 LB: >> { %v15459_v63 = vld [vmem:[%s18818_s19] sm:$0xff]  ;;  %s15461_s13 = sadd.s32 1, %s18822_s8  ;;  %s15453_s20 = sadd.s32 1, %s18826_s20   ;;  %s18826_s20 = sphi %s18824_s20, %s15453_s20   ;;  %s18822_s8 = sphi %s18820_s8, %s18821_s8   ;;  %s18818_s19 = sphi %s18816_s19, %s15466_s19   ;;  %s18814_s18 = sphi %s18812_s18, %s15467_s18  }
 0x6d3   : >> { %15460 = vst [vmem:[%s18814_s18] sm:$0xff] %v15459_v63  ;;  %p15462_p9 = scmp.ge.s32.totalorder %s15461_s13, %s25495_s21  ;;  %p15452_p12 = scmp.ge.s32.totalorder %s15453_s20, %s25495_s21 }
 0x6d5   : >> { %s27625_s13 = smov (%p15462_p9, %s15461_s13), 0  ;;  %15455 = sbr.rel (!%p15452_p12) target bundleno = 1746 (0x6d2), region = 237 }
 0x6d6   : >> { %s16136_s10 = sshll.u32 %s27625_s13, 3  ;;  %s18821_s8 = smov %s27625_s13  }
 0x6d7   : >> { %s15466_s19 = scalar_lea.vmem %s15444_s28, %s16136_s10 [#allocation13]   ;;  %s15467_s18 = scalar_lea.vmem %s15447_s30, %s16136_s10  }
 0x6dc PF: > { %s18843_s11 = smov 0  }
 0x6dd   : > { %s15468_s24 = sshllo.u32 %s18843_s11, %s25115_s12 }
 0x6de   : > { %v15477_v28 = vld [vmem:[%s15288_s14] sm:%s15468_s24] }
 0x6df   : > { %15478 = vst [vmem:[%s15290_s16] sm:%s15468_s24] %v15477_v28 }
 0x6e0 PF: > { %p16138_p0 = scmp.ge.u32.totalorder %s25111_s9, 8 }
 0x6e1   : > { %s18844_s15 = smov (!%p16138_p0), 0  }
 0x6e2   : > { %15089 = sbr.rel (%p16138_p0) target bundleno = 1769 (0x6e9), region = 92  ;;  %s15090_s27 = sshllo.u32 (!%p16138_p0), %s18844_s15, %s25111_s9 }
 0x6e3   : > { %v15099_v19 = vld [vmem:[%s21895_s7] sm:%s15090_s27] (!%p16138_p0) }
 0x6e4   : > { %15100 = vst [vmem:[%s25109_s22] sm:%s15090_s27] (!%p16138_p0), %v15099_v19 }
 0x6e9 PF: > { %s27607_s27 = sld [smem:[#allocation18_spill]]  ;;  %s27608_s12 = sld [smem:[#allocation19_spill]] }
 0x6ea   : > { %s27609_s24 = smov %s18754_s25  ;;  %s27610_s25 = smov %s18758_s26 }
 0x6ef   : > { %p20_p5 = scmp.ge.s32.totalorder %s27607_s27, 12   ;;  %s27611_s26 = smov %s27608_s12 }
 0x6f1   :  { %22 = sbr.rel (!%p20_p5) target bundleno = 8 (0x8), region = 248 }
 0x6f8   :  { %15492 = vsyncpa [#allocation3], 1 }
 0x6f9   :  { %15494 = vsyncpa [#allocation3 + $0x1], 1 }
 0x6fa   :  { %15495 = vsyncpa [#allocation5], 1 }
 0x6fb   :  { %15496 = vsyncpa [#allocation8], 1 }
 0x6fc   :  { %15497 = vsyncpa [#allocation11], 1 }
 0x6fd   :  { %15499 = vsyncpa [#allocation11 + $0x1], 1 }

</bundles_post_ra>
